<compile_context>
chip_gen: v6e
topology: v6e:2x2x1
jax: 0.10.0
libtpu: 0.0.40
codegen_flags: <defaults>
</compile_context>

<pallas_src>
import functools

import jax
import jax.numpy as jnp
import numpy as np
from jax import lax
from jax.experimental import pallas as pl
from jax.experimental.pallas import tpu as pltpu

EPS = 1e-5            # BatchNorm2d default eps
LANE = 128            # TPU lane width


# ---------------------------------------------------------------------------
# Generation-aware VMEM budget
# ---------------------------------------------------------------------------
def _vmem_capacity_bytes():
    try:
        return int(pltpu.get_tpu_info().vmem_capacity_bytes)
    except Exception:
        return 64 * 1024 * 1024            # conservative fallback (v7x-sized)


def _vmem_limit_bytes():
    # ~25% headroom: ~48 MiB on v7x (64 MiB part), ~96 MiB on v5e/v6e (128 MiB).
    return int(min(_vmem_capacity_bytes() * 3 // 4, 112 * 1024 * 1024))


# ---------------------------------------------------------------------------
# In-kernel helpers
# ---------------------------------------------------------------------------
def _fill_reflect_tile(src_ref, ptile_ref, prep, *, tile_h, img_h, img_w):
    """Build the ReflectionPad2d(1)'d (tile_h+2, W+2) row tile in VMEM from the
    unpadded source slab, applying `prep` (cast / BN+ReLU) on the way in."""
    i = pl.program_id(0)
    r0 = i * tile_h
    if tile_h % 8 == 0:                       # static; aligned hint when valid
        r0 = pl.multiple_of(r0, 8)
    top = jnp.where(i == 0, 1, r0 - 1)                        # reflect row -1 -> 1
    bot = jnp.where(i == pl.num_programs(0) - 1, img_h - 2, r0 + tile_h)

    ptile_ref[:, 1:tile_h + 1, 1:img_w + 1, :] = prep(
        src_ref[:, pl.ds(r0, tile_h), :, :])
    ptile_ref[:, 0:1, 1:img_w + 1, :] = prep(src_ref[:, pl.ds(top, 1), :, :])
    ptile_ref[:, tile_h + 1:tile_h + 2, 1:img_w + 1, :] = prep(
        src_ref[:, pl.ds(bot, 1), :, :])

    # Reflect the two W columns (pad=1 reflection is separable; corners come
    # out right because the rows above were already reflected).
    ptile_ref[:, :, 0:1, :] = ptile_ref[:, :, 2:3, :]
    ptile_ref[:, :, img_w + 1:img_w + 2, :] = ptile_ref[:, :, img_w - 1:img_w, :]


def _conv_core(ptile_ref, patch_ref, w_ref, *, tile_h, img_w):
    """9-tap im2col written straight into the VMEM patches scratch, then one
    long-K MXU matmul: (rows, 9*Cp) x (9*Cp, Cp) -> f32."""
    n, _, _, cp = ptile_ref.shape
    rows = n * tile_h * img_w
    k = 0
    for dy in range(3):
        for dx in range(3):
            tap = ptile_ref[:, dy:dy + tile_h, dx:dx + img_w, :]
            patch_ref[:, k * cp:(k + 1) * cp] = tap.reshape(rows, cp)
            k += 1
    return jnp.dot(patch_ref[...], w_ref[...], preferred_element_type=jnp.float32)


def _write_tile_outputs(y, conv_ref, stats_ref):
    conv_ref[...] = y.reshape(conv_ref.shape).astype(conv_ref.dtype)
    s = jnp.sum(y, axis=0, keepdims=True)          # f32 partial sums for BN
    q = jnp.sum(y * y, axis=0, keepdims=True)
    stats_ref[...] = jnp.concatenate([s, q], axis=0).reshape(stats_ref.shape)


# ---------------------------------------------------------------------------
# Pallas kernels
# ---------------------------------------------------------------------------
def _conv1_kernel(x_ref, w_ref, conv_ref, stats_ref, ptile_ref, patch_ref, *,
                  tile_h, img_h, img_w):
    """RefPad -> Conv1 row tile; the f32->bf16 cast is fused into the fill."""
    prep = lambda v: v.astype(jnp.bfloat16)
    _fill_reflect_tile(x_ref, ptile_ref, prep,
                       tile_h=tile_h, img_h=img_h, img_w=img_w)
    y = _conv_core(ptile_ref, patch_ref, w_ref, tile_h=tile_h, img_w=img_w)
    _write_tile_outputs(y, conv_ref, stats_ref)


def _conv2_kernel(h_ref, w_ref, scale_ref, shift_ref, conv_ref, stats_ref,
                  ptile_ref, patch_ref, *, tile_h, img_h, img_w):
    """BN1 (global stats) + ReLU fused into the halo fill, then RefPad->Conv2."""
    cp = h_ref.shape[-1]
    scale = scale_ref[...].reshape(1, 1, 1, cp)     # hoisted broadcasts
    shift = shift_ref[...].reshape(1, 1, 1, cp)

    def prep(v):
        v = v.astype(jnp.float32) * scale + shift
        return jnp.maximum(v, 0.0).astype(jnp.bfloat16)

    _fill_reflect_tile(h_ref, ptile_ref, prep,
                       tile_h=tile_h, img_h=img_h, img_w=img_w)
    y = _conv_core(ptile_ref, patch_ref, w_ref, tile_h=tile_h, img_w=img_w)
    _write_tile_outputs(y, conv_ref, stats_ref)


def _bn_residual_kernel(conv_ref, scale_ref, shift_ref, skip_ref, out_ref):
    """out = skip + (conv * scale + shift)   (BN2 with global stats + residual)."""
    cp = conv_ref.shape[-1]
    scale = scale_ref[...].reshape(1, 1, 1, cp)
    shift = shift_ref[...].reshape(1, 1, 1, cp)
    y = conv_ref[...].astype(jnp.float32) * scale + shift
    out_ref[...] = (skip_ref[...] + y).astype(out_ref.dtype)


# ---------------------------------------------------------------------------
# Pass wrappers
# ---------------------------------------------------------------------------
def _conv_pass(src, w_fused, scale_shift, *, tile_h):
    """One RefPad+Conv pass over row tiles.  Returns (conv bf16, (2,Cp) stats)."""
    N, H, W, Cp = src.shape
    n_tiles = H // tile_h
    rows = N * tile_h * W

    full_spec = pl.BlockSpec((N, H, W, Cp), lambda i: (0, 0, 0, 0))
    tile_spec = pl.BlockSpec((N, tile_h, W, Cp), lambda i: (0, i, 0, 0))
    stats_spec = pl.BlockSpec((1, 2, Cp), lambda i: (i, 0, 0))
    w_spec = pl.BlockSpec((9 * Cp, Cp), lambda i: (0, 0))
    vec_spec = pl.BlockSpec((1, Cp), lambda i: (0, 0))

    if scale_shift is None:       # stage 1
        kernel = functools.partial(_conv1_kernel, tile_h=tile_h, img_h=H, img_w=W)
        in_specs = [full_spec, w_spec]
        args = (src, w_fused)
    else:                         # stage 2: fused BN1+ReLU prologue
        kernel = functools.partial(_conv2_kernel, tile_h=tile_h, img_h=H, img_w=W)
        in_specs = [full_spec, w_spec, vec_spec, vec_spec]
        args = (src, w_fused) + tuple(scale_shift)

    conv, part_stats = pl.pallas_call(
        kernel,
        grid=(n_tiles,),
        in_specs=in_specs,
        out_specs=[tile_spec, stats_spec],
        out_shape=[
            jax.ShapeDtypeStruct((N, H, W, Cp), jnp.bfloat16),     # bf16 intermediate
            jax.ShapeDtypeStruct((n_tiles, 2, Cp), jnp.float32),   # per-tile partials
        ],
        scratch_shapes=[
            pltpu.VMEM((N, tile_h + 2, W + 2, Cp), jnp.bfloat16),  # reflect-padded tile
            pltpu.VMEM((rows, 9 * Cp), jnp.bfloat16),              # im2col patches
        ],
        compiler_params=pltpu.CompilerParams(
            dimension_semantics=("parallel",),   # per-tile stats -> megacore friendly
            vmem_limit_bytes=_vmem_limit_bytes(),
        ),
    )(*args)

    stats = jnp.sum(part_stats, axis=0)          # tiny (2, Cp) global reduction
    return conv, stats


def _bn_residual_pass(conv, scale, shift, skip, *, tile_h):
    N, H, W, Cp = conv.shape
    n_tiles = H // tile_h
    tile_spec = pl.BlockSpec((N, tile_h, W, Cp), lambda i: (0, i, 0, 0))
    vec_spec = pl.BlockSpec((1, Cp), lambda i: (0, 0))
    return pl.pallas_call(
        _bn_residual_kernel,
        grid=(n_tiles,),
        in_specs=[tile_spec, vec_spec, vec_spec, tile_spec],
        out_specs=tile_spec,
        out_shape=jax.ShapeDtypeStruct((N, H, W, Cp), skip.dtype),
        input_output_aliases={3: 0},             # reuse the skip buffer for the output
        compiler_params=pltpu.CompilerParams(
            dimension_semantics=("parallel",),
            vmem_limit_bytes=_vmem_limit_bytes(),
        ),
    )(conv, scale, shift, skip)


# ---------------------------------------------------------------------------
# JAX glue (layout only: transposes, channel pad, tiny stat math)
# ---------------------------------------------------------------------------
def _round_up(v, m):
    return (v + m - 1) // m * m


def _pad_last(a, cp):
    pad = cp - a.shape[-1]
    if pad == 0:
        return a
    return jnp.pad(a, [(0, 0)] * (a.ndim - 1) + [(0, pad)])


def _bn_scale_shift(stats, gamma, beta, count):
    """gamma*(x-mean)*rsqrt(var+eps)+beta == x*scale+shift, from f32 sum/sumsq.
    # TODO(synk): switch to a shifted/Welford accumulation if E[x^2]-E[x]^2
    # cancellation ever becomes a concern at tighter tolerances."""
    mean = stats[0:1, :] / count
    var = jnp.maximum(stats[1:2, :] / count - mean * mean, 0.0)
    scale = gamma * lax.rsqrt(var + EPS)
    shift = beta - mean * scale
    return scale, shift


def _pick_tile_h(H, N, W):
    """Largest divisor of H whose row tile holds at most ~target rows
    (generation-aware: smaller on v7x's 64 MiB VMEM)."""
    target_rows = 1024 if _vmem_capacity_bytes() <= 64 * 1024 * 1024 else 2048
    best = 1
    for d in range(1, H + 1):
        if H % d == 0 and N * d * W <= target_rows:
            best = d
    return best


def resnet_block_forward(x_nchw, params, *, tile_h=None):
    """Forward of ResnetBlock.  x_nchw: (N, C, H, W) float32."""
    w1, g1, b1, w2, g2, b2 = params
    N, C, H, W = x_nchw.shape
    Cp = _round_up(C, LANE)
    if tile_h is None:
        tile_h = _pick_tile_h(H, N, W)
    assert H % tile_h == 0, "tile_h must divide H"

    # NCHW -> NHWC, zero-pad channels to a lane-dense multiple of 128.
    # TODO(synk): in a full ResnetGenerator port keep all activations NHWC so
    # these per-block transposes / channel pads disappear entirely.
    x = jnp.transpose(x_nchw, (0, 2, 3, 1))
    x_p = _pad_last(x, Cp)                               # f32 skip / conv1 source
    count = float(N * H * W)

    def fuse_w(w):  # (9, C, C) -> (9*Cp, Cp) fused-tap weight, bf16 for the MXU
        wp = jnp.pad(w, ((0, 0), (0, Cp - C), (0, Cp - C)))
        return wp.reshape(9 * Cp, Cp).astype(jnp.bfloat16)

    def vec(v):     # (C,) -> (1, Cp) f32
        return _pad_last(v.reshape(1, C), Cp)

    # Stage 1: RefPad -> Conv1 (stats only; BN1+ReLU are fused into stage 2).
    conv1, stats1 = _conv_pass(x_p, fuse_w(w1), None, tile_h=tile_h)
    scale1, shift1 = _bn_scale_shift(stats1, vec(g1), vec(b1), count)

    # Stage 2: BN1 + ReLU + RefPad -> Conv2, all in one pass.
    conv2, stats2 = _conv_pass(conv1, fuse_w(w2), (scale1, shift1), tile_h=tile_h)
    scale2, shift2 = _bn_scale_shift(stats2, vec(g2), vec(b2), count)

    # Stage 3: BN2 + residual add (output aliased onto the skip buffer).
    out_p = _bn_residual_pass(conv2, scale2, shift2, x_p, tile_h=tile_h)

    out = out_p[..., :C]                                 # drop channel padding
    return jnp.transpose(out, (0, 3, 1, 2)).astype(x_nchw.dtype)


# ---------------------------------------------------------------------------
# Pure-JAX f32 reference (module semantics, for correctness check)
# ---------------------------------------------------------------------------
def _ref_resnet_block(x_nchw, params):
    w1, g1, b1, w2, g2, b2 = params
    x = jnp.transpose(x_nchw, (0, 2, 3, 1))

    def conv_bn(h, w, g, b, relu):
        C = h.shape[-1]
        hpad = jnp.pad(h, ((0, 0), (1, 1), (1, 1), (0, 0)), mode="reflect")
        w_hwio = w.reshape(3, 3, C, C)                   # (dy, dx, cin, cout)
        y = lax.conv_general_dilated(
            hpad, w_hwio, (1, 1), "VALID",
            dimension_numbers=("NHWC", "HWIO", "NHWC"),
        )
        mean = jnp.mean(y, axis=(0, 1, 2))
        var = jnp.var(y, axis=(0, 1, 2))
        y = (y - mean) * lax.rsqrt(var + EPS) * g + b
        return jnp.maximum(y, 0.0) if relu else y

    h = conv_bn(x, w1, g1, b1, True)
    out = x + conv_bn(h, w2, g2, b2, False)
    return jnp.transpose(out, (0, 3, 1, 2))


# ---------------------------------------------------------------------------
if __name__ == "__main__":
    N, C, H, W = 2, 4, 16, 16  # ResnetBlock(dim=4) on a 2x4x16x16 input
    key = jax.random.PRNGKey(0)
    ks = jax.random.split(key, 7)

    x = jax.random.normal(ks[0], (N, C, H, W), jnp.float32)

    # Conv weights in (9, C_in, C_out) layout; w[dy*3+dx, ci, co] corresponds
    # to PyTorch weight[co, ci, dy, dx].
    fan_in = float(C * 3 * 3)
    w1 = jax.random.normal(ks[1], (9, C, C), jnp.float32) / np.sqrt(fan_in)
    w2 = jax.random.normal(ks[2], (9, C, C), jnp.float32) / np.sqrt(fan_in)
    g1 = 1.0 + 0.1 * jax.random.normal(ks[3], (C,), jnp.float32)
    b1 = 0.1 * jax.random.normal(ks[4], (C,), jnp.float32)
    g2 = 1.0 + 0.1 * jax.random.normal(ks[5], (C,), jnp.float32)
    b2 = 0.1 * jax.random.normal(ks[6], (C,), jnp.float32)
    params = (w1, g1, b1, w2, g2, b2)

    # tile_h=4 -> 4 grid steps per conv pass: exercises the multi-tile global
    # BatchNorm reduction AND the in-kernel row/column reflection at tile edges.
    fwd = jax.jit(functools.partial(resnet_block_forward, tile_h=4))
    out = jax.block_until_ready(fwd(x, params))

    ref = jax.block_until_ready(_ref_resnet_block(x, params))
    # Tolerance accounts for bf16 MXU inputs AND the bf16 conv intermediates
    # (all accumulation / BatchNorm math stays in f32) vs the pure-f32 reference.
    np.testing.assert_allclose(
        np.asarray(out), np.asarray(ref), atol=4e-2, rtol=4e-2
    )
    print("KERNEL_OK")
</pallas_src>

<mosaic_0001>
module attributes {stable_mosaic.version = 11 : i64} {
  func.func @_conv1_kernel(%arg0: i32, %arg1: memref<2x16x16x128xf32, #tpu.memory_space<vmem>>, %arg2: memref<1152x128xbf16, #tpu.memory_space<vmem>>, %arg3: memref<2x4x16x128xbf16, #tpu.memory_space<vmem>>, %arg4: memref<1x2x128xf32, #tpu.memory_space<vmem>>, %arg5: memref<2x6x18x128xbf16, #tpu.memory_space<vmem>>, %arg6: memref<128x1152xbf16, #tpu.memory_space<vmem>>) attributes {dimension_semantics = [#tpu.dimension_semantics<parallel>], iteration_bounds = array<i64: 4>, scalar_prefetch = 0 : i64, scratch_operands = 2 : i64, tpu.core_type = #tpu.core_type<tc>, window_params = [{pipeline_mode = #tpu.pipeline_mode<synchronous>, transform_indices = @transform_0, window_bounds = array<i64: 2, 16, 16, 128>}, {pipeline_mode = #tpu.pipeline_mode<synchronous>, transform_indices = @transform_1, window_bounds = array<i64: 1152, 128>}, {transform_indices = @transform_2, window_bounds = array<i64: 2, 4, 16, 128>}, {transform_indices = @transform_3, window_bounds = array<i64: 1, 2, 128>}]} {
    %c4_i32 = arith.constant 4 : i32
    %0 = arith.muli %arg0, %c4_i32 : i32
    %c0_i32 = arith.constant 0 : i32
    %1 = arith.cmpi eq, %arg0, %c0_i32 : i32
    %c1_i32 = arith.constant 1 : i32
    %2 = arith.subi %0, %c1_i32 : i32
    %c1_i32_0 = arith.constant 1 : i32
    %3 = arith.select %1, %c1_i32_0, %2 : i32
    %c3_i32 = arith.constant 3 : i32
    %4 = arith.cmpi eq, %arg0, %c3_i32 : i32
    %c4_i32_1 = arith.constant 4 : i32
    %5 = arith.addi %0, %c4_i32_1 : i32
    %c14_i32 = arith.constant 14 : i32
    %6 = arith.select %4, %c14_i32, %5 : i32
    %c0 = arith.constant 0 : index
    %7 = arith.index_cast %0 : i32 to index
    %c0_2 = arith.constant 0 : index
    %c0_3 = arith.constant 0 : index
    %8 = vector.load %arg1[%c0, %7, %c0_2, %c0_3] : memref<2x16x16x128xf32, #tpu.memory_space<vmem>>, vector<2x4x16x128xf32>
    %9 = arith.truncf %8 : vector<2x4x16x128xf32> to vector<2x4x16x128xbf16>
    %c0_4 = arith.constant 0 : index
    %c1 = arith.constant 1 : index
    %c1_5 = arith.constant 1 : index
    %c0_6 = arith.constant 0 : index
    %10 = vector.load %arg5[%c0_4, %c1, %c1_5, %c0_6] : memref<2x6x18x128xbf16, #tpu.memory_space<vmem>>, vector<2x4x16x128xbf16>
    tpu.vector_store %arg5[%c0_4, %c1, %c1_5, %c0_6], %9 {strides = array<i32>} : memref<2x6x18x128xbf16, #tpu.memory_space<vmem>>, vector<2x4x16x128xbf16>,
    %c0_7 = arith.constant 0 : index
    %11 = arith.index_cast %3 : i32 to index
    %c0_8 = arith.constant 0 : index
    %c0_9 = arith.constant 0 : index
    %12 = vector.load %arg1[%c0_7, %11, %c0_8, %c0_9] : memref<2x16x16x128xf32, #tpu.memory_space<vmem>>, vector<2x1x16x128xf32>
    %13 = arith.truncf %12 : vector<2x1x16x128xf32> to vector<2x1x16x128xbf16>
    %c0_10 = arith.constant 0 : index
    %c0_11 = arith.constant 0 : index
    %c1_12 = arith.constant 1 : index
    %c0_13 = arith.constant 0 : index
    %14 = vector.load %arg5[%c0_10, %c0_11, %c1_12, %c0_13] : memref<2x6x18x128xbf16, #tpu.memory_space<vmem>>, vector<2x1x16x128xbf16>
    tpu.vector_store %arg5[%c0_10, %c0_11, %c1_12, %c0_13], %13 {strides = array<i32>} : memref<2x6x18x128xbf16, #tpu.memory_space<vmem>>, vector<2x1x16x128xbf16>,
    %c0_14 = arith.constant 0 : index
    %15 = arith.index_cast %6 : i32 to index
    %c0_15 = arith.constant 0 : index
    %c0_16 = arith.constant 0 : index
    %16 = vector.load %arg1[%c0_14, %15, %c0_15, %c0_16] : memref<2x16x16x128xf32, #tpu.memory_space<vmem>>, vector<2x1x16x128xf32>
    %17 = arith.truncf %16 : vector<2x1x16x128xf32> to vector<2x1x16x128xbf16>
    %c0_17 = arith.constant 0 : index
    %c5 = arith.constant 5 : index
    %c1_18 = arith.constant 1 : index
    %c0_19 = arith.constant 0 : index
    %18 = vector.load %arg5[%c0_17, %c5, %c1_18, %c0_19] : memref<2x6x18x128xbf16, #tpu.memory_space<vmem>>, vector<2x1x16x128xbf16>
    tpu.vector_store %arg5[%c0_17, %c5, %c1_18, %c0_19], %17 {strides = array<i32>} : memref<2x6x18x128xbf16, #tpu.memory_space<vmem>>, vector<2x1x16x128xbf16>,
    %c0_20 = arith.constant 0 : index
    %c0_21 = arith.constant 0 : index
    %c2 = arith.constant 2 : index
    %c0_22 = arith.constant 0 : index
    %19 = vector.load %arg5[%c0_20, %c0_21, %c2, %c0_22] : memref<2x6x18x128xbf16, #tpu.memory_space<vmem>>, vector<2x6x1x128xbf16>
    %c0_23 = arith.constant 0 : index
    %c0_24 = arith.constant 0 : index
    %c0_25 = arith.constant 0 : index
    %c0_26 = arith.constant 0 : index
    %20 = vector.load %arg5[%c0_23, %c0_24, %c0_25, %c0_26] : memref<2x6x18x128xbf16, #tpu.memory_space<vmem>>, vector<2x6x1x128xbf16>
    tpu.vector_store %arg5[%c0_23, %c0_24, %c0_25, %c0_26], %19 {strides = array<i32>} : memref<2x6x18x128xbf16, #tpu.memory_space<vmem>>, vector<2x6x1x128xbf16>,
    %c0_27 = arith.constant 0 : index
    %c0_28 = arith.constant 0 : index
    %c15 = arith.constant 15 : index
    %c0_29 = arith.constant 0 : index
    %21 = vector.load %arg5[%c0_27, %c0_28, %c15, %c0_29] : memref<2x6x18x128xbf16, #tpu.memory_space<vmem>>, vector<2x6x1x128xbf16>
    %c0_30 = arith.constant 0 : index
    %c0_31 = arith.constant 0 : index
    %c17 = arith.constant 17 : index
    %c0_32 = arith.constant 0 : index
    %22 = vector.load %arg5[%c0_30, %c0_31, %c17, %c0_32] : memref<2x6x18x128xbf16, #tpu.memory_space<vmem>>, vector<2x6x1x128xbf16>
    tpu.vector_store %arg5[%c0_30, %c0_31, %c17, %c0_32], %21 {strides = array<i32>} : memref<2x6x18x128xbf16, #tpu.memory_space<vmem>>, vector<2x6x1x128xbf16>,
    %c0_33 = arith.constant 0 : index
    %c0_34 = arith.constant 0 : index
    %c0_35 = arith.constant 0 : index
    %c0_36 = arith.constant 0 : index
    %23 = vector.load %arg5[%c0_33, %c0_34, %c0_35, %c0_36] : memref<2x6x18x128xbf16, #tpu.memory_space<vmem>>, vector<2x4x16x128xbf16>
    %24 = vector.shape_cast %23 : vector<2x4x16x128xbf16> to vector<128x128xbf16>
    %c0_37 = arith.constant 0 : index
    %c0_38 = arith.constant 0 : index
    %25 = vector.load %arg6[%c0_37, %c0_38] : memref<128x1152xbf16, #tpu.memory_space<vmem>>, vector<128x128xbf16>
    tpu.vector_store %arg6[%c0_37, %c0_38], %24 {strides = array<i32>} : memref<128x1152xbf16, #tpu.memory_space<vmem>>, vector<128x128xbf16>,
    %c0_39 = arith.constant 0 : index
    %c0_40 = arith.constant 0 : index
    %c1_41 = arith.constant 1 : index
    %c0_42 = arith.constant 0 : index
    %26 = vector.load %arg5[%c0_39, %c0_40, %c1_41, %c0_42] : memref<2x6x18x128xbf16, #tpu.memory_space<vmem>>, vector<2x4x16x128xbf16>
    %27 = vector.shape_cast %26 : vector<2x4x16x128xbf16> to vector<128x128xbf16>
    %c0_43 = arith.constant 0 : index
    %c128 = arith.constant 128 : index
    %28 = vector.load %arg6[%c0_43, %c128] : memref<128x1152xbf16, #tpu.memory_space<vmem>>, vector<128x128xbf16>
    tpu.vector_store %arg6[%c0_43, %c128], %27 {strides = array<i32>} : memref<128x1152xbf16, #tpu.memory_space<vmem>>, vector<128x128xbf16>,
    %c0_44 = arith.constant 0 : index
    %c0_45 = arith.constant 0 : index
    %c2_46 = arith.constant 2 : index
    %c0_47 = arith.constant 0 : index
    %29 = vector.load %arg5[%c0_44, %c0_45, %c2_46, %c0_47] : memref<2x6x18x128xbf16, #tpu.memory_space<vmem>>, vector<2x4x16x128xbf16>
    %30 = vector.shape_cast %29 : vector<2x4x16x128xbf16> to vector<128x128xbf16>
    %c0_48 = arith.constant 0 : index
    %c256 = arith.constant 256 : index
    %31 = vector.load %arg6[%c0_48, %c256] : memref<128x1152xbf16, #tpu.memory_space<vmem>>, vector<128x128xbf16>
    tpu.vector_store %arg6[%c0_48, %c256], %30 {strides = array<i32>} : memref<128x1152xbf16, #tpu.memory_space<vmem>>, vector<128x128xbf16>,
    %c0_49 = arith.constant 0 : index
    %c1_50 = arith.constant 1 : index
    %c0_51 = arith.constant 0 : index
    %c0_52 = arith.constant 0 : index
    %32 = vector.load %arg5[%c0_49, %c1_50, %c0_51, %c0_52] : memref<2x6x18x128xbf16, #tpu.memory_space<vmem>>, vector<2x4x16x128xbf16>
    %33 = vector.shape_cast %32 : vector<2x4x16x128xbf16> to vector<128x128xbf16>
    %c0_53 = arith.constant 0 : index
    %c384 = arith.constant 384 : index
    %34 = vector.load %arg6[%c0_53, %c384] : memref<128x1152xbf16, #tpu.memory_space<vmem>>, vector<128x128xbf16>
    tpu.vector_store %arg6[%c0_53, %c384], %33 {strides = array<i32>} : memref<128x1152xbf16, #tpu.memory_space<vmem>>, vector<128x128xbf16>,
    %c0_54 = arith.constant 0 : index
    %c1_55 = arith.constant 1 : index
    %c1_56 = arith.constant 1 : index
    %c0_57 = arith.constant 0 : index
    %35 = vector.load %arg5[%c0_54, %c1_55, %c1_56, %c0_57] : memref<2x6x18x128xbf16, #tpu.memory_space<vmem>>, vector<2x4x16x128xbf16>
    %36 = vector.shape_cast %35 : vector<2x4x16x128xbf16> to vector<128x128xbf16>
    %c0_58 = arith.constant 0 : index
    %c512 = arith.constant 512 : index
    %37 = vector.load %arg6[%c0_58, %c512] : memref<128x1152xbf16, #tpu.memory_space<vmem>>, vector<128x128xbf16>
    tpu.vector_store %arg6[%c0_58, %c512], %36 {strides = array<i32>} : memref<128x1152xbf16, #tpu.memory_space<vmem>>, vector<128x128xbf16>,
    %c0_59 = arith.constant 0 : index
    %c1_60 = arith.constant 1 : index
    %c2_61 = arith.constant 2 : index
    %c0_62 = arith.constant 0 : index
    %38 = vector.load %arg5[%c0_59, %c1_60, %c2_61, %c0_62] : memref<2x6x18x128xbf16, #tpu.memory_space<vmem>>, vector<2x4x16x128xbf16>
    %39 = vector.shape_cast %38 : vector<2x4x16x128xbf16> to vector<128x128xbf16>
    %c0_63 = arith.constant 0 : index
    %c640 = arith.constant 640 : index
    %40 = vector.load %arg6[%c0_63, %c640] : memref<128x1152xbf16, #tpu.memory_space<vmem>>, vector<128x128xbf16>
    tpu.vector_store %arg6[%c0_63, %c640], %39 {strides = array<i32>} : memref<128x1152xbf16, #tpu.memory_space<vmem>>, vector<128x128xbf16>,
    %c0_64 = arith.constant 0 : index
    %c2_65 = arith.constant 2 : index
    %c0_66 = arith.constant 0 : index
    %c0_67 = arith.constant 0 : index
    %41 = vector.load %arg5[%c0_64, %c2_65, %c0_66, %c0_67] : memref<2x6x18x128xbf16, #tpu.memory_space<vmem>>, vector<2x4x16x128xbf16>
    %42 = vector.shape_cast %41 : vector<2x4x16x128xbf16> to vector<128x128xbf16>
    %c0_68 = arith.constant 0 : index
    %c768 = arith.constant 768 : index
    %43 = vector.load %arg6[%c0_68, %c768] : memref<128x1152xbf16, #tpu.memory_space<vmem>>, vector<128x128xbf16>
    tpu.vector_store %arg6[%c0_68, %c768], %42 {strides = array<i32>} : memref<128x1152xbf16, #tpu.memory_space<vmem>>, vector<128x128xbf16>,
    %c0_69 = arith.constant 0 : index
    %c2_70 = arith.constant 2 : index
    %c1_71 = arith.constant 1 : index
    %c0_72 = arith.constant 0 : index
    %44 = vector.load %arg5[%c0_69, %c2_70, %c1_71, %c0_72] : memref<2x6x18x128xbf16, #tpu.memory_space<vmem>>, vector<2x4x16x128xbf16>
    %45 = vector.shape_cast %44 : vector<2x4x16x128xbf16> to vector<128x128xbf16>
    %c0_73 = arith.constant 0 : index
    %c896 = arith.constant 896 : index
    %46 = vector.load %arg6[%c0_73, %c896] : memref<128x1152xbf16, #tpu.memory_space<vmem>>, vector<128x128xbf16>
    tpu.vector_store %arg6[%c0_73, %c896], %45 {strides = array<i32>} : memref<128x1152xbf16, #tpu.memory_space<vmem>>, vector<128x128xbf16>,
    %c0_74 = arith.constant 0 : index
    %c2_75 = arith.constant 2 : index
    %c2_76 = arith.constant 2 : index
    %c0_77 = arith.constant 0 : index
    %47 = vector.load %arg5[%c0_74, %c2_75, %c2_76, %c0_77] : memref<2x6x18x128xbf16, #tpu.memory_space<vmem>>, vector<2x4x16x128xbf16>
    %48 = vector.shape_cast %47 : vector<2x4x16x128xbf16> to vector<128x128xbf16>
    %c0_78 = arith.constant 0 : index
    %c1024 = arith.constant 1024 : index
    %49 = vector.load %arg6[%c0_78, %c1024] : memref<128x1152xbf16, #tpu.memory_space<vmem>>, vector<128x128xbf16>
    tpu.vector_store %arg6[%c0_78, %c1024], %48 {strides = array<i32>} : memref<128x1152xbf16, #tpu.memory_space<vmem>>, vector<128x128xbf16>,
    %c0_79 = arith.constant 0 : index
    %c0_80 = arith.constant 0 : index
    %50 = vector.load %arg6[%c0_79, %c0_80] : memref<128x1152xbf16, #tpu.memory_space<vmem>>, vector<128x1152xbf16>
    %c0_81 = arith.constant 0 : index
    %c0_82 = arith.constant 0 : index
    %51 = vector.load %arg2[%c0_81, %c0_82] : memref<1152x128xbf16, #tpu.memory_space<vmem>>, vector<1152x128xbf16>
    %cst = arith.constant dense<0.000000e+00> : vector<128x128xf32>
    %52 = tpu.matmul %50, %51, %cst {dimension_numbers = #tpu.dot_dimension_numbers<[1], [0], [0], [1], [0, 0, 1, 1], [], []>} : vector<128x1152xbf16>, vector<1152x128xbf16>, vector<128x128xf32> -> vector<128x128xf32>
    %53 = vector.shape_cast %52 : vector<128x128xf32> to vector<2x4x16x128xf32>
    %54 = arith.truncf %53 : vector<2x4x16x128xf32> to vector<2x4x16x128xbf16>
    %c0_83 = arith.constant 0 : index
    %c0_84 = arith.constant 0 : index
    %c0_85 = arith.constant 0 : index
    %c0_86 = arith.constant 0 : index
    %55 = vector.load %arg3[%c0_83, %c0_84, %c0_85, %c0_86] : memref<2x4x16x128xbf16, #tpu.memory_space<vmem>>, vector<2x4x16x128xbf16>
    tpu.vector_store %arg3[%c0_83, %c0_84, %c0_85, %c0_86], %54 {strides = array<i32>} : memref<2x4x16x128xbf16, #tpu.memory_space<vmem>>, vector<2x4x16x128xbf16>,
    %cst_87 = arith.constant dense<0.000000e+00> : vector<128xf32>
    %56 = vector.multi_reduction <add>, %52, %cst_87 [0] : vector<128x128xf32> to vector<128xf32>
    %57 = vector.shape_cast %56 : vector<128xf32> to vector<1x128xf32>
    %58 = arith.mulf %52, %52 : vector<128x128xf32>
    %cst_88 = arith.constant dense<0.000000e+00> : vector<128xf32>
    %59 = vector.multi_reduction <add>, %58, %cst_88 [0] : vector<128x128xf32> to vector<128xf32>
    %60 = vector.shape_cast %59 : vector<128xf32> to vector<1x128xf32>
    %61 = tpu.concatenate %57, %60 in 0 : vector<1x128xf32>, vector<1x128xf32> -> vector<2x128xf32>
    %62 = vector.shape_cast %61 : vector<2x128xf32> to vector<1x2x128xf32>
    %c0_89 = arith.constant 0 : index
    %c0_90 = arith.constant 0 : index
    %c0_91 = arith.constant 0 : index
    %63 = vector.load %arg4[%c0_89, %c0_90, %c0_91] : memref<1x2x128xf32, #tpu.memory_space<vmem>>, vector<1x2x128xf32>
    tpu.vector_store %arg4[%c0_89, %c0_90, %c0_91], %62 {strides = array<i32>} : memref<1x2x128xf32, #tpu.memory_space<vmem>>, vector<1x2x128xf32>,
    return
  }
  func.func @transform_0(%arg0: i32) -> (i32, i32, i32, i32) {
    %c0_i32 = arith.constant 0 : i32
    %c0_i32_0 = arith.constant 0 : i32
    %c0_i32_1 = arith.constant 0 : i32
    %c0_i32_2 = arith.constant 0 : i32
    %c0_i32_3 = arith.constant 0 : i32
    return %c0_i32, %c0_i32_0, %c0_i32_1, %c0_i32_2 : i32, i32, i32, i32
  }
  func.func @transform_1(%arg0: i32) -> (i32, i32) {
    %c0_i32 = arith.constant 0 : i32
    %c0_i32_0 = arith.constant 0 : i32
    %c0_i32_1 = arith.constant 0 : i32
    return %c0_i32, %c0_i32_0 : i32, i32
  }
  func.func @transform_2(%arg0: i32) -> (i32, i32, i32, i32) {
    %c0_i32 = arith.constant 0 : i32
    %c0_i32_0 = arith.constant 0 : i32
    %c0_i32_1 = arith.constant 0 : i32
    %c0_i32_2 = arith.constant 0 : i32
    return %c0_i32, %arg0, %c0_i32_0, %c0_i32_1 : i32, i32, i32, i32
  }
  func.func @transform_3(%arg0: i32) -> (i32, i32, i32) {
    %c0_i32 = arith.constant 0 : i32
    %c0_i32_0 = arith.constant 0 : i32
    %c0_i32_1 = arith.constant 0 : i32
    return %arg0, %c0_i32, %c0_i32_0 : i32, i32, i32
  }
}

module attributes {stable_mosaic.version = 11 : i64} {
  func.func @_bn_residual_kernel(%arg0: i32, %arg1: memref<2x4x16x128xbf16, #tpu.memory_space<vmem>>, %arg2: memref<1x128xf32, #tpu.memory_space<vmem>>, %arg3: memref<1x128xf32, #tpu.memory_space<vmem>>, %arg4: memref<2x4x16x128xf32, #tpu.memory_space<vmem>>, %arg5: memref<2x4x16x128xf32, #tpu.memory_space<vmem>>) attributes {dimension_semantics = [#tpu.dimension_semantics<parallel>], iteration_bounds = array<i64: 4>, scalar_prefetch = 0 : i64, scratch_operands = 0 : i64, tpu.core_type = #tpu.core_type<tc>, window_params = [{transform_indices = @transform_0, window_bounds = array<i64: 2, 4, 16, 128>}, {pipeline_mode = #tpu.pipeline_mode<synchronous>, transform_indices = @transform_1, window_bounds = array<i64: 1, 128>}, {pipeline_mode = #tpu.pipeline_mode<synchronous>, transform_indices = @transform_2, window_bounds = array<i64: 1, 128>}, {transform_indices = @transform_3, window_bounds = array<i64: 2, 4, 16, 128>}, {transform_indices = @transform_4, window_bounds = array<i64: 2, 4, 16, 128>}]} {
    %c0 = arith.constant 0 : index
    %c0_0 = arith.constant 0 : index
    %0 = vector.load %arg2[%c0, %c0_0] : memref<1x128xf32, #tpu.memory_space<vmem>>, vector<1x128xf32>
    %1 = vector.shape_cast %0 : vector<1x128xf32> to vector<1x1x1x128xf32>
    %c0_1 = arith.constant 0 : index
    %c0_2 = arith.constant 0 : index
    %2 = vector.load %arg3[%c0_1, %c0_2] : memref<1x128xf32, #tpu.memory_space<vmem>>, vector<1x128xf32>
    %3 = vector.shape_cast %2 : vector<1x128xf32> to vector<1x1x1x128xf32>
    %c0_3 = arith.constant 0 : index
    %c0_4 = arith.constant 0 : index
    %c0_5 = arith.constant 0 : index
    %c0_6 = arith.constant 0 : index
    %4 = vector.load %arg1[%c0_3, %c0_4, %c0_5, %c0_6] : memref<2x4x16x128xbf16, #tpu.memory_space<vmem>>, vector<2x4x16x128xbf16>
    %5 = arith.extf %4 : vector<2x4x16x128xbf16> to vector<2x4x16x128xf32>
    %6 = vector.broadcast %1 : vector<1x1x1x128xf32> to vector<2x4x16x128xf32>
    %7 = arith.mulf %5, %6 : vector<2x4x16x128xf32>
    %8 = vector.broadcast %3 : vector<1x1x1x128xf32> to vector<2x4x16x128xf32>
    %9 = arith.addf %7, %8 : vector<2x4x16x128xf32>
    %c0_7 = arith.constant 0 : index
    %c0_8 = arith.constant 0 : index
    %c0_9 = arith.constant 0 : index
    %c0_10 = arith.constant 0 : index
    %10 = vector.load %arg4[%c0_7, %c0_8, %c0_9, %c0_10] : memref<2x4x16x128xf32, #tpu.memory_space<vmem>>, vector<2x4x16x128xf32>
    %11 = arith.addf %10, %9 : vector<2x4x16x128xf32>
    %c0_11 = arith.constant 0 : index
    %c0_12 = arith.constant 0 : index
    %c0_13 = arith.constant 0 : index
    %c0_14 = arith.constant 0 : index
    %12 = vector.load %arg5[%c0_11, %c0_12, %c0_13, %c0_14] : memref<2x4x16x128xf32, #tpu.memory_space<vmem>>, vector<2x4x16x128xf32>
    tpu.vector_store %arg5[%c0_11, %c0_12, %c0_13, %c0_14], %11 {strides = array<i32>} : memref<2x4x16x128xf32, #tpu.memory_space<vmem>>, vector<2x4x16x128xf32>,
    return
  }
  func.func @transform_0(%arg0: i32) -> (i32, i32, i32, i32) {
    %c0_i32 = arith.constant 0 : i32
    %c0_i32_0 = arith.constant 0 : i32
    %c0_i32_1 = arith.constant 0 : i32
    %c0_i32_2 = arith.constant 0 : i32
    return %c0_i32, %arg0, %c0_i32_0, %c0_i32_1 : i32, i32, i32, i32
  }
  func.func @transform_1(%arg0: i32) -> (i32, i32) {
    %c0_i32 = arith.constant 0 : i32
    %c0_i32_0 = arith.constant 0 : i32
    %c0_i32_1 = arith.constant 0 : i32
    return %c0_i32, %c0_i32_0 : i32, i32
  }
  func.func @transform_2(%arg0: i32) -> (i32, i32) {
    %c0_i32 = arith.constant 0 : i32
    %c0_i32_0 = arith.constant 0 : i32
    %c0_i32_1 = arith.constant 0 : i32
    return %c0_i32, %c0_i32_0 : i32, i32
  }
  func.func @transform_3(%arg0: i32) -> (i32, i32, i32, i32) {
    %c0_i32 = arith.constant 0 : i32
    %c0_i32_0 = arith.constant 0 : i32
    %c0_i32_1 = arith.constant 0 : i32
    %c0_i32_2 = arith.constant 0 : i32
    return %c0_i32, %arg0, %c0_i32_0, %c0_i32_1 : i32, i32, i32, i32
  }
  func.func @transform_4(%arg0: i32) -> (i32, i32, i32, i32) {
    %c0_i32 = arith.constant 0 : i32
    %c0_i32_0 = arith.constant 0 : i32
    %c0_i32_1 = arith.constant 0 : i32
    %c0_i32_2 = arith.constant 0 : i32
    return %c0_i32, %arg0, %c0_i32_0, %c0_i32_1 : i32, i32, i32, i32
  }
}

module attributes {stable_mosaic.version = 11 : i64} {
  func.func @_conv2_kernel(%arg0: i32, %arg1: memref<2x16x16x128xbf16, #tpu.memory_space<vmem>>, %arg2: memref<1152x128xbf16, #tpu.memory_space<vmem>>, %arg3: memref<1x128xf32, #tpu.memory_space<vmem>>, %arg4: memref<1x128xf32, #tpu.memory_space<vmem>>, %arg5: memref<2x4x16x128xbf16, #tpu.memory_space<vmem>>, %arg6: memref<1x2x128xf32, #tpu.memory_space<vmem>>, %arg7: memref<2x6x18x128xbf16, #tpu.memory_space<vmem>>, %arg8: memref<128x1152xbf16, #tpu.memory_space<vmem>>) attributes {dimension_semantics = [#tpu.dimension_semantics<parallel>], iteration_bounds = array<i64: 4>, scalar_prefetch = 0 : i64, scratch_operands = 2 : i64, tpu.core_type = #tpu.core_type<tc>, window_params = [{pipeline_mode = #tpu.pipeline_mode<synchronous>, transform_indices = @transform_0, window_bounds = array<i64: 2, 16, 16, 128>}, {pipeline_mode = #tpu.pipeline_mode<synchronous>, transform_indices = @transform_1, window_bounds = array<i64: 1152, 128>}, {pipeline_mode = #tpu.pipeline_mode<synchronous>, transform_indices = @transform_2, window_bounds = array<i64: 1, 128>}, {pipeline_mode = #tpu.pipeline_mode<synchronous>, transform_indices = @transform_3, window_bounds = array<i64: 1, 128>}, {transform_indices = @transform_4, window_bounds = array<i64: 2, 4, 16, 128>}, {transform_indices = @transform_5, window_bounds = array<i64: 1, 2, 128>}]} {
    %c0 = arith.constant 0 : index
    %c0_0 = arith.constant 0 : index
    %0 = vector.load %arg3[%c0, %c0_0] : memref<1x128xf32, #tpu.memory_space<vmem>>, vector<1x128xf32>
    %1 = vector.shape_cast %0 : vector<1x128xf32> to vector<1x1x1x128xf32>
    %c0_1 = arith.constant 0 : index
    %c0_2 = arith.constant 0 : index
    %2 = vector.load %arg4[%c0_1, %c0_2] : memref<1x128xf32, #tpu.memory_space<vmem>>, vector<1x128xf32>
    %3 = vector.shape_cast %2 : vector<1x128xf32> to vector<1x1x1x128xf32>
    %c4_i32 = arith.constant 4 : i32
    %4 = arith.muli %arg0, %c4_i32 : i32
    %c0_i32 = arith.constant 0 : i32
    %5 = arith.cmpi eq, %arg0, %c0_i32 : i32
    %c1_i32 = arith.constant 1 : i32
    %6 = arith.subi %4, %c1_i32 : i32
    %c1_i32_3 = arith.constant 1 : i32
    %7 = arith.select %5, %c1_i32_3, %6 : i32
    %c3_i32 = arith.constant 3 : i32
    %8 = arith.cmpi eq, %arg0, %c3_i32 : i32
    %c4_i32_4 = arith.constant 4 : i32
    %9 = arith.addi %4, %c4_i32_4 : i32
    %c14_i32 = arith.constant 14 : i32
    %10 = arith.select %8, %c14_i32, %9 : i32
    %c0_5 = arith.constant 0 : index
    %11 = arith.index_cast %4 : i32 to index
    %c0_6 = arith.constant 0 : index
    %c0_7 = arith.constant 0 : index
    %12 = vector.load %arg1[%c0_5, %11, %c0_6, %c0_7] : memref<2x16x16x128xbf16, #tpu.memory_space<vmem>>, vector<2x4x16x128xbf16>
    %13 = arith.extf %12 : vector<2x4x16x128xbf16> to vector<2x4x16x128xf32>
    %14 = vector.broadcast %1 : vector<1x1x1x128xf32> to vector<2x4x16x128xf32>
    %15 = arith.mulf %13, %14 : vector<2x4x16x128xf32>
    %16 = vector.broadcast %3 : vector<1x1x1x128xf32> to vector<2x4x16x128xf32>
    %17 = arith.addf %15, %16 : vector<2x4x16x128xf32>
    %cst = arith.constant 0.000000e+00 : f32
    %18 = vector.broadcast %cst : f32 to vector<2x4x16x128xf32>
    %19 = arith.maximumf %17, %18 : vector<2x4x16x128xf32>
    %20 = arith.truncf %19 : vector<2x4x16x128xf32> to vector<2x4x16x128xbf16>
    %c0_8 = arith.constant 0 : index
    %c1 = arith.constant 1 : index
    %c1_9 = arith.constant 1 : index
    %c0_10 = arith.constant 0 : index
    %21 = vector.load %arg7[%c0_8, %c1, %c1_9, %c0_10] : memref<2x6x18x128xbf16, #tpu.memory_space<vmem>>, vector<2x4x16x128xbf16>
    tpu.vector_store %arg7[%c0_8, %c1, %c1_9, %c0_10], %20 {strides = array<i32>} : memref<2x6x18x128xbf16, #tpu.memory_space<vmem>>, vector<2x4x16x128xbf16>,
    %c0_11 = arith.constant 0 : index
    %22 = arith.index_cast %7 : i32 to index
    %c0_12 = arith.constant 0 : index
    %c0_13 = arith.constant 0 : index
    %23 = vector.load %arg1[%c0_11, %22, %c0_12, %c0_13] : memref<2x16x16x128xbf16, #tpu.memory_space<vmem>>, vector<2x1x16x128xbf16>
    %24 = arith.extf %23 : vector<2x1x16x128xbf16> to vector<2x1x16x128xf32>
    %25 = vector.broadcast %1 : vector<1x1x1x128xf32> to vector<2x1x16x128xf32>
    %26 = arith.mulf %24, %25 : vector<2x1x16x128xf32>
    %27 = vector.broadcast %3 : vector<1x1x1x128xf32> to vector<2x1x16x128xf32>
    %28 = arith.addf %26, %27 : vector<2x1x16x128xf32>
    %cst_14 = arith.constant 0.000000e+00 : f32
    %29 = vector.broadcast %cst_14 : f32 to vector<2x1x16x128xf32>
    %30 = arith.maximumf %28, %29 : vector<2x1x16x128xf32>
    %31 = arith.truncf %30 : vector<2x1x16x128xf32> to vector<2x1x16x128xbf16>
    %c0_15 = arith.constant 0 : index
    %c0_16 = arith.constant 0 : index
    %c1_17 = arith.constant 1 : index
    %c0_18 = arith.constant 0 : index
    %32 = vector.load %arg7[%c0_15, %c0_16, %c1_17, %c0_18] : memref<2x6x18x128xbf16, #tpu.memory_space<vmem>>, vector<2x1x16x128xbf16>
    tpu.vector_store %arg7[%c0_15, %c0_16, %c1_17, %c0_18], %31 {strides = array<i32>} : memref<2x6x18x128xbf16, #tpu.memory_space<vmem>>, vector<2x1x16x128xbf16>,
    %c0_19 = arith.constant 0 : index
    %33 = arith.index_cast %10 : i32 to index
    %c0_20 = arith.constant 0 : index
    %c0_21 = arith.constant 0 : index
    %34 = vector.load %arg1[%c0_19, %33, %c0_20, %c0_21] : memref<2x16x16x128xbf16, #tpu.memory_space<vmem>>, vector<2x1x16x128xbf16>
    %35 = arith.extf %34 : vector<2x1x16x128xbf16> to vector<2x1x16x128xf32>
    %36 = vector.broadcast %1 : vector<1x1x1x128xf32> to vector<2x1x16x128xf32>
    %37 = arith.mulf %35, %36 : vector<2x1x16x128xf32>
    %38 = vector.broadcast %3 : vector<1x1x1x128xf32> to vector<2x1x16x128xf32>
    %39 = arith.addf %37, %38 : vector<2x1x16x128xf32>
    %cst_22 = arith.constant 0.000000e+00 : f32
    %40 = vector.broadcast %cst_22 : f32 to vector<2x1x16x128xf32>
    %41 = arith.maximumf %39, %40 : vector<2x1x16x128xf32>
    %42 = arith.truncf %41 : vector<2x1x16x128xf32> to vector<2x1x16x128xbf16>
    %c0_23 = arith.constant 0 : index
    %c5 = arith.constant 5 : index
    %c1_24 = arith.constant 1 : index
    %c0_25 = arith.constant 0 : index
    %43 = vector.load %arg7[%c0_23, %c5, %c1_24, %c0_25] : memref<2x6x18x128xbf16, #tpu.memory_space<vmem>>, vector<2x1x16x128xbf16>
    tpu.vector_store %arg7[%c0_23, %c5, %c1_24, %c0_25], %42 {strides = array<i32>} : memref<2x6x18x128xbf16, #tpu.memory_space<vmem>>, vector<2x1x16x128xbf16>,
    %c0_26 = arith.constant 0 : index
    %c0_27 = arith.constant 0 : index
    %c2 = arith.constant 2 : index
    %c0_28 = arith.constant 0 : index
    %44 = vector.load %arg7[%c0_26, %c0_27, %c2, %c0_28] : memref<2x6x18x128xbf16, #tpu.memory_space<vmem>>, vector<2x6x1x128xbf16>
    %c0_29 = arith.constant 0 : index
    %c0_30 = arith.constant 0 : index
    %c0_31 = arith.constant 0 : index
    %c0_32 = arith.constant 0 : index
    %45 = vector.load %arg7[%c0_29, %c0_30, %c0_31, %c0_32] : memref<2x6x18x128xbf16, #tpu.memory_space<vmem>>, vector<2x6x1x128xbf16>
    tpu.vector_store %arg7[%c0_29, %c0_30, %c0_31, %c0_32], %44 {strides = array<i32>} : memref<2x6x18x128xbf16, #tpu.memory_space<vmem>>, vector<2x6x1x128xbf16>,
    %c0_33 = arith.constant 0 : index
    %c0_34 = arith.constant 0 : index
    %c15 = arith.constant 15 : index
    %c0_35 = arith.constant 0 : index
    %46 = vector.load %arg7[%c0_33, %c0_34, %c15, %c0_35] : memref<2x6x18x128xbf16, #tpu.memory_space<vmem>>, vector<2x6x1x128xbf16>
    %c0_36 = arith.constant 0 : index
    %c0_37 = arith.constant 0 : index
    %c17 = arith.constant 17 : index
    %c0_38 = arith.constant 0 : index
    %47 = vector.load %arg7[%c0_36, %c0_37, %c17, %c0_38] : memref<2x6x18x128xbf16, #tpu.memory_space<vmem>>, vector<2x6x1x128xbf16>
    tpu.vector_store %arg7[%c0_36, %c0_37, %c17, %c0_38], %46 {strides = array<i32>} : memref<2x6x18x128xbf16, #tpu.memory_space<vmem>>, vector<2x6x1x128xbf16>,
    %c0_39 = arith.constant 0 : index
    %c0_40 = arith.constant 0 : index
    %c0_41 = arith.constant 0 : index
    %c0_42 = arith.constant 0 : index
    %48 = vector.load %arg7[%c0_39, %c0_40, %c0_41, %c0_42] : memref<2x6x18x128xbf16, #tpu.memory_space<vmem>>, vector<2x4x16x128xbf16>
    %49 = vector.shape_cast %48 : vector<2x4x16x128xbf16> to vector<128x128xbf16>
    %c0_43 = arith.constant 0 : index
    %c0_44 = arith.constant 0 : index
    %50 = vector.load %arg8[%c0_43, %c0_44] : memref<128x1152xbf16, #tpu.memory_space<vmem>>, vector<128x128xbf16>
    tpu.vector_store %arg8[%c0_43, %c0_44], %49 {strides = array<i32>} : memref<128x1152xbf16, #tpu.memory_space<vmem>>, vector<128x128xbf16>,
    %c0_45 = arith.constant 0 : index
    %c0_46 = arith.constant 0 : index
    %c1_47 = arith.constant 1 : index
    %c0_48 = arith.constant 0 : index
    %51 = vector.load %arg7[%c0_45, %c0_46, %c1_47, %c0_48] : memref<2x6x18x128xbf16, #tpu.memory_space<vmem>>, vector<2x4x16x128xbf16>
    %52 = vector.shape_cast %51 : vector<2x4x16x128xbf16> to vector<128x128xbf16>
    %c0_49 = arith.constant 0 : index
    %c128 = arith.constant 128 : index
    %53 = vector.load %arg8[%c0_49, %c128] : memref<128x1152xbf16, #tpu.memory_space<vmem>>, vector<128x128xbf16>
    tpu.vector_store %arg8[%c0_49, %c128], %52 {strides = array<i32>} : memref<128x1152xbf16, #tpu.memory_space<vmem>>, vector<128x128xbf16>,
    %c0_50 = arith.constant 0 : index
    %c0_51 = arith.constant 0 : index
    %c2_52 = arith.constant 2 : index
    %c0_53 = arith.constant 0 : index
    %54 = vector.load %arg7[%c0_50, %c0_51, %c2_52, %c0_53] : memref<2x6x18x128xbf16, #tpu.memory_space<vmem>>, vector<2x4x16x128xbf16>
    %55 = vector.shape_cast %54 : vector<2x4x16x128xbf16> to vector<128x128xbf16>
    %c0_54 = arith.constant 0 : index
    %c256 = arith.constant 256 : index
    %56 = vector.load %arg8[%c0_54, %c256] : memref<128x1152xbf16, #tpu.memory_space<vmem>>, vector<128x128xbf16>
    tpu.vector_store %arg8[%c0_54, %c256], %55 {strides = array<i32>} : memref<128x1152xbf16, #tpu.memory_space<vmem>>, vector<128x128xbf16>,
    %c0_55 = arith.constant 0 : index
    %c1_56 = arith.constant 1 : index
    %c0_57 = arith.constant 0 : index
    %c0_58 = arith.constant 0 : index
    %57 = vector.load %arg7[%c0_55, %c1_56, %c0_57, %c0_58] : memref<2x6x18x128xbf16, #tpu.memory_space<vmem>>, vector<2x4x16x128xbf16>
    %58 = vector.shape_cast %57 : vector<2x4x16x128xbf16> to vector<128x128xbf16>
    %c0_59 = arith.constant 0 : index
    %c384 = arith.constant 384 : index
    %59 = vector.load %arg8[%c0_59, %c384] : memref<128x1152xbf16, #tpu.memory_space<vmem>>, vector<128x128xbf16>
    tpu.vector_store %arg8[%c0_59, %c384], %58 {strides = array<i32>} : memref<128x1152xbf16, #tpu.memory_space<vmem>>, vector<128x128xbf16>,
    %c0_60 = arith.constant 0 : index
    %c1_61 = arith.constant 1 : index
    %c1_62 = arith.constant 1 : index
    %c0_63 = arith.constant 0 : index
    %60 = vector.load %arg7[%c0_60, %c1_61, %c1_62, %c0_63] : memref<2x6x18x128xbf16, #tpu.memory_space<vmem>>, vector<2x4x16x128xbf16>
    %61 = vector.shape_cast %60 : vector<2x4x16x128xbf16> to vector<128x128xbf16>
    %c0_64 = arith.constant 0 : index
    %c512 = arith.constant 512 : index
    %62 = vector.load %arg8[%c0_64, %c512] : memref<128x1152xbf16, #tpu.memory_space<vmem>>, vector<128x128xbf16>
    tpu.vector_store %arg8[%c0_64, %c512], %61 {strides = array<i32>} : memref<128x1152xbf16, #tpu.memory_space<vmem>>, vector<128x128xbf16>,
    %c0_65 = arith.constant 0 : index
    %c1_66 = arith.constant 1 : index
    %c2_67 = arith.constant 2 : index
    %c0_68 = arith.constant 0 : index
    %63 = vector.load %arg7[%c0_65, %c1_66, %c2_67, %c0_68] : memref<2x6x18x128xbf16, #tpu.memory_space<vmem>>, vector<2x4x16x128xbf16>
    %64 = vector.shape_cast %63 : vector<2x4x16x128xbf16> to vector<128x128xbf16>
    %c0_69 = arith.constant 0 : index
    %c640 = arith.constant 640 : index
    %65 = vector.load %arg8[%c0_69, %c640] : memref<128x1152xbf16, #tpu.memory_space<vmem>>, vector<128x128xbf16>
    tpu.vector_store %arg8[%c0_69, %c640], %64 {strides = array<i32>} : memref<128x1152xbf16, #tpu.memory_space<vmem>>, vector<128x128xbf16>,
    %c0_70 = arith.constant 0 : index
    %c2_71 = arith.constant 2 : index
    %c0_72 = arith.constant 0 : index
    %c0_73 = arith.constant 0 : index
    %66 = vector.load %arg7[%c0_70, %c2_71, %c0_72, %c0_73] : memref<2x6x18x128xbf16, #tpu.memory_space<vmem>>, vector<2x4x16x128xbf16>
    %67 = vector.shape_cast %66 : vector<2x4x16x128xbf16> to vector<128x128xbf16>
    %c0_74 = arith.constant 0 : index
    %c768 = arith.constant 768 : index
    %68 = vector.load %arg8[%c0_74, %c768] : memref<128x1152xbf16, #tpu.memory_space<vmem>>, vector<128x128xbf16>
    tpu.vector_store %arg8[%c0_74, %c768], %67 {strides = array<i32>} : memref<128x1152xbf16, #tpu.memory_space<vmem>>, vector<128x128xbf16>,
    %c0_75 = arith.constant 0 : index
    %c2_76 = arith.constant 2 : index
    %c1_77 = arith.constant 1 : index
    %c0_78 = arith.constant 0 : index
    %69 = vector.load %arg7[%c0_75, %c2_76, %c1_77, %c0_78] : memref<2x6x18x128xbf16, #tpu.memory_space<vmem>>, vector<2x4x16x128xbf16>
    %70 = vector.shape_cast %69 : vector<2x4x16x128xbf16> to vector<128x128xbf16>
    %c0_79 = arith.constant 0 : index
    %c896 = arith.constant 896 : index
    %71 = vector.load %arg8[%c0_79, %c896] : memref<128x1152xbf16, #tpu.memory_space<vmem>>, vector<128x128xbf16>
    tpu.vector_store %arg8[%c0_79, %c896], %70 {strides = array<i32>} : memref<128x1152xbf16, #tpu.memory_space<vmem>>, vector<128x128xbf16>,
    %c0_80 = arith.constant 0 : index
    %c2_81 = arith.constant 2 : index
    %c2_82 = arith.constant 2 : index
    %c0_83 = arith.constant 0 : index
    %72 = vector.load %arg7[%c0_80, %c2_81, %c2_82, %c0_83] : memref<2x6x18x128xbf16, #tpu.memory_space<vmem>>, vector<2x4x16x128xbf16>
    %73 = vector.shape_cast %72 : vector<2x4x16x128xbf16> to vector<128x128xbf16>
    %c0_84 = arith.constant 0 : index
    %c1024 = arith.constant 1024 : index
    %74 = vector.load %arg8[%c0_84, %c1024] : memref<128x1152xbf16, #tpu.memory_space<vmem>>, vector<128x128xbf16>
    tpu.vector_store %arg8[%c0_84, %c1024], %73 {strides = array<i32>} : memref<128x1152xbf16, #tpu.memory_space<vmem>>, vector<128x128xbf16>,
    %c0_85 = arith.constant 0 : index
    %c0_86 = arith.constant 0 : index
    %75 = vector.load %arg8[%c0_85, %c0_86] : memref<128x1152xbf16, #tpu.memory_space<vmem>>, vector<128x1152xbf16>
    %c0_87 = arith.constant 0 : index
    %c0_88 = arith.constant 0 : index
    %76 = vector.load %arg2[%c0_87, %c0_88] : memref<1152x128xbf16, #tpu.memory_space<vmem>>, vector<1152x128xbf16>
    %cst_89 = arith.constant dense<0.000000e+00> : vector<128x128xf32>
    %77 = tpu.matmul %75, %76, %cst_89 {dimension_numbers = #tpu.dot_dimension_numbers<[1], [0], [0], [1], [0, 0, 1, 1], [], []>} : vector<128x1152xbf16>, vector<1152x128xbf16>, vector<128x128xf32> -> vector<128x128xf32>
    %78 = vector.shape_cast %77 : vector<128x128xf32> to vector<2x4x16x128xf32>
    %79 = arith.truncf %78 : vector<2x4x16x128xf32> to vector<2x4x16x128xbf16>
    %c0_90 = arith.constant 0 : index
    %c0_91 = arith.constant 0 : index
    %c0_92 = arith.constant 0 : index
    %c0_93 = arith.constant 0 : index
    %80 = vector.load %arg5[%c0_90, %c0_91, %c0_92, %c0_93] : memref<2x4x16x128xbf16, #tpu.memory_space<vmem>>, vector<2x4x16x128xbf16>
    tpu.vector_store %arg5[%c0_90, %c0_91, %c0_92, %c0_93], %79 {strides = array<i32>} : memref<2x4x16x128xbf16, #tpu.memory_space<vmem>>, vector<2x4x16x128xbf16>,
    %cst_94 = arith.constant dense<0.000000e+00> : vector<128xf32>
    %81 = vector.multi_reduction <add>, %77, %cst_94 [0] : vector<128x128xf32> to vector<128xf32>
    %82 = vector.shape_cast %81 : vector<128xf32> to vector<1x128xf32>
    %83 = arith.mulf %77, %77 : vector<128x128xf32>
    %cst_95 = arith.constant dense<0.000000e+00> : vector<128xf32>
    %84 = vector.multi_reduction <add>, %83, %cst_95 [0] : vector<128x128xf32> to vector<128xf32>
    %85 = vector.shape_cast %84 : vector<128xf32> to vector<1x128xf32>
    %86 = tpu.concatenate %82, %85 in 0 : vector<1x128xf32>, vector<1x128xf32> -> vector<2x128xf32>
    %87 = vector.shape_cast %86 : vector<2x128xf32> to vector<1x2x128xf32>
    %c0_96 = arith.constant 0 : index
    %c0_97 = arith.constant 0 : index
    %c0_98 = arith.constant 0 : index
    %88 = vector.load %arg6[%c0_96, %c0_97, %c0_98] : memref<1x2x128xf32, #tpu.memory_space<vmem>>, vector<1x2x128xf32>
    tpu.vector_store %arg6[%c0_96, %c0_97, %c0_98], %87 {strides = array<i32>} : memref<1x2x128xf32, #tpu.memory_space<vmem>>, vector<1x2x128xf32>,
    return
  }
  func.func @transform_0(%arg0: i32) -> (i32, i32, i32, i32) {
    %c0_i32 = arith.constant 0 : i32
    %c0_i32_0 = arith.constant 0 : i32
    %c0_i32_1 = arith.constant 0 : i32
    %c0_i32_2 = arith.constant 0 : i32
    %c0_i32_3 = arith.constant 0 : i32
    return %c0_i32, %c0_i32_0, %c0_i32_1, %c0_i32_2 : i32, i32, i32, i32
  }
  func.func @transform_1(%arg0: i32) -> (i32, i32) {
    %c0_i32 = arith.constant 0 : i32
    %c0_i32_0 = arith.constant 0 : i32
    %c0_i32_1 = arith.constant 0 : i32
    return %c0_i32, %c0_i32_0 : i32, i32
  }
  func.func @transform_2(%arg0: i32) -> (i32, i32) {
    %c0_i32 = arith.constant 0 : i32
    %c0_i32_0 = arith.constant 0 : i32
    %c0_i32_1 = arith.constant 0 : i32
    return %c0_i32, %c0_i32_0 : i32, i32
  }
  func.func @transform_3(%arg0: i32) -> (i32, i32) {
    %c0_i32 = arith.constant 0 : i32
    %c0_i32_0 = arith.constant 0 : i32
    %c0_i32_1 = arith.constant 0 : i32
    return %c0_i32, %c0_i32_0 : i32, i32
  }
  func.func @transform_4(%arg0: i32) -> (i32, i32, i32, i32) {
    %c0_i32 = arith.constant 0 : i32
    %c0_i32_0 = arith.constant 0 : i32
    %c0_i32_1 = arith.constant 0 : i32
    %c0_i32_2 = arith.constant 0 : i32
    return %c0_i32, %arg0, %c0_i32_0, %c0_i32_1 : i32, i32, i32, i32
  }
  func.func @transform_5(%arg0: i32) -> (i32, i32, i32) {
    %c0_i32 = arith.constant 0 : i32
    %c0_i32_0 = arith.constant 0 : i32
    %c0_i32_1 = arith.constant 0 : i32
    return %arg0, %c0_i32, %c0_i32_0 : i32, i32, i32
  }
}

</mosaic_0001>

<bundles_post_ra>
// kernel: resnet_block_forward.5
= control target key start
LH: loop header
LB: loop body
LE: loop exit
PB: predicated region body
PF: predicated region fallthrough
CT: control target
= control target key end

     0   :  { %s863_s15 = smov 0   ;;  %s865_s16 = smov 0   ;;  %s1062_s0 = inlined_call_operand.vmem [shape: bf16[2,16,16,128], index: 0, kind: input, shape index: {}]   ;;  %s1063_s1 = inlined_call_operand.vmem [shape: f32[1,128], index: 1, kind: input, shape index: {}]   ;;  %s1064_s2 = inlined_call_operand.vmem [shape: f32[1,128], index: 2, kind: input, shape index: {}]   ;;  %s1065_s3 = inlined_call_operand.vmem [shape: f32[2,16,16,128], index: 3, kind: input, shape index: {}, may-alias: {3,4}]   ;;  %s1066_s4 = inlined_call_operand.vmem [shape: f32[2,16,16,128], index: 4, kind: output, shape index: {}, may-alias: {3,4}]  }
   0x1   :  { %s867_s17 = smov 0  }
   0x2 LB: > { %s721_s18 = sadd.s32 4294967295, %s836_s17   ;;  %s880_s19 = sadd.s32 1, %s836_s17   ;;  %s836_s17 = sphi %s867_s17, %s1071_s17   ;;  %s832_s16 = sphi %s865_s16, %s1070_s16   ;;  %s828_s15 = sphi %s863_s15, %s1069_s15  }
   0x3   : > { %s18_s20 = ssub.s32 %s836_s17, %s880_s19  ;;  %s21_s21 = sadd.s32 1, %s832_s16 }
   0x4   : > { %p19_p0 = scmp.eq.s32.totalorder %s18_s20, 0  ;;  %p28_p1 = scmp.ne.s32.totalorder %s832_s16, %s828_s15 }
   0x5   : > { %p29_p2 = scmp.eq.s32.totalorder %s836_s17, 0  ;;  %p126_p3 = scmp.eq.s32.totalorder %s721_s18, 3 }
   0x6   : > { %s891_s22 = scalar_select %p19_p0, %s832_s16, %s21_s21  }
   0x7   : > { %p893_p4 = por %p29_p2, %p28_p1  ;;  %p897_p5 = por %p126_p3, %p28_p1 }
   0x8   : > { %p724_p6 = scmp.ge.s32.totalorder %s836_s17, 4 }
   0xa   : > { %154 = sbr.rel (%p724_p6) target bundleno = 35 (0x23), region = 24 }
   0xf   : > { %157 = sbr.rel (!%p893_p4) target bundleno = 23 (0x17), region = 28  ;;  %s159_s25 = sand.u32 (%p893_p4), 1, %s832_s16  }
  0x10   : > { %s746_s26 = sshll.u32 (%p893_p4), %s836_s17, 5  ;;  %s725_s27 = sshll.u32 (%p893_p4), %s159_s25, 6 }
  0x11   : > { %s165_s30 = scalar_lea.vmem (%p893_p4), %s1062_s0, %s746_s26  ;;  %s161_s5 = scalar_lea.vmem (%p893_p4), [#allocation2], %s725_s27 }
  0x12   : > { %v182_v0 = vld [vmem:[%s165_s30] sm:$0xff] (%p893_p4)   ;;  %v186_v1 = vld [vmem:[%s165_s30 + $0x8] sm:$0xff] (%p893_p4)   ;;  %v190_v2 = vld [vmem:[%s165_s30 + $0x10] sm:$0xff] (%p893_p4)  }
  0x13   : > { %183 = vst [vmem:[%s161_s5] sm:$0xff] (%p893_p4), %v182_v0   ;;  %187 = vst [vmem:[%s161_s5 + $0x8] sm:$0xff] (%p893_p4), %v186_v1   ;;  %v194_v3 = vld [vmem:[%s165_s30 + $0x18] sm:$0xff] (%p893_p4)   ;;  %v198_v4 = vld [vmem:[%s165_s30 + $0x80] sm:$0xff] (%p893_p4)  }
  0x14   : > { %191 = vst [vmem:[%s161_s5 + $0x10] sm:$0xff] %v190_v2   ;;  %v202_v5 = vld [vmem:[%s165_s30 + $0x88] sm:$0xff]   ;;  %195 = vst [vmem:[%s161_s5 + $0x18] sm:$0xff] %v194_v3   ;;  %v206_v6 = vld [vmem:[%s165_s30 + $0x90] sm:$0xff]  }
  0x15   : > { %199 = vst [vmem:[%s161_s5 + $0x20] sm:$0xff] %v198_v4   ;;  %203 = vst [vmem:[%s161_s5 + $0x28] sm:$0xff] %v202_v5   ;;  %v210_v7 = vld [vmem:[%s165_s30 + $0x98] sm:$0xff]  }
  0x16   : > { %207 = vst [vmem:[%s161_s5 + $0x30] sm:$0xff] %v206_v6   ;;  %211 = vst [vmem:[%s161_s5 + $0x38] sm:$0xff] %v210_v7  }
  0x17 PF: > { %269 = sbr.rel (!%p893_p4) target bundleno = 35 (0x23), region = 69  ;;  %s271_s6 = sand.u32 (%p893_p4), 1, %s832_s16  }
  0x18   : > { %s748_s7 = sshll.u32 (%p893_p4), %s836_s17, 6  ;;  %s729_s8 = sshll.u32 (%p893_p4), %s271_s6, 7 }
  0x19   : > { %s916_s11 = scalar_lea.vmem (%p893_p4), %s1065_s3, %s748_s7  ;;  %s273_s12 = scalar_lea.vmem (%p893_p4), [#allocation3], %s729_s8 }
  0x1a   : > { %v336_v8 = vld [vmem:[%s916_s11] sm:$0xff] (%p893_p4)  ;;  %v338_v9 = vld [vmem:[%s916_s11 + $0x8] sm:$0xff] (%p893_p4)  ;;  %v340_v10 = vld [vmem:[%s916_s11 + $0x10] sm:$0xff] (%p893_p4) }
  0x1b   : > { %337 = vst [vmem:[%s273_s12] sm:$0xff] (%p893_p4), %v336_v8  ;;  %339 = vst [vmem:[%s273_s12 + $0x8] sm:$0xff] (%p893_p4), %v338_v9  ;;  %v342_v11 = vld [vmem:[%s916_s11 + $0x18] sm:$0xff] (%p893_p4)  ;;  %v344_v12 = vld [vmem:[%s916_s11 + $0x20] sm:$0xff] (%p893_p4) }
  0x1c   : > { %341 = vst [vmem:[%s273_s12 + $0x10] sm:$0xff] %v340_v10  ;;  %v346_v13 = vld [vmem:[%s916_s11 + $0x28] sm:$0xff]  ;;  %343 = vst [vmem:[%s273_s12 + $0x18] sm:$0xff] %v342_v11  ;;  %v348_v14 = vld [vmem:[%s916_s11 + $0x30] sm:$0xff] }
  0x1d   : > { %345 = vst [vmem:[%s273_s12 + $0x20] sm:$0xff] %v344_v12  ;;  %347 = vst [vmem:[%s273_s12 + $0x28] sm:$0xff] %v346_v13  ;;  %v350_v15 = vld [vmem:[%s916_s11 + $0x38] sm:$0xff]  ;;  %v352_v16 = vld [vmem:[%s916_s11 + $0x100] sm:$0xff] }
  0x1e   : > { %349 = vst [vmem:[%s273_s12 + $0x30] sm:$0xff] %v348_v14  ;;  %351 = vst [vmem:[%s273_s12 + $0x38] sm:$0xff] %v350_v15  ;;  %v354_v17 = vld [vmem:[%s916_s11 + $0x108] sm:$0xff]  ;;  %v356_v18 = vld [vmem:[%s916_s11 + $0x110] sm:$0xff] }
  0x1f   : > { %353 = vst [vmem:[%s273_s12 + $0x40] sm:$0xff] %v352_v16  ;;  %v358_v19 = vld [vmem:[%s916_s11 + $0x118] sm:$0xff]  ;;  %355 = vst [vmem:[%s273_s12 + $0x48] sm:$0xff] %v354_v17  ;;  %v360_v20 = vld [vmem:[%s916_s11 + $0x120] sm:$0xff] }
  0x20   : > { %357 = vst [vmem:[%s273_s12 + $0x50] sm:$0xff] %v356_v18  ;;  %359 = vst [vmem:[%s273_s12 + $0x58] sm:$0xff] %v358_v19  ;;  %v362_v21 = vld [vmem:[%s916_s11 + $0x128] sm:$0xff]  ;;  %v364_v22 = vld [vmem:[%s916_s11 + $0x130] sm:$0xff] }
  0x21   : > { %361 = vst [vmem:[%s273_s12 + $0x60] sm:$0xff] %v360_v20  ;;  %363 = vst [vmem:[%s273_s12 + $0x68] sm:$0xff] %v362_v21  ;;  %v366_v23 = vld [vmem:[%s916_s11 + $0x138] sm:$0xff] }
  0x22   : > { %365 = vst [vmem:[%s273_s12 + $0x70] sm:$0xff] %v364_v22  ;;  %367 = vst [vmem:[%s273_s12 + $0x78] sm:$0xff] %v366_v23 }
  0x23 PF: > { %p733_p7 = scmp.ge.s32.totalorder %s836_s17, 1  ;;  %p372_p8 = scmp.lt.s32.totalorder %s836_s17, 5 }
  0x25   : > { %p373_p9 = pnand %p733_p7, %p372_p8 }
  0x26   : > { %s379_s13 = sand.u32 (!%p373_p9), 1, %s828_s15  }
  0x27   : > { %376 = sbr.rel (%p373_p9) target bundleno = 73 (0x49), region = 107  ;;  %s734_s14 = sshll.u32 (!%p373_p9), %s379_s13, 6 }
  0x28   : > { %s937_s20 = sshll.u32 (!%p373_p9), %s379_s13, 7  ;;  %s944_s25 = scalar_lea.vmem (!%p373_p9), [#allocation2], %s734_s14 }
  0x29   : > { %s958_s27 = scalar_lea.vmem (!%p373_p9), [#allocation3], %s937_s20  ;;  %s986_s28 = scalar_lea.vmem (!%p373_p9), [#allocation4], %s937_s20 }
  0x2c   : > { %v942_v24 = vld [vmem:[%s1063_s1] ss:$0 sm:$0xff]  ;;  %v783_v28 = vld [vmem:[%s944_s25 + $0x8] sm:$0xff]   ;;  %v784_v32 = vld [vmem:[%s944_s25 + $0x10] sm:$0xff]   ;;  %s750_s29 = sshll.u32 (%p897_p5), %s721_s18, 6 }
  0x2d   : > { %v752_v25 = vld [vmem:[%s944_s25] sm:$0xff]   ;;  %v757_v30 = vunpack.c.l.bf16 %v783_v28  ;;  %v758_v31 = vunpack.c.h.bf16 %v783_v28  ;;  %v761_v35 = vunpack.c.l.bf16 %v784_v32  ;;  %v762_v36 = vunpack.c.h.bf16 %v784_v32  ;;  %v785_v37 = vld [vmem:[%s944_s25 + $0x18] sm:$0xff]   ;;  %v496_v39 = vld [vmem:[%s958_s27 + $0x8] sm:$0xff]  ;;  %s553_s24 = scalar_lea.vmem (%p897_p5), %s1066_s4, %s750_s29 }
  0x2e   : > { %v753_v26 = vunpack.c.l.bf16 %v752_v25  ;;  %v754_v27 = vunpack.c.h.bf16 %v752_v25  ;;  %v951_v29 = vld [vmem:[%s1064_s2] ss:$0 sm:$0xff]  ;;  %v765_v42 = vunpack.c.l.bf16 %v785_v37  ;;  %v766_v43 = vunpack.c.h.bf16 %v785_v37  ;;  %v497_v46 = vld [vmem:[%s958_s27 + $0x10] sm:$0xff]  ;;  %v498_v47 = vld [vmem:[%s958_s27 + $0x18] sm:$0xff] }
  0x2f   : > { %v495_v38 = vld [vmem:[%s958_s27] sm:$0xff]  ;;  %v459_v40 = vmul.f32 %v757_v30, %v942_v24  ;;  %v460_v41 = vmul.f32 %v758_v31, %v942_v24  ;;  %v461_v48 = vmul.f32 %v761_v35, %v942_v24  ;;  %v462_v49 = vmul.f32 %v762_v36, %v942_v24  ;;  %v500_v53 = vld [vmem:[%s958_s27 + $0x28] sm:$0xff]  ;;  %v501_v61 = vld [vmem:[%s958_s27 + $0x30] sm:$0xff] }
  0x30   : > { %v457_v33 = vmul.f32 %v753_v26, %v942_v24  ;;  %v458_v34 = vmul.f32 %v754_v27, %v942_v24  ;;  %v499_v52 = vld [vmem:[%s958_s27 + $0x20] sm:$0xff]  ;;  %v463_v54 = vmul.f32 %v765_v42, %v942_v24  ;;  %v464_v55 = vmul.f32 %v766_v43, %v942_v24  ;;  %v502_v62 = vld [vmem:[%s958_s27 + $0x38] sm:$0xff]  ;;  %v787_v63 = vld [vmem:[%s944_s25 + $0x28] sm:$0xff]  }
  0x31   : > { %v481_v50 = vadd.f32 %v951_v29, %v459_v40  ;;  %v482_v51 = vadd.f32 %v951_v29, %v460_v41  ;;  %v786_v56 = vld [vmem:[%s944_s25 + $0x20] sm:$0xff]   ;;  %v483_v59 = vadd.f32 %v951_v29, %v461_v48  ;;  %v484_v60 = vadd.f32 %v951_v29, %v462_v49  ;;  %v788_v4 = vld [vmem:[%s944_s25 + $0x30] sm:$0xff]   ;;  %v789_v9 = vld [vmem:[%s944_s25 + $0x38] sm:$0xff]  }
  0x32   : > { %v479_v44 = vadd.f32 %v951_v29, %v457_v33  ;;  %v480_v45 = vadd.f32 %v951_v29, %v458_v34  ;;  %v485_v2 = vadd.f32 %v951_v29, %v463_v54  ;;  %v486_v3 = vadd.f32 %v951_v29, %v464_v55  ;;  %v503_v18 = vld [vmem:[%s958_s27 + $0x40] sm:$0xff]  ;;  %v504_v19 = vld [vmem:[%s958_s27 + $0x48] sm:$0xff]  ;;  %v505_v27 = vld [vmem:[%s958_s27 + $0x50] sm:$0xff] }
  0x33   : > { %v513_v0 = vadd.f32 %v497_v46, %v481_v50  ;;  %v514_v1 = vadd.f32 %v498_v47, %v482_v51  ;;  %v515_v5 = vadd.f32 %v499_v52, %v483_v59  ;;  %v516_v6 = vadd.f32 %v500_v53, %v484_v60  ;;  %v506_v28 = vld [vmem:[%s958_s27 + $0x58] sm:$0xff]  ;;  %v507_v34 = vld [vmem:[%s958_s27 + $0x60] sm:$0xff]  ;;  %v508_v35 = vld [vmem:[%s958_s27 + $0x68] sm:$0xff] }
  0x34   : > { %v511_v57 = vadd.f32 %v495_v38, %v479_v44  ;;  %v512_v58 = vadd.f32 %v496_v39, %v480_v45  ;;  %v769_v7 = vunpack.c.l.bf16 %v786_v56  ;;  %v770_v8 = vunpack.c.h.bf16 %v786_v56  ;;  %v509_v42 = vld [vmem:[%s958_s27 + $0x70] sm:$0xff]  ;;  %v510_v43 = vld [vmem:[%s958_s27 + $0x78] sm:$0xff] }
  0x35   : > { %529 = vst [vmem:[%s986_s28 + $0x10] sm:$0xff] %v513_v0  ;;  %530 = vst [vmem:[%s986_s28 + $0x18] sm:$0xff] %v514_v1  ;;  %v517_v10 = vadd.f32 %v501_v61, %v485_v2  ;;  %v518_v11 = vadd.f32 %v502_v62, %v486_v3  ;;  %v773_v12 = vunpack.c.l.bf16 %v787_v63  ;;  %v774_v13 = vunpack.c.h.bf16 %v787_v63 }
  0x36   : > { %527 = vst [vmem:[%s986_s28] sm:$0xff] %v511_v57  ;;  %528 = vst [vmem:[%s986_s28 + $0x8] sm:$0xff] %v512_v58  ;;  %v465_v14 = vmul.f32 %v769_v7, %v942_v24  ;;  %v466_v15 = vmul.f32 %v770_v8, %v942_v24  ;;  %v777_v16 = vunpack.c.l.bf16 %v788_v4  ;;  %v778_v17 = vunpack.c.h.bf16 %v788_v4 }
  0x37   : > { %531 = vst [vmem:[%s986_s28 + $0x20] sm:$0xff] %v515_v5  ;;  %532 = vst [vmem:[%s986_s28 + $0x28] sm:$0xff] %v516_v6  ;;  %v467_v20 = vmul.f32 %v773_v12, %v942_v24  ;;  %v468_v21 = vmul.f32 %v774_v13, %v942_v24  ;;  %v781_v22 = vunpack.c.l.bf16 %v789_v9  ;;  %v782_v23 = vunpack.c.h.bf16 %v789_v9 }
  0x38   : > { %533 = vst [vmem:[%s986_s28 + $0x30] sm:$0xff] %v517_v10  ;;  %534 = vst [vmem:[%s986_s28 + $0x38] sm:$0xff] %v518_v11  ;;  %v487_v25 = vadd.f32 %v951_v29, %v465_v14  ;;  %v488_v26 = vadd.f32 %v951_v29, %v466_v15  ;;  %v469_v30 = vmul.f32 %v777_v16, %v942_v24 }
  0x39   : > { %v470_v31 = vmul.f32 %v778_v17, %v942_v24  ;;  %v489_v32 = vadd.f32 %v951_v29, %v467_v20  ;;  %v490_v33 = vadd.f32 %v951_v29, %v468_v21  ;;  %v471_v36 = vmul.f32 %v781_v22, %v942_v24 }
  0x3a   : > { %v472_v37 = vmul.f32 %v782_v23, %v942_v24  ;;  %v519_v38 = vadd.f32 %v503_v18, %v487_v25  ;;  %v520_v39 = vadd.f32 %v504_v19, %v488_v26  ;;  %v491_v40 = vadd.f32 %v951_v29, %v469_v30 }
  0x3b   : > { %v492_v41 = vadd.f32 %v951_v29, %v470_v31  ;;  %v521_v44 = vadd.f32 %v505_v27, %v489_v32  ;;  %v522_v45 = vadd.f32 %v506_v28, %v490_v33  ;;  %v493_v46 = vadd.f32 %v951_v29, %v471_v36 }
  0x3c   : > { %v494_v47 = vadd.f32 %v951_v29, %v472_v37  ;;  %535 = vst [vmem:[%s986_s28 + $0x40] sm:$0xff] %v519_v38  ;;  %536 = vst [vmem:[%s986_s28 + $0x48] sm:$0xff] %v520_v39  ;;  %v523_v24 = vadd.f32 %v507_v34, %v491_v40  ;;  %549 = sbr.rel (!%p897_p5) target bundleno = 73 (0x49), region = 119  ;;  %v616_v52 = vld [vmem:[%s986_s28 + $0x10] sm:$0xff] (%p897_p5)  ;;  %v618_v53 = vld [vmem:[%s986_s28 + $0x18] sm:$0xff] (%p897_p5) }
  0x3d   : > { %v524_v48 = vadd.f32 %v508_v35, %v492_v41  ;;  %537 = vst [vmem:[%s986_s28 + $0x50] sm:$0xff] %v521_v44  ;;  %538 = vst [vmem:[%s986_s28 + $0x58] sm:$0xff] %v522_v45  ;;  %v525_v49 = vadd.f32 %v509_v42, %v493_v46  ;;  %v612_v29 = vld [vmem:[%s986_s28] sm:$0xff] (%p897_p5)  ;;  %v614_v51 = vld [vmem:[%s986_s28 + $0x8] sm:$0xff] (%p897_p5) }
  0x3e   : > { %v526_v50 = vadd.f32 %v510_v43, %v494_v47  ;;  %539 = vst [vmem:[%s986_s28 + $0x60] sm:$0xff] %v523_v24  ;;  %v620_v54 = vld [vmem:[%s986_s28 + $0x20] sm:$0xff] (%p897_p5)  ;;  %v622_v55 = vld [vmem:[%s986_s28 + $0x28] sm:$0xff] (%p897_p5)  ;;  %613 = vst [vmem:[%s553_s24] sm:$0xff] (%p897_p5), %v612_v29 }
  0x3f   : > { %540 = vst [vmem:[%s986_s28 + $0x68] sm:$0xff] %v524_v48  ;;  %541 = vst [vmem:[%s986_s28 + $0x70] sm:$0xff] %v525_v49  ;;  %v624_v56 = vld [vmem:[%s986_s28 + $0x30] sm:$0xff] (%p897_p5)  ;;  %v626_v57 = vld [vmem:[%s986_s28 + $0x38] sm:$0xff] (%p897_p5) }
  0x40   : > { %542 = vst [vmem:[%s986_s28 + $0x78] sm:$0xff] %v526_v50  ;;  %615 = vst [vmem:[%s553_s24 + $0x8] sm:$0xff] (%p897_p5), %v614_v51 }
  0x41   : > { %617 = vst [vmem:[%s553_s24 + $0x10] sm:$0xff] %v616_v52  ;;  %619 = vst [vmem:[%s553_s24 + $0x18] sm:$0xff] %v618_v53 }
  0x42   : > { %621 = vst [vmem:[%s553_s24 + $0x20] sm:$0xff] %v620_v54  ;;  %623 = vst [vmem:[%s553_s24 + $0x28] sm:$0xff] %v622_v55 }
  0x43   : > { %v628_v58 = vld [vmem:[%s986_s28 + $0x40] sm:$0xff]  ;;  %625 = vst [vmem:[%s553_s24 + $0x30] sm:$0xff] %v624_v56  ;;  %627 = vst [vmem:[%s553_s24 + $0x38] sm:$0xff] %v626_v57  ;;  %v630_v59 = vld [vmem:[%s986_s28 + $0x48] sm:$0xff] }
  0x44   : > { %629 = vst [vmem:[%s553_s24 + $0x100] sm:$0xff] %v628_v58  ;;  %v632_v60 = vld [vmem:[%s986_s28 + $0x50] sm:$0xff]  ;;  %v634_v61 = vld [vmem:[%s986_s28 + $0x58] sm:$0xff]  ;;  %631 = vst [vmem:[%s553_s24 + $0x108] sm:$0xff] %v630_v59 }
  0x45   : > { %633 = vst [vmem:[%s553_s24 + $0x110] sm:$0xff] %v632_v60  ;;  %635 = vst [vmem:[%s553_s24 + $0x118] sm:$0xff] %v634_v61  ;;  %v636_v62 = vld [vmem:[%s986_s28 + $0x60] sm:$0xff] }
  0x46   : > { %v638_v63 = vld [vmem:[%s986_s28 + $0x68] sm:$0xff]  ;;  %v640_v0 = vld [vmem:[%s986_s28 + $0x70] sm:$0xff]  ;;  %637 = vst [vmem:[%s553_s24 + $0x120] sm:$0xff] %v636_v62 }
  0x47   : > { %639 = vst [vmem:[%s553_s24 + $0x128] sm:$0xff] %v638_v63  ;;  %641 = vst [vmem:[%s553_s24 + $0x130] sm:$0xff] %v640_v0  ;;  %v642_v1 = vld [vmem:[%s986_s28 + $0x78] sm:$0xff] }
  0x48   : > { %643 = vst [vmem:[%s553_s24 + $0x138] sm:$0xff] %v642_v1 }
  0x49 PF: > { %p11_p10 = scmp.ge.s32.totalorder %s880_s19, 6   ;;  %s1069_s15 = smov %s832_s16 }
  0x4a   : > { %s1070_s16 = smov %s891_s22  ;;  %s1071_s17 = smov %s880_s19 }
  0x4b   :  { %13 = sbr.rel (!%p11_p10) target bundleno = 2 (0x2), region = 196 }

// kernel: resnet_block_forward.3
= control target key start
LH: loop header
LB: loop body
LE: loop exit
PB: predicated region body
PF: predicated region fallthrough
CT: control target
= control target key end

     0   :  { %s4789_s12 = smov 0   ;;  %s4791_s13 = smov 0   ;;  %s5758_s0 = inlined_call_operand.vmem [shape: f32[2,16,16,128], index: 0, kind: input, shape index: {}]   ;;  %s5759_s1 = inlined_call_operand.vmem [shape: bf16[1152,128], index: 1, kind: input, shape index: {}]   ;;  %s5760_s2 = inlined_call_operand.vmem [shape: bf16[2,16,16,128], index: 2, kind: output, shape index: {0}]   ;;  %s5761_s3 = inlined_call_operand.vmem [shape: f32[4,2,128], index: 3, kind: output, shape index: {1}]  }
   0x1   :  { %s4793_s14 = smov 0  }
   0x2 LB: > { %s4802_s15 = sadd.s32 4294967295, %s4767_s14   ;;  %s4804_s16 = sadd.s32 1, %s4767_s14   ;;  %s4767_s14 = sphi %s4793_s14, %s5815_s14   ;;  %s4763_s13 = sphi %s4791_s13, %s5814_s13   ;;  %s4759_s12 = sphi %s4789_s12, %s5813_s12  }
   0x3   : > { %s60_s17 = ssub.s32 %s4767_s14, %s4804_s16  ;;  %s63_s18 = sadd.s32 1, %s4763_s13 }
   0x4   : > { %p61_p0 = scmp.eq.s32.totalorder %s60_s17, 0  ;;  %p73_p1 = scmp.ne.s32.totalorder %s4763_s13, %s4759_s12 }
   0x5   : > { %p74_p2 = scmp.eq.s32.totalorder %s4802_s15, 3  ;;  %p3889_p3 = scmp.ge.s32.totalorder %s4767_s14, 1 }
   0x6   : > { %s4812_s19 = scalar_select %p61_p0, %s4763_s13, %s63_s18  }
   0x7   : > { %p4816_p4 = por %p74_p2, %p73_p1  ;;  %p130_p5 = scmp.lt.s32.totalorder %s4767_s14, 5 }
   0x9   : > { %p131_p6 = pnand %p3889_p3, %p130_p5 }
   0xb   : > { %134 = sbr.rel (%p131_p6) target bundleno = 560 (0x230), region = 28 }
  0x10   : > { %v4569_v0 = vld [vmem:[%s5759_s1 + $0xf8] sm:$0xff]   ;;  %v4571_v2 = vld [vmem:[%s5759_s1 + $0xf0] sm:$0xff]   ;;  %v4575_v6 = vld [vmem:[%s5759_s1 + $0xe8] sm:$0xff]   ;;  %s3892_s5 = sshll.u32 %s4802_s15, 2  ;;  %p159_p7 = scmp.eq.s32.totalorder %s4802_s15, 0  ;;  %vm395_vm1 = vcmask 1043456  }
  0x11   : > { %v4570_v1 = vld [vmem:[%s5759_s1 + $0xb8] sm:$0xff]   ;;  %4289 = vmatprep.subr.bf16.mxu1 %v4569_v0  ;;  %v4573_v4 = vld [vmem:[%s5759_s1 + $0xb0] sm:$0xff]   ;;  %v4577_v8 = vld [vmem:[%s5759_s1 + $0xa8] sm:$0xff]   ;;  %s3893_s14 = sadd.s32 4294967295, %s3892_s5  ;;  %s4135_s4 = sshll.u32 %s4802_s15, 6  ;;  %vm402_vm4 = vcmask 1040384  }
  0x12   : > { %4290 = vmatpush3.bf16.msra.mxu1 %v4570_v1  ;;  %v4572_v3 = vld [vmem:[%s5759_s1 + $0x78] sm:$0xff]   ;;  %v4576_v7 = vld [vmem:[%s5759_s1 + $0x70] sm:$0xff]   ;;  %v4579_v10 = vld [vmem:[%s5759_s1 + $0xe0] sm:$0xff]   ;;  %s5817_s14 = smov (%p159_p7, %s3893_s14), 1  ;;  %s4912_s22 = scalar_lea.vmem %s5758_s0, %s4135_s4  ;;  %vm231_vm0 = vsmask.f32 256 }
  0x13   : > { %4291 = vmatprep.subr.bf16.mxu1 %v4571_v2  ;;  %4225 = vmatprep.subr.bf16.mxu0 %v4572_v3  ;;  %v4574_v5 = vld [vmem:[%s5759_s1 + $0x38] sm:$0xff]   ;;  %v4578_v9 = vld [vmem:[%s5759_s1 + $0x30] sm:$0xff]   ;;  %v4580_v11 = vld [vmem:[%s5759_s1 + $0x68] sm:$0xff]   ;;  %s3911_s8 = sshll.u32 %s5817_s14, 4  ;;  %vm232_vm2 = vsmask.f32 4368 }
  0x14   : > { %4226 = vmatpush3.bf16.msra.mxu0 %v4574_v5  ;;  %v4581_v12 = vld [vmem:[%s5759_s1 + $0xa0] sm:$0xff]   ;;  %v4582_v13 = vld [vmem:[%s5759_s1 + $0x28] sm:$0xff]   ;;  %v4583_v14 = vld [vmem:[%s5759_s1 + $0xd8] sm:$0xff]   ;;  %s4920_s26 = scalar_lea.vmem %s5758_s0, %s3911_s8  ;;  %vm396_vm3 = vsmask.f32 7938  ;;  %vm1125_vm8 = vcmask 1042432  }
  0x15   : > { %4227 = vmatprep.subr.bf16.mxu0 %v4576_v7  ;;  %v4584_v15 = vld [vmem:[%s5759_s1 + $0x60] sm:$0xff]   ;;  %v4585_v16 = vld [vmem:[%s5759_s1 + $0x98] sm:$0xff]   ;;  %v4587_v18 = vld [vmem:[%s5759_s1 + $0xd0] sm:$0xff]   ;;  %vm1126_vm9 = vcmask 1046532   ;;  %vm850_vm12 = vsmask.f32 3328 }
  0x16   : > { %4292 = vmatpush3.bf16.msra.mxu1 %v4573_v4  ;;  %v4586_v17 = vld [vmem:[%s5759_s1 + $0x20] sm:$0xff]   ;;  %v4588_v19 = vld [vmem:[%s5759_s1 + $0x58] sm:$0xff]   ;;  %v4589_v20 = vld [vmem:[%s5759_s1 + $0x90] sm:$0xff]   ;;  %vm851_vm13 = vsmask.f32 7440  ;;  %s163_s10 = sadd.s32 4, %s3892_s5 }
  0x17   : > { %4293 = vmatprep.subr.bf16.mxu1 %v4575_v6  ;;  %v4590_v21 = vld [vmem:[%s5759_s1 + $0x18] sm:$0xff]   ;;  %v4591_v22 = vld [vmem:[%s5759_s1 + $0xc8] sm:$0xff]   ;;  %v4592_v23 = vld [vmem:[%s5759_s1 + $0x50] sm:$0xff]   ;;  %s5819_s10 = smov (%p74_p2, %s163_s10), 14  ;;  %s143_s18 = sand.u32 1, %s4759_s12  }
  0x18   : > { %4228 = vmatpush3.bf16.msra.mxu0 %v4578_v9  ;;  %v4593_v24 = vld [vmem:[%s5759_s1 + $0x88] sm:$0xff]   ;;  %v4594_v25 = vld [vmem:[%s5759_s1 + $0x10] sm:$0xff]   ;;  %v4595_v26 = vld [vmem:[%s5759_s1 + $0xc0] sm:$0xff]   ;;  %s3916_s14 = sshll.u32 %s5819_s10, 4  ;;  %s3890_s21 = sshll.u32 %s143_s18, 6 }
  0x19   : > { %4229 = vmatprep.subr.bf16.mxu0 %v4580_v11  ;;  %v4596_v27 = vld [vmem:[%s5759_s1 + $0x48] sm:$0xff]   ;;  %v4597_v28 = vld [vmem:[%s5759_s1 + $0x80] sm:$0xff]   ;;  %v4607_v53 = vld [vmem:[%s5759_s1 + $0x178] sm:$0xff]   ;;  %s5327_s25 = scalar_lea.vmem %s5758_s0, %s3916_s14  ;;  %s5676_s12 = scalar_lea.vmem [#allocation4], %s3890_s21 }
  0x1a   : > { %4294 = vmatpush3.bf16.msra.mxu1 %v4577_v8  ;;  %v4598_v29 = vld [vmem:[%s5759_s1 + $0x8] sm:$0xff]   ;;  %v167_v30 = vld [vmem:[%s4912_s22] sm:$0xff]  ;;  %vm4940_vm5 = vmand %vm395_vm1, %vm396_vm3  ;;  %p153_p8 = scmp.lt.s32.totalorder %s4802_s15, 3  ;;  %s4177_s27 = sshll.u32 (%p4816_p4), %s4802_s15, 5 }
  0x1b   : > { %4295 = vmatprep.subr.bf16.mxu1 %v4579_v10  ;;  %v168_v31 = vld [vmem:[%s4912_s22 + $0x8] sm:$0xff]  ;;  %v4136_v32 = vpack.c.bf16 %v167_v30, %v167_v30  ;;  %v458_v34 = vld [vmem:[%s4920_s26] sm:$0xff]  ;;  %vm4946_vm6 = vmor %vm231_vm0, %vm232_vm2  ;;  %s3713_s29 = scalar_lea.vmem (%p4816_p4), %s5760_s2, %s4177_s27 }
  0x1c   : > { %4230 = vmatpush3.bf16.msra.mxu0 %v4582_v13  ;;  %v4137_v33 = vpack.c.bf16 %v168_v31, %v168_v31  ;;  %v459_v35 = vld [vmem:[%s4920_s26 + $0x8] sm:$0xff]  ;;  %v4152_v36 = vpack.c.bf16 %v458_v34, %v458_v34  ;;  %v514_v47 = vld [vmem:[#allocation2] sm:$0xf]  ;;  %vm4956_vm7 = vmand %vm402_vm4, %vm231_vm0  ;;  %s154_s23 = scalar_select %p153_p8, %s4802_s15, 3 }
  0x1d   : > { %4231 = vmatprep.subr.bf16.mxu0 %v4584_v15  ;;  %v235_v37 = vshrl.u32 %v4136_v32, 16  ;;  %v238_v38 = vshll.u32 %v4136_v32, 16  ;;  %v398_v41 = vld [vmem:[#allocation2 + $0xc] sm:$0xf]  ;;  %v4153_v42 = vpack.c.bf16 %v459_v35, %v459_v35  ;;  %v4602_v48 = vld [vmem:[%s5759_s1 + $0x40] sm:$0xff]   ;;  %v169_v6 = vld [vmem:[%s4912_s22 + $0x10] sm:$0xff] }
  0x1e   : > { %4296 = vmatpush3.bf16.msra.mxu1 %v4581_v12  ;;  %v243_v39 = vshrl.u32 %v4137_v33, 16  ;;  %v246_v40 = vshll.u32 %v4137_v33, 16  ;;  %v475_v43 = vshrl.u32 %v4152_v36, 16  ;;  %v478_v44 = vshll.u32 %v4152_v36, 16  ;;  %v4603_v49 = vld [vmem:[%s5759_s1] sm:$0xff]   ;;  %v170_v7 = vld [vmem:[%s4912_s22 + $0x18] sm:$0xff]  ;;  %vm4981_vm10 = vmor %vm1125_vm8, %vm1126_vm9 }
  0x1f   : > { %4297 = vmatprep.subr.bf16.mxu1 %v4583_v14  ;;  %v237_v45 = vrot.slane %v235_v37, 7  ;;  %v483_v51 = vshrl.u32 %v4153_v42, 16  ;;  %v486_v52 = vshll.u32 %v4153_v42, 16  ;;  %v518_v2 = vld [vmem:[#allocation2 + $0x8] sm:$0x1]  ;;  %v4138_v9 = vpack.c.bf16 %v169_v6, %v169_v6  ;;  %vm4987_vm11 = vmand %vm402_vm4, %vm396_vm3  ;;  %s3891_s14 = sshll.u32 %s154_s23, 1 }
  0x20   : > { %4232 = vmatpush3.bf16.msra.mxu0 %v4586_v17  ;;  %v245_v46 = vrot.slane %v243_v39, 7  ;;  %v477_v50 = vrot.slane %v475_v43, 7  ;;  %v404_v8 = vld [vmem:[#allocation2 + $0x14] sm:$0x1]  ;;  %v4139_v10 = vpack.c.bf16 %v170_v7, %v170_v7  ;;  %vm5031_vm14 = vmor %vm850_vm12, %vm851_vm13 }
  0x21   : > { %4233 = vmatprep.subr.bf16.mxu0 %v4588_v19  ;;  %v240_v54 = vor.u32 %v238_v38, %v237_v45  ;;  %v241_v55 = vrot.slane %v237_v45, 4  ;;  %v485_v62 = vrot.slane %v483_v51, 7  ;;  %v252_v14 = vshrl.u32 %v4138_v9, 16  ;;  %v407_v19 = vld [vmem:[#allocation2 + $0x18] sm:$0xf] }
  0x22   : > { %4298 = vmatpush3.bf16.msra.mxu1 %v4585_v16  ;;  %v248_v56 = vor.u32 %v246_v40, %v245_v46  ;;  %v250_v57 = vrot.slane %v245_v46, 4  ;;  %v480_v60 = vor.u32 %v478_v44, %v477_v50  ;;  %v481_v61 = vrot.slane %v477_v50, 4 }
  0x23   : > { %4299 = vmatprep.subr.bf16.mxu1 %v4587_v18  ;;  %v399_v0 = vsel %vm4940_vm5, %v240_v54, %v398_v41  ;;  %v488_v3 = vor.u32 %v486_v52, %v485_v62  ;;  %v490_v4 = vrot.slane %v485_v62, 4  ;;  %v255_v15 = vshll.u32 %v4138_v9, 16  ;;  %v171_v18 = vld [vmem:[%s4912_s22 + $0x20] sm:$0xff] }
  0x24   : > { %4234 = vmatpush3.bf16.msra.mxu0 %v4590_v21  ;;  %v249_v63 = vsel %vm4946_vm6, %v241_v55, %v248_v56  ;;  %400 = vst [vmem:[#allocation2 + $0xc] sm:$0xf] %v399_v0  ;;  %v515_v5 = vsel %vm4940_vm5, %v480_v60, %v514_v47  ;;  %v405_v11 = vsel %vm4956_vm7, %v250_v57, %v404_v8  ;;  %v260_v16 = vshrl.u32 %v4139_v10, 16 }
  0x25   : > { %4235 = vmatprep.subr.bf16.mxu0 %v4592_v23  ;;  %401 = vst [vmem:[#allocation2 + $0x10] sm:$0xf] %v249_v63  ;;  %516 = vst [vmem:[#allocation2] sm:$0xf] %v515_v5  ;;  %v489_v12 = vsel %vm4946_vm6, %v481_v61, %v488_v3  ;;  %v519_v13 = vsel %vm4956_vm7, %v490_v4, %v518_v2  ;;  %v263_v17 = vshll.u32 %v4139_v10, 16  ;;  %v254_v21 = vrot.slane %v252_v14, 7 }
  0x26   : > { %4300 = vmatpush3.bf16.msra.mxu1 %v4589_v20  ;;  %406 = vst [vmem:[#allocation2 + $0x14] sm:$0x1] %v405_v11  ;;  %517 = vst [vmem:[#allocation2 + $0x4] sm:$0xf] %v489_v12  ;;  %v4971_v20 = vpack.c.bf16 %v171_v18, %v171_v18  ;;  %v172_v23 = vld [vmem:[%s4912_s22 + $0x28] sm:$0xff] }
  0x27   : > { %4301 = vmatprep.subr.bf16.mxu1 %v4591_v22  ;;  %520 = vst [vmem:[#allocation2 + $0x8] sm:$0x1] %v519_v13  ;;  %v262_v22 = vrot.slane %v260_v16, 7  ;;  %v257_v31 = vor.u32 %v255_v15, %v254_v21  ;;  %v258_v37 = vrot.slane %v254_v21, 4  ;;  %v414_v10 = vld [vmem:[#allocation2 + $0x24] sm:$0xf] }
  0x28   : > { %4236 = vmatpush3.bf16.msra.mxu0 %v4594_v25  ;;  %v272_v25 = vshll.u32 %v4971_v20, 16 }
  0x29   : > { %4237 = vmatprep.subr.bf16.mxu0 %v4596_v27  ;;  %v4623_v27 = vld [vmem:[%s5759_s1 + $0x1f8] sm:$0xff]   ;;  %v265_v32 = vor.u32 %v263_v17, %v262_v22  ;;  %v267_v42 = vrot.slane %v262_v22, 4  ;;  %v408_v43 = vsel %vm4940_vm5, %v257_v31, %v407_v19 }
  0x2a   : > { %4302 = vmatpush3.bf16.msra.mxu1 %v4593_v24  ;;  %v269_v24 = vshrl.u32 %v4971_v20, 16  ;;  %409 = vst [vmem:[#allocation2 + $0x18] sm:$0xf] %v408_v43 }
  0x2b   : > { %4303 = vmatprep.subr.bf16.mxu1 %v4595_v26  ;;  %v411_v26 = vld [vmem:[#allocation2 + $0x20] sm:$0x1]  ;;  %v1080_v3 = vld [vmem:[#allocation2 + $0xc] sm:$0xe] }
  0x2c   : > { %4238 = vmatpush3.bf16.msra.mxu0 %v4598_v29  ;;  %v664_v29 = vld [vmem:[#allocation2 + $0xc] sm:$0x1]  ;;  %v1217_v30 = vld [vmem:[#allocation2 + $0x10] sm:$0xf]  ;;  %v1077_v34 = vld [vmem:[#allocation2] sm:$0xe]  ;;  %v412_v55 = vsel %vm4956_vm7, %v267_v42, %v411_v26 }
  0x2d   : > { %4239 = vmatprep.subr.bf16.mxu0 %v4602_v48  ;;  %1233 = vst [vmem:[#allocation3 + $0x30] sm:$0xf] %v1217_v30  ;;  %v601_v36 = vld [vmem:[#allocation2] sm:$0x2]  ;;  %v3945_v39 = vrot.slane %v1077_v34, 9  ;;  %v266_v48 = vsel %vm4946_vm6, %v258_v37, %v265_v32  ;;  %v3946_v7 = vrot.slane %v1080_v3, 9 }
  0x2e   : > { %4304 = vmatpush3.bf16.msra.mxu1 %v4597_v28  ;;  %v602_v28 = vld [vmem:[#allocation2 + $0xc] sm:$0x2]  ;;  %v3921_v40 = vrot.slane %v601_v36, 9  ;;  %v661_v41 = vld [vmem:[#allocation2] sm:$0x1]  ;;  %v5013_v13 = vrot.slane %v269_v24, 7 }
  0x2f   : > { %v3922_v33 = vrot.slane %v602_v28, 9  ;;  %4417 = vmatprep.subr.bf16.mxu1 %v4623_v27  ;;  %v697_v45 = vld [vmem:[#allocation2 + $0x4] sm:$0x8]  ;;  %v758_v46 = vld [vmem:[#allocation2 + $0x8] sm:$0x1] }
  0x30   : > { %4240 = vmatpush3.bf16.msra.mxu0 %v4603_v49  ;;  %v1078_v47 = vld [vmem:[#allocation2 + $0x4] sm:$0xf]  ;;  %v4997_v49 = vpack.c.bf16 %v172_v23, %v172_v23  ;;  %v3933_v50 = vrot.slane %v697_v45, 11  ;;  %v662_v52 = vsel %vm4956_vm7, %v3921_v40, %v661_v41  ;;  %410 = vst [vmem:[#allocation2 + $0x1c] sm:$0xf] %v266_v48  ;;  %v274_v24 = vor.u32 %v272_v25, %v5013_v13  ;;  %v173_v40 = vld [vmem:[%s4912_s22 + $0x30] sm:$0xff] }
  0x31   : > { %4353 = vmatprep.subr.bf16.mxu0 %v4607_v53  ;;  %v665_v44 = vsel %vm4956_vm7, %v3922_v33, %v664_v29  ;;  %v1130_v51 = vrot.slane %v1078_v47, 5  ;;  %v795_v53 = vld [vmem:[#allocation2 + $0x4] sm:$0xf]  ;;  %663 = vst [vmem:[#allocation2] sm:$0x1] %v662_v52  ;;  %v275_v26 = vrot.slane %v5013_v13, 4 }
  0x32   : > { %666 = vst [vmem:[#allocation2 + $0xc] sm:$0x1] %v665_v44  ;;  %v827_v54 = vld [vmem:[#allocation2 + $0x4] sm:$0xf]  ;;  %811 = vst [vmem:[#allocation3 + $0x24] sm:$0xf] %v795_v53  ;;  %v759_v62 = vsel %vm4987_vm11, %v3933_v50, %v758_v46  ;;  %v415_v34 = vsel %vm4940_vm5, %v274_v24, %v414_v10 }
  0x33   : > { %v863_v56 = vshll.u32 %v827_v54, 16  ;;  %v867_v57 = vshrl.u32 %v827_v54, 16  ;;  %v698_v60 = vld [vmem:[#allocation2 + $0x10] sm:$0x8]  ;;  %v761_v61 = vld [vmem:[#allocation2 + $0x14] sm:$0x1]  ;;  %v1131_v63 = vsel %vm4981_vm10, %v3945_v39, %v1130_v51 }
  0x34   : > { %413 = vst [vmem:[#allocation2 + $0x20] sm:$0x1] %v412_v55  ;;  %v5007_v0 = vrot.slane %v1130_v51, 4  ;;  %v3934_v2 = vrot.slane %v698_v60, 11  ;;  %v1081_v4 = vld [vmem:[#allocation2 + $0x10] sm:$0xf] }
  0x35   : > { %760 = vst [vmem:[#allocation2 + $0x8] sm:$0x1] %v759_v62  ;;  %1200 = vst [vmem:[#allocation3 + $0x8] sm:$0xf] %v1131_v63  ;;  %v5009_v5 = vrot.slane %v863_v56, 5  ;;  %v869_v6 = vrot.slane %v867_v57, 4  ;;  %v5035_v56 = vpack.c.bf16 %v173_v40, %v173_v40 }
  0x36   : > { %v1137_v8 = vrot.slane %v1081_v4, 5  ;;  %v797_v9 = vld [vmem:[#allocation2 + $0x10] sm:$0xf]  ;;  %v762_v11 = vsel %vm4987_vm11, %v3934_v2, %v761_v61  ;;  %v277_v14 = vshrl.u32 %v4997_v49, 16  ;;  %v280_v15 = vshll.u32 %v4997_v49, 16  ;;  %v4626_v13 = vld [vmem:[%s5759_s1 + $0x1b8] sm:$0xff]  }
  0x37   : > { %813 = vst [vmem:[#allocation3 + $0x6c] sm:$0xf] %v797_v9  ;;  %v830_v12 = vld [vmem:[#allocation2 + $0x10] sm:$0xf]  ;;  %v870_v16 = vor.u32 %v869_v6, %v5009_v5  ;;  %763 = vst [vmem:[#allocation2 + $0x14] sm:$0x1] %v762_v11 }
  0x38   : > { %v1138_v17 = vsel %vm4981_vm10, %v3946_v7, %v1137_v8  ;;  %v1139_v18 = vrot.slane %v1137_v8, 4  ;;  %v887_v19 = vshll.u32 %v830_v12, 16  ;;  %v603_v21 = vld [vmem:[#allocation2 + $0x18] sm:$0x2]  ;;  %v667_v22 = vld [vmem:[#allocation2 + $0x18] sm:$0x1] }
  0x39   : > { %1202 = vst [vmem:[#allocation3 + $0x50] sm:$0xf] %v1138_v17  ;;  %v891_v23 = vshrl.u32 %v830_v12, 16  ;;  %v1216_v27 = vld [vmem:[#allocation2 + $0xc] sm:$0xf]  ;;  %v871_v28 = vrot.slane %v870_v16, 4 }
  0x3a   : > { %v3923_v29 = vrot.slane %v603_v21, 9  ;;  %v1219_v30 = vld [vmem:[#allocation2 + $0x1c] sm:$0xf]  ;;  %1232 = vst [vmem:[#allocation3 + $0xc] sm:$0xf] %v1216_v27  ;;  %v889_v39 = vrot.slane %v887_v19, 5 }
  0x3b   : > { %v794_v31 = vld [vmem:[#allocation2] sm:$0xf]  ;;  %1235 = vst [vmem:[#allocation3 + $0x78] sm:$0xf] %v1219_v30  ;;  %v796_v33 = vld [vmem:[#allocation2 + $0xc] sm:$0xf] }
  0x3c   : > { %v826_v32 = vld [vmem:[#allocation2] sm:$0xf]  ;;  %810 = vst [vmem:[#allocation3] sm:$0xf] %v794_v31  ;;  %v668_v20 = vsel %vm4956_vm7, %v3923_v29, %v667_v22  ;;  %812 = vst [vmem:[#allocation3 + $0x48] sm:$0xf] %v796_v33 }
  0x3d   : > { %v854_v36 = vshrl.u32 %v826_v32, 16  ;;  %v857_v37 = vshll.u32 %v826_v32, 16  ;;  %v829_v25 = vld [vmem:[#allocation2 + $0xc] sm:$0xf]  ;;  %416 = vst [vmem:[#allocation2 + $0x24] sm:$0xf] %v415_v34 }
  0x3e   : > { %v1079_v41 = vld [vmem:[#allocation2 + $0x8] sm:$0x1]  ;;  %669 = vst [vmem:[#allocation2 + $0x18] sm:$0x1] %v668_v20  ;;  %v878_v43 = vshrl.u32 %v829_v25, 16  ;;  %v881_v44 = vshll.u32 %v829_v25, 16 }
  0x3f   : > { %v828_v42 = vld [vmem:[#allocation2 + $0x8] sm:$0x1]  ;;  %v1133_v45 = vrot.slane %v1079_v41, 5  ;;  %v856_v46 = vrot.slane %v854_v36, 4  ;;  %v859_v47 = vrot.slane %v857_v37, 5  ;;  %v893_v4 = vrot.slane %v891_v23, 4 }
  0x40   : > { %v873_v48 = vshll.u32 %v828_v42, 16  ;;  %v699_v50 = vld [vmem:[#allocation2 + $0x1c] sm:$0x8]  ;;  %v1082_v52 = vld [vmem:[#allocation2 + $0x14] sm:$0x1]  ;;  %v880_v54 = vrot.slane %v878_v43, 4 }
  0x41   : > { %v831_v53 = vld [vmem:[#allocation2 + $0x14] sm:$0x1]  ;;  %v883_v55 = vrot.slane %v881_v44, 5  ;;  %v1134_v57 = vsel %vm4981_vm10, %v5007_v0, %v1133_v45  ;;  %v860_v60 = vor.u32 %v859_v47, %v856_v46  ;;  %v1140_v62 = vrot.slane %v1082_v52, 5  ;;  %v764_v63 = vld [vmem:[#allocation2 + $0x20] sm:$0x1] }
  0x42   : > { %v875_v61 = vrot.slane %v873_v48, 5  ;;  %v1083_v2 = vld [vmem:[#allocation2 + $0x18] sm:$0xe]  ;;  %1201 = vst [vmem:[#allocation3 + $0x2c] sm:$0xf] %v1134_v57  ;;  %v897_v6 = vshll.u32 %v831_v53, 16  ;;  %v894_v19 = vor.u32 %v893_v4, %v889_v39 }
  0x43   : > { %v884_v3 = vor.u32 %v883_v55, %v880_v54  ;;  %v5040_v7 = vrot.slane %v277_v14, 7  ;;  %v1084_v8 = vld [vmem:[#allocation2 + $0x1c] sm:$0xf]  ;;  %v861_v9 = vrot.slane %v860_v60, 4  ;;  %v1141_v0 = vsel %vm4981_vm10, %v1139_v18, %v1140_v62  ;;  %v4633_v41 = vld [vmem:[%s5759_s1 + $0x1f0] sm:$0xff]  }
  0x44   : > { %v876_v10 = vsel %vm5031_vm14, %v871_v28, %v875_v61  ;;  %v3935_v11 = vrot.slane %v699_v50, 11  ;;  %v799_v12 = vld [vmem:[#allocation2 + $0x1c] sm:$0xf]  ;;  %1203 = vst [vmem:[#allocation3 + $0x74] sm:$0xf] %v1141_v0  ;;  %v899_v21 = vrot.slane %v897_v6, 5 }
  0x45   : > { %v174_v16 = vld [vmem:[%s4912_s22 + $0x38] sm:$0xff]  ;;  %1062 = vst [vmem:[#allocation3 + $0x28] sm:$0xf] %v876_v10  ;;  %v885_v17 = vrot.slane %v884_v3, 4  ;;  %v282_v14 = vor.u32 %v280_v15, %v5040_v7  ;;  %v604_v22 = vld [vmem:[#allocation2 + $0x24] sm:$0x2]  ;;  %v866_v24 = vsel %vm5031_vm14, %v861_v9, %v5009_v5 }
  0x46   : > { %v670_v23 = vld [vmem:[#allocation2 + $0x24] sm:$0x1]  ;;  %815 = vst [vmem:[#allocation3 + $0xb4] sm:$0xf] %v799_v12  ;;  %v1218_v18 = vld [vmem:[#allocation2 + $0x18] sm:$0xf]  ;;  %v765_v29 = vsel %vm4987_vm11, %v3935_v11, %v764_v63  ;;  %v5069_v40 = vpack.c.bf16 %v174_v16, %v174_v16 }
  0x47   : > { %v284_v27 = vrot.slane %v5040_v7, 4  ;;  %v3924_v28 = vrot.slane %v604_v22, 9  ;;  %v798_v30 = vld [vmem:[#allocation2 + $0x18] sm:$0xf]  ;;  %1061 = vst [vmem:[#allocation3 + $0x4] sm:$0xf] %v866_v24  ;;  %v890_v49 = vsel %vm5031_vm14, %v885_v17, %v889_v39  ;;  %v283_v31 = vsel %vm4946_vm6, %v275_v26, %v282_v14 }
  0x48   : > { %1234 = vst [vmem:[#allocation3 + $0x54] sm:$0xf] %v1218_v18  ;;  %v895_v15 = vrot.slane %v894_v19, 4  ;;  %766 = vst [vmem:[#allocation2 + $0x20] sm:$0x1] %v765_v29  ;;  %v3947_v5 = vrot.slane %v1083_v2, 9 }
  0x49   : > { %814 = vst [vmem:[#allocation3 + $0x90] sm:$0xf] %v798_v30  ;;  %v832_v32 = vld [vmem:[#allocation2 + $0x18] sm:$0xf]  ;;  %v833_v33 = vld [vmem:[#allocation2 + $0x1c] sm:$0xf]  ;;  %v671_v34 = vsel %vm4956_vm7, %v3924_v28, %v670_v23 }
  0x4a   : > { %1063 = vst [vmem:[#allocation3 + $0x4c] sm:$0xf] %v890_v49  ;;  %417 = vst [vmem:[#allocation2 + $0x28] sm:$0xf] %v283_v31  ;;  %v1144_v36 = vrot.slane %v1084_v8, 5  ;;  %v902_v37 = vshrl.u32 %v832_v32, 16  ;;  %v900_v26 = vsel %vm5031_vm14, %v895_v15, %v899_v21 }
  0x4b   : > { %v905_v20 = vshll.u32 %v832_v32, 16  ;;  %672 = vst [vmem:[#allocation2 + $0x24] sm:$0x1] %v671_v34  ;;  %v911_v25 = vshll.u32 %v833_v33, 16  ;;  %v915_v39 = vshrl.u32 %v833_v33, 16  ;;  %v4608_v52 = vld [vmem:[%s5759_s1 + $0x138] sm:$0xff]  }
  0x4c   : > { %v4599_v42 = vld [vmem:[#allocation3 + $0x8] ss:$36 sps:$4 sm:$0xff]   ;;  %1064 = vst [vmem:[#allocation3 + $0x70] sm:$0xf] %v900_v26  ;;  %v1145_v44 = vsel %vm4981_vm10, %v3947_v5, %v1144_v36  ;;  %v904_v45 = vrot.slane %v902_v37, 4  ;;  %v1146_v53 = vrot.slane %v1144_v36, 4 }
  0x4d   : > { %v4601_v43 = vld [vmem:[#allocation3 + $0xc] ss:$36 sps:$4 sm:$0xff]   ;;  %1204 = vst [vmem:[#allocation3 + $0x98] sm:$0xf] %v1145_v44  ;;  %v907_v46 = vrot.slane %v905_v20, 5  ;;  %v913_v47 = vrot.slane %v911_v25, 5 }
  0x4e   : > { %v917_v48 = vrot.slane %v915_v39, 4  ;;  %v418_v50 = vld [vmem:[#allocation2 + $0x2c] sm:$0x1]  ;;  %3202 = vmatprep.mubr.bf16.mxu1 %v4601_v43  ;;  %v286_v54 = vshrl.u32 %v5035_v56, 16  ;;  %v289_v55 = vshll.u32 %v5035_v56, 16  ;;  %v4614_v57 = vld [vmem:[%s5759_s1 + $0x170] sm:$0xff]  }
  0x4f   : > { %3203 = vmatmul.mubr.bf16.vlgmr.msra.gmra.mxu1 %v4599_v42  ;;  %v908_v60 = vor.u32 %v907_v46, %v904_v45  ;;  %v294_v62 = vshrl.u32 %v5069_v40, 16  ;;  %v419_v63 = vsel %vm4956_vm7, %v284_v27, %v418_v50  ;;  %v421_v2 = vld [vmem:[#allocation2 + $0x30] sm:$0xf]  ;;  %v4606_v4 = vld [vmem:[#allocation3 + $0x4] ss:$36 sps:$4 sm:$0xff]   ;;  %v297_v16 = vshll.u32 %v5069_v40, 16 }
  0x50   : > { %v918_v61 = vor.u32 %v917_v48, %v913_v47  ;;  %v4604_v3 = vld [vmem:[#allocation3] ss:$36 sps:$4 sm:$0xff]   ;;  %4418 = vmatpush3.bf16.msra.mxu1 %v4626_v13  ;;  %v288_v6 = vrot.slane %v286_v54, 7  ;;  %420 = vst [vmem:[#allocation2 + $0x2c] sm:$0x1] %v419_v63  ;;  %3105 = vmatprep.mubr.bf16.mxu0 %v4606_v4  ;;  %v4622_v22 = vld [vmem:[%s5759_s1 + $0x168] sm:$0xff]  }
  0x51   : > { %v1086_v7 = vld [vmem:[#allocation2 + $0x24] sm:$0xe]  ;;  %v909_v9 = vrot.slane %v908_v60, 4  ;;  %4419 = vmatprep.subr.bf16.mxu1 %v4633_v41  ;;  %v4616_v10 = vld [vmem:[%s5759_s1 + $0x130] sm:$0xff]   ;;  %v1085_v0 = vld [vmem:[#allocation2 + $0x20] sm:$0x1]  ;;  %3106 = vmatmul.mubr.bf16.vlgmr.msra.gmra.mxu0 %v4604_v3 }
  0x52   : > { %v4609_v56 = vld [vmem:[#allocation3 + $0x54] ss:$36 sps:$4 sm:$0xff]   ;;  %v291_v12 = vor.u32 %v289_v55, %v288_v6  ;;  %v1147_v19 = vrot.slane %v1085_v0, 5  ;;  %v919_v14 = vrot.slane %v918_v61, 4  ;;  %4354 = vmatpush3.bf16.msra.mxu0 %v4608_v52  ;;  %v834_v24 = vld [vmem:[#allocation2 + $0x20] sm:$0x1] }
  0x53   : > { %v4611_v8 = vld [vmem:[#allocation3 + $0x50] ss:$36 sps:$4 sm:$0xff]   ;;  %3210 = vmatprep.mubr.bf16.mxu1 %v4609_v56  ;;  %v914_v21 = vsel %vm5031_vm14, %v909_v9, %v913_v47  ;;  %v1221_v23 = vld [vmem:[#allocation2 + $0x28] sm:$0xf]  ;;  %v292_v18 = vrot.slane %v288_v6, 4  ;;  %v5096_v27 = vrot.slane %v294_v62, 7  ;;  %4355 = vmatprep.subr.bf16.mxu0 %v4614_v57 }
  0x54   : > { %v1220_v11 = vld [vmem:[#allocation2 + $0x24] sm:$0xf]  ;;  %v4612_v17 = vld [vmem:[#allocation3 + $0x4c] ss:$36 sps:$4 sm:$0xff]   ;;  %1065 = vst [vmem:[#allocation3 + $0x94] sm:$0xf] %v914_v21  ;;  %v422_v28 = vsel %vm4940_vm5, %v291_v12, %v421_v2  ;;  %v1148_v29 = vsel %vm4981_vm10, %v1146_v53, %v1147_v19 }
  0x55   : > { %1236 = vst [vmem:[#allocation3 + $0x9c] sm:$0xf] %v1220_v11  ;;  %3113 = vmatprep.mubr.bf16.mxu0 %v4612_v17  ;;  %1237 = vst [vmem:[#allocation3 + $0xc0] sm:$0xf] %v1221_v23  ;;  %v921_v30 = vshll.u32 %v834_v24, 16  ;;  %v3948_v31 = vrot.slane %v1086_v7, 9  ;;  %v299_v33 = vor.u32 %v297_v16, %v5096_v27 }
  0x56   : > { %423 = vst [vmem:[#allocation2 + $0x30] sm:$0xf] %v422_v28  ;;  %v700_v49 = vld [vmem:[#allocation2 + $0x28] sm:$0x8]  ;;  %v4615_v5 = vld [vmem:[#allocation3 + $0x48] ss:$36 sps:$4 sm:$0xff]   ;;  %4356 = vmatpush3.bf16.msra.mxu0 %v4616_v10 }
  0x57   : > { %v1087_v15 = vld [vmem:[#allocation2 + $0x28] sm:$0xf]  ;;  %1205 = vst [vmem:[#allocation3 + $0xbc] sm:$0xf] %v1148_v29  ;;  %v3936_v34 = vrot.slane %v700_v49, 11  ;;  %3211 = vmatmul.mubr.bf16.gmra.mxu1 %v4611_v8  ;;  %v923_v20 = vrot.slane %v921_v30, 5  ;;  %v300_v40 = vsel %vm4946_vm6, %v292_v18, %v299_v33  ;;  %4357 = vmatprep.subr.bf16.mxu0 %v4622_v22 }
  0x58   : > { %v4625_v32 = vld [vmem:[%s5759_s1 + $0x128] sm:$0xff]   ;;  %v1151_v36 = vrot.slane %v1087_v15, 5  ;;  %v800_v37 = vld [vmem:[#allocation2 + $0x24] sm:$0xf]  ;;  %v4636_v39 = vld [vmem:[%s5759_s1 + $0x1b0] sm:$0xff]  }
  0x59   : > { %v767_v13 = vld [vmem:[#allocation2 + $0x2c] sm:$0x1]  ;;  %v801_v26 = vld [vmem:[#allocation2 + $0x28] sm:$0xf]  ;;  %816 = vst [vmem:[#allocation3 + $0xd8] sm:$0xf] %v800_v37  ;;  %v924_v47 = vsel %vm5031_vm14, %v919_v14, %v923_v20  ;;  %4420 = vmatpush3.bf16.msra.mxu1 %v4636_v39  ;;  %3114 = vmatmul.mubr.bf16.gmra.mxu0 %v4615_v5 }
  0x5a   : > { %v4632_v25 = vld [vmem:[%s5759_s1 + $0x160] sm:$0xff]   ;;  %v768_v41 = vsel %vm4987_vm11, %v3936_v34, %v767_v13  ;;  %v1152_v42 = vsel %vm4981_vm10, %v3948_v31, %v1151_v36  ;;  %v5118_v43 = vrot.slane %v1151_v36, 4  ;;  %817 = vst [vmem:[#allocation3 + $0xfc] sm:$0xf] %v801_v26  ;;  %v836_v45 = vld [vmem:[#allocation2 + $0x28] sm:$0xf]  ;;  %4358 = vmatpush3.bf16.msra.mxu0 %v4625_v32 }
  0x5b   : > { %v835_v44 = vld [vmem:[#allocation2 + $0x24] sm:$0xf]  ;;  %424 = vst [vmem:[#allocation2 + $0x34] sm:$0xf] %v300_v40  ;;  %769 = vst [vmem:[#allocation2 + $0x2c] sm:$0x1] %v768_v41  ;;  %4359 = vmatprep.subr.bf16.mxu0 %v4632_v25 }
  0x5c   : > { %v175_v46 = vld [vmem:[%s4912_s22 + $0x100] sm:$0xff]  ;;  %1206 = vst [vmem:[#allocation3 + $0xe0] sm:$0xf] %v1152_v42  ;;  %v926_v48 = vshrl.u32 %v835_v44, 16  ;;  %v929_v50 = vshll.u32 %v835_v44, 16  ;;  %v935_v52 = vshll.u32 %v836_v45, 16 }
  0x5d   : > { %v176_v53 = vld [vmem:[%s4912_s22 + $0x108] sm:$0xff]  ;;  %1066 = vst [vmem:[#allocation3 + $0xb8] sm:$0xf] %v924_v47  ;;  %v939_v54 = vshrl.u32 %v836_v45, 16  ;;  %v4635_v55 = vld [vmem:[%s5759_s1 + $0x120] sm:$0xff]   ;;  %v4144_v57 = vpack.c.bf16 %v175_v46, %v175_v46  ;;  %v4642_v33 = vld [vmem:[%s5759_s1 + $0x158] sm:$0xff]  }
  0x5e   : > { %v928_v60 = vrot.slane %v926_v48, 4  ;;  %v931_v61 = vrot.slane %v929_v50, 5  ;;  %v937_v62 = vrot.slane %v935_v52, 5  ;;  %v605_v63 = vld [vmem:[#allocation2 + $0x30] sm:$0x2]  ;;  %v4145_v10 = vpack.c.bf16 %v176_v53, %v176_v53  ;;  %v460_v19 = vld [vmem:[%s4920_s26 + $0x100] sm:$0xff]  ;;  %4360 = vmatpush3.bf16.msra.mxu0 %v4635_v55 }
  0x5f   : > { %v673_v2 = vld [vmem:[#allocation2 + $0x30] sm:$0x1]  ;;  %v941_v3 = vrot.slane %v939_v54, 4  ;;  %v303_v4 = vshrl.u32 %v4144_v57, 16  ;;  %v4619_v7 = vld [vmem:[#allocation3 + $0x98] ss:$36 sps:$4 sm:$0xff]   ;;  %v4154_v23 = vpack.c.bf16 %v460_v19, %v460_v19  ;;  %4361 = vmatprep.subr.bf16.mxu0 %v4642_v33 }
  0x60   : > { %v4617_v6 = vld [vmem:[#allocation3 + $0x9c] ss:$36 sps:$4 sm:$0xff]   ;;  %v3925_v56 = vrot.slane %v605_v63, 9  ;;  %v932_v8 = vor.u32 %v931_v61, %v928_v60  ;;  %v306_v16 = vshll.u32 %v4144_v57, 16  ;;  %v428_v17 = vld [vmem:[#allocation2 + $0x54] sm:$0xf] }
  0x61   : > { %v942_v9 = vor.u32 %v941_v3, %v937_v62  ;;  %3218 = vmatprep.mubr.bf16.mxu1 %v4617_v6  ;;  %v305_v12 = vrot.slane %v303_v4, 7  ;;  %v4624_v18 = vld [vmem:[#allocation3 + $0x90] ss:$36 sps:$4 sm:$0xff]   ;;  %v311_v5 = vshrl.u32 %v4145_v10, 16  ;;  %v461_v32 = vld [vmem:[%s4920_s26 + $0x108] sm:$0xff]  ;;  %v314_v36 = vshll.u32 %v4145_v10, 16 }
  0x62   : > { %v674_v0 = vsel %vm4956_vm7, %v3925_v56, %v673_v2  ;;  %v933_v11 = vrot.slane %v932_v8, 4  ;;  %3219 = vmatmul.mubr.bf16.gmra.mxu1 %v4619_v7  ;;  %v1088_v21 = vld [vmem:[#allocation2 + $0x2c] sm:$0x1]  ;;  %v1223_v14 = vld [vmem:[#allocation2 + $0x34] sm:$0xf]  ;;  %v4155_v20 = vpack.c.bf16 %v461_v32, %v461_v32  ;;  %v492_v39 = vshrl.u32 %v4154_v23, 16 }
  0x63   : > { %675 = vst [vmem:[#allocation2 + $0x30] sm:$0x1] %v674_v0  ;;  %v837_v22 = vld [vmem:[#allocation2 + $0x2c] sm:$0x1]  ;;  %v1154_v28 = vrot.slane %v1088_v21, 5  ;;  %v308_v30 = vor.u32 %v306_v16, %v305_v12  ;;  %v943_v49 = vrot.slane %v942_v9, 4 }
  0x64   : > { %v4620_v24 = vld [vmem:[#allocation3 + $0x94] ss:$36 sps:$4 sm:$0xff]   ;;  %1239 = vst [vmem:[#allocation3 + $0x108] sm:$0xf] %v1223_v14  ;;  %v938_v29 = vsel %vm5031_vm14, %v933_v11, %v937_v62  ;;  %v945_v15 = vshll.u32 %v837_v22, 16  ;;  %v309_v31 = vrot.slane %v305_v12, 4 }
  0x65   : > { %1067 = vst [vmem:[#allocation3 + $0xdc] sm:$0xf] %v938_v29  ;;  %3121 = vmatprep.mubr.bf16.mxu0 %v4620_v24  ;;  %v1155_v34 = vsel %vm4981_vm10, %v5118_v43, %v1154_v28  ;;  %v429_v37 = vsel %vm4940_vm5, %v308_v30, %v428_v17  ;;  %v4643_v13 = vld [vmem:[%s5759_s1 + $0x1e8] sm:$0xff]   ;;  %v313_v25 = vrot.slane %v311_v5, 7  ;;  %v495_v40 = vshll.u32 %v4154_v23, 16  ;;  %v4645_v53 = vld [vmem:[%s5759_s1 + $0x118] sm:$0xff]  }
  0x66   : > { %3122 = vmatmul.mubr.bf16.gmra.mxu0 %v4624_v18  ;;  %1207 = vst [vmem:[#allocation3 + $0x104] sm:$0xf] %v1155_v34  ;;  %v947_v26 = vrot.slane %v945_v15, 5  ;;  %430 = vst [vmem:[#allocation2 + $0x54] sm:$0xf] %v429_v37  ;;  %v500_v41 = vshrl.u32 %v4155_v20, 16  ;;  %4421 = vmatprep.subr.bf16.mxu1 %v4643_v13 }
  0x67   : > { %v503_v42 = vshll.u32 %v4155_v20, 16  ;;  %v521_v43 = vld [vmem:[#allocation2 + $0x48] sm:$0xf]  ;;  %v316_v45 = vor.u32 %v314_v36, %v313_v25  ;;  %v318_v46 = vrot.slane %v313_v25, 4  ;;  %v494_v47 = vrot.slane %v492_v39, 7  ;;  %4362 = vmatpush3.bf16.msra.mxu0 %v4645_v53  ;;  %v177_v63 = vld [vmem:[%s4912_s22 + $0x110] sm:$0xff] }
  0x68   : > { %v948_v44 = vsel %vm5031_vm14, %v943_v49, %v947_v26  ;;  %v525_v48 = vld [vmem:[#allocation2 + $0x50] sm:$0x1]  ;;  %v502_v52 = vrot.slane %v500_v41, 7  ;;  %v4646_v60 = vld [vmem:[%s5759_s1 + $0x1a8] sm:$0xff]   ;;  %v178_v2 = vld [vmem:[%s4912_s22 + $0x118] sm:$0xff]  ;;  %v4146_v4 = vpack.c.bf16 %v177_v63, %v177_v63 }
  0x69   : > { %1068 = vst [vmem:[#allocation3 + $0x100] sm:$0xf] %v948_v44  ;;  %v317_v54 = vsel %vm4946_vm6, %v309_v31, %v316_v45  ;;  %v497_v55 = vor.u32 %v495_v40, %v494_v47  ;;  %v498_v57 = vrot.slane %v494_v47, 4  ;;  %4422 = vmatpush3.bf16.msra.mxu1 %v4646_v60  ;;  %v4147_v6 = vpack.c.bf16 %v178_v2, %v178_v2  ;;  %v432_v7 = vld [vmem:[#allocation2 + $0x5c] sm:$0x1]  ;;  %v4650_v23 = vld [vmem:[%s5759_s1 + $0x1e0] sm:$0xff]  }
  0x6a   : > { %v1222_v50 = vld [vmem:[#allocation2 + $0x30] sm:$0xf]  ;;  %431 = vst [vmem:[#allocation2 + $0x58] sm:$0xf] %v317_v54  ;;  %v505_v61 = vor.u32 %v503_v42, %v502_v52  ;;  %v507_v62 = vrot.slane %v502_v52, 4  ;;  %v433_v0 = vsel %vm4956_vm7, %v318_v46, %v432_v7  ;;  %v320_v12 = vshrl.u32 %v4146_v4, 16  ;;  %4423 = vmatprep.subr.bf16.mxu1 %v4650_v23 }
  0x6b   : > { %1238 = vst [vmem:[#allocation3 + $0xe4] sm:$0xf] %v1222_v50  ;;  %v522_v3 = vsel %vm4940_vm5, %v497_v55, %v521_v43  ;;  %v323_v16 = vshll.u32 %v4146_v4, 16  ;;  %v328_v17 = vshrl.u32 %v4147_v6, 16  ;;  %434 = vst [vmem:[#allocation2 + $0x5c] sm:$0x1] %v433_v0 }
  0x6c   : > { %v506_v56 = vsel %vm4946_vm6, %v498_v57, %v505_v61  ;;  %523 = vst [vmem:[#allocation2 + $0x48] sm:$0xf] %v522_v3  ;;  %v526_v8 = vsel %vm4956_vm7, %v507_v62, %v525_v48  ;;  %v331_v21 = vshll.u32 %v4147_v6, 16  ;;  %v435_v14 = vld [vmem:[#allocation2 + $0x60] sm:$0xf]  ;;  %v4653_v24 = vld [vmem:[%s5759_s1 + $0x150] sm:$0xff]  }
  0x6d   : > { %v608_v9 = vld [vmem:[#allocation2 + $0x54] sm:$0x2]  ;;  %v682_v10 = vld [vmem:[#allocation2 + $0x54] sm:$0x1]  ;;  %524 = vst [vmem:[#allocation2 + $0x4c] sm:$0xf] %v506_v56  ;;  %4363 = vmatprep.subr.bf16.mxu0 %v4653_v24 }
  0x6e   : > { %527 = vst [vmem:[#allocation2 + $0x50] sm:$0x1] %v526_v8  ;;  %v3928_v11 = vrot.slane %v608_v9, 9  ;;  %v5164_v19 = vld [vmem:[#allocation2 + $0x54] sm:$0xe]  ;;  %v322_v30 = vrot.slane %v320_v12, 7 }
  0x6f   : > { %v3950_v22 = vrot.slane %v5164_v19, 9  ;;  %v4634_v28 = vld [vmem:[#allocation3 + $0xd8] ss:$36 sps:$4 sm:$0xff]   ;;  %v4629_v15 = vld [vmem:[#allocation3 + $0xe0] ss:$36 sps:$4 sm:$0xff]   ;;  %v5175_v31 = vrot.slane %v328_v17, 7 }
  0x70   : > { %v4630_v18 = vld [vmem:[#allocation3 + $0xdc] ss:$36 sps:$4 sm:$0xff]   ;;  %v683_v29 = vsel %vm4956_vm7, %v3928_v11, %v682_v10  ;;  %v325_v32 = vor.u32 %v323_v16, %v322_v30  ;;  %v326_v33 = vrot.slane %v322_v30, 4  ;;  %v4654_v36 = vld [vmem:[%s5759_s1 + $0x1a0] sm:$0xff]  }
  0x71   : > { %684 = vst [vmem:[#allocation2 + $0x54] sm:$0x1] %v683_v29  ;;  %3129 = vmatprep.mubr.bf16.mxu0 %v4630_v18  ;;  %v1225_v5 = vld [vmem:[#allocation2 + $0x58] sm:$0xf]  ;;  %v333_v37 = vor.u32 %v331_v21, %v5175_v31  ;;  %v335_v20 = vrot.slane %v5175_v31, 4  ;;  %4424 = vmatpush3.bf16.msra.mxu1 %v4654_v36  ;;  %v4656_v60 = vld [vmem:[%s5759_s1 + $0x110] sm:$0xff]  }
  0x72   : > { %v4627_v49 = vld [vmem:[#allocation3 + $0xe4] ss:$36 sps:$4 sm:$0xff]   ;;  %3130 = vmatmul.mubr.bf16.gmra.mxu0 %v4634_v28  ;;  %1241 = vst [vmem:[#allocation3 + $0x150] sm:$0xf] %v1225_v5  ;;  %v436_v42 = vsel %vm4940_vm5, %v325_v32, %v435_v14  ;;  %v779_v55 = vld [vmem:[#allocation2 + $0x5c] sm:$0x1] }
  0x73   : > { %v704_v34 = vld [vmem:[#allocation2 + $0x58] sm:$0x8]  ;;  %3226 = vmatprep.mubr.bf16.mxu1 %v4627_v49  ;;  %v1089_v39 = vld [vmem:[#allocation2 + $0x48] sm:$0xe]  ;;  %v679_v41 = vld [vmem:[#allocation2 + $0x48] sm:$0x1]  ;;  %v334_v46 = vsel %vm4946_vm6, %v326_v33, %v333_v37  ;;  %4364 = vmatpush3.bf16.msra.mxu0 %v4656_v60 }
  0x74   : > { %v3940_v13 = vrot.slane %v704_v34, 11  ;;  %v1093_v26 = vld [vmem:[#allocation2 + $0x58] sm:$0xf]  ;;  %3227 = vmatmul.mubr.bf16.gmra.mxu1 %v4629_v15  ;;  %v607_v40 = vld [vmem:[#allocation2 + $0x48] sm:$0x2]  ;;  %v3949_v48 = vrot.slane %v1089_v39, 9 }
  0x75   : > { %v805_v25 = vld [vmem:[#allocation2 + $0x58] sm:$0xf]  ;;  %v703_v43 = vld [vmem:[#allocation2 + $0x4c] sm:$0x8]  ;;  %v776_v44 = vld [vmem:[#allocation2 + $0x50] sm:$0x1] }
  0x76   : > { %821 = vst [vmem:[#allocation3 + $0x18c] sm:$0xf] %v805_v25  ;;  %v1090_v45 = vld [vmem:[#allocation2 + $0x4c] sm:$0xf]  ;;  %437 = vst [vmem:[#allocation2 + $0x60] sm:$0xf] %v436_v42  ;;  %v780_v8 = vsel %vm4987_vm11, %v3940_v13, %v779_v55 }
  0x77   : > { %v3939_v47 = vrot.slane %v703_v43, 11  ;;  %v1158_v50 = vrot.slane %v1090_v45, 5  ;;  %v3927_v52 = vrot.slane %v607_v40, 9  ;;  %v803_v53 = vld [vmem:[#allocation2 + $0x4c] sm:$0xf]  ;;  %v1165_v57 = vrot.slane %v1093_v26, 5 }
  0x78   : > { %438 = vst [vmem:[#allocation2 + $0x64] sm:$0xf] %v334_v46  ;;  %819 = vst [vmem:[#allocation3 + $0x144] sm:$0xf] %v803_v53  ;;  %v839_v54 = vld [vmem:[#allocation2 + $0x4c] sm:$0xf] }
  0x79   : > { %v777_v61 = vsel %vm4987_vm11, %v3939_v47, %v776_v44  ;;  %v1159_v62 = vsel %vm4981_vm10, %v3949_v48, %v1158_v50  ;;  %v5193_v63 = vrot.slane %v1158_v50, 4  ;;  %v1224_v2 = vld [vmem:[#allocation2 + $0x54] sm:$0xf]  ;;  %v680_v3 = vsel %vm4956_vm7, %v3927_v52, %v679_v41  ;;  %v179_v6 = vld [vmem:[%s4912_s22 + $0x120] sm:$0xff]  ;;  %v842_v0 = vld [vmem:[#allocation2 + $0x58] sm:$0xf] }
  0x7a   : > { %v804_v4 = vld [vmem:[#allocation2 + $0x54] sm:$0xf]  ;;  %778 = vst [vmem:[#allocation2 + $0x50] sm:$0x1] %v777_v61  ;;  %1208 = vst [vmem:[#allocation3 + $0x128] sm:$0xf] %v1159_v62  ;;  %v1166_v9 = vsel %vm4981_vm10, %v3950_v22, %v1165_v57  ;;  %v4148_v24 = vpack.c.bf16 %v179_v6, %v179_v6 }
  0x7b   : > { %1240 = vst [vmem:[#allocation3 + $0x12c] sm:$0xf] %v1224_v2  ;;  %681 = vst [vmem:[#allocation2 + $0x48] sm:$0x1] %v680_v3  ;;  %v959_v7 = vshll.u32 %v839_v54, 16  ;;  %v963_v56 = vshrl.u32 %v839_v54, 16 }
  0x7c   : > { %820 = vst [vmem:[#allocation3 + $0x168] sm:$0xf] %v804_v4  ;;  %v841_v10 = vld [vmem:[#allocation2 + $0x54] sm:$0xf]  ;;  %781 = vst [vmem:[#allocation2 + $0x5c] sm:$0x1] %v780_v8 }
  0x7d   : > { %v1167_v11 = vrot.slane %v1165_v57, 4  ;;  %1210 = vst [vmem:[#allocation3 + $0x170] sm:$0xf] %v1166_v9  ;;  %v974_v12 = vshrl.u32 %v841_v10, 16  ;;  %v977_v16 = vshll.u32 %v841_v10, 16  ;;  %v983_v17 = vshll.u32 %v842_v0, 16 }
  0x7e   : > { %v5204_v21 = vrot.slane %v959_v7, 5  ;;  %v965_v14 = vrot.slane %v963_v56, 4  ;;  %v987_v23 = vshrl.u32 %v842_v0, 16  ;;  %v609_v19 = vld [vmem:[#allocation2 + $0x60] sm:$0x2]  ;;  %v180_v29 = vld [vmem:[%s4912_s22 + $0x128] sm:$0xff] }
  0x7f   : > { %v685_v18 = vld [vmem:[#allocation2 + $0x60] sm:$0x1]  ;;  %v976_v28 = vrot.slane %v974_v12, 4  ;;  %v979_v22 = vrot.slane %v977_v16, 5  ;;  %v3929_v49 = vrot.slane %v609_v19, 9  ;;  %v985_v5 = vrot.slane %v983_v17, 5 }
  0x80   : > { %v966_v30 = vor.u32 %v965_v14, %v5204_v21  ;;  %v1227_v15 = vld [vmem:[#allocation2 + $0x64] sm:$0xf]  ;;  %v989_v32 = vrot.slane %v987_v23, 4  ;;  %v4660_v33 = vld [vmem:[%s5759_s1 + $0x1d8] sm:$0xff]   ;;  %v337_v26 = vshrl.u32 %v4148_v24, 16  ;;  %v4149_v47 = vpack.c.bf16 %v180_v29, %v180_v29  ;;  %v4662_v62 = vld [vmem:[%s5759_s1 + $0x1d0] sm:$0xff]  }
  0x81   : > { %1243 = vst [vmem:[#allocation3 + $0x198] sm:$0xf] %v1227_v15  ;;  %v980_v34 = vor.u32 %v979_v22, %v976_v28  ;;  %v686_v37 = vsel %vm4956_vm7, %v3929_v49, %v685_v18  ;;  %v439_v25 = vld [vmem:[#allocation2 + $0x68] sm:$0x1]  ;;  %4425 = vmatprep.subr.bf16.mxu1 %v4660_v33  ;;  %v1091_v39 = vld [vmem:[#allocation2 + $0x50] sm:$0x1] }
  0x82   : > { %v967_v36 = vrot.slane %v966_v30, 4  ;;  %v990_v13 = vor.u32 %v989_v32, %v985_v5  ;;  %v802_v40 = vld [vmem:[#allocation2 + $0x48] sm:$0xf]  ;;  %687 = vst [vmem:[#allocation2 + $0x60] sm:$0x1] %v686_v37  ;;  %v440_v42 = vsel %vm4956_vm7, %v335_v20, %v439_v25  ;;  %v1161_v43 = vrot.slane %v1091_v39, 5 }
  0x83   : > { %v981_v41 = vrot.slane %v980_v34, 4  ;;  %818 = vst [vmem:[#allocation3 + $0x120] sm:$0xf] %v802_v40  ;;  %v838_v44 = vld [vmem:[#allocation2 + $0x48] sm:$0xf]  ;;  %v4661_v31 = vld [vmem:[%s5759_s1 + $0x198] sm:$0xff]  }
  0x84   : > { %v840_v45 = vld [vmem:[#allocation2 + $0x50] sm:$0x1]  ;;  %v991_v46 = vrot.slane %v990_v13, 4  ;;  %441 = vst [vmem:[#allocation2 + $0x68] sm:$0x1] %v440_v42  ;;  %v950_v48 = vshrl.u32 %v838_v44, 16  ;;  %v1162_v20 = vsel %vm4981_vm10, %v5193_v63, %v1161_v43  ;;  %4426 = vmatpush3.bf16.msra.mxu1 %v4661_v31 }
  0x85   : > { %v953_v50 = vshll.u32 %v838_v44, 16  ;;  %v969_v52 = vshll.u32 %v840_v45, 16  ;;  %v1094_v53 = vld [vmem:[#allocation2 + $0x5c] sm:$0x1]  ;;  %v986_v54 = vsel %vm5031_vm14, %v981_v41, %v985_v5  ;;  %v339_v60 = vrot.slane %v337_v26, 7  ;;  %4427 = vmatprep.subr.bf16.mxu1 %v4662_v62  ;;  %v4665_v22 = vld [vmem:[%s5759_s1 + $0x148] sm:$0xff]  }
  0x86   : > { %v1168_v55 = vrot.slane %v1094_v53, 5  ;;  %v843_v57 = vld [vmem:[#allocation2 + $0x5c] sm:$0x1]  ;;  %1071 = vst [vmem:[#allocation3 + $0x16c] sm:$0xf] %v986_v54  ;;  %v340_v61 = vshll.u32 %v4148_v24, 16  ;;  %4365 = vmatprep.subr.bf16.mxu0 %v4665_v22 }
  0x87   : > { %1209 = vst [vmem:[#allocation3 + $0x14c] sm:$0xf] %v1162_v20  ;;  %v952_v2 = vrot.slane %v950_v48, 4  ;;  %v955_v3 = vrot.slane %v953_v50, 5  ;;  %v971_v4 = vrot.slane %v969_v52, 5  ;;  %v993_v6 = vshll.u32 %v843_v57, 16 }
  0x88   : > { %v442_v7 = vld [vmem:[#allocation2 + $0x6c] sm:$0xf]  ;;  %v1169_v56 = vsel %vm4981_vm10, %v1167_v11, %v1168_v55  ;;  %v342_v63 = vor.u32 %v340_v61, %v339_v60  ;;  %v343_v8 = vrot.slane %v339_v60, 4  ;;  %v345_v9 = vshrl.u32 %v4149_v47, 16  ;;  %v705_v10 = vld [vmem:[#allocation2 + $0x64] sm:$0x8] }
  0x89   : > { %v1095_v0 = vld [vmem:[#allocation2 + $0x60] sm:$0xe]  ;;  %v956_v12 = vor.u32 %v955_v3, %v952_v2  ;;  %v972_v16 = vsel %vm5031_vm14, %v967_v36, %v971_v4  ;;  %1211 = vst [vmem:[#allocation3 + $0x194] sm:$0xf] %v1169_v56  ;;  %v995_v17 = vrot.slane %v993_v6, 5  ;;  %v348_v14 = vshll.u32 %v4149_v47, 16 }
  0x8a   : > { %v1096_v23 = vld [vmem:[#allocation2 + $0x64] sm:$0xf]  ;;  %1070 = vst [vmem:[#allocation3 + $0x148] sm:$0xf] %v972_v16  ;;  %v1226_v24 = vld [vmem:[#allocation2 + $0x60] sm:$0xf]  ;;  %v443_v11 = vsel %vm4940_vm5, %v342_v63, %v442_v7 }
  0x8b   : > { %v5232_v19 = vrot.slane %v345_v9, 7  ;;  %v3941_v18 = vrot.slane %v705_v10, 11  ;;  %v3951_v28 = vrot.slane %v1095_v0, 9  ;;  %v957_v29 = vrot.slane %v956_v12, 4  ;;  %1242 = vst [vmem:[#allocation3 + $0x174] sm:$0xf] %v1226_v24 }
  0x8c   : > { %v996_v30 = vsel %vm5031_vm14, %v991_v46, %v995_v17  ;;  %444 = vst [vmem:[#allocation2 + $0x6c] sm:$0xf] %v443_v11  ;;  %v782_v49 = vld [vmem:[#allocation2 + $0x68] sm:$0x1]  ;;  %v1172_v15 = vrot.slane %v1096_v23, 5  ;;  %v4666_v33 = vld [vmem:[%s5759_s1 + $0x190] sm:$0xff]  }
  0x8d   : > { %1072 = vst [vmem:[#allocation3 + $0x190] sm:$0xf] %v996_v30  ;;  %v350_v5 = vor.u32 %v348_v14, %v5232_v19  ;;  %v783_v32 = vsel %vm4987_vm11, %v3941_v18, %v782_v49  ;;  %v962_v34 = vsel %vm5031_vm14, %v957_v29, %v5204_v21  ;;  %v4637_v37 = vld [vmem:[#allocation3 + $0x12c] ss:$36 sps:$4 sm:$0xff]   ;;  %4428 = vmatpush3.bf16.msra.mxu1 %v4666_v33  ;;  %v807_v39 = vld [vmem:[#allocation2 + $0x64] sm:$0xf] }
  0x8e   : > { %784 = vst [vmem:[#allocation2 + $0x68] sm:$0x1] %v783_v32  ;;  %v1173_v36 = vsel %vm4981_vm10, %v3951_v28, %v1172_v15  ;;  %v4639_v13 = vld [vmem:[#allocation3 + $0x128] ss:$36 sps:$4 sm:$0xff]   ;;  %1069 = vst [vmem:[#allocation3 + $0x124] sm:$0xf] %v962_v34  ;;  %3234 = vmatprep.mubr.bf16.mxu1 %v4637_v37 }
  0x8f   : > { %v351_v26 = vsel %vm4946_vm6, %v343_v8, %v350_v5  ;;  %1212 = vst [vmem:[#allocation3 + $0x1b8] sm:$0xf] %v1173_v36  ;;  %v806_v25 = vld [vmem:[#allocation2 + $0x60] sm:$0xf]  ;;  %823 = vst [vmem:[#allocation3 + $0x1d4] sm:$0xf] %v807_v39  ;;  %3235 = vmatmul.mubr.bf16.gmra.mxu1 %v4639_v13 }
  0x90   : > { %445 = vst [vmem:[#allocation2 + $0x70] sm:$0xf] %v351_v26  ;;  %v844_v40 = vld [vmem:[#allocation2 + $0x60] sm:$0xf]  ;;  %822 = vst [vmem:[#allocation3 + $0x1b0] sm:$0xf] %v806_v25 }
  0x91   : > { %v845_v21 = vld [vmem:[#allocation2 + $0x64] sm:$0xf]  ;;  %v998_v41 = vshrl.u32 %v844_v40, 16  ;;  %v1001_v42 = vshll.u32 %v844_v40, 16  ;;  %v4668_v43 = vld [vmem:[%s5759_s1 + $0x108] sm:$0xff]   ;;  %v352_v44 = vrot.slane %v5232_v19, 4 }
  0x92   : > { %v1174_v45 = vrot.slane %v1172_v15, 4  ;;  %v1007_v46 = vshll.u32 %v845_v21, 16  ;;  %v4647_v47 = vld [vmem:[#allocation3 + $0x174] ss:$36 sps:$4 sm:$0xff]   ;;  %v1011_v50 = vshrl.u32 %v845_v21, 16  ;;  %4366 = vmatpush3.bf16.msra.mxu0 %v4668_v43  ;;  %v181_v52 = vld [vmem:[%s4912_s22 + $0x130] sm:$0xff] }
  0x93   : > { %v1000_v48 = vrot.slane %v998_v41, 4  ;;  %v4649_v53 = vld [vmem:[#allocation3 + $0x170] ss:$36 sps:$4 sm:$0xff]   ;;  %v1003_v31 = vrot.slane %v1001_v42, 5  ;;  %3242 = vmatprep.mubr.bf16.mxu1 %v4647_v47  ;;  %v610_v20 = vld [vmem:[#allocation2 + $0x6c] sm:$0x2]  ;;  %v4150_v3 = vpack.c.bf16 %v181_v52, %v181_v52 }
  0x94   : > { %v4651_v54 = vld [vmem:[#allocation3 + $0x16c] ss:$36 sps:$4 sm:$0xff]   ;;  %v688_v55 = vld [vmem:[#allocation2 + $0x6c] sm:$0x1]  ;;  %v4644_v61 = vld [vmem:[#allocation3 + $0x120] ss:$36 sps:$4 sm:$0xff]  }
  0x95   : > { %v1097_v57 = vld [vmem:[#allocation2 + $0x68] sm:$0x1]  ;;  %v4640_v60 = vld [vmem:[#allocation3 + $0x124] ss:$36 sps:$4 sm:$0xff]   ;;  %v3930_v62 = vrot.slane %v610_v20, 9  ;;  %v1004_v2 = vor.u32 %v1003_v31, %v1000_v48  ;;  %v1009_v56 = vrot.slane %v1007_v46, 5 }
  0x96   : > { %v1175_v4 = vrot.slane %v1097_v57, 5  ;;  %v846_v7 = vld [vmem:[#allocation2 + $0x68] sm:$0x1]  ;;  %3137 = vmatprep.mubr.bf16.mxu0 %v4640_v60  ;;  %v1013_v9 = vrot.slane %v1011_v50, 4  ;;  %v182_v0 = vld [vmem:[%s4912_s22 + $0x138] sm:$0xff]  ;;  %v354_v24 = vshrl.u32 %v4150_v3, 16 }
  0x97   : > { %v1229_v6 = vld [vmem:[#allocation2 + $0x70] sm:$0xf]  ;;  %v689_v63 = vsel %vm4956_vm7, %v3930_v62, %v688_v55  ;;  %v1005_v8 = vrot.slane %v1004_v2, 4  ;;  %v1017_v10 = vshll.u32 %v846_v7, 16  ;;  %3138 = vmatmul.mubr.bf16.gmra.mxu0 %v4644_v61  ;;  %v4151_v16 = vpack.c.bf16 %v182_v0, %v182_v0  ;;  %3243 = vmatmul.mubr.bf16.gmra.mxu1 %v4649_v53  ;;  %v446_v19 = vld [vmem:[#allocation2 + $0x74] sm:$0x1] }
  0x98   : > { %1245 = vst [vmem:[#allocation3 + $0x1e0] sm:$0xf] %v1229_v6  ;;  %690 = vst [vmem:[#allocation2 + $0x6c] sm:$0x1] %v689_v63  ;;  %v1176_v12 = vsel %vm4981_vm10, %v1174_v45, %v1175_v4  ;;  %3145 = vmatprep.mubr.bf16.mxu0 %v4651_v54  ;;  %v1014_v14 = vor.u32 %v1013_v9, %v1009_v56  ;;  %v4655_v11 = vld [vmem:[#allocation3 + $0x168] ss:$36 sps:$4 sm:$0xff]   ;;  %v447_v29 = vsel %vm4956_vm7, %v352_v44, %v446_v19 }
  0x99   : > { %1213 = vst [vmem:[#allocation3 + $0x1dc] sm:$0xf] %v1176_v12  ;;  %v1010_v17 = vsel %vm5031_vm14, %v1005_v8, %v1009_v56  ;;  %v1019_v23 = vrot.slane %v1017_v10, 5  ;;  %v357_v18 = vshll.u32 %v4150_v3, 16  ;;  %v362_v28 = vshrl.u32 %v4151_v16, 16  ;;  %v4672_v49 = vld [vmem:[%s5759_s1 + $0x1c8] sm:$0xff]  }
  0x9a   : > { %1073 = vst [vmem:[#allocation3 + $0x1b4] sm:$0xf] %v1010_v17  ;;  %v365_v22 = vshll.u32 %v4151_v16, 16  ;;  %v449_v30 = vld [vmem:[#allocation2 + $0x78] sm:$0xf]  ;;  %v1015_v15 = vrot.slane %v1014_v14, 4  ;;  %4429 = vmatprep.subr.bf16.mxu1 %v4672_v49 }
  0x9b   : > { %v356_v5 = vrot.slane %v354_v24, 7  ;;  %448 = vst [vmem:[#allocation2 + $0x74] sm:$0x1] %v447_v29  ;;  %v706_v32 = vld [vmem:[#allocation2 + $0x70] sm:$0x8]  ;;  %v5271_v34 = vrot.slane %v362_v28, 7 }
  0x9c   : > { %v1098_v33 = vld [vmem:[#allocation2 + $0x6c] sm:$0xe]  ;;  %v5273_v36 = vld [vmem:[#allocation2 + $0x70] sm:$0xf]  ;;  %v1020_v26 = vsel %vm5031_vm14, %v1015_v15, %v1019_v23  ;;  %v4674_v41 = vld [vmem:[%s5759_s1 + $0x1c0] sm:$0xff]   ;;  %v3942_v44 = vrot.slane %v706_v32, 11 }
  0x9d   : > { %v3952_v37 = vrot.slane %v1098_v33, 9  ;;  %v4673_v13 = vld [vmem:[%s5759_s1 + $0x188] sm:$0xff]   ;;  %v359_v25 = vor.u32 %v357_v18, %v356_v5  ;;  %v360_v39 = vrot.slane %v356_v5, 4  ;;  %v1179_v40 = vrot.slane %v5273_v36, 5  ;;  %1074 = vst [vmem:[#allocation3 + $0x1d8] sm:$0xf] %v1020_v26 }
  0x9e   : > { %v367_v21 = vor.u32 %v365_v22, %v5271_v34  ;;  %4430 = vmatpush3.bf16.msra.mxu1 %v4673_v13  ;;  %v4677_v46 = vld [vmem:[%s5759_s1 + $0x140] sm:$0xff]   ;;  %v809_v50 = vld [vmem:[#allocation2 + $0x70] sm:$0xf]  ;;  %v1633_v23 = vld [vmem:[#allocation2 + $0x18] sm:$0xf] }
  0x9f   : > { %v1228_v42 = vld [vmem:[#allocation2 + $0x6c] sm:$0xf]  ;;  %v450_v43 = vsel %vm4940_vm5, %v359_v25, %v449_v30  ;;  %v1180_v45 = vsel %vm4981_vm10, %v3952_v37, %v1179_v40  ;;  %3146 = vmatmul.mubr.bf16.gmra.mxu0 %v4655_v11  ;;  %4431 = vmatprep.subr.bf16.mxu1 %v4674_v41  ;;  %825 = vst [vmem:[#allocation3 + $0x21c] sm:$0xf] %v809_v50  ;;  %v848_v54 = vld [vmem:[#allocation2 + $0x70] sm:$0xf] }
  0xa0   : > { %1244 = vst [vmem:[#allocation3 + $0x1bc] sm:$0xf] %v1228_v42  ;;  %v368_v47 = vsel %vm4946_vm6, %v360_v39, %v367_v21  ;;  %451 = vst [vmem:[#allocation2 + $0x78] sm:$0xf] %v450_v43  ;;  %v808_v48 = vld [vmem:[#allocation2 + $0x6c] sm:$0xf]  ;;  %4367 = vmatprep.subr.bf16.mxu0 %v4677_v46 }
  0xa1   : > { %1214 = vst [vmem:[#allocation3 + $0x200] sm:$0xf] %v1180_v45  ;;  %452 = vst [vmem:[#allocation2 + $0x7c] sm:$0xf] %v368_v47  ;;  %v847_v52 = vld [vmem:[#allocation2 + $0x6c] sm:$0xf] }
  0xa2   : > { %824 = vst [vmem:[#allocation3 + $0x1f8] sm:$0xf] %v808_v48  ;;  %v785_v53 = vld [vmem:[#allocation2 + $0x74] sm:$0x1]  ;;  %v1022_v31 = vshrl.u32 %v847_v52, 16  ;;  %v1025_v20 = vshll.u32 %v847_v52, 16 }
  0xa3   : > { %v786_v55 = vsel %vm4987_vm11, %v3942_v44, %v785_v53  ;;  %v1031_v57 = vshll.u32 %v848_v54, 16  ;;  %v1035_v60 = vshrl.u32 %v848_v54, 16  ;;  %v4667_v3 = vld [vmem:[#allocation3 + $0x1b0] ss:$36 sps:$4 sm:$0xff]   ;;  %v4659_v8 = vld [vmem:[#allocation3 + $0x1b8] ss:$36 sps:$4 sm:$0xff]  }
  0xa4   : > { %787 = vst [vmem:[#allocation2 + $0x74] sm:$0x1] %v786_v55  ;;  %v1024_v61 = vrot.slane %v1022_v31, 4  ;;  %v1027_v62 = vrot.slane %v1025_v20, 5  ;;  %v4663_v2 = vld [vmem:[#allocation3 + $0x1b4] ss:$36 sps:$4 sm:$0xff]  }
  0xa5   : > { %v1033_v4 = vrot.slane %v1031_v57, 5  ;;  %v1037_v7 = vrot.slane %v1035_v60, 4  ;;  %v4678_v56 = vld [vmem:[%s5759_s1 + $0x180] sm:$0xff]   ;;  %3153 = vmatprep.mubr.bf16.mxu0 %v4663_v2  ;;  %v5311_v24 = vld [vmem:[%s5759_s1 + $0x238] sm:$0xff]   ;;  %v1181_v19 = vrot.slane %v1179_v40, 4 }
  0xa6   : > { %v1028_v6 = vor.u32 %v1027_v62, %v1024_v61  ;;  %4432 = vmatpush3.bf16.msra.mxu1 %v4678_v56  ;;  %v4680_v14 = vld [vmem:[%s5759_s1 + $0x100] sm:$0xff]   ;;  %v1634_v18 = vld [vmem:[#allocation2 + $0x1c] sm:$0xf]  ;;  %1649 = vst [vmem:[#allocation3 + $0x18] sm:$0xf] %v1633_v23 }
  0xa7   : > { %v4657_v63 = vld [vmem:[#allocation3 + $0x1bc] ss:$36 sps:$4 sm:$0xff]   ;;  %3154 = vmatmul.mubr.bf16.gmra.mxu0 %v4667_v3  ;;  %v611_v9 = vld [vmem:[#allocation2 + $0x78] sm:$0x2]  ;;  %v691_v10 = vld [vmem:[#allocation2 + $0x78] sm:$0x1]  ;;  %v1038_v12 = vor.u32 %v1037_v7, %v1033_v4  ;;  %4529 = vmatprep.subr.bf16.mxu1 %v5311_v24 }
  0xa8   : > { %v1231_v0 = vld [vmem:[#allocation2 + $0x7c] sm:$0xf]  ;;  %3250 = vmatprep.mubr.bf16.mxu1 %v4657_v63  ;;  %v3931_v16 = vrot.slane %v611_v9, 9  ;;  %v1029_v17 = vrot.slane %v1028_v6, 4  ;;  %v1665_v28 = vld [vmem:[#allocation2 + $0x18] sm:$0xf]  ;;  %4368 = vmatpush3.bf16.msra.mxu0 %v4680_v14 }
  0xa9   : > { %1247 = vst [vmem:[#allocation3 + $0x228] sm:$0xf] %v1231_v0  ;;  %3251 = vmatmul.mubr.bf16.gmra.mxu1 %v4659_v8  ;;  %v1039_v11 = vrot.slane %v1038_v12, 4  ;;  %1650 = vst [vmem:[#allocation3 + $0x3c] sm:$0xf] %v1634_v18  ;;  %v1690_v36 = vshrl.u32 %v1665_v28, 16  ;;  %4497 = vmatprep.subr.bf16.mxu0 %v5311_v24 }
  0xaa   : > { %v692_v22 = vsel %vm4956_vm7, %v3931_v16, %v691_v10  ;;  %v1034_v49 = vsel %vm5031_vm14, %v1029_v17, %v1033_v4  ;;  %v1666_v15 = vld [vmem:[#allocation2 + $0x1c] sm:$0xf]  ;;  %v1667_v33 = vld [vmem:[#allocation2 + $0x20] sm:$0x1]  ;;  %v1693_v37 = vshll.u32 %v1665_v28, 16 }
  0xab   : > { %v1100_v29 = vld [vmem:[#allocation2 + $0x74] sm:$0x1]  ;;  %693 = vst [vmem:[#allocation2 + $0x78] sm:$0x1] %v692_v22  ;;  %1075 = vst [vmem:[#allocation3 + $0x1fc] sm:$0xf] %v1034_v49 }
  0xac   : > { %v849_v30 = vld [vmem:[#allocation2 + $0x74] sm:$0x1]  ;;  %v1182_v5 = vrot.slane %v1100_v29, 5  ;;  %v1699_v13 = vshll.u32 %v1666_v15, 16  ;;  %v1703_v26 = vshrl.u32 %v1666_v15, 16  ;;  %v1709_v25 = vshll.u32 %v1667_v33, 16 }
  0xad   : > { %v1041_v32 = vshll.u32 %v849_v30, 16  ;;  %v1248_v39 = vld [vmem:[#allocation2 + $0xc] sm:$0xf]  ;;  %v1692_v41 = vrot.slane %v1690_v36, 4  ;;  %v1695_v42 = vrot.slane %v1693_v37, 5  ;;  %v530_v49 = vld [vmem:[%s5327_s25] sm:$0xff] }
  0xae   : > { %v1183_v40 = vsel %vm4981_vm10, %v1181_v19, %v1182_v5  ;;  %v1249_v43 = vld [vmem:[#allocation2 + $0x10] sm:$0xf]  ;;  %v1701_v44 = vrot.slane %v1699_v13, 5  ;;  %v1705_v45 = vrot.slane %v1703_v26, 4  ;;  %v1711_v46 = vrot.slane %v1709_v25, 5 }
  0xaf   : > { %v1043_v21 = vrot.slane %v1041_v32, 5  ;;  %1215 = vst [vmem:[#allocation3 + $0x224] sm:$0xf] %v1183_v40  ;;  %v1250_v47 = vld [vmem:[#allocation2 + $0x14] sm:$0x1]  ;;  %v1273_v48 = vshrl.u32 %v1248_v39, 16  ;;  %v1696_v52 = vor.u32 %v1695_v42, %v1692_v41 }
  0xb0   : > { %v1276_v53 = vshll.u32 %v1248_v39, 16  ;;  %v1282_v54 = vshll.u32 %v1249_v43, 16  ;;  %v1496_v31 = vld [vmem:[#allocation2 + $0xc] sm:$0xe]  ;;  %v1497_v20 = vld [vmem:[#allocation2 + $0x10] sm:$0xf]  ;;  %v1706_v55 = vor.u32 %v1705_v45, %v1701_v44 }
  0xb1   : > { %v1044_v50 = vsel %vm5031_vm14, %v1039_v11, %v1043_v21  ;;  %v1275_v57 = vrot.slane %v1273_v48, 4  ;;  %v1286_v60 = vshrl.u32 %v1249_v43, 16  ;;  %v1292_v61 = vshll.u32 %v1250_v47, 16  ;;  %v1498_v62 = vld [vmem:[#allocation2 + $0x14] sm:$0x1] }
  0xb2   : > { %1076 = vst [vmem:[#allocation3 + $0x220] sm:$0xf] %v1044_v50  ;;  %v1697_v2 = vrot.slane %v1696_v52, 4  ;;  %v1278_v3 = vrot.slane %v1276_v53, 5  ;;  %v1284_v4 = vrot.slane %v1282_v54, 5  ;;  %v3953_v6 = vrot.slane %v1496_v31, 9 }
  0xb3   : > { %v1230_v7 = vld [vmem:[#allocation2 + $0x78] sm:$0xf]  ;;  %v1707_v56 = vrot.slane %v1706_v55, 4  ;;  %v1288_v63 = vrot.slane %v1286_v60, 4  ;;  %v1294_v8 = vrot.slane %v1292_v61, 5  ;;  %v1546_v0 = vrot.slane %v1497_v20, 5 }
  0xb4   : > { %1246 = vst [vmem:[#allocation3 + $0x204] sm:$0xf] %v1230_v7  ;;  %v1702_v9 = vsel %vm5031_vm14, %v1697_v2, %v1701_v44  ;;  %v1279_v10 = vor.u32 %v1278_v3, %v1275_v57  ;;  %v1549_v12 = vrot.slane %v1498_v62, 5  ;;  %v1635_v16 = vld [vmem:[#allocation2 + $0x24] sm:$0xf]  ;;  %v5342_v20 = vpack.c.bf16 %v530_v49, %v530_v49 }
  0xb5   : > { %v1712_v17 = vsel %vm5031_vm14, %v1707_v56, %v1711_v46  ;;  %1897 = vst [vmem:[#allocation3 + $0x1c] sm:$0xf] %v1702_v9  ;;  %v1289_v14 = vor.u32 %v1288_v63, %v1284_v4  ;;  %v1636_v23 = vld [vmem:[#allocation2 + $0x28] sm:$0xf]  ;;  %1651 = vst [vmem:[#allocation3 + $0x60] sm:$0xf] %v1635_v16  ;;  %v1547_v28 = vsel %vm4981_vm10, %v3953_v6, %v1546_v0 }
  0xb6   : > { %v1668_v19 = vld [vmem:[#allocation2 + $0x24] sm:$0xf]  ;;  %v1669_v11 = vld [vmem:[#allocation2 + $0x28] sm:$0xf]  ;;  %1898 = vst [vmem:[#allocation3 + $0x40] sm:$0xf] %v1712_v17 }
  0xb7   : > { %v1280_v18 = vrot.slane %v1279_v10, 4  ;;  %v1548_v22 = vrot.slane %v1546_v0, 4  ;;  %1652 = vst [vmem:[#allocation3 + $0x84] sm:$0xf] %v1636_v23  ;;  %v1670_v29 = vld [vmem:[#allocation2 + $0x2c] sm:$0x1] }
  0xb8   : > { %v1714_v30 = vshrl.u32 %v1668_v19, 16  ;;  %v1290_v15 = vrot.slane %v1289_v14, 4  ;;  %1616 = vst [vmem:[#allocation3 + $0x14] sm:$0xf] %v1547_v28  ;;  %v1717_v5 = vshll.u32 %v1668_v19, 16  ;;  %v1723_v32 = vshll.u32 %v1669_v11, 16 }
  0xb9   : > { %v1727_v33 = vshrl.u32 %v1669_v11, 16  ;;  %v1251_v36 = vld [vmem:[#allocation2 + $0x18] sm:$0xf]  ;;  %v4675_v37 = vld [vmem:[#allocation3 + $0x1fc] ss:$36 sps:$4 sm:$0xff]   ;;  %v1285_v26 = vsel %vm5031_vm14, %v1280_v18, %v1284_v4  ;;  %v1550_v25 = vsel %vm4981_vm10, %v1548_v22, %v1549_v12  ;;  %v1733_v44 = vshll.u32 %v1670_v29, 16 }
  0xba   : > { %v4679_v13 = vld [vmem:[#allocation3 + $0x1f8] ss:$36 sps:$4 sm:$0xff]   ;;  %v1716_v39 = vrot.slane %v1714_v30, 4  ;;  %v1295_v40 = vsel %vm5031_vm14, %v1290_v15, %v1294_v8  ;;  %1480 = vst [vmem:[#allocation3 + $0x10] sm:$0xf] %v1285_v26  ;;  %v1719_v21 = vrot.slane %v1717_v5, 5  ;;  %3161 = vmatprep.mubr.bf16.mxu0 %v4675_v37 }
  0xbb   : > { %1617 = vst [vmem:[#allocation3 + $0x38] sm:$0xf] %v1550_v25  ;;  %v1725_v41 = vrot.slane %v1723_v32, 5  ;;  %v1729_v42 = vrot.slane %v1727_v33, 4  ;;  %v1252_v43 = vld [vmem:[#allocation2 + $0x1c] sm:$0xf]  ;;  %3162 = vmatmul.mubr.bf16.gmra.mxu0 %v4679_v13 }
  0xbc   : > { %1481 = vst [vmem:[#allocation3 + $0x34] sm:$0xf] %v1295_v40  ;;  %v1253_v45 = vld [vmem:[#allocation2 + $0x20] sm:$0x1]  ;;  %v1297_v46 = vshrl.u32 %v1251_v36, 16  ;;  %v1300_v47 = vshll.u32 %v1251_v36, 16  ;;  %v1720_v53 = vor.u32 %v1719_v21, %v1716_v39 }
  0xbd   : > { %v1306_v48 = vshll.u32 %v1252_v43, 16  ;;  %v4669_v50 = vld [vmem:[#allocation3 + $0x204] ss:$36 sps:$4 sm:$0xff]   ;;  %v1730_v54 = vor.u32 %v1729_v42, %v1725_v41  ;;  %v1310_v31 = vshrl.u32 %v1252_v43, 16  ;;  %v1735_v55 = vrot.slane %v1733_v44, 5 }
  0xbe   : > { %v4671_v52 = vld [vmem:[#allocation3 + $0x200] ss:$36 sps:$4 sm:$0xff]   ;;  %v1299_v57 = vrot.slane %v1297_v46, 4  ;;  %v1302_v60 = vrot.slane %v1300_v47, 5  ;;  %v301_v62 = vrot.slane %v5096_v27, 4  ;;  %3258 = vmatprep.mubr.bf16.mxu1 %v4669_v50  ;;  %v1721_v3 = vrot.slane %v1720_v53, 4 }
  0xbf   : > { %v1308_v61 = vrot.slane %v1306_v48, 5  ;;  %v4683_v2 = vld [vmem:[#allocation3 + $0x1c] ss:$36 sps:$4 sm:$0xff]   ;;  %3259 = vmatmul.mubr.bf16.gmra.mxu1 %v4671_v52  ;;  %v1731_v4 = vrot.slane %v1730_v54, 4  ;;  %v1312_v7 = vrot.slane %v1310_v31, 4  ;;  %v1316_v56 = vshll.u32 %v1253_v45, 16 }
  0xc0   : > { %v1303_v6 = vor.u32 %v1302_v60, %v1299_v57  ;;  %v1499_v63 = vld [vmem:[#allocation2 + $0x18] sm:$0xe]  ;;  %3396 = vmatprep.mubr.bf16.mxu1 %v4683_v2  ;;  %v1726_v8 = vsel %vm5031_vm14, %v1721_v3, %v1725_v41  ;;  %v1500_v9 = vld [vmem:[#allocation2 + $0x1c] sm:$0xf]  ;;  %v1501_v10 = vld [vmem:[#allocation2 + $0x20] sm:$0x1] }
  0xc1   : > { %v3954_v0 = vrot.slane %v1499_v63, 9  ;;  %v547_v12 = vshrl.u32 %v5342_v20, 16  ;;  %v4681_v16 = vld [vmem:[#allocation3 + $0x18] ss:$36 sps:$4 sm:$0xff]   ;;  %v1736_v27 = vsel %vm5031_vm14, %v1731_v4, %v1735_v55  ;;  %1899 = vst [vmem:[#allocation3 + $0x64] sm:$0xf] %v1726_v8  ;;  %v1313_v14 = vor.u32 %v1312_v7, %v1308_v61 }
  0xc2   : > { %v1304_v17 = vrot.slane %v1303_v6, 4  ;;  %v1318_v23 = vrot.slane %v1316_v56, 5  ;;  %v4686_v11 = vld [vmem:[#allocation3 + $0x14] ss:$36 sps:$4 sm:$0xff]   ;;  %1900 = vst [vmem:[#allocation3 + $0x88] sm:$0xf] %v1736_v27 }
  0xc3   : > { %v4684_v19 = vld [vmem:[#allocation3 + $0x10] ss:$36 sps:$4 sm:$0xff]   ;;  %v1553_v18 = vrot.slane %v1500_v9, 5  ;;  %v1314_v22 = vrot.slane %v1313_v14, 4  ;;  %v1556_v29 = vrot.slane %v1501_v10, 5  ;;  %v5355_v30 = vld [vmem:[%s5759_s1 + $0x230] sm:$0xff]   ;;  %3299 = vmatprep.mubr.bf16.mxu0 %v4686_v11 }
  0xc4   : > { %v1309_v28 = vsel %vm5031_vm14, %v1304_v17, %v1308_v61  ;;  %v425_v49 = vld [vmem:[#allocation2 + $0x38] sm:$0x1]  ;;  %v701_v33 = vld [vmem:[#allocation2 + $0x34] sm:$0x8]  ;;  %v1637_v36 = vld [vmem:[#allocation2 + $0x30] sm:$0xf]  ;;  %3300 = vmatmul.mubr.bf16.vlgmr.msra.gmra.mxu0 %v4684_v19 }
  0xc5   : > { %1482 = vst [vmem:[#allocation3 + $0x58] sm:$0xf] %v1309_v28  ;;  %v1554_v15 = vsel %vm4981_vm10, %v3954_v0, %v1553_v18  ;;  %v1555_v5 = vrot.slane %v1553_v18, 4  ;;  %v426_v32 = vsel %vm4956_vm7, %v301_v62, %v425_v49  ;;  %v5361_v37 = vrot.slane %v547_v12, 7  ;;  %v1638_v25 = vld [vmem:[#allocation2 + $0x34] sm:$0xf]  ;;  %4498 = vmatpush3.bf16.msra.mxu0 %v5311_v24 }
  0xc6   : > { %v1319_v13 = vsel %vm5031_vm14, %v1314_v22, %v1318_v23  ;;  %1618 = vst [vmem:[#allocation3 + $0x5c] sm:$0xf] %v1554_v15  ;;  %427 = vst [vmem:[#allocation2 + $0x38] sm:$0x1] %v426_v32  ;;  %v3937_v26 = vrot.slane %v701_v33, 11  ;;  %v550_v40 = vshll.u32 %v5342_v20, 16  ;;  %4499 = vmatprep.subr.bf16.mxu0 %v5355_v30 }
  0xc7   : > { %1653 = vst [vmem:[#allocation3 + $0xa8] sm:$0xf] %v1637_v36  ;;  %v1671_v39 = vld [vmem:[#allocation2 + $0x30] sm:$0xf]  ;;  %1483 = vst [vmem:[#allocation3 + $0x7c] sm:$0xf] %v1319_v13  ;;  %v1557_v21 = vsel %vm4981_vm10, %v1555_v5, %v1556_v29  ;;  %3397 = vmatmul.mubr.bf16.vlgmr.msra.gmra.mxu1 %v4681_v16 }
  0xc8   : > { %1654 = vst [vmem:[#allocation3 + $0xcc] sm:$0xf] %v1638_v25  ;;  %v1672_v41 = vld [vmem:[#allocation2 + $0x34] sm:$0xf]  ;;  %v1738_v42 = vshrl.u32 %v1671_v39, 16  ;;  %v1741_v43 = vshll.u32 %v1671_v39, 16  ;;  %4537 = vmatpush3.bf16.msra.mxu1 %v5311_v24  ;;  %v552_v22 = vor.u32 %v550_v40, %v5361_v37 }
  0xc9   : > { %v1254_v44 = vld [vmem:[#allocation2 + $0x24] sm:$0xf]  ;;  %1619 = vst [vmem:[#allocation3 + $0x80] sm:$0xf] %v1557_v21  ;;  %v1747_v45 = vshll.u32 %v1672_v41, 16  ;;  %v1751_v46 = vshrl.u32 %v1672_v41, 16  ;;  %4530 = vmatprep.subr.bf16.mxu1 %v5355_v30  ;;  %4500 = vmatpush3.bf16.msra.mxu0 %v5355_v30 }
  0xca   : > { %v1255_v47 = vld [vmem:[#allocation2 + $0x28] sm:$0xf]  ;;  %v1256_v48 = vld [vmem:[#allocation2 + $0x2c] sm:$0x1]  ;;  %v1740_v52 = vrot.slane %v1738_v42, 4  ;;  %v1743_v53 = vrot.slane %v1741_v43, 5 }
  0xcb   : > { %v4700_v50 = vld [vmem:[%s5759_s1 + $0x228] sm:$0xff]   ;;  %v1321_v54 = vshrl.u32 %v1254_v44, 16  ;;  %v1324_v31 = vshll.u32 %v1254_v44, 16  ;;  %v4688_v55 = vld [vmem:[#allocation3 + $0x64] ss:$36 sps:$4 sm:$0xff]   ;;  %v1749_v60 = vrot.slane %v1747_v45, 5 }
  0xcc   : > { %v531_v20 = vld [vmem:[%s5327_s25 + $0x8] sm:$0xff]  ;;  %v4690_v57 = vld [vmem:[#allocation3 + $0x60] ss:$36 sps:$4 sm:$0xff]   ;;  %v1744_v61 = vor.u32 %v1743_v53, %v1740_v52  ;;  %v1753_v62 = vrot.slane %v1751_v46, 4  ;;  %v1502_v4 = vld [vmem:[#allocation2 + $0x24] sm:$0xe]  ;;  %3404 = vmatprep.mubr.bf16.mxu1 %v4688_v55  ;;  %4501 = vmatprep.subr.bf16.mxu0 %v4700_v50 }
  0xcd   : > { %v1323_v2 = vrot.slane %v1321_v54, 4  ;;  %v1326_v3 = vrot.slane %v1324_v31, 5  ;;  %v1330_v6 = vshll.u32 %v1255_v47, 16  ;;  %v1334_v7 = vshrl.u32 %v1255_v47, 16  ;;  %v1503_v63 = vld [vmem:[#allocation2 + $0x28] sm:$0xf]  ;;  %4538 = vmatpush3.bf16.msra.mxu1 %v5355_v30  ;;  %4502 = vmatpush3.bf16.msra.mxu0 %v4700_v50 }
  0xce   : > { %v1340_v56 = vshll.u32 %v1256_v48, 16  ;;  %v770_v24 = vld [vmem:[#allocation2 + $0x38] sm:$0x1]  ;;  %v1745_v8 = vrot.slane %v1744_v61, 4  ;;  %v1754_v9 = vor.u32 %v1753_v62, %v1749_v60  ;;  %v1504_v0 = vld [vmem:[#allocation2 + $0x2c] sm:$0x1]  ;;  %v4157_v12 = vpack.c.bf16 %v531_v20, %v531_v20  ;;  %4531 = vmatprep.subr.bf16.mxu1 %v4700_v50 }
  0xcf   : > { %v1327_v10 = vor.u32 %v1326_v3, %v1323_v2  ;;  %v771_v16 = vsel %vm4987_vm11, %v3937_v26, %v770_v24  ;;  %v1332_v27 = vrot.slane %v1330_v6, 5  ;;  %v1336_v17 = vrot.slane %v1334_v7, 4  ;;  %v4707_v23 = vld [vmem:[%s5759_s1 + $0x220] sm:$0xff]   ;;  %v4694_v11 = vld [vmem:[#allocation3 + $0x58] ss:$36 sps:$4 sm:$0xff]   ;;  %3405 = vmatmul.mubr.bf16.gmra.mxu1 %v4690_v57  ;;  %v5389_v5 = vld [vmem:[%s5759_s1 + $0x218] sm:$0xff]  }
  0xd0   : > { %v3955_v14 = vrot.slane %v1502_v4, 9  ;;  %v4691_v19 = vld [vmem:[#allocation3 + $0x5c] ss:$36 sps:$4 sm:$0xff]   ;;  %772 = vst [vmem:[#allocation2 + $0x38] sm:$0x1] %v771_v16  ;;  %v1750_v18 = vsel %vm5031_vm14, %v1745_v8, %v1749_v60  ;;  %v1342_v28 = vrot.slane %v1340_v56, 5  ;;  %4503 = vmatprep.subr.bf16.mxu0 %v4707_v23 }
  0xd1   : > { %1901 = vst [vmem:[#allocation3 + $0xac] sm:$0xf] %v1750_v18  ;;  %v1328_v29 = vrot.slane %v1327_v10, 4  ;;  %v1337_v30 = vor.u32 %v1336_v17, %v1332_v27  ;;  %v1560_v49 = vrot.slane %v1503_v63, 5  ;;  %v1563_v15 = vrot.slane %v1504_v0, 5  ;;  %3307 = vmatprep.mubr.bf16.mxu0 %v4691_v19  ;;  %4539 = vmatpush3.bf16.msra.mxu1 %v4700_v50  ;;  %v4721_v60 = vld [vmem:[%s5759_s1 + $0x210] sm:$0xff]  }
  0xd2   : > { %v5391_v32 = vrot.slane %v1754_v9, 4  ;;  %v553_v33 = vrot.slane %v5361_v37, 4  ;;  %v555_v36 = vshrl.u32 %v4157_v12, 16  ;;  %v558_v13 = vshll.u32 %v4157_v12, 16  ;;  %v587_v26 = vld [vmem:[#allocation2 + $0x3c] sm:$0xf]  ;;  %3308 = vmatmul.mubr.bf16.gmra.mxu0 %v4694_v11  ;;  %4532 = vmatprep.subr.bf16.mxu1 %v4707_v23 }
  0xd3   : > { %v1333_v25 = vsel %vm5031_vm14, %v1328_v29, %v1332_v27  ;;  %v1338_v39 = vrot.slane %v1337_v30, 4  ;;  %v1561_v40 = vsel %vm4981_vm10, %v3955_v14, %v1560_v49  ;;  %v1562_v21 = vrot.slane %v1560_v49, 4  ;;  %v591_v41 = vld [vmem:[#allocation2 + $0x44] sm:$0x1]  ;;  %v1257_v42 = vld [vmem:[#allocation2 + $0x30] sm:$0xf]  ;;  %4504 = vmatpush3.bf16.msra.mxu0 %v4707_v23 }
  0xd4   : > { %1484 = vst [vmem:[#allocation3 + $0xa0] sm:$0xf] %v1333_v25  ;;  %1620 = vst [vmem:[#allocation3 + $0xa4] sm:$0xf] %v1561_v40  ;;  %v557_v43 = vrot.slane %v555_v36, 7  ;;  %v588_v37 = vsel %vm4940_vm5, %v552_v22, %v587_v26  ;;  %v1345_v45 = vshrl.u32 %v1257_v42, 16  ;;  %4505 = vmatprep.subr.bf16.mxu0 %v5389_v5 }
  0xd5   : > { %v1258_v44 = vld [vmem:[#allocation2 + $0x34] sm:$0xf]  ;;  %v1348_v46 = vshll.u32 %v1257_v42, 16  ;;  %v1343_v47 = vsel %vm5031_vm14, %v1338_v39, %v1342_v28  ;;  %v1564_v48 = vsel %vm4981_vm10, %v1562_v21, %v1563_v15  ;;  %589 = vst [vmem:[#allocation2 + $0x3c] sm:$0xf] %v588_v37  ;;  %4540 = vmatpush3.bf16.msra.mxu1 %v4707_v23  ;;  %v4728_v14 = vld [vmem:[%s5759_s1 + $0x208] sm:$0xff]  }
  0xd6   : > { %v1354_v50 = vshll.u32 %v1258_v44, 16  ;;  %v1358_v52 = vshrl.u32 %v1258_v44, 16  ;;  %v1505_v53 = vld [vmem:[#allocation2 + $0x30] sm:$0xe]  ;;  %v1506_v54 = vld [vmem:[#allocation2 + $0x34] sm:$0xf]  ;;  %v560_v31 = vor.u32 %v558_v13, %v557_v43  ;;  %4533 = vmatprep.subr.bf16.mxu1 %v5389_v5 }
  0xd7   : > { %1485 = vst [vmem:[#allocation3 + $0xc4] sm:$0xf] %v1343_v47  ;;  %1621 = vst [vmem:[#allocation3 + $0xc8] sm:$0xf] %v1564_v48  ;;  %v562_v20 = vrot.slane %v557_v43, 4  ;;  %v1347_v55 = vrot.slane %v1345_v45, 4  ;;  %4506 = vmatpush3.bf16.msra.mxu0 %v5389_v5 }
  0xd8   : > { %v1350_v57 = vrot.slane %v1348_v46, 5  ;;  %v1673_v61 = vld [vmem:[#allocation2 + $0x38] sm:$0x1]  ;;  %v1356_v2 = vrot.slane %v1354_v50, 5  ;;  %v1360_v3 = vrot.slane %v1358_v52, 4  ;;  %v561_v6 = vsel %vm4946_vm6, %v553_v33, %v560_v31  ;;  %4507 = vmatprep.subr.bf16.mxu0 %v4721_v60  ;;  %v4733_v37 = vld [vmem:[%s5759_s1 + $0x200] sm:$0xff]  }
  0xd9   : > { %v1259_v62 = vld [vmem:[#allocation2 + $0x38] sm:$0x1]  ;;  %v1757_v4 = vshll.u32 %v1673_v61, 16  ;;  %v592_v7 = vsel %vm4956_vm7, %v562_v20, %v591_v41  ;;  %590 = vst [vmem:[#allocation2 + $0x40] sm:$0xf] %v561_v6  ;;  %v3956_v9 = vrot.slane %v1505_v53, 9  ;;  %4541 = vmatpush3.bf16.msra.mxu1 %v5389_v5 }
  0xda   : > { %v1351_v56 = vor.u32 %v1350_v57, %v1347_v55  ;;  %v1507_v63 = vld [vmem:[#allocation2 + $0x38] sm:$0x1]  ;;  %593 = vst [vmem:[#allocation2 + $0x44] sm:$0x1] %v592_v7  ;;  %v1361_v24 = vor.u32 %v1360_v3, %v1356_v2  ;;  %v1364_v8 = vshll.u32 %v1259_v62, 16  ;;  %v1567_v10 = vrot.slane %v1506_v54, 5  ;;  %4534 = vmatprep.subr.bf16.mxu1 %v4721_v60 }
  0xdb   : > { %v1641_v0 = vld [vmem:[#allocation2 + $0x60] sm:$0xf]  ;;  %v1759_v12 = vrot.slane %v1757_v4, 5  ;;  %v1570_v27 = vrot.slane %v1507_v63, 5  ;;  %v1642_v17 = vld [vmem:[#allocation2 + $0x64] sm:$0xf]  ;;  %4508 = vmatpush3.bf16.msra.mxu0 %v4721_v60 }
  0xdc   : > { %v1352_v16 = vrot.slane %v1351_v56, 4  ;;  %1657 = vst [vmem:[#allocation3 + $0x138] sm:$0xf] %v1641_v0  ;;  %v1362_v23 = vrot.slane %v1361_v24, 4  ;;  %v1366_v19 = vrot.slane %v1364_v8, 5  ;;  %v1568_v11 = vsel %vm4981_vm10, %v3956_v9, %v1567_v10  ;;  %4509 = vmatprep.subr.bf16.mxu0 %v4728_v14 }
  0xdd   : > { %v1569_v18 = vrot.slane %v1567_v10, 4  ;;  %1658 = vst [vmem:[#allocation3 + $0x15c] sm:$0xf] %v1642_v17  ;;  %v1677_v28 = vld [vmem:[#allocation2 + $0x60] sm:$0xf]  ;;  %v1760_v22 = vsel %vm5031_vm14, %v5391_v32, %v1759_v12  ;;  %4542 = vmatpush3.bf16.msra.mxu1 %v4721_v60 }
  0xde   : > { %v606_v29 = vld [vmem:[#allocation2 + $0x3c] sm:$0x2]  ;;  %v676_v30 = vld [vmem:[#allocation2 + $0x3c] sm:$0x1]  ;;  %v1357_v49 = vsel %vm5031_vm14, %v1352_v16, %v1356_v2  ;;  %1622 = vst [vmem:[#allocation3 + $0xec] sm:$0xf] %v1568_v11  ;;  %v1367_v13 = vsel %vm5031_vm14, %v1362_v23, %v1366_v19  ;;  %4535 = vmatprep.subr.bf16.mxu1 %v4728_v14 }
  0xdf   : > { %v1678_v15 = vld [vmem:[#allocation2 + $0x64] sm:$0xf]  ;;  %1902 = vst [vmem:[#allocation3 + $0xd0] sm:$0xf] %v1760_v22  ;;  %v4698_v5 = vld [vmem:[#allocation3 + $0xa4] ss:$36 sps:$4 sm:$0xff]   ;;  %v1571_v26 = vsel %vm4981_vm10, %v1569_v18, %v1570_v27  ;;  %4510 = vmatpush3.bf16.msra.mxu0 %v4728_v14 }
  0xe0   : > { %v4701_v33 = vld [vmem:[#allocation3 + $0xa0] ss:$36 sps:$4 sm:$0xff]   ;;  %v3926_v36 = vrot.slane %v606_v29, 9  ;;  %1486 = vst [vmem:[#allocation3 + $0xe8] sm:$0xf] %v1357_v49  ;;  %v1786_v25 = vshrl.u32 %v1677_v28, 16  ;;  %3315 = vmatprep.mubr.bf16.mxu0 %v4698_v5  ;;  %4511 = vmatprep.subr.bf16.mxu0 %v4733_v37 }
  0xe1   : > { %1487 = vst [vmem:[#allocation3 + $0x10c] sm:$0xf] %v1367_v13  ;;  %1623 = vst [vmem:[#allocation3 + $0x110] sm:$0xf] %v1571_v26  ;;  %v1679_v32 = vld [vmem:[#allocation2 + $0x68] sm:$0x1]  ;;  %3316 = vmatmul.mubr.bf16.gmra.mxu0 %v4701_v33  ;;  %4543 = vmatpush3.bf16.msra.mxu1 %v4728_v14 }
  0xe2   : > { %v1789_v39 = vshll.u32 %v1677_v28, 16  ;;  %v1795_v40 = vshll.u32 %v1678_v15, 16  ;;  %v1799_v21 = vshrl.u32 %v1678_v15, 16  ;;  %v677_v41 = vsel %vm4956_vm7, %v3926_v36, %v676_v30  ;;  %v1260_v43 = vld [vmem:[#allocation2 + $0x54] sm:$0xf]  ;;  %4536 = vmatprep.subr.bf16.mxu1 %v4733_v37  ;;  %v532_v14 = vld [vmem:[%s5327_s25 + $0x100] sm:$0xff] }
  0xe3   : > { %v1805_v42 = vshll.u32 %v1679_v32, 16  ;;  %678 = vst [vmem:[#allocation2 + $0x3c] sm:$0x1] %v677_v41  ;;  %v702_v44 = vld [vmem:[#allocation2 + $0x40] sm:$0x8]  ;;  %v1788_v50 = vrot.slane %v1786_v25, 4  ;;  %4512 = vmatpush3.bf16.msra.mxu0 %v4733_v37 }
  0xe4   : > { %v773_v45 = vld [vmem:[#allocation2 + $0x44] sm:$0x1]  ;;  %v1640_v46 = vld [vmem:[#allocation2 + $0x40] sm:$0xf]  ;;  %v3938_v47 = vrot.slane %v702_v44, 11  ;;  %v1791_v52 = vrot.slane %v1789_v39, 5 }
  0xe5   : > { %1656 = vst [vmem:[#allocation3 + $0x114] sm:$0xf] %v1640_v46  ;;  %v1675_v48 = vld [vmem:[#allocation2 + $0x40] sm:$0xf]  ;;  %v1797_v53 = vrot.slane %v1795_v40, 5  ;;  %v1801_v20 = vrot.slane %v1799_v21, 4  ;;  %4544 = vmatpush3.bf16.msra.mxu1 %v4733_v37 }
  0xe6   : > { %v1771_v54 = vshll.u32 %v1675_v48, 16  ;;  %v1775_v31 = vshrl.u32 %v1675_v48, 16  ;;  %v1807_v55 = vrot.slane %v1805_v42, 5  ;;  %v774_v57 = vsel %vm4987_vm11, %v3938_v47, %v773_v45  ;;  %v1261_v61 = vld [vmem:[#allocation2 + $0x58] sm:$0xf] }
  0xe7   : > { %v1792_v60 = vor.u32 %v1791_v52, %v1788_v50  ;;  %v1262_v62 = vld [vmem:[#allocation2 + $0x5c] sm:$0x1]  ;;  %v1369_v2 = vshrl.u32 %v1260_v43, 16  ;;  %v1372_v3 = vshll.u32 %v1260_v43, 16  ;;  %775 = vst [vmem:[#allocation2 + $0x44] sm:$0x1] %v774_v57  ;;  %v1802_v56 = vor.u32 %v1801_v20, %v1797_v53 }
  0xe8   : > { %v4695_v4 = vld [vmem:[#allocation3 + $0xac] ss:$36 sps:$4 sm:$0xff]   ;;  %v5436_v7 = vrot.slane %v1771_v54, 5  ;;  %v1777_v63 = vrot.slane %v1775_v31, 4  ;;  %v1508_v9 = vld [vmem:[#allocation2 + $0x54] sm:$0xe]  ;;  %v5445_v45 = vpack.c.bf16 %v532_v14, %v532_v14 }
  0xe9   : > { %v4697_v6 = vld [vmem:[#allocation3 + $0xa8] ss:$36 sps:$4 sm:$0xff]   ;;  %v1793_v8 = vrot.slane %v1792_v60, 4  ;;  %3412 = vmatprep.mubr.bf16.mxu1 %v4695_v4  ;;  %v1803_v0 = vrot.slane %v1802_v56, 4  ;;  %v1371_v12 = vrot.slane %v1369_v2, 4  ;;  %v1374_v16 = vrot.slane %v1372_v3, 5 }
  0xea   : > { %v4705_v24 = vld [vmem:[#allocation3 + $0xec] ss:$36 sps:$4 sm:$0xff]   ;;  %v1378_v27 = vshll.u32 %v1261_v61, 16  ;;  %v1509_v17 = vld [vmem:[#allocation2 + $0x58] sm:$0xf]  ;;  %3413 = vmatmul.mubr.bf16.gmra.mxu1 %v4697_v6  ;;  %v1778_v11 = vor.u32 %v1777_v63, %v5436_v7  ;;  %v1382_v28 = vshrl.u32 %v1261_v61, 16 }
  0xeb   : > { %v4708_v10 = vld [vmem:[#allocation3 + $0xe8] ss:$36 sps:$4 sm:$0xff]   ;;  %3323 = vmatprep.mubr.bf16.mxu0 %v4705_v24  ;;  %v1798_v18 = vsel %vm5031_vm14, %v1793_v8, %v1797_v53  ;;  %v1388_v22 = vshll.u32 %v1262_v62, 16  ;;  %v1808_v49 = vsel %vm5031_vm14, %v1803_v0, %v1807_v55  ;;  %v1375_v15 = vor.u32 %v1374_v16, %v1371_v12  ;;  %v1643_v21 = vld [vmem:[#allocation2 + $0x6c] sm:$0xf] }
  0xec   : > { %v1639_v23 = vld [vmem:[#allocation2 + $0x3c] sm:$0xf]  ;;  %3324 = vmatmul.mubr.bf16.gmra.mxu0 %v4708_v10  ;;  %1905 = vst [vmem:[#allocation3 + $0x13c] sm:$0xf] %v1798_v18  ;;  %v369_v33 = vrot.slane %v5271_v34, 4  ;;  %v1380_v36 = vrot.slane %v1378_v27, 5 }
  0xed   : > { %v1674_v19 = vld [vmem:[#allocation2 + $0x3c] sm:$0xf]  ;;  %1655 = vst [vmem:[#allocation3 + $0xf0] sm:$0xf] %v1639_v23  ;;  %1906 = vst [vmem:[#allocation3 + $0x160] sm:$0xf] %v1808_v49 }
  0xee   : > { %v1762_v29 = vshrl.u32 %v1674_v19, 16  ;;  %v1765_v30 = vshll.u32 %v1674_v19, 16  ;;  %v1510_v5 = vld [vmem:[#allocation2 + $0x5c] sm:$0x1]  ;;  %v1384_v13 = vrot.slane %v1382_v28, 4  ;;  %v1390_v26 = vrot.slane %v1388_v22, 5 }
  0xef   : > { %v1376_v39 = vrot.slane %v1375_v15, 4  ;;  %v3957_v40 = vrot.slane %v1508_v9, 9  ;;  %v1676_v41 = vld [vmem:[#allocation2 + $0x44] sm:$0x1]  ;;  %v1574_v43 = vrot.slane %v1509_v17, 5  ;;  %v1577_v37 = vrot.slane %v1510_v5, 5 }
  0xf0   : > { %v1764_v32 = vrot.slane %v1762_v29, 4  ;;  %v1767_v25 = vrot.slane %v1765_v30, 5  ;;  %v1385_v42 = vor.u32 %v1384_v13, %v1380_v36  ;;  %v1644_v44 = vld [vmem:[#allocation2 + $0x70] sm:$0xf]  ;;  %1659 = vst [vmem:[#allocation3 + $0x180] sm:$0xf] %v1643_v21 }
  0xf1   : > { %v1779_v47 = vrot.slane %v1778_v11, 4  ;;  %v1781_v48 = vshll.u32 %v1676_v41, 16  ;;  %v1381_v50 = vsel %vm5031_vm14, %v1376_v39, %v1380_v36  ;;  %1660 = vst [vmem:[#allocation3 + $0x1a4] sm:$0xf] %v1644_v44  ;;  %v1680_v52 = vld [vmem:[#allocation2 + $0x6c] sm:$0xf]  ;;  %v1575_v31 = vsel %vm4981_vm10, %v3957_v40, %v1574_v43 }
  0xf2   : > { %v1768_v46 = vor.u32 %v1767_v25, %v1764_v32  ;;  %v1681_v53 = vld [vmem:[#allocation2 + $0x70] sm:$0xf]  ;;  %v1386_v54 = vrot.slane %v1385_v42, 4  ;;  %1488 = vst [vmem:[#allocation3 + $0x130] sm:$0xf] %v1381_v50  ;;  %v1576_v20 = vrot.slane %v1574_v43, 4 }
  0xf3   : > { %v1682_v55 = vld [vmem:[#allocation2 + $0x74] sm:$0x1]  ;;  %v1810_v57 = vshrl.u32 %v1680_v52, 16  ;;  %v1783_v61 = vrot.slane %v1781_v48, 5  ;;  %1624 = vst [vmem:[#allocation3 + $0x134] sm:$0xf] %v1575_v31 }
  0xf4   : > { %v1769_v60 = vrot.slane %v1768_v46, 4  ;;  %v1813_v62 = vshll.u32 %v1680_v52, 16  ;;  %v1819_v2 = vshll.u32 %v1681_v53, 16  ;;  %v1263_v3 = vld [vmem:[#allocation2 + $0x60] sm:$0xf]  ;;  %v1391_v4 = vsel %vm5031_vm14, %v1386_v54, %v1390_v26 }
  0xf5   : > { %v1578_v6 = vsel %vm4981_vm10, %v1576_v20, %v1577_v37  ;;  %v1812_v56 = vrot.slane %v1810_v57, 4  ;;  %v1823_v63 = vshrl.u32 %v1681_v53, 16  ;;  %v1264_v24 = vld [vmem:[#allocation2 + $0x64] sm:$0xf]  ;;  %v1784_v9 = vsel %vm5031_vm14, %v1779_v47, %v1783_v61  ;;  %1489 = vst [vmem:[#allocation3 + $0x154] sm:$0xf] %v1391_v4 }
  0xf6   : > { %v1774_v8 = vsel %vm5031_vm14, %v1769_v60, %v5436_v7  ;;  %1625 = vst [vmem:[#allocation3 + $0x158] sm:$0xf] %v1578_v6  ;;  %v1815_v10 = vrot.slane %v1813_v62, 5  ;;  %v564_v0 = vshrl.u32 %v5445_v45, 16  ;;  %1904 = vst [vmem:[#allocation3 + $0x118] sm:$0xf] %v1784_v9 }
  0xf7   : > { %1903 = vst [vmem:[#allocation3 + $0xf4] sm:$0xf] %v1774_v8  ;;  %v1821_v12 = vrot.slane %v1819_v2, 5  ;;  %v1825_v16 = vrot.slane %v1823_v63, 4  ;;  %v1829_v27 = vshll.u32 %v1682_v55, 16  ;;  %v1393_v14 = vshrl.u32 %v1263_v3, 16 }
  0xf8   : > { %v1265_v17 = vld [vmem:[#allocation2 + $0x68] sm:$0x1]  ;;  %v1816_v23 = vor.u32 %v1815_v10, %v1812_v56  ;;  %v1396_v19 = vshll.u32 %v1263_v3, 16  ;;  %v1402_v11 = vshll.u32 %v1264_v24, 16  ;;  %v1406_v18 = vshrl.u32 %v1264_v24, 16 }
  0xf9   : > { %v1511_v7 = vld [vmem:[#allocation2 + $0x60] sm:$0xe]  ;;  %v1826_v28 = vor.u32 %v1825_v16, %v1821_v12  ;;  %v1831_v22 = vrot.slane %v1829_v27, 5  ;;  %v1395_v29 = vrot.slane %v1393_v14, 4  ;;  %v1412_v30 = vshll.u32 %v1265_v17, 16  ;;  %v533_v24 = vld [vmem:[%s5327_s25 + $0x108] sm:$0xff]  ;;  %s156_s25 = scalar_lea.vmem %s5761_s3, %s3891_s14 }
  0xfa   : > { %v1512_v49 = vld [vmem:[#allocation2 + $0x64] sm:$0xf]  ;;  %v1817_v15 = vrot.slane %v1816_v23, 4  ;;  %v1398_v5 = vrot.slane %v1396_v19, 5  ;;  %v1404_v36 = vrot.slane %v1402_v11, 5  ;;  %v1408_v13 = vrot.slane %v1406_v18, 4 }
  0xfb   : > { %v1513_v26 = vld [vmem:[#allocation2 + $0x68] sm:$0x1]  ;;  %v1827_v32 = vrot.slane %v1826_v28, 4  ;;  %v1414_v25 = vrot.slane %v1412_v30, 5  ;;  %v3958_v39 = vrot.slane %v1511_v7, 9  ;;  %v1581_v40 = vrot.slane %v1512_v49, 5 }
  0xfc   : > { %v4709_v21 = vld [vmem:[#allocation3 + $0x13c] ss:$36 sps:$4 sm:$0xff]   ;;  %v1822_v41 = vsel %vm5031_vm14, %v1817_v15, %v1821_v12  ;;  %v1399_v42 = vor.u32 %v1398_v5, %v1395_v29  ;;  %v1409_v43 = vor.u32 %v1408_v13, %v1404_v36  ;;  %v1584_v37 = vrot.slane %v1513_v26, 5  ;;  %v4715_v46 = vld [vmem:[#allocation3 + $0x130] ss:$36 sps:$4 sm:$0xff]  }
  0xfd   : > { %v4712_v44 = vld [vmem:[#allocation3 + $0x134] ss:$36 sps:$4 sm:$0xff]   ;;  %v1832_v47 = vsel %vm5031_vm14, %v1827_v32, %v1831_v22  ;;  %1907 = vst [vmem:[#allocation3 + $0x184] sm:$0xf] %v1822_v41  ;;  %v1582_v48 = vsel %vm4981_vm10, %v3958_v39, %v1581_v40  ;;  %v1583_v50 = vrot.slane %v1581_v40, 4  ;;  %v5469_v57 = vrot.slane %v564_v0, 7 }
  0xfe   : > { %v4702_v52 = vld [vmem:[#allocation3 + $0xf4] ss:$36 sps:$4 sm:$0xff]   ;;  %1908 = vst [vmem:[#allocation3 + $0x1a8] sm:$0xf] %v1832_v47  ;;  %v1400_v53 = vrot.slane %v1399_v42, 4  ;;  %v1410_v54 = vrot.slane %v1409_v43, 4  ;;  %3331 = vmatprep.mubr.bf16.mxu0 %v4712_v44 }
  0xff   : > { %1626 = vst [vmem:[#allocation3 + $0x17c] sm:$0xf] %v1582_v48  ;;  %v4704_v31 = vld [vmem:[#allocation3 + $0xf0] ss:$36 sps:$4 sm:$0xff]   ;;  %v1585_v20 = vsel %vm4981_vm10, %v1583_v50, %v1584_v37  ;;  %v567_v60 = vshll.u32 %v5445_v45, 16  ;;  %3420 = vmatprep.mubr.bf16.mxu1 %v4702_v52  ;;  %3332 = vmatmul.mubr.bf16.gmra.mxu0 %v4715_v46 }
 0x100   : > { %v453_v55 = vld [vmem:[#allocation2 + $0x80] sm:$0x1]  ;;  %v1405_v61 = vsel %vm5031_vm14, %v1400_v53, %v1404_v36  ;;  %v1415_v62 = vsel %vm5031_vm14, %v1410_v54, %v1414_v25  ;;  %1627 = vst [vmem:[#allocation3 + $0x1a0] sm:$0xf] %v1585_v20  ;;  %v707_v3 = vld [vmem:[#allocation2 + $0x7c] sm:$0x8]  ;;  %3421 = vmatmul.mubr.bf16.gmra.mxu1 %v4704_v31  ;;  %v4159_v36 = vpack.c.bf16 %v533_v24, %v533_v24 }
 0x101   : > { %v454_v2 = vsel %vm4956_vm7, %v369_v33, %v453_v55  ;;  %v1645_v4 = vld [vmem:[#allocation2 + $0x78] sm:$0xf]  ;;  %v1646_v6 = vld [vmem:[#allocation2 + $0x7c] sm:$0xf]  ;;  %1490 = vst [vmem:[#allocation3 + $0x178] sm:$0xf] %v1405_v61  ;;  %3428 = vmatprep.mubr.bf16.mxu1 %v4709_v21  ;;  %v569_v43 = vor.u32 %v567_v60, %v5469_v57 }
 0x102   : > { %1491 = vst [vmem:[#allocation3 + $0x19c] sm:$0xf] %v1415_v62  ;;  %455 = vst [vmem:[#allocation2 + $0x80] sm:$0x1] %v454_v2  ;;  %v1683_v45 = vld [vmem:[#allocation2 + $0x78] sm:$0xf] }
 0x103   : > { %1661 = vst [vmem:[#allocation3 + $0x1c8] sm:$0xf] %v1645_v4  ;;  %1662 = vst [vmem:[#allocation3 + $0x1ec] sm:$0xf] %v1646_v6  ;;  %v1684_v56 = vld [vmem:[#allocation2 + $0x7c] sm:$0xf] }
 0x104   : > { %v1266_v63 = vld [vmem:[#allocation2 + $0x6c] sm:$0xf]  ;;  %v1834_v8 = vshrl.u32 %v1683_v45, 16  ;;  %v1837_v9 = vshll.u32 %v1683_v45, 16  ;;  %v1843_v34 = vshll.u32 %v1684_v56, 16  ;;  %v1847_v10 = vshrl.u32 %v1684_v56, 16 }
 0x105   : > { %v1267_v0 = vld [vmem:[#allocation2 + $0x70] sm:$0xf]  ;;  %v4711_v33 = vld [vmem:[#allocation3 + $0x138] ss:$36 sps:$4 sm:$0xff]   ;;  %v1268_v12 = vld [vmem:[#allocation2 + $0x74] sm:$0x1] }
 0x106   : > { %v1417_v16 = vshrl.u32 %v1266_v63, 16  ;;  %v1420_v27 = vshll.u32 %v1266_v63, 16  ;;  %v1426_v17 = vshll.u32 %v1267_v0, 16  ;;  %v1430_v14 = vshrl.u32 %v1267_v0, 16  ;;  %v4716_v7 = vld [vmem:[#allocation3 + $0x184] ss:$36 sps:$4 sm:$0xff]  }
 0x107   : > { %v1836_v23 = vrot.slane %v1834_v8, 4  ;;  %v1839_v19 = vrot.slane %v1837_v9, 5  ;;  %v1845_v11 = vrot.slane %v1843_v34, 5  ;;  %v1849_v18 = vrot.slane %v1847_v10, 4  ;;  %v1514_v15 = vld [vmem:[#allocation2 + $0x6c] sm:$0xe] }
 0x108   : > { %v3943_v28 = vrot.slane %v707_v3, 11  ;;  %v1419_v22 = vrot.slane %v1417_v16, 4  ;;  %v1422_v30 = vrot.slane %v1420_v27, 5  ;;  %v1428_v49 = vrot.slane %v1426_v17, 5  ;;  %v1515_v5 = vld [vmem:[#allocation2 + $0x70] sm:$0xf]  ;;  %3429 = vmatmul.mubr.bf16.gmra.mxu1 %v4711_v33 }
 0x109   : > { %v1840_v29 = vor.u32 %v1839_v19, %v1836_v23  ;;  %v1432_v13 = vrot.slane %v1430_v14, 4  ;;  %v1436_v26 = vshll.u32 %v1268_v12, 16  ;;  %v1516_v32 = vld [vmem:[#allocation2 + $0x74] sm:$0x1]  ;;  %v3959_v25 = vrot.slane %v1514_v15, 9  ;;  %3436 = vmatprep.mubr.bf16.mxu1 %v4716_v7 }
 0x10a   : > { %v1588_v39 = vrot.slane %v1515_v5, 5  ;;  %v4719_v40 = vld [vmem:[#allocation3 + $0x17c] ss:$36 sps:$4 sm:$0xff]   ;;  %v1850_v41 = vor.u32 %v1849_v18, %v1845_v11  ;;  %v1423_v42 = vor.u32 %v1422_v30, %v1419_v22  ;;  %v788_v44 = vld [vmem:[#allocation2 + $0x80] sm:$0x1]  ;;  %v1591_v31 = vrot.slane %v1516_v32, 5 }
 0x10b   : > { %v1841_v21 = vrot.slane %v1840_v29, 4  ;;  %v4722_v37 = vld [vmem:[#allocation3 + $0x178] ss:$36 sps:$4 sm:$0xff]   ;;  %v1433_v46 = vor.u32 %v1432_v13, %v1428_v49  ;;  %v1438_v47 = vrot.slane %v1436_v26, 5  ;;  %3339 = vmatprep.mubr.bf16.mxu0 %v4719_v40  ;;  %v789_v52 = vsel %vm4987_vm11, %v3943_v28, %v788_v44  ;;  %v4718_v20 = vld [vmem:[#allocation3 + $0x180] ss:$36 sps:$4 sm:$0xff]  }
 0x10c   : > { %v1589_v48 = vsel %vm4981_vm10, %v3959_v25, %v1588_v39  ;;  %v1590_v50 = vrot.slane %v1588_v39, 4  ;;  %v1424_v54 = vrot.slane %v1423_v42, 4  ;;  %3340 = vmatmul.mubr.bf16.gmra.mxu0 %v4722_v37  ;;  %790 = vst [vmem:[#allocation2 + $0x80] sm:$0x1] %v789_v52  ;;  %v570_v60 = vrot.slane %v5469_v57, 4 }
 0x10d   : > { %v1846_v53 = vsel %vm5031_vm14, %v1841_v21, %v1845_v11  ;;  %1628 = vst [vmem:[#allocation3 + $0x1c4] sm:$0xf] %v1589_v48  ;;  %v1434_v55 = vrot.slane %v1433_v46, 4  ;;  %v572_v61 = vshrl.u32 %v4159_v36, 16  ;;  %v575_v62 = vshll.u32 %v4159_v36, 16 }
 0x10e   : > { %1909 = vst [vmem:[#allocation3 + $0x1cc] sm:$0xf] %v1846_v53  ;;  %v594_v2 = vld [vmem:[#allocation2 + $0x84] sm:$0xf]  ;;  %v1429_v3 = vsel %vm5031_vm14, %v1424_v54, %v1428_v49  ;;  %v1592_v4 = vsel %vm4981_vm10, %v1590_v50, %v1591_v31  ;;  %v598_v45 = vld [vmem:[#allocation2 + $0x8c] sm:$0x1] }
 0x10f   : > { %v595_v6 = vsel %vm4940_vm5, %v569_v43, %v594_v2  ;;  %v5495_v56 = vrot.slane %v1850_v41, 4  ;;  %v1439_v63 = vsel %vm5031_vm14, %v1434_v55, %v1438_v47  ;;  %1492 = vst [vmem:[#allocation3 + $0x1c0] sm:$0xf] %v1429_v3  ;;  %1629 = vst [vmem:[#allocation3 + $0x1e8] sm:$0xf] %v1592_v4  ;;  %v574_v57 = vrot.slane %v572_v61, 7 }
 0x110   : > { %596 = vst [vmem:[#allocation2 + $0x84] sm:$0xf] %v595_v6  ;;  %v1269_v24 = vld [vmem:[#allocation2 + $0x78] sm:$0xf]  ;;  %v1270_v8 = vld [vmem:[#allocation2 + $0x7c] sm:$0xf]  ;;  %3437 = vmatmul.mubr.bf16.gmra.mxu1 %v4718_v20 }
 0x111   : > { %1493 = vst [vmem:[#allocation3 + $0x1e4] sm:$0xf] %v1439_v63  ;;  %v1441_v9 = vshrl.u32 %v1269_v24, 16  ;;  %v1444_v34 = vshll.u32 %v1269_v24, 16  ;;  %v1450_v10 = vshll.u32 %v1270_v8, 16  ;;  %v1454_v0 = vshrl.u32 %v1270_v8, 16 }
 0x112   : > { %v1517_v33 = vld [vmem:[#allocation2 + $0x78] sm:$0xe]  ;;  %v577_v58 = vor.u32 %v575_v62, %v574_v57  ;;  %v579_v12 = vrot.slane %v574_v57, 4  ;;  %v1518_v16 = vld [vmem:[#allocation2 + $0x7c] sm:$0xf] }
 0x113   : > { %v3960_v27 = vrot.slane %v1517_v33, 9  ;;  %v1925_v17 = vld [vmem:[#allocation2 + $0x60] sm:$0xe]  ;;  %v1443_v14 = vrot.slane %v1441_v9, 4  ;;  %v1446_v23 = vrot.slane %v1444_v34, 5  ;;  %v1452_v19 = vrot.slane %v1450_v10, 5 }
 0x114   : > { %v1456_v11 = vrot.slane %v1454_v0, 4  ;;  %v1926_v18 = vld [vmem:[#allocation2 + $0x64] sm:$0xf]  ;;  %v578_v7 = vsel %vm4946_vm6, %v570_v60, %v577_v58  ;;  %v599_v28 = vsel %vm4956_vm7, %v579_v12, %v598_v45  ;;  %v1595_v22 = vrot.slane %v1518_v16, 5  ;;  %v1685_v30 = vld [vmem:[#allocation2 + $0x80] sm:$0x1] }
 0x115   : > { %v3965_v29 = vrot.slane %v1925_v17, 9  ;;  %597 = vst [vmem:[#allocation2 + $0x88] sm:$0xf] %v578_v7  ;;  %600 = vst [vmem:[#allocation2 + $0x8c] sm:$0x1] %v599_v28  ;;  %v1447_v15 = vor.u32 %v1446_v23, %v1443_v14  ;;  %v1991_v13 = vrot.slane %v1926_v18, 5 }
 0x116   : > { %v1271_v49 = vld [vmem:[#allocation2 + $0x80] sm:$0x1]  ;;  %v1457_v5 = vor.u32 %v1456_v11, %v1452_v19  ;;  %v1927_v36 = vld [vmem:[#allocation2 + $0x68] sm:$0x1]  ;;  %v1853_v26 = vshll.u32 %v1685_v30, 16  ;;  %v1596_v59 = vsel %vm4981_vm10, %v3960_v27, %v1595_v22  ;;  %v1597_v39 = vrot.slane %v1595_v22, 4  ;;  %v4305_v22 = vpop.f32.mrf.mxu1 }
 0x117   : > { %v1460_v32 = vshll.u32 %v1271_v49, 16  ;;  %v1519_v25 = vld [vmem:[#allocation2 + $0x80] sm:$0x1]  ;;  %v1928_v40 = vld [vmem:[#allocation2 + $0x6c] sm:$0xe]  ;;  %v1448_v42 = vrot.slane %v1447_v15, 4  ;;  %v1992_v43 = vsel %vm4981_vm10, %v3965_v29, %v1991_v13 }
 0x118   : > { %v612_v21 = vld [vmem:[#allocation2 + $0x84] sm:$0x2]  ;;  %v694_v41 = vld [vmem:[#allocation2 + $0x84] sm:$0x1]  ;;  %1630 = vst [vmem:[#allocation3 + $0x20c] sm:$0xf] %v1596_v59 }
 0x119   : > { %v1855_v37 = vrot.slane %v1853_v26, 5  ;;  %v4726_v44 = vld [vmem:[#allocation3 + $0x1c4] ss:$36 sps:$4 sm:$0xff]   ;;  %2041 = vst [vmem:[#allocation3 + $0x140] sm:$0xf] %v1992_v43  ;;  %v3932_v47 = vrot.slane %v612_v21, 9  ;;  %v1453_v48 = vsel %vm5031_vm14, %v1448_v42, %v1452_v19 }
 0x11a   : > { %v4729_v46 = vld [vmem:[#allocation3 + $0x1c0] ss:$36 sps:$4 sm:$0xff]   ;;  %v1458_v50 = vrot.slane %v1457_v5, 4  ;;  %v1462_v52 = vrot.slane %v1460_v32, 5  ;;  %3347 = vmatprep.mubr.bf16.mxu0 %v4726_v44  ;;  %1494 = vst [vmem:[#allocation3 + $0x208] sm:$0xf] %v1453_v48 }
 0x11b   : > { %v1929_v53 = vld [vmem:[#allocation2 + $0x70] sm:$0xf]  ;;  %v1856_v54 = vsel %vm5031_vm14, %v5495_v56, %v1855_v37  ;;  %v1598_v31 = vrot.slane %v1519_v25, 5  ;;  %v1993_v20 = vrot.slane %v1991_v13, 4  ;;  %v1994_v55 = vrot.slane %v1927_v36, 5  ;;  %3348 = vmatmul.mubr.bf16.gmra.mxu0 %v4729_v46  ;;  %v4306_v13 = vpop.f32.mrf.mxu1  ;;  %v4241_v37 = vpop.f32.mrf.mxu0 }
 0x11c   : > { %v1930_v60 = vld [vmem:[#allocation2 + $0x74] sm:$0x1]  ;;  %1910 = vst [vmem:[#allocation3 + $0x1f0] sm:$0xf] %v1856_v54  ;;  %v695_v61 = vsel %vm4956_vm7, %v3932_v47, %v694_v41  ;;  %v1463_v62 = vsel %vm5031_vm14, %v1458_v50, %v1462_v52  ;;  %v3966_v2 = vrot.slane %v1928_v40, 9  ;;  %v1998_v3 = vrot.slane %v1929_v53, 5 }
 0x11d   : > { %v1913_v4 = vld [vmem:[#allocation2 + $0x18] sm:$0xe]  ;;  %v1914_v6 = vld [vmem:[#allocation2 + $0x1c] sm:$0xf]  ;;  %696 = vst [vmem:[#allocation2 + $0x84] sm:$0x1] %v695_v61  ;;  %v1599_v57 = vsel %vm4981_vm10, %v1597_v39, %v1598_v31  ;;  %v1995_v24 = vsel %vm4981_vm10, %v1993_v20, %v1994_v55  ;;  %v4307_v40 = vadd.f32 %v4306_v13, %v4305_v22  ;;  %v4308_v43 = vpop.f32.mrf.mxu1  ;;  %v4242_v53 = vpop.f32.mrf.mxu0 }
 0x11e   : > { %v708_v45 = vld [vmem:[#allocation2 + $0x88] sm:$0x8]  ;;  %v791_v56 = vld [vmem:[#allocation2 + $0x8c] sm:$0x1]  ;;  %1495 = vst [vmem:[#allocation3 + $0x22c] sm:$0xf] %v1463_v62  ;;  %v1999_v9 = vsel %vm4981_vm10, %v3966_v2, %v1998_v3  ;;  %v4243_v55 = vadd.f32 %v4242_v53, %v4241_v37 }
 0x11f   : > { %v1648_v63 = vld [vmem:[#allocation2 + $0x88] sm:$0xf]  ;;  %v3944_v1 = vrot.slane %v708_v45, 11  ;;  %1631 = vst [vmem:[#allocation3 + $0x230] sm:$0xf] %v1599_v57  ;;  %v2000_v34 = vrot.slane %v1998_v3, 4  ;;  %v4309_v52 = vpop.f32.mrf.mxu1 }
 0x120   : > { %1664 = vst [vmem:[#allocation3 + $0x234] sm:$0xf] %v1648_v63  ;;  %v1687_v8 = vld [vmem:[#allocation2 + $0x88] sm:$0xf]  ;;  %2042 = vst [vmem:[#allocation3 + $0x164] sm:$0xf] %v1995_v24  ;;  %v4310_v20 = vadd.f32 %v4309_v52, %v4308_v43  ;;  %v5537_v63 = vadd.f32 %v4307_v40, %v4243_v55 }
 0x121   : > { %v2001_v10 = vrot.slane %v1930_v60, 5  ;;  %v1867_v0 = vshll.u32 %v1687_v8, 16  ;;  %v1871_v33 = vshrl.u32 %v1687_v8, 16  ;;  %2043 = vst [vmem:[#allocation3 + $0x188] sm:$0xf] %v1999_v9  ;;  %v3961_v12 = vrot.slane %v1913_v4, 9  ;;  %v4311_v3 = vpop.f32.mrf.mxu1  ;;  %v4244_v4 = vpop.f32.mrf.mxu0 }
 0x122   : > { %v1915_v58 = vld [vmem:[#allocation2 + $0x20] sm:$0x1]  ;;  %v1963_v16 = vrot.slane %v1914_v6, 5  ;;  %v792_v27 = vsel %vm4987_vm11, %v3944_v1, %v791_v56  ;;  %v1916_v23 = vld [vmem:[#allocation2 + $0x24] sm:$0xe] }
 0x123   : > { %v2002_v17 = vsel %vm4981_vm10, %v2000_v34, %v2001_v10  ;;  %v1966_v14 = vrot.slane %v1915_v58, 5  ;;  %793 = vst [vmem:[#allocation2 + $0x8c] sm:$0x1] %v792_v27  ;;  %v5526_v19 = vrot.slane %v1867_v0, 5  ;;  %v1873_v11 = vrot.slane %v1871_v33, 4  ;;  %v4312_v8 = vpop.f32.mrf.mxu1  ;;  %v4245_v9 = vpop.f32.mrf.mxu0 }
 0x124   : > { %2044 = vst [vmem:[#allocation3 + $0x1ac] sm:$0xf] %v2002_v17  ;;  %v1964_v18 = vsel %vm4981_vm10, %v3961_v12, %v1963_v16  ;;  %v1965_v7 = vrot.slane %v1963_v16, 4  ;;  %v1917_v28 = vld [vmem:[#allocation2 + $0x28] sm:$0xf]  ;;  %v3962_v38 = vrot.slane %v1916_v23, 9  ;;  %v4313_v58 = vadd.f32 %v4312_v8, %v4311_v3 }
 0x125   : > { %2033 = vst [vmem:[#allocation3 + $0x20] sm:$0xf] %v1964_v18  ;;  %v1918_v29 = vld [vmem:[#allocation2 + $0x2c] sm:$0x1]  ;;  %v1970_v30 = vrot.slane %v1917_v28, 5  ;;  %v1874_v25 = vor.u32 %v1873_v11, %v5526_v19  ;;  %v4314_v11 = vpop.f32.mrf.mxu1  ;;  %v4247_v18 = vpop.f32.mrf.mxu0 }
 0x126   : > { %v4723_v49 = vld [vmem:[#allocation3 + $0x1cc] ss:$36 sps:$4 sm:$0xff]   ;;  %v1967_v5 = vsel %vm4981_vm10, %v1965_v7, %v1966_v14  ;;  %v1973_v36 = vrot.slane %v1918_v29, 5  ;;  %v1647_v26 = vld [vmem:[#allocation2 + $0x84] sm:$0xf] }
 0x127   : > { %v4725_v15 = vld [vmem:[#allocation3 + $0x1c8] ss:$36 sps:$4 sm:$0xff]   ;;  %v1686_v32 = vld [vmem:[#allocation2 + $0x84] sm:$0xf]  ;;  %2034 = vst [vmem:[#allocation3 + $0x44] sm:$0xf] %v1967_v5  ;;  %v1971_v59 = vsel %vm4981_vm10, %v3962_v38, %v1970_v30  ;;  %3444 = vmatprep.mubr.bf16.mxu1 %v4723_v49  ;;  %v4248_v5 = vpop.f32.mrf.mxu0 }
 0x128   : > { %v1972_v39 = vrot.slane %v1970_v30, 4  ;;  %1663 = vst [vmem:[#allocation3 + $0x210] sm:$0xf] %v1647_v26  ;;  %v1858_v21 = vshrl.u32 %v1686_v32, 16  ;;  %v1861_v41 = vshll.u32 %v1686_v32, 16  ;;  %3445 = vmatmul.mubr.bf16.gmra.mxu1 %v4725_v15  ;;  %v1875_v31 = vrot.slane %v1874_v25, 4  ;;  %v4315_v15 = vpop.f32.mrf.mxu1 }
 0x129   : > { %v4734_v42 = vld [vmem:[#allocation3 + $0x20c] ss:$36 sps:$4 sm:$0xff]   ;;  %2035 = vst [vmem:[#allocation3 + $0x68] sm:$0xf] %v1971_v59  ;;  %v1931_v50 = vld [vmem:[#allocation2 + $0x78] sm:$0xe]  ;;  %v4316_v59 = vadd.f32 %v4315_v15, %v4314_v11  ;;  %v4250_v43 = vpop.f32.mrf.mxu0 }
 0x12a   : > { %v4736_v44 = vld [vmem:[#allocation3 + $0x208] ss:$36 sps:$4 sm:$0xff]   ;;  %v1974_v46 = vsel %vm4981_vm10, %v1972_v39, %v1973_v36  ;;  %v1860_v47 = vrot.slane %v1858_v21, 4  ;;  %v1863_v48 = vrot.slane %v1861_v41, 5  ;;  %3355 = vmatprep.mubr.bf16.mxu0 %v4734_v42  ;;  %v1688_v54 = vld [vmem:[#allocation2 + $0x8c] sm:$0x1]  ;;  %v4249_v42 = vadd.f32 %v4248_v5, %v4247_v18 }
 0x12b   : > { %2036 = vst [vmem:[#allocation3 + $0x8c] sm:$0xf] %v1974_v46  ;;  %3356 = vmatmul.mubr.bf16.gmra.mxu0 %v4736_v44  ;;  %v1877_v61 = vshll.u32 %v1688_v54, 16  ;;  %v1932_v62 = vld [vmem:[#allocation2 + $0x7c] sm:$0xf]  ;;  %v3967_v2 = vrot.slane %v1931_v50, 9  ;;  %v4251_v53 = vpop.f32.mrf.mxu0 }
 0x12c   : > { %v1864_v60 = vor.u32 %v1863_v48, %v1860_v47  ;;  %v1933_v6 = vld [vmem:[#allocation2 + $0x80] sm:$0x1]  ;;  %v2005_v45 = vrot.slane %v1932_v62, 5  ;;  %v1934_v56 = vld [vmem:[#allocation2 + $0x84] sm:$0xe]  ;;  %v4317_v47 = vpop.f32.mrf.mxu1  ;;  %v5558_v52 = vadd.f32 %v4313_v58, %v4249_v42  ;;  %v4252_v55 = vadd.f32 %v4251_v53, %v4250_v43 }
 0x12d   : > { %v1879_v24 = vrot.slane %v1877_v61, 5  ;;  %v2008_v0 = vrot.slane %v1933_v6, 5  ;;  %v1935_v33 = vld [vmem:[#allocation2 + $0x88] sm:$0xf]  ;;  %v1936_v27 = vld [vmem:[#allocation2 + $0x8c] sm:$0x1]  ;;  %v4253_v6 = vpop.f32.mrf.mxu0 }
 0x12e   : > { %v1865_v57 = vrot.slane %v1864_v60, 4  ;;  %v4739_v1 = vld [vmem:[#allocation3 + $0x20] ss:$36 sps:$4 sm:$0xff]   ;;  %v2006_v34 = vsel %vm4981_vm10, %v3967_v2, %v2005_v45  ;;  %v2007_v10 = vrot.slane %v2005_v45, 4  ;;  %v3968_v17 = vrot.slane %v1934_v56, 9 }
 0x12f   : > { %v1880_v16 = vsel %vm5031_vm14, %v1875_v31, %v1879_v24  ;;  %4513 = vmatprep.mubr.bf16.mxu0 %v4739_v1  ;;  %2045 = vst [vmem:[#allocation3 + $0x1d0] sm:$0xf] %v2006_v34  ;;  %v2012_v14 = vrot.slane %v1935_v33, 5  ;;  %v1919_v23 = vld [vmem:[#allocation2 + $0x30] sm:$0xe]  ;;  %v2015_v22 = vrot.slane %v1936_v27, 5  ;;  %v5564_v3 = vadd.f32 %v4316_v59, %v4252_v55  ;;  %v4254_v56 = vpop.f32.mrf.mxu0 }
 0x130   : > { %v1870_v12 = vsel %vm5031_vm14, %v1865_v57, %v5526_v19  ;;  %1912 = vst [vmem:[#allocation3 + $0x238] sm:$0xf] %v1880_v16  ;;  %v2009_v28 = vsel %vm4981_vm10, %v2007_v10, %v2008_v0  ;;  %v3963_v29 = vrot.slane %v1919_v23, 9  ;;  %v4246_v19 = vadd.f32 %v4245_v9, %v4244_v4  ;;  %v1920_v30 = vld [vmem:[#allocation2 + $0x34] sm:$0xf] }
 0x131   : > { %1911 = vst [vmem:[#allocation3 + $0x214] sm:$0xf] %v1870_v12  ;;  %2046 = vst [vmem:[#allocation3 + $0x1f4] sm:$0xf] %v2009_v28  ;;  %v2013_v51 = vsel %vm4981_vm10, %v3968_v17, %v2012_v14  ;;  %v2014_v38 = vrot.slane %v2012_v14, 4  ;;  %v1977_v36 = vrot.slane %v1920_v30, 5  ;;  %v4255_v24 = vadd.f32 %v4254_v56, %v4253_v6  ;;  %v4256_v1 = vpop.f32.mrf.mxu0 }
 0x132   : > { %v4740_v7 = vld [vmem:[#allocation3 + $0x68] ss:$36 sps:$4 sm:$0xff]   ;;  %2047 = vst [vmem:[#allocation3 + $0x218] sm:$0xf] %v2013_v51  ;;  %v1923_v32 = vld [vmem:[#allocation2 + $0x40] sm:$0xf]  ;;  %v5550_v25 = vadd.f32 %v4310_v20, %v4246_v19  ;;  %v4318_v20 = vpop.f32.mrf.mxu1 }
 0x133   : > { %v1921_v49 = vld [vmem:[#allocation2 + $0x38] sm:$0x1]  ;;  %4514 = vmatmul.mubr.bf16.vlgmr.msra.gmra.mxu0 %v4740_v7  ;;  %v1922_v26 = vld [vmem:[#allocation2 + $0x3c] sm:$0xe]  ;;  %v2016_v39 = vsel %vm4981_vm10, %v2014_v38, %v2015_v22  ;;  %v1924_v40 = vld [vmem:[#allocation2 + $0x44] sm:$0x1]  ;;  %v1978_v37 = vsel %vm4981_vm10, %v3963_v29, %v1977_v36  ;;  %v4319_v62 = vadd.f32 %v4318_v20, %v4317_v47  ;;  %v4257_v34 = vpop.f32.mrf.mxu0 }
 0x134   : > { %v1980_v13 = vrot.slane %v1921_v49, 5  ;;  %v3964_v21 = vrot.slane %v1922_v26, 9  ;;  %v1984_v41 = vrot.slane %v1923_v32, 5  ;;  %2048 = vst [vmem:[#allocation3 + $0x23c] sm:$0xf] %v2016_v39  ;;  %v1979_v44 = vrot.slane %v1977_v36, 4  ;;  %v4320_v4 = vpop.f32.mrf.mxu1 }
 0x135   : > { %v1987_v46 = vrot.slane %v1924_v40, 5  ;;  %2037 = vst [vmem:[#allocation3 + $0xb0] sm:$0xf] %v1978_v37  ;;  %v4737_v54 = vld [vmem:[#allocation3 + $0x140] ss:$36 sps:$4 sm:$0xff]   ;;  %v5566_v8 = vadd.f32 %v4319_v62, %v4255_v24  ;;  %v4258_v33 = vadd.f32 %v4257_v34, %v4256_v1  ;;  %v4259_v12 = vpop.f32.mrf.mxu0 }
 0x136   : > { %v1985_v48 = vsel %vm4981_vm10, %v3964_v21, %v1984_v41  ;;  %v1986_v50 = vrot.slane %v1984_v41, 4  ;;  %v1981_v31 = vsel %vm4981_vm10, %v1979_v44, %v1980_v13  ;;  %v4732_v2 = vld [vmem:[#allocation3 + $0x210] ss:$36 sps:$4 sm:$0xff]   ;;  %v4321_v45 = vpop.f32.mrf.mxu1  ;;  %v4738_v9 = vld [vmem:[#allocation3 + $0x188] ss:$36 sps:$4 sm:$0xff]  }
 0x137   : > { %2039 = vst [vmem:[#allocation3 + $0xf8] sm:$0xf] %v1985_v48  ;;  %2038 = vst [vmem:[#allocation3 + $0xd4] sm:$0xf] %v1981_v31  ;;  %v4322_v57 = vadd.f32 %v4321_v45, %v4320_v4  ;;  %v4260_v17 = vpop.f32.mrf.mxu0 }
 0x138   : > { %v4730_v60 = vld [vmem:[#allocation3 + $0x214] ss:$36 sps:$4 sm:$0xff]   ;;  %v1988_v61 = vsel %vm4981_vm10, %v1986_v50, %v1987_v46  ;;  %v4323_v27 = vpop.f32.mrf.mxu1  ;;  %v4261_v23 = vadd.f32 %v4260_v17, %v4259_v12 }
 0x139   : > { %2040 = vst [vmem:[#allocation3 + $0x11c] sm:$0xf] %v1988_v61  ;;  %3452 = vmatprep.mubr.bf16.mxu1 %v4730_v60  ;;  %v4741_v10 = vld [vmem:[#allocation3 + $0x1d0] ss:$36 sps:$4 sm:$0xff]   ;;  %v5568_v58 = vadd.f32 %v4322_v57, %v4258_v33  ;;  %v4262_v18 = vpop.f32.mrf.mxu0 }
 0x13a   : > { %3453 = vmatmul.mubr.bf16.gmra.mxu1 %v4732_v2  ;;  %v4324_v14 = vpop.f32.mrf.mxu1 }
 0x13b   : > { %4521 = vmatprep.mubr.bf16.mxu1 %v4737_v54  ;;  %v4742_v16 = vld [vmem:[#allocation3 + $0x218] ss:$36 sps:$4 sm:$0xff]   ;;  %v4325_v11 = vadd.f32 %v4324_v14, %v4323_v27  ;;  %v4263_v22 = vpop.f32.mrf.mxu0 }
 0x13c   : > { %v4326_v7 = vpop.f32.mrf.mxu1  ;;  %v4264_v19 = vadd.f32 %v4263_v22, %v4262_v18 }
 0x13d   : > { %v5570_v28 = vadd.f32 %v4325_v11, %v4261_v23 }
 0x13e   : > { %v4743_v35 = vld [vmem:[#allocation3 + $0xb0] ss:$36 sps:$4 sm:$0xff]   ;;  %v4327_v29 = vpop.f32.mrf.mxu1 }
 0x13f   : > { %4517 = vmatprep.mubr.bf16.mxu0 %v4743_v35  ;;  %v4328_v51 = vadd.f32 %v4327_v29, %v4326_v7 }
 0x140   : > { %v4744_v0 = vld [vmem:[#allocation3 + $0xf8] ss:$36 sps:$4 sm:$0xff]  }
 0x141   : > { %4518 = vmatmul.mubr.bf16.gmra.mxu0 %v4744_v0  ;;  %v5572_v38 = vadd.f32 %v4328_v51, %v4264_v19 }
 0x142   : > { %4522 = vmatmul.mubr.bf16.vlgmr.msra.gmra.mxu1 %v4738_v9 }
 0x143   : > { %4525 = vmatprep.mubr.bf16.mxu1 %v4741_v10 }
 0x14a   : > { %4526 = vmatmul.mubr.bf16.gmra.mxu1 %v4742_v16 }
 0x14f   : > { %v4329_v30 = vpop.f32.mrf.mxu1 }
 0x151   : > { %v4330_v49 = vpop.f32.mrf.mxu1 }
 0x152   : > { %v4331_v15 = vadd.f32 %v4330_v49, %v4329_v30 }
 0x153   : > { %v4332_v5 = vpop.f32.mrf.mxu1 }
 0x155   : > { %v4333_v36 = vpop.f32.mrf.mxu1 }
 0x156   : > { %v4334_v26 = vadd.f32 %v4333_v36, %v4332_v5 }
 0x157   : > { %v4265_v13 = vpop.f32.mrf.mxu0  ;;  %v4335_v32 = vpop.f32.mrf.mxu1 }
 0x159   : > { %v4266_v59 = vpop.f32.mrf.mxu0  ;;  %v4336_v40 = vpop.f32.mrf.mxu1 }
 0x15a   : > { %v4267_v39 = vadd.f32 %v4266_v59, %v4265_v13  ;;  %v4337_v41 = vadd.f32 %v4336_v40, %v4335_v32 }
 0x15b   : > { %v4268_v21 = vpop.f32.mrf.mxu0  ;;  %v4338_v43 = vpop.f32.mrf.mxu1 }
 0x15c   : > { %v5574_v42 = vadd.f32 %v4331_v15, %v4267_v39 }
 0x15d   : > { %v4269_v37 = vpop.f32.mrf.mxu0  ;;  %v4339_v46 = vpop.f32.mrf.mxu1 }
 0x15e   : > { %v4270_v44 = vadd.f32 %v4269_v37, %v4268_v21  ;;  %v4340_v48 = vadd.f32 %v4339_v46, %v4338_v43 }
 0x15f   : > { %v4271_v47 = vpop.f32.mrf.mxu0 }
 0x160   : > { %v5576_v50 = vadd.f32 %v4334_v26, %v4270_v44 }
 0x161   : > { %v4272_v53 = vpop.f32.mrf.mxu0 }
 0x162   : > { %5775 = vst [vmem:[#allocation5_spill] sm:$0xff] %v5576_v50  ;;  %v4273_v54 = vadd.f32 %v4272_v53, %v4271_v47 }
 0x163   : > { %v4274_v31 = vpop.f32.mrf.mxu0 }
 0x164   : > { %v5578_v20 = vadd.f32 %v4337_v41, %v4273_v54 }
 0x165   : > { %v4275_v55 = vpop.f32.mrf.mxu0 }
 0x166   : > { %5776 = vst [vmem:[#allocation6_spill] sm:$0xff] %v5578_v20  ;;  %v4276_v60 = vadd.f32 %v4275_v55, %v4274_v31 }
 0x167   : > { %v4277_v61 = vpop.f32.mrf.mxu0 }
 0x168   : > { %v5580_v62 = vadd.f32 %v4340_v48, %v4276_v60 }
 0x169   : > { %v4341_v2 = vpop.f32.mrf.mxu1  ;;  %v4278_v4 = vpop.f32.mrf.mxu0 }
 0x16a   : > { %5777 = vst [vmem:[#allocation7_spill] sm:$0xff] %v5580_v62  ;;  %v4279_v6 = vadd.f32 %v4278_v4, %v4277_v61 }
 0x16b   : > { %v4342_v45 = vpop.f32.mrf.mxu1  ;;  %v4280_v56 = vpop.f32.mrf.mxu0 }
 0x16c   : > { %v4343_v57 = vadd.f32 %v4342_v45, %v4341_v2 }
 0x16d   : > { %v4344_v24 = vpop.f32.mrf.mxu1  ;;  %v4281_v1 = vpop.f32.mrf.mxu0 }
 0x16e   : > { %v5582_v9 = vadd.f32 %v4343_v57, %v4279_v6  ;;  %v4282_v35 = vadd.f32 %v4281_v1, %v4280_v56 }
 0x16f   : > { %v4345_v34 = vpop.f32.mrf.mxu1 }
 0x170   : > { %5778 = vst [vmem:[#allocation8_spill] sm:$0xff] %v5582_v9  ;;  %v4346_v10 = vadd.f32 %v4345_v34, %v4344_v24 }
 0x172   : > { %v5584_v0 = vadd.f32 %v4346_v10, %v4282_v35 }
 0x174   : > { %5779 = vst [vmem:[#allocation9_spill] sm:$0xff] %v5584_v0 }
 0x17b   : > { %v4283_v33 = vpop.f32.mrf.mxu0 }
 0x17d   : > { %v4284_v12 = vpop.f32.mrf.mxu0 }
 0x17e   : > { %v4285_v27 = vadd.f32 %v4284_v12, %v4283_v33 }
 0x17f   : > { %v4347_v16 = vpop.f32.mrf.mxu1  ;;  %v4286_v17 = vpop.f32.mrf.mxu0 }
 0x181   : > { %v4348_v14 = vpop.f32.mrf.mxu1  ;;  %v4287_v11 = vpop.f32.mrf.mxu0 }
 0x182   : > { %v4349_v23 = vadd.f32 %v4348_v14, %v4347_v16  ;;  %v4288_v7 = vadd.f32 %v4287_v11, %v4286_v17 }
 0x183   : > { %v4350_v18 = vpop.f32.mrf.mxu1 }
 0x184   : > { %v5586_v22 = vadd.f32 %v4349_v23, %v4285_v27  ;;  %v4369_v19 = vpop.f32.mrf.mxu0 }
 0x185   : > { %v4351_v29 = vpop.f32.mrf.mxu1 }
 0x186   : > { %5780 = vst [vmem:[#allocation10_spill] sm:$0xff] %v5586_v22  ;;  %v4352_v51 = vadd.f32 %v4351_v29, %v4350_v18  ;;  %v4370_v30 = vpop.f32.mrf.mxu0 }
 0x187   : > { %v4371_v15 = vadd.f32 %v4370_v30, %v4369_v19  ;;  %v4433_v5 = vpop.f32.mrf.mxu1 }
 0x188   : > { %v5588_v49 = vadd.f32 %v4352_v51, %v4288_v7  ;;  %v4372_v36 = vpop.f32.mrf.mxu0 }
 0x189   : > { %v5591_v13 = vadd.f32 %v4371_v15, %v5537_v63  ;;  %v4434_v26 = vpop.f32.mrf.mxu1 }
 0x18a   : > { %5781 = vst [vmem:[#allocation11_spill] sm:$0xff] %v5588_v49  ;;  %v4373_v32 = vpop.f32.mrf.mxu0  ;;  %v4435_v20 = vadd.f32 %v4434_v26, %v4433_v5 }
 0x18b   : > { %v4436_v59 = vpop.f32.mrf.mxu1 }
 0x18d   : > { %v4437_v21 = vpop.f32.mrf.mxu1 }
 0x18f   : > { %v4439_v43 = vpop.f32.mrf.mxu1 }
 0x191   : > { %v4440_v44 = vpop.f32.mrf.mxu1 }
 0x192   : > { %v4375_v39 = vpop.f32.mrf.mxu0 }
 0x193   : > { %v4442_v48 = vpop.f32.mrf.mxu1 }
 0x194   : > { %v4376_v40 = vpop.f32.mrf.mxu0 }
 0x195   : > { %v4443_v31 = vpop.f32.mrf.mxu1 }
 0x196   : > { %v4378_v41 = vpop.f32.mrf.mxu0  ;;  %v4444_v50 = vadd.f32 %v4443_v31, %v4442_v48 }
 0x198   : > { %v4379_v37 = vpop.f32.mrf.mxu0 }
 0x1a1   : > { %v4381_v46 = vpop.f32.mrf.mxu0 }
 0x1a3   : > { %v4382_v47 = vpop.f32.mrf.mxu0 }
 0x1a4   : > { %v4383_v26 = vadd.f32 %v4382_v47, %v4381_v46 }
 0x1a5   : > { %v4384_v53 = vpop.f32.mrf.mxu0 }
 0x1a7   : > { %v4385_v54 = vpop.f32.mrf.mxu0 }
 0x1aa   : > { %v5595_v63 = vpop.f32.mrf.mxu1 }
 0x1ac   : > { %v5593_v55 = vpop.f32.mrf.mxu0  ;;  %v5597_v61 = vpop.f32.mrf.mxu1 }
 0x1ae   : > { %v4388_v60 = vpop.f32.mrf.mxu0  ;;  %v5601_v4 = vpop.f32.mrf.mxu1 }
 0x1b0   : > { %v5599_v2 = vpop.f32.mrf.mxu0  ;;  %v5605_v45 = vpop.f32.mrf.mxu1 }
 0x1b2   : > { %v5603_v6 = vpop.f32.mrf.mxu0 }
 0x1bf   : > { %v5607_v56 = vpop.f32.mrf.mxu0 }
 0x1c0   : > { %v5609_v57 = vpop.f32.mrf.mxu1 }
 0x1c1   : > { %v4394_v24 = vpop.f32.mrf.mxu0 }
 0x1c2   : > { %v5611_v1 = vpop.f32.mrf.mxu1 }
 0x1c3   : > { %v5613_v35 = vpop.f32.mrf.mxu0 }
 0x1c4   : > { %v5615_v34 = vpop.f32.mrf.mxu1 }
 0x1c5   : > { %v5619_v33 = vpop.f32.mrf.mxu0 }
 0x1c6   : > { %v5617_v10 = vpop.f32.mrf.mxu1 }
 0x1c8   : > { %v5621_v12 = vpop.f32.mrf.mxu1 }
 0x1ca   : > { %v5623_v16 = vpop.f32.mrf.mxu1 }
 0x1cc   : > { %v5625_v27 = vpop.f32.mrf.mxu0  ;;  %v5627_v17 = vpop.f32.mrf.mxu1 }
 0x1ce   : > { %v4400_v14 = vpop.f32.mrf.mxu0  ;;  %v5629_v23 = vpop.f32.mrf.mxu1 }
 0x1cf   : > { %5782 = vst [vmem:[#allocation12_spill] sm:$0xff] %v5629_v23  ;;  %v4438_v23 = vadd.f32 %v4437_v21, %v4436_v59  ;;  %v4389_v59 = vadd.f32 %v4388_v60, %v5593_v55 }
 0x1d0   : > { %v4402_v11 = vpop.f32.mrf.mxu0  ;;  %v5631_v18 = vpop.f32.mrf.mxu1 }
 0x1d1   : > { %5783 = vst [vmem:[#allocation13_spill] sm:$0xff] %v5631_v18  ;;  %v4380_v18 = vadd.f32 %v4379_v37, %v4378_v41 }
 0x1d2   : > { %v4403_v7 = vpop.f32.mrf.mxu0  ;;  %v5633_v29 = vpop.f32.mrf.mxu1 }
 0x1d3   : > { %5784 = vst [vmem:[#allocation14_spill] sm:$0xff] %v5633_v29  ;;  %v4377_v29 = vadd.f32 %v4376_v40, %v4375_v39  ;;  %v4404_v60 = vadd.f32 %v4403_v7, %v4402_v11  ;;  %v4459_v11 = vadd.f32 %v5623_v16, %v5621_v12 }
 0x1d4   : > { %v5639_v30 = vpop.f32.mrf.mxu1 }
 0x1d5   : > { %5787 = vst [vmem:[#allocation17_spill] sm:$0xff] %v5639_v30  ;;  %v4374_v30 = vadd.f32 %v4373_v32, %v4372_v36  ;;  %v3399_v36 = vadd.f32 %v4435_v20, %v5591_v13  ;;  %v4386_v32 = vadd.f32 %v4385_v54, %v4384_v53  ;;  %v4398_v53 = vadd.f32 %v5619_v33, %v5613_v35 }
 0x1d6   : > { %v5643_v0 = vpop.f32.mrf.mxu1  ;;  %v4401_v54 = vadd.f32 %v4400_v14, %v5625_v27  ;;  %v4456_v35 = vadd.f32 %v5617_v10, %v5615_v34  ;;  %v5801_v10 = vld [vmem:[#allocation7_spill] sm:$0xff] }
 0x1d7   : > { %5789 = vst [vmem:[#allocation19_spill] sm:$0xff] %v5643_v0  ;;  %v4441_v0 = vadd.f32 %v4440_v44, %v4439_v43  ;;  %v3305_v39 = vadd.f32 %v4374_v30, %v5550_v25  ;;  %v3321_v20 = vadd.f32 %v4386_v32, %v5568_v58  ;;  %v3326_v58 = vadd.f32 %v4389_v59, %v5570_v28 }
 0x1d9   : > { %v3402_v48 = vadd.f32 %v4438_v23, %v3305_v39  ;;  %v4453_v23 = vadd.f32 %v5611_v1, %v5609_v57  ;;  %v5796_v57 = vld [vmem:[#allocation6_spill] sm:$0xff] }
 0x1da   : > { %v3342_v1 = vadd.f32 %v4401_v54, %v5796_v57 }
 0x1db   : > { %v5635_v19 = vpop.f32.mrf.mxu0 }
 0x1dc   : > { %5785 = vst [vmem:[#allocation15_spill] sm:$0xff] %v5635_v19  ;;  %v5799_v39 = vld [vmem:[#allocation17_spill] sm:$0xff] }
 0x1dd   : > { %v5637_v51 = vpop.f32.mrf.mxu0 }
 0x1de   : > { %5786 = vst [vmem:[#allocation16_spill] sm:$0xff] %v5637_v51 }
 0x1df   : > { %v5641_v15 = vpop.f32.mrf.mxu0 }
 0x1e0   : > { %5788 = vst [vmem:[#allocation18_spill] sm:$0xff] %v5641_v15 }
 0x1e1   : > { %v5645_v9 = vpop.f32.mrf.mxu0 }
 0x1e2   : > { %5790 = vst [vmem:[#allocation20_spill] sm:$0xff] %v5645_v9  ;;  %v3310_v9 = vadd.f32 %v4377_v29, %v5558_v52  ;;  %v5797_v29 = vld [vmem:[#allocation13_spill] sm:$0xff] }
 0x1e4   : > { %v3407_v41 = vadd.f32 %v4441_v0, %v3310_v9  ;;  %v3318_v9 = vadd.f32 %v4383_v26, %v5566_v8  ;;  %v4395_v0 = vadd.f32 %v4394_v24, %v5607_v56  ;;  %v4447_v8 = vadd.f32 %v5597_v61, %v5595_v63 }
 0x1e5   : > { %v4450_v24 = vadd.f32 %v5605_v45, %v5601_v4  ;;  %v5795_v45 = vld [vmem:[#allocation5_spill] sm:$0xff] }
 0x1e6   : > { %v3334_v28 = vadd.f32 %v4395_v0, %v5574_v42  ;;  %v3337_v7 = vadd.f32 %v4398_v53, %v5795_v45  ;;  %v5798_v42 = vld [vmem:[#allocation14_spill] sm:$0xff]  ;;  %v3415_v12 = vadd.f32 %v4447_v8, %v3318_v9  ;;  %v5805_v0 = vld [vmem:[#allocation16_spill] sm:$0xff] }
 0x1e7   : > { %v4465_v30 = vadd.f32 %v5798_v42, %v5797_v29 }
 0x1e8   : > { %v5647_v49 = vpop.f32.mrf.mxu1 }
 0x1e9   : > { %5791 = vst [vmem:[#allocation21_spill] sm:$0xff] %v5647_v49  ;;  %v3313_v49 = vadd.f32 %v4380_v18, %v5564_v3  ;;  %v5794_v18 = vld [vmem:[#allocation12_spill] sm:$0xff] }
 0x1ea   : > { %v5653_v19 = vpop.f32.mrf.mxu1  ;;  %v4462_v4 = vadd.f32 %v5794_v18, %v5627_v17 }
 0x1eb   : > { %v5649_v22 = vpop.f32.mrf.mxu0  ;;  %v3410_v5 = vadd.f32 %v4444_v50, %v3313_v49  ;;  %v4392_v50 = vadd.f32 %v5603_v6, %v5599_v2 }
 0x1ec   : > { %5792 = vst [vmem:[#allocation22_spill] sm:$0xff] %v5649_v22  ;;  %v5661_v22 = vpop.f32.mrf.mxu1 }
 0x1ed   : > { %v5651_v62 = vpop.f32.mrf.mxu0  ;;  %v3329_v63 = vadd.f32 %v4392_v50, %v5572_v38  ;;  %v5804_v50 = vld [vmem:[#allocation15_spill] sm:$0xff] }
 0x1ee   : > { %5793 = vst [vmem:[#allocation23_spill] sm:$0xff] %v5651_v62  ;;  %v5666_v43 = vpop.f32.mrf.mxu1 }
 0x1ef   : > { %v5655_v51 = vpop.f32.mrf.mxu0 }
 0x1f1   : > { %v5657_v15 = vpop.f32.mrf.mxu0 }
 0x1f3   : > { %v4515_v62 = vpop.f32.mrf.mxu0  ;;  %v5802_v16 = vld [vmem:[#allocation22_spill] sm:$0xff] }
 0x1f4   : > { %v3504_v52 = vadd.f32 %v4515_v62, %v3407_v41  ;;  %v3345_v41 = vadd.f32 %v4404_v60, %v5801_v10 }
 0x1f5   : > { %v3495_v40 = vpop.f32.mrf.mxu0  ;;  %v5803_v32 = vld [vmem:[#allocation23_spill] sm:$0xff] }
 0x1f6   : > { %v3496_v3 = vadd.f32 %v3495_v40, %v3399_v36  ;;  %v3661_v2 = vmul.f32 %v3504_v52, %v3504_v52  ;;  %v5800_v40 = vld [vmem:[#allocation19_spill] sm:$0xff]  ;;  %v4413_v17 = vadd.f32 %v5803_v32, %v5802_v16 }
 0x1f7   : > { %v4516_v37 = vpop.f32.mrf.mxu0  ;;  %v4468_v34 = vadd.f32 %v5800_v40, %v5799_v39  ;;  %v5811_v39 = vld [vmem:[#allocation21_spill] sm:$0xff] }
 0x1f8   : > { %v3507_v44 = vadd.f32 %v4516_v37, %v3410_v5  ;;  %v3659_v62 = vmul.f32 %v3496_v3, %v3496_v3  ;;  %v4416_v37 = vadd.f32 %v5657_v15, %v5655_v51  ;;  %v5812_v40 = vld [vmem:[#allocation9_spill] sm:$0xff] }
 0x1f9   : > { %v3498_v21 = vpop.f32.mrf.mxu0  ;;  %v3442_v8 = vadd.f32 %v4468_v34, %v3345_v41 }
 0x1fa   : > { %v4186_v25 = vpack.c.bf16 %v3507_v44, %v3504_v52  ;;  %v3499_v31 = vadd.f32 %v3498_v21, %v3402_v48  ;;  %v5674_v49 = vpop.f32.mrf.mxu1  ;;  %v3662_v33 = vmul.f32 %v3507_v44, %v3507_v44  ;;  %v3431_v48 = vadd.f32 %v4459_v11, %v3334_v28 }
 0x1fb   : > { %v3434_v21 = vadd.f32 %v4462_v4, %v3337_v7  ;;  %v5810_v7 = vld [vmem:[#allocation8_spill] sm:$0xff] }
 0x1fc   : > { %4218 = vst [vmem:[%s5676_s12 + $0x8] sm:$0xff] %v4186_v25   ;;  %v4181_v13 = vpack.c.bf16 %v3499_v31, %v3496_v3  ;;  %v3638_v46 = vadd.f32 %v3499_v31, %v3496_v3  ;;  %v3660_v47 = vmul.f32 %v3499_v31, %v3499_v31  ;;  %v4476_v55 = vpop.f32.mrf.mxu1  ;;  %v3426_v31 = vadd.f32 %v4456_v35, %v3329_v63 }
 0x1fd   : > { %v4477_v28 = vadd.f32 %v4476_v55, %v5674_v49  ;;  %v4471_v49 = vadd.f32 %v5653_v19, %v5811_v39  ;;  %v4474_v55 = vadd.f32 %v5666_v43, %v5661_v22 }
 0x1fe   : > { %4182 = vst [vmem:[%s5676_s12] sm:$0xff] %v4181_v13   ;;  %v3639_v6 = vadd.f32 %v3638_v46, %v3504_v52  ;;  %v3675_v56 = vadd.f32 %v3660_v47, %v3659_v62  ;;  %v4478_v61 = vpop.f32.mrf.mxu1  ;;  %v3423_v52 = vadd.f32 %v4453_v23, %v3326_v58  ;;  %v4407_v62 = vadd.f32 %v5805_v0, %v5804_v50  ;;  %v5806_v13 = vld [vmem:[#allocation18_spill] sm:$0xff]  ;;  %v5807_v46 = vld [vmem:[#allocation20_spill] sm:$0xff] }
 0x1ff   : > { %v4410_v9 = vadd.f32 %v5807_v46, %v5806_v13  ;;  %v3439_v47 = vadd.f32 %v4465_v30, %v3342_v1 }
 0x200   : > { %v3676_v27 = vadd.f32 %v3675_v56, %v3661_v2  ;;  %v3640_v14 = vadd.f32 %v3639_v6, %v3507_v44  ;;  %v4479_v38 = vpop.f32.mrf.mxu1  ;;  %v3418_v44 = vadd.f32 %v4450_v24, %v3321_v20  ;;  %v5808_v20 = vld [vmem:[#allocation10_spill] sm:$0xff]  ;;  %v5809_v56 = vld [vmem:[#allocation11_spill] sm:$0xff]  ;;  %v3350_v57 = vadd.f32 %v4407_v62, %v5810_v7 }
 0x201   : > { %v4519_v36 = vpop.f32.mrf.mxu0  ;;  %v3358_v2 = vadd.f32 %v4413_v17, %v5808_v20  ;;  %v3361_v24 = vadd.f32 %v4416_v37, %v5809_v56  ;;  %v4480_v18 = vadd.f32 %v4479_v38, %v4478_v61  ;;  %v3353_v61 = vadd.f32 %v4410_v9, %v5812_v40 }
 0x202   : > { %v3677_v5 = vadd.f32 %v3676_v27, %v3662_v33  ;;  %v4523_v26 = vpop.f32.mrf.mxu1  ;;  %v3520_v60 = vadd.f32 %v4519_v36, %v3423_v52  ;;  %v3447_v37 = vadd.f32 %v4471_v49, %v3350_v57 }
 0x203   : > { %v3511_v3 = vpop.f32.mrf.mxu0  ;;  %v3536_v6 = vadd.f32 %v4523_v26, %v3439_v47  ;;  %v3458_v26 = vadd.f32 %v4480_v18, %v3361_v24  ;;  %v3450_v43 = vadd.f32 %v4474_v55, %v3353_v61  ;;  %v3734_v39 = vld [vmem:[%s5676_s12 + $0x8] sm:$0xff] (%p4816_p4)  }
 0x204   : > { %v3527_v59 = vpop.f32.mrf.mxu1  ;;  %v3512_v25 = vadd.f32 %v3511_v3, %v3415_v12  ;;  %v3665_v10 = vmul.f32 %v3520_v60, %v3520_v60  ;;  %3735 = vst [vmem:[%s3713_s29 + $0x8] sm:$0xff] (%p4816_p4), %v3734_v39  }
 0x205   : > { %v4520_v53 = vpop.f32.mrf.mxu0  ;;  %v3528_v4 = vadd.f32 %v3527_v59, %v3431_v48  ;;  %v3669_v13 = vmul.f32 %v3536_v6, %v3536_v6 }
 0x206   : > { %v4524_v54 = vpop.f32.mrf.mxu1  ;;  %v3641_v51 = vadd.f32 %v3640_v14, %v3512_v25  ;;  %v3663_v15 = vmul.f32 %v3512_v25, %v3512_v25  ;;  %v3523_v58 = vadd.f32 %v4520_v53, %v3426_v31 }
 0x207   : > { %v3539_v23 = vadd.f32 %v4524_v54, %v3442_v8  ;;  %v3514_v63 = vpop.f32.mrf.mxu0  ;;  %v3667_v52 = vmul.f32 %v3528_v4, %v3528_v4 }
 0x208   : > { %v3530_v35 = vpop.f32.mrf.mxu1  ;;  %v3678_v33 = vadd.f32 %v3677_v5, %v3663_v15  ;;  %v4196_v27 = vpack.c.bf16 %v3523_v58, %v3520_v60  ;;  %v3515_v11 = vadd.f32 %v3514_v63, %v3418_v44  ;;  %v3455_v5 = vadd.f32 %v4477_v28, %v3358_v2 }
 0x209   : > { %v4206_v14 = vpack.c.bf16 %v3539_v23, %v3536_v6  ;;  %v3531_v45 = vadd.f32 %v3530_v35, %v3434_v21  ;;  %v3666_v16 = vmul.f32 %v3523_v58, %v3523_v58  ;;  %v3670_v47 = vmul.f32 %v3539_v23, %v3539_v23 }
 0x20a   : > { %v4527_v1 = vpop.f32.mrf.mxu1  ;;  %4220 = vst [vmem:[%s5676_s12 + $0x18] sm:$0xff] %v4196_v27   ;;  %v4191_v29 = vpack.c.bf16 %v3515_v11, %v3512_v25  ;;  %v3642_v42 = vadd.f32 %v3641_v51, %v3515_v11  ;;  %v3664_v30 = vmul.f32 %v3515_v11, %v3515_v11 }
 0x20b   : > { %4222 = vst [vmem:[%s5676_s12 + $0x28] sm:$0xff] %v4206_v14   ;;  %v4201_v38 = vpack.c.bf16 %v3531_v45, %v3528_v4  ;;  %v3552_v17 = vadd.f32 %v4527_v1, %v3455_v5  ;;  %v3668_v31 = vmul.f32 %v3531_v45, %v3531_v45 }
 0x20c   : > { %v3543_v34 = vpop.f32.mrf.mxu1  ;;  %4219 = vst [vmem:[%s5676_s12 + $0x10] sm:$0xff] %v4191_v29   ;;  %v3643_v41 = vadd.f32 %v3642_v42, %v3520_v60  ;;  %v3679_v36 = vadd.f32 %v3678_v33, %v3664_v30  ;;  %v3730_v30 = vld [vmem:[%s5676_s12] sm:$0xff] (%p4816_p4)  }
 0x20d   : > { %4221 = vst [vmem:[%s5676_s12 + $0x20] sm:$0xff] %v4201_v38   ;;  %v3544_v59 = vadd.f32 %v3543_v34, %v3447_v37  ;;  %v3673_v2 = vmul.f32 %v3552_v17, %v3552_v17  ;;  %3731 = vst [vmem:[%s3713_s29] sm:$0xff] (%p4816_p4), %v3730_v30  }
 0x20e   : > { %v4528_v12 = vpop.f32.mrf.mxu1  ;;  %v3644_v32 = vadd.f32 %v3643_v41, %v3523_v58  ;;  %v3680_v19 = vadd.f32 %v3679_v36, %v3665_v10 }
 0x20f   : > { %v3555_v22 = vadd.f32 %v4528_v12, %v3458_v26  ;;  %v3671_v54 = vmul.f32 %v3544_v59, %v3544_v59 }
 0x210   : > { %v3546_v3 = vpop.f32.mrf.mxu1  ;;  %v3645_v44 = vadd.f32 %v3644_v32, %v3528_v4  ;;  %v3681_v48 = vadd.f32 %v3680_v19, %v3666_v16 }
 0x211   : > { %v4216_v21 = vpack.c.bf16 %v3555_v22, %v3552_v17  ;;  %v3547_v25 = vadd.f32 %v3546_v3, %v3450_v43  ;;  %v3674_v63 = vmul.f32 %v3555_v22, %v3555_v22  ;;  %v3742_v55 = vld [vmem:[%s5676_s12 + $0x18] sm:$0xff] (%p4816_p4)  }
 0x212   : > { %v3646_v50 = vadd.f32 %v3645_v44, %v3531_v45  ;;  %v3682_v0 = vadd.f32 %v3681_v48, %v3667_v52  ;;  %v3750_v61 = vld [vmem:[%s5676_s12 + $0x28] sm:$0xff] (%p4816_p4)   ;;  %3743 = vst [vmem:[%s3713_s29 + $0x18] sm:$0xff] (%p4816_p4), %v3742_v55  }
 0x213   : > { %4224 = vst [vmem:[%s5676_s12 + $0x38] sm:$0xff] %v4216_v21   ;;  %v4211_v62 = vpack.c.bf16 %v3547_v25, %v3544_v59  ;;  %v3672_v15 = vmul.f32 %v3547_v25, %v3547_v25  ;;  %v3738_v49 = vld [vmem:[%s5676_s12 + $0x10] sm:$0xff] (%p4816_p4)   ;;  %3751 = vst [vmem:[%s3713_s29 + $0x88] sm:$0xff] (%p4816_p4), %v3750_v61  }
 0x214   : > { %v3647_v46 = vadd.f32 %v3646_v50, %v3536_v6  ;;  %v3683_v9 = vadd.f32 %v3682_v0, %v3668_v31  ;;  %v3746_v40 = vld [vmem:[%s5676_s12 + $0x20] sm:$0xff] (%p4816_p4)   ;;  %3739 = vst [vmem:[%s3713_s29 + $0x10] sm:$0xff] (%p4816_p4), %v3738_v49  }
 0x215   : > { %4223 = vst [vmem:[%s5676_s12 + $0x30] sm:$0xff] %v4211_v62   ;;  %3747 = vst [vmem:[%s3713_s29 + $0x80] sm:$0xff] (%p4816_p4), %v3746_v40  }
 0x216   : > { %v3648_v8 = vadd.f32 %v3647_v46, %v3539_v23  ;;  %v3684_v53 = vadd.f32 %v3683_v9, %v3669_v13 }
 0x218   : > { %v3649_v60 = vadd.f32 %v3648_v8, %v3544_v59  ;;  %v3685_v51 = vadd.f32 %v3684_v53, %v3670_v47 }
 0x21a   : > { %v3650_v58 = vadd.f32 %v3649_v60, %v3547_v25  ;;  %v3686_v20 = vadd.f32 %v3685_v51, %v3671_v54  ;;  %v3758_v34 = vld [vmem:[%s5676_s12 + $0x38] sm:$0xff] (%p4816_p4)  }
 0x21b   : > { %3759 = vst [vmem:[%s3713_s29 + $0x98] sm:$0xff] (%p4816_p4), %v3758_v34  }
 0x21c   : > { %v3651_v56 = vadd.f32 %v3650_v58, %v3552_v17  ;;  %v3687_v24 = vadd.f32 %v3686_v20, %v3672_v15  ;;  %v3754_v38 = vld [vmem:[%s5676_s12 + $0x30] sm:$0xff] (%p4816_p4)  }
 0x21d   : > { %3755 = vst [vmem:[%s3713_s29 + $0x90] sm:$0xff] (%p4816_p4), %v3754_v38  }
 0x21e   : > { %v3652_v28 = vadd.f32 %v3651_v56, %v3555_v22  ;;  %v3688_v35 = vadd.f32 %v3687_v24, %v3673_v2 }
 0x220   : > { %v3653_v6 = vrot.slane %v3652_v28, 4  ;;  %v3689_v33 = vadd.f32 %v3688_v35, %v3674_v63 }
 0x222   : > { %v3654_v27 = vadd.f32 %v3653_v6, %v3652_v28  ;;  %v3690_v23 = vrot.slane %v3689_v33, 4 }
 0x224   : > { %v3655_v11 = vrot.slane %v3654_v27, 2  ;;  %v3691_v18 = vadd.f32 %v3690_v23, %v3689_v33 }
 0x226   : > { %v3656_v4 = vadd.f32 %v3655_v11, %v3654_v27  ;;  %v3692_v14 = vrot.slane %v3691_v18, 2 }
 0x228   : > { %v3657_v45 = vrot.slane %v3656_v4, 1  ;;  %v3693_v7 = vadd.f32 %v3692_v14, %v3691_v18 }
 0x22a   : > { %v3694_v57 = vrot.slane %v3693_v7, 1  ;;  %v3658_v1 = vadd.f32 %v3657_v45, %v3656_v4 }
 0x22b   : > { %3709 = sbr.rel (!%p4816_p4) target bundleno = 560 (0x230), region = 32 }
 0x22c   : > { %v3695_v29 = vadd.f32 %v3694_v57, %v3693_v7 }
 0x22e   : > { %v3697_v42 = vsel %vm402_vm4, %v3658_v1, %v3695_v29 }
 0x22f   : > { %3698 = vst [vmem:[%s156_s25] sm:$0x3] %v3697_v42 }
 0x230 PF: > { %p11_p9 = scmp.ge.s32.totalorder %s4804_s16, 6   ;;  %s5813_s12 = smov %s4763_s13 }
 0x231   : > { %s5814_s13 = smov %s4812_s19  ;;  %s5815_s14 = smov %s4804_s16 }
 0x232   :  { %13 = sbr.rel (!%p11_p9) target bundleno = 2 (0x2), region = 114 }

// kernel: resnet_block_forward.4
= control target key start
LH: loop header
LB: loop body
LE: loop exit
PB: predicated region body
PF: predicated region fallthrough
CT: control target
= control target key end

     0   :  { %s5035_s18 = smov 0   ;;  %s5037_s19 = smov 0   ;;  %s6212_s0 = inlined_call_operand.vmem [shape: bf16[2,16,16,128], index: 0, kind: input, shape index: {}]   ;;  %s6213_s1 = inlined_call_operand.vmem [shape: bf16[1152,128], index: 1, kind: input, shape index: {}]   ;;  %s6214_s2 = inlined_call_operand.vmem [shape: f32[1,128], index: 2, kind: input, shape index: {}]   ;;  %s6215_s3 = inlined_call_operand.vmem [shape: f32[1,128], index: 3, kind: input, shape index: {}]   ;;  %s6216_s4 = inlined_call_operand.vmem [shape: bf16[2,16,16,128], index: 4, kind: output, shape index: {0}]   ;;  %s6217_s5 = inlined_call_operand.vmem [shape: f32[4,2,128], index: 5, kind: output, shape index: {1}]  }
   0x1   :  { %s5039_s20 = smov 0  }
   0x2 LB: > { %s5048_s21 = sadd.s32 4294967295, %s5003_s20   ;;  %s5050_s22 = sadd.s32 1, %s5003_s20   ;;  %s5003_s20 = sphi %s5039_s20, %s6273_s20   ;;  %s4999_s19 = sphi %s5037_s19, %s6272_s19   ;;  %s4995_s18 = sphi %s5035_s18, %s6271_s18  }
   0x3   : > { %s104_s23 = ssub.s32 %s5003_s20, %s5050_s22  ;;  %s107_s24 = sadd.s32 1, %s4999_s19 }
   0x4   : > { %p105_p0 = scmp.eq.s32.totalorder %s104_s23, 0  ;;  %p117_p1 = scmp.ne.s32.totalorder %s4999_s19, %s4995_s18 }
   0x5   : > { %p118_p2 = scmp.eq.s32.totalorder %s5048_s21, 3  ;;  %p4056_p3 = scmp.ge.s32.totalorder %s5003_s20, 1 }
   0x6   : > { %s5058_s25 = scalar_select %p105_p0, %s4999_s19, %s107_s24  }
   0x7   : > { %p5062_p4 = por %p118_p2, %p117_p1  ;;  %p180_p5 = scmp.lt.s32.totalorder %s5003_s20, 5 }
   0x9   : > { %p181_p6 = pnand %p4056_p3, %p180_p5 }
   0xb   : > { %184 = sbr.rel (%p181_p6) target bundleno = 571 (0x23b), region = 36 }
  0x10   : > { %v4801_v0 = vld [vmem:[%s6213_s1 + $0xf8] sm:$0xff]   ;;  %v4803_v2 = vld [vmem:[%s6213_s1 + $0xf0] sm:$0xff]   ;;  %v4807_v6 = vld [vmem:[%s6213_s1 + $0xe8] sm:$0xff]   ;;  %s4059_s17 = sshll.u32 %s5048_s21, 2  ;;  %p215_p7 = scmp.eq.s32.totalorder %s5048_s21, 0  ;;  %vm528_vm2 = vcmask 1043456  }
  0x11   : > { %v4802_v1 = vld [vmem:[%s6213_s1 + $0xb8] sm:$0xff]   ;;  %4521 = vmatprep.subr.bf16.mxu1 %v4801_v0  ;;  %v4805_v4 = vld [vmem:[%s6213_s1 + $0xb0] sm:$0xff]   ;;  %v4809_v8 = vld [vmem:[%s6213_s1 + $0xa8] sm:$0xff]   ;;  %s4060_s30 = sadd.s32 4294967295, %s4059_s17  ;;  %s4308_s16 = sshll.u32 %s5048_s21, 5  ;;  %vm535_vm3 = vcmask 1040384  }
  0x12   : > { %4522 = vmatpush3.bf16.msra.mxu1 %v4802_v1  ;;  %v4804_v3 = vld [vmem:[%s6213_s1 + $0x78] sm:$0xff]   ;;  %v4808_v7 = vld [vmem:[%s6213_s1 + $0x70] sm:$0xff]   ;;  %v4811_v10 = vld [vmem:[%s6213_s1 + $0xe0] sm:$0xff]   ;;  %s6275_s30 = smov (%p215_p7, %s4060_s30), 1  ;;  %s5160_s9 = scalar_lea.vmem %s6212_s0, %s4308_s16  ;;  %vm364_vm0 = vsmask.f32 256 }
  0x13   : > { %4523 = vmatprep.subr.bf16.mxu1 %v4803_v2  ;;  %4457 = vmatprep.subr.bf16.mxu0 %v4804_v3  ;;  %v4806_v5 = vld [vmem:[%s6213_s1 + $0x38] sm:$0xff]   ;;  %v4810_v9 = vld [vmem:[%s6213_s1 + $0x30] sm:$0xff]   ;;  %v4812_v11 = vld [vmem:[%s6213_s1 + $0x68] sm:$0xff]   ;;  %s4325_s28 = sshll.u32 %s6275_s30, 3  ;;  %vm365_vm1 = vsmask.f32 4368  ;;  %s3880_s10 = scalar_lea.vmem (%p5062_p4), %s6216_s4, %s4308_s16 }
  0x14   : > { %4458 = vmatpush3.bf16.msra.mxu0 %v4806_v5  ;;  %v4813_v12 = vld [vmem:[%s6213_s1 + $0xa0] sm:$0xff]   ;;  %v4814_v13 = vld [vmem:[%s6213_s1 + $0x28] sm:$0xff]   ;;  %v4815_v14 = vld [vmem:[%s6213_s1 + $0xd8] sm:$0xff]   ;;  %s5171_s15 = scalar_lea.vmem %s6212_s0, %s4325_s28  ;;  %vm529_vm4 = vsmask.f32 7938  ;;  %vm1292_vm8 = vcmask 1042432  }
  0x15   : > { %4459 = vmatprep.subr.bf16.mxu0 %v4808_v7  ;;  %v4816_v15 = vld [vmem:[%s6213_s1 + $0x60] sm:$0xff]   ;;  %v4817_v16 = vld [vmem:[%s6213_s1 + $0x98] sm:$0xff]   ;;  %v4819_v18 = vld [vmem:[%s6213_s1 + $0xd0] sm:$0xff]   ;;  %vm1293_vm9 = vcmask 1046532   ;;  %vm1017_vm12 = vsmask.f32 3328 }
  0x16   : > { %4524 = vmatpush3.bf16.msra.mxu1 %v4805_v4  ;;  %v4818_v17 = vld [vmem:[%s6213_s1 + $0x20] sm:$0xff]   ;;  %v4820_v19 = vld [vmem:[%s6213_s1 + $0x58] sm:$0xff]   ;;  %v4821_v20 = vld [vmem:[%s6213_s1 + $0x90] sm:$0xff]   ;;  %vm1018_vm13 = vsmask.f32 7440  ;;  %s5668_s13 = sadd.s32 4, %s4059_s17 }
  0x17   : > { %4525 = vmatprep.subr.bf16.mxu1 %v4807_v6  ;;  %v4822_v21 = vld [vmem:[%s6213_s1 + $0x18] sm:$0xff]   ;;  %v4823_v22 = vld [vmem:[%s6213_s1 + $0xc8] sm:$0xff]   ;;  %v4824_v23 = vld [vmem:[%s6213_s1 + $0x50] sm:$0xff]   ;;  %s6277_s13 = smov (%p118_p2, %s5668_s13), 14  ;;  %s197_s23 = sand.u32 1, %s4995_s18  }
  0x18   : > { %4460 = vmatpush3.bf16.msra.mxu0 %v4810_v9  ;;  %v4825_v24 = vld [vmem:[%s6213_s1 + $0x88] sm:$0xff]   ;;  %v4826_v25 = vld [vmem:[%s6213_s1 + $0x10] sm:$0xff]   ;;  %v4827_v26 = vld [vmem:[%s6213_s1 + $0xc0] sm:$0xff]   ;;  %s4330_s17 = sshll.u32 %s6277_s13, 3  ;;  %s4057_s24 = sshll.u32 %s197_s23, 6 }
  0x19   : > { %4461 = vmatprep.subr.bf16.mxu0 %v4812_v11  ;;  %v4828_v27 = vld [vmem:[%s6213_s1 + $0x48] sm:$0xff]   ;;  %v4829_v28 = vld [vmem:[%s6213_s1 + $0x80] sm:$0xff]   ;;  %v4839_v50 = vld [vmem:[%s6213_s1 + $0x178] sm:$0xff]   ;;  %s5723_s20 = scalar_lea.vmem %s6212_s0, %s4330_s17  ;;  %s6129_s18 = scalar_lea.vmem [#allocation4], %s4057_s24 }
  0x1a   : > { %4526 = vmatpush3.bf16.msra.mxu1 %v4809_v8  ;;  %v4830_v29 = vld [vmem:[%s6213_s1 + $0x8] sm:$0xff]   ;;  %v4354_v30 = vld [vmem:[%s5160_s9] sm:$0xff]   ;;  %v4442_v2 = vld [vmem:[%s5160_s9 + $0x10] sm:$0xff]   ;;  %p207_p8 = scmp.lt.s32.totalorder %s5048_s21, 3 }
  0x1b   : > { %4527 = vmatprep.subr.bf16.mxu1 %v4811_v10  ;;  %v4355_v31 = vunpack.c.l.bf16 %v4354_v30  ;;  %v4356_v32 = vunpack.c.h.bf16 %v4354_v30  ;;  %v5177_v33 = vld [vmem:[%s6214_s2] ss:$0 sm:$0xff]  ;;  %v4441_v55 = vld [vmem:[%s5160_s9 + $0x8] sm:$0xff]   ;;  %v537_v6 = vld [vmem:[#allocation2 + $0x14] sm:$0x1]  ;;  %v4363_v7 = vunpack.c.l.bf16 %v4442_v2  ;;  %v4364_v8 = vunpack.c.h.bf16 %v4442_v2 }
  0x1c   : > { %4462 = vmatpush3.bf16.msra.mxu0 %v4814_v13  ;;  %v4386_v34 = vld [vmem:[%s5171_s15] sm:$0xff]   ;;  %v4359_v56 = vunpack.c.l.bf16 %v4441_v55  ;;  %v4360_v57 = vunpack.c.h.bf16 %v4441_v55  ;;  %v531_v5 = vld [vmem:[#allocation2 + $0xc] sm:$0xf]  ;;  %vm5208_vm5 = vmor %vm364_vm0, %vm365_vm1  ;;  %s208_s27 = scalar_select %p207_p8, %s5048_s21, 3 }
  0x1d   : > { %4463 = vmatprep.subr.bf16.mxu0 %v4816_v15  ;;  %v5183_v35 = vld [vmem:[%s6215_s3] ss:$0 sm:$0xff]  ;;  %v262_v36 = vmul.f32 %v4355_v31, %v5177_v33  ;;  %v263_v37 = vmul.f32 %v4356_v32, %v5177_v33  ;;  %v4387_v38 = vunpack.c.l.bf16 %v4386_v34  ;;  %v4388_v39 = vunpack.c.h.bf16 %v4386_v34  ;;  %vm5214_vm6 = vmand %vm528_vm2, %vm529_vm4 }
  0x1e   : > { %4528 = vmatpush3.bf16.msra.mxu1 %v4813_v12  ;;  %v4834_v44 = vld [vmem:[%s6213_s1 + $0x40] sm:$0xff]   ;;  %v264_v0 = vmul.f32 %v4359_v56, %v5177_v33  ;;  %v265_v1 = vmul.f32 %v4360_v57, %v5177_v33  ;;  %vm5223_vm7 = vmand %vm535_vm3, %vm364_vm0  ;;  %v266_v30 = vmul.f32 %v4363_v7, %v5177_v33  ;;  %s4058_s28 = sshll.u32 %s208_s27, 1 }
  0x1f   : > { %4529 = vmatprep.subr.bf16.mxu1 %v4815_v14  ;;  %v284_v40 = vadd.f32 %v5183_v35, %v262_v36  ;;  %v285_v41 = vadd.f32 %v5183_v35, %v263_v37  ;;  %v600_v42 = vmul.f32 %v4387_v38, %v5177_v33  ;;  %v601_v43 = vmul.f32 %v4388_v39, %v5177_v33  ;;  %v4835_v45 = vld [vmem:[%s6213_s1] sm:$0xff]   ;;  %vm5259_vm10 = vmand %vm535_vm3, %vm529_vm4  ;;  %s210_s7 = scalar_lea.vmem %s6217_s5, %s4058_s28 }
  0x20   : > { %4464 = vmatpush3.bf16.msra.mxu0 %v4818_v17  ;;  %v267_v39 = vmul.f32 %v4364_v8, %v5177_v33  ;;  %vm5272_vm11 = vmor %vm1292_vm8, %vm1293_vm9 }
  0x21   : > { %4465 = vmatprep.subr.bf16.mxu0 %v4820_v19  ;;  %v300_v46 = vmax.f32 %v284_v40, 0.0  ;;  %v301_v47 = vmax.f32 %v285_v41, 0.0  ;;  %v604_v48 = vadd.f32 %v5183_v35, %v600_v42  ;;  %v605_v49 = vadd.f32 %v5183_v35, %v601_v43  ;;  %v664_v19 = vld [vmem:[#allocation2] sm:$0xf]  ;;  %vm5339_vm14 = vmor %vm1017_vm12, %vm1018_vm13 }
  0x22   : > { %4530 = vmatpush3.bf16.msra.mxu1 %v4817_v16  ;;  %v288_v40 = vadd.f32 %v5183_v35, %v266_v30 }
  0x23   : > { %4531 = vmatprep.subr.bf16.mxu1 %v4819_v18  ;;  %v4309_v51 = vpack.c.bf16 %v300_v46, %v300_v46  ;;  %v4310_v52 = vpack.c.bf16 %v301_v47, %v301_v47  ;;  %v608_v53 = vmax.f32 %v604_v48, 0.0  ;;  %v609_v54 = vmax.f32 %v605_v49, 0.0  ;;  %v5245_v47 = vld [vmem:[%s5171_s15 + $0x80] sm:$0xff]  }
  0x24   : > { %4466 = vmatpush3.bf16.msra.mxu0 %v4822_v21  ;;  %v304_v46 = vmax.f32 %v288_v40, 0.0 }
  0x25   : > { %4467 = vmatprep.subr.bf16.mxu0 %v4824_v23  ;;  %v368_v58 = vshrl.u32 %v4309_v51, 16  ;;  %v371_v59 = vshll.u32 %v4309_v51, 16  ;;  %v376_v60 = vshrl.u32 %v4310_v52, 16  ;;  %v379_v61 = vshll.u32 %v4310_v52, 16  ;;  %v5251_v51 = vld [vmem:[%s5160_s9 + $0x18] sm:$0xff]  }
  0x26   : > { %4532 = vmatpush3.bf16.msra.mxu1 %v4821_v20  ;;  %v4326_v62 = vpack.c.bf16 %v608_v53, %v608_v53  ;;  %v4327_v63 = vpack.c.bf16 %v609_v54, %v609_v54  ;;  %v4855_v20 = vld [vmem:[%s6213_s1 + $0x1f8] sm:$0xff]   ;;  %v5253_v54 = vpack.c.bf16 %v304_v46, %v304_v46 }
  0x27   : > { %4533 = vmatprep.subr.bf16.mxu1 %v4823_v22  ;;  %v370_v3 = vrot.slane %v368_v58, 7  ;;  %v378_v4 = vrot.slane %v376_v60, 7  ;;  %v540_v58 = vld [vmem:[#allocation2 + $0x18] sm:$0xf] }
  0x28   : > { %4468 = vmatpush3.bf16.msra.mxu0 %v4826_v25  ;;  %v625_v10 = vshrl.u32 %v4326_v62, 16  ;;  %v628_v11 = vshll.u32 %v4326_v62, 16  ;;  %v633_v12 = vshrl.u32 %v4327_v63, 16  ;;  %v636_v13 = vshll.u32 %v4327_v63, 16 }
  0x29   : > { %4469 = vmatprep.subr.bf16.mxu0 %v4828_v27  ;;  %v373_v14 = vor.u32 %v371_v59, %v370_v3  ;;  %v374_v15 = vrot.slane %v370_v3, 4  ;;  %v381_v16 = vor.u32 %v379_v61, %v378_v4  ;;  %v383_v17 = vrot.slane %v378_v4, 4 }
  0x2a   : > { %4534 = vmatpush3.bf16.msra.mxu1 %v4825_v24  ;;  %v627_v22 = vrot.slane %v625_v10, 7  ;;  %v635_v23 = vrot.slane %v633_v12, 7  ;;  %v286_v24 = vadd.f32 %v5183_v35, %v264_v0  ;;  %v287_v25 = vadd.f32 %v5183_v35, %v265_v1 }
  0x2b   : > { %4535 = vmatprep.subr.bf16.mxu1 %v4827_v26  ;;  %v382_v26 = vsel %vm5208_vm5, %v374_v15, %v381_v16  ;;  %v532_v27 = vsel %vm5214_vm6, %v373_v14, %v531_v5  ;;  %v402_v3 = vshrl.u32 %v5253_v54, 16  ;;  %v4367_v4 = vunpack.c.l.bf16 %v5251_v51 }
  0x2c   : > { %4470 = vmatpush3.bf16.msra.mxu0 %v4830_v29  ;;  %v538_v29 = vsel %vm5223_vm7, %v383_v17, %v537_v6  ;;  %533 = vst [vmem:[#allocation2 + $0xc] sm:$0xf] %v532_v27  ;;  %534 = vst [vmem:[#allocation2 + $0x10] sm:$0xf] %v382_v26  ;;  %v630_v31 = vor.u32 %v628_v11, %v627_v22  ;;  %v631_v32 = vrot.slane %v627_v22, 4  ;;  %v640_v36 = vrot.slane %v635_v23, 4 }
  0x2d   : > { %4471 = vmatprep.subr.bf16.mxu0 %v4834_v44  ;;  %v638_v34 = vor.u32 %v636_v13, %v635_v23  ;;  %539 = vst [vmem:[#allocation2 + $0x14] sm:$0x1] %v538_v29  ;;  %v302_v37 = vmax.f32 %v286_v24, 0.0  ;;  %v303_v38 = vmax.f32 %v287_v25, 0.0  ;;  %v4391_v5 = vunpack.c.l.bf16 %v5245_v47 }
  0x2e   : > { %4536 = vmatpush3.bf16.msra.mxu1 %v4829_v28  ;;  %v668_v28 = vld [vmem:[#allocation2 + $0x8] sm:$0x1]  ;;  %v665_v42 = vsel %vm5214_vm6, %v630_v31, %v664_v19  ;;  %v4392_v13 = vunpack.c.h.bf16 %v5245_v47  ;;  %v4840_v47 = vld [vmem:[%s6213_s1 + $0x138] sm:$0xff]  }
  0x2f   : > { %4649 = vmatprep.subr.bf16.mxu1 %v4855_v20  ;;  %v639_v41 = vsel %vm5208_vm5, %v631_v32, %v638_v34  ;;  %v669_v43 = vsel %vm5223_vm7, %v640_v36, %v668_v28  ;;  %666 = vst [vmem:[#allocation2] sm:$0xf] %v665_v42  ;;  %v4311_v44 = vpack.c.bf16 %v302_v37, %v302_v37  ;;  %v4368_v28 = vunpack.c.h.bf16 %v5251_v51 }
  0x30   : > { %4472 = vmatpush3.bf16.msra.mxu0 %v4835_v45  ;;  %667 = vst [vmem:[#allocation2 + $0x4] sm:$0xf] %v639_v41  ;;  %670 = vst [vmem:[#allocation2 + $0x8] sm:$0x1] %v669_v43  ;;  %v4312_v45 = vpack.c.bf16 %v303_v38, %v303_v38  ;;  %v268_v36 = vmul.f32 %v4367_v4, %v5177_v33 }
  0x31   : > { %4585 = vmatprep.subr.bf16.mxu0 %v4839_v50  ;;  %v385_v48 = vshrl.u32 %v4311_v44, 16  ;;  %v5248_v50 = vadd.f32 %v5183_v35, %v267_v39  ;;  %v388_v52 = vshll.u32 %v4311_v44, 16  ;;  %v5311_v4 = vmul.f32 %v4368_v28, %v5177_v33 }
  0x32   : > { %v393_v49 = vshrl.u32 %v4312_v45, 16  ;;  %v396_v53 = vshll.u32 %v4312_v45, 16 }
  0x33   : > { %v769_v55 = vld [vmem:[#allocation2 + $0xc] sm:$0x2]  ;;  %v831_v56 = vld [vmem:[#allocation2 + $0xc] sm:$0x1]  ;;  %v1384_v57 = vld [vmem:[#allocation2 + $0x10] sm:$0xf] }
  0x34   : > { %v4094_v59 = vrot.slane %v769_v55, 9  ;;  %1400 = vst [vmem:[#allocation3 + $0x30] sm:$0xf] %v1384_v57  ;;  %v387_v60 = vrot.slane %v385_v48, 7  ;;  %v5255_v61 = vrot.slane %v393_v49, 7  ;;  %v305_v2 = vmax.f32 %v5248_v50, 0.0 }
  0x35   : > { %v865_v62 = vld [vmem:[#allocation2 + $0x10] sm:$0x8]  ;;  %v928_v1 = vld [vmem:[#allocation2 + $0x14] sm:$0x1]  ;;  %v1247_v12 = vld [vmem:[#allocation2 + $0xc] sm:$0xe] }
  0x36   : > { %v4106_v0 = vrot.slane %v865_v62, 11  ;;  %v832_v6 = vsel %vm5223_vm7, %v4094_v59, %v831_v56  ;;  %v1244_v10 = vld [vmem:[#allocation2] sm:$0xe]  ;;  %v390_v11 = vor.u32 %v388_v52, %v387_v60  ;;  %v398_v20 = vor.u32 %v396_v53, %v5255_v61  ;;  %v828_v25 = vld [vmem:[#allocation2] sm:$0x1] }
  0x37   : > { %v864_v7 = vld [vmem:[#allocation2 + $0x4] sm:$0x8]  ;;  %v925_v8 = vld [vmem:[#allocation2 + $0x8] sm:$0x1]  ;;  %833 = vst [vmem:[#allocation2 + $0xc] sm:$0x1] %v832_v6  ;;  %v5317_v6 = vmul.f32 %v4391_v5, %v5177_v33 }
  0x38   : > { %v4105_v14 = vrot.slane %v864_v7, 11  ;;  %v1245_v15 = vld [vmem:[#allocation2 + $0x4] sm:$0xf]  ;;  %v4117_v17 = vrot.slane %v1244_v10, 9  ;;  %v768_v19 = vld [vmem:[#allocation2] sm:$0x2]  ;;  %v929_v22 = vsel %vm5259_vm10, %v4106_v0, %v928_v1  ;;  %v541_v27 = vsel %vm5214_vm6, %v390_v11, %v540_v58 }
  0x39   : > { %v1297_v23 = vrot.slane %v1245_v15, 5  ;;  %v4093_v24 = vrot.slane %v768_v19, 9  ;;  %v962_v26 = vld [vmem:[#allocation2 + $0x4] sm:$0xf]  ;;  %930 = vst [vmem:[#allocation2 + $0x14] sm:$0x1] %v929_v22 }
  0x3a   : > { %v926_v29 = vsel %vm5259_vm10, %v4105_v14, %v925_v8  ;;  %978 = vst [vmem:[#allocation3 + $0x24] sm:$0xf] %v962_v26  ;;  %v994_v30 = vld [vmem:[#allocation2 + $0x4] sm:$0xf]  ;;  %v391_v31 = vrot.slane %v387_v60, 4  ;;  %v400_v32 = vrot.slane %v5255_v61, 4  ;;  %v4314_v26 = vpack.c.bf16 %v305_v2, %v305_v2 }
  0x3b   : > { %542 = vst [vmem:[#allocation2 + $0x18] sm:$0xf] %v541_v27  ;;  %v1248_v34 = vld [vmem:[#allocation2 + $0x10] sm:$0xf]  ;;  %927 = vst [vmem:[#allocation2 + $0x8] sm:$0x1] %v926_v29  ;;  %v1298_v37 = vsel %vm5272_vm11, %v4117_v17, %v1297_v23  ;;  %v829_v39 = vsel %vm5223_vm7, %v4093_v24, %v828_v25 }
  0x3c   : > { %v5288_v38 = vrot.slane %v1297_v23, 4  ;;  %v1030_v40 = vshll.u32 %v994_v30, 16  ;;  %v964_v41 = vld [vmem:[#allocation2 + $0x10] sm:$0xf]  ;;  %1367 = vst [vmem:[#allocation3 + $0x8] sm:$0xf] %v1298_v37  ;;  %v399_v44 = vsel %vm5208_vm5, %v391_v31, %v398_v20  ;;  %v5324_v20 = vadd.f32 %v5183_v35, %v268_v36 }
  0x3d   : > { %v5292_v42 = vld [vmem:[#allocation2 + $0x10] sm:$0xf]  ;;  %830 = vst [vmem:[#allocation2] sm:$0x1] %v829_v39  ;;  %v1034_v43 = vshrl.u32 %v994_v30, 16  ;;  %v4118_v45 = vrot.slane %v1247_v12, 9 }
  0x3e   : > { %v1304_v46 = vrot.slane %v1248_v34, 5  ;;  %980 = vst [vmem:[#allocation3 + $0x6c] sm:$0xf] %v964_v41  ;;  %v544_v48 = vld [vmem:[#allocation2 + $0x20] sm:$0x1]  ;;  %v5299_v51 = vrot.slane %v1030_v40, 5 }
  0x3f   : > { %v5297_v49 = vld [vmem:[%s5160_s9 + $0x80] sm:$0xff]   ;;  %543 = vst [vmem:[#allocation2 + $0x1c] sm:$0xf] %v399_v44  ;;  %v1054_v52 = vshll.u32 %v5292_v42, 16  ;;  %v1058_v53 = vshrl.u32 %v5292_v42, 16  ;;  %v5303_v55 = vrot.slane %v402_v3, 7  ;;  %v545_v1 = vsel %vm5223_vm7, %v400_v32, %v544_v48 }
  0x40   : > { %v1036_v56 = vrot.slane %v1034_v43, 4  ;;  %v1305_v57 = vsel %vm5272_vm11, %v4118_v45, %v1304_v46  ;;  %v1306_v58 = vrot.slane %v1304_v46, 4  ;;  %v405_v59 = vshll.u32 %v5253_v54, 16  ;;  %v547_v60 = vld [vmem:[#allocation2 + $0x24] sm:$0xf] }
  0x41   : > { %v1383_v61 = vld [vmem:[#allocation2 + $0xc] sm:$0xf]  ;;  %1369 = vst [vmem:[#allocation3 + $0x50] sm:$0xf] %v1305_v57  ;;  %v4371_v3 = vunpack.c.l.bf16 %v5297_v49  ;;  %v1249_v7 = vld [vmem:[#allocation2 + $0x14] sm:$0x1]  ;;  %v4372_v5 = vunpack.c.h.bf16 %v5297_v49  ;;  %v603_v49 = vmul.f32 %v4392_v13, %v5177_v33 }
  0x42   : > { %v963_v62 = vld [vmem:[#allocation2 + $0xc] sm:$0xf]  ;;  %1399 = vst [vmem:[#allocation3 + $0xc] sm:$0xf] %v1383_v61  ;;  %v1037_v54 = vor.u32 %v1036_v56, %v5299_v51  ;;  %v407_v11 = vor.u32 %v405_v59, %v5303_v55  ;;  %546 = vst [vmem:[#allocation2 + $0x20] sm:$0x1] %v545_v1 }
  0x43   : > { %v996_v0 = vld [vmem:[#allocation2 + $0xc] sm:$0xf]  ;;  %979 = vst [vmem:[#allocation3 + $0x48] sm:$0xf] %v963_v62  ;;  %v770_v12 = vld [vmem:[#allocation2 + $0x18] sm:$0x2]  ;;  %v5335_v34 = vmul.f32 %v4371_v3, %v5177_v33 }
  0x44   : > { %v1045_v8 = vshrl.u32 %v996_v0, 16  ;;  %v1048_v10 = vshll.u32 %v996_v0, 16  ;;  %v834_v14 = vld [vmem:[#allocation2 + $0x18] sm:$0x1]  ;;  %v1307_v15 = vrot.slane %v1249_v7, 5  ;;  %v5321_v19 = vrot.slane %v1054_v52, 5 }
  0x45   : > { %v998_v17 = vld [vmem:[#allocation2 + $0x14] sm:$0x1]  ;;  %v1246_v22 = vld [vmem:[#allocation2 + $0x8] sm:$0x1]  ;;  %v1038_v24 = vrot.slane %v1037_v54, 4  ;;  %v4095_v25 = vrot.slane %v770_v12, 9  ;;  %v548_v27 = vsel %vm5214_vm6, %v407_v11, %v547_v60 }
  0x46   : > { %v995_v23 = vld [vmem:[#allocation2 + $0x8] sm:$0x1]  ;;  %v1300_v28 = vrot.slane %v1246_v22, 5  ;;  %v961_v29 = vld [vmem:[#allocation2] sm:$0xf]  ;;  %v1308_v32 = vsel %vm5272_vm11, %v1306_v58, %v1307_v15  ;;  %v1047_v40 = vrot.slane %v1045_v8, 4 }
  0x47   : > { %v993_v30 = vld [vmem:[#allocation2] sm:$0xf]  ;;  %v1040_v31 = vshll.u32 %v995_v23, 16  ;;  %549 = vst [vmem:[#allocation2 + $0x24] sm:$0xf] %v548_v27  ;;  %v835_v37 = vsel %vm5223_vm7, %v4095_v25, %v834_v14  ;;  %v1050_v43 = vrot.slane %v1048_v10, 5  ;;  %v5359_v23 = vadd.f32 %v5183_v35, %v5311_v4 }
  0x48   : > { %977 = vst [vmem:[#allocation3] sm:$0xf] %v961_v29  ;;  %v1021_v2 = vshrl.u32 %v993_v30, 16  ;;  %v1024_v36 = vshll.u32 %v993_v30, 16  ;;  %1370 = vst [vmem:[#allocation3 + $0x74] sm:$0xf] %v1308_v32  ;;  %v1301_v41 = vsel %vm5272_vm11, %v5288_v38, %v1300_v28 }
  0x49   : > { %v1386_v39 = vld [vmem:[#allocation2 + $0x1c] sm:$0xf]  ;;  %v1042_v42 = vrot.slane %v1040_v31, 5  ;;  %836 = vst [vmem:[#allocation2 + $0x18] sm:$0x1] %v835_v37  ;;  %v1060_v44 = vrot.slane %v1058_v53, 4  ;;  %v1051_v59 = vor.u32 %v1050_v43, %v1047_v40 }
  0x4a   : > { %1402 = vst [vmem:[#allocation3 + $0x78] sm:$0xf] %v1386_v39  ;;  %v866_v45 = vld [vmem:[#allocation2 + $0x1c] sm:$0x8]  ;;  %1368 = vst [vmem:[#allocation3 + $0x2c] sm:$0xf] %v1301_v41  ;;  %v5387_v41 = vadd.f32 %v5183_v35, %v5335_v34 }
  0x4b   : > { %v1023_v46 = vrot.slane %v1021_v2, 4  ;;  %v1026_v48 = vrot.slane %v1024_v36, 5  ;;  %v1064_v52 = vshll.u32 %v998_v17, 16  ;;  %v408_v56 = vrot.slane %v5303_v55, 4  ;;  %v1250_v57 = vld [vmem:[#allocation2 + $0x18] sm:$0xe] }
  0x4c   : > { %v1043_v58 = vsel %vm5339_vm14, %v1038_v24, %v1042_v42  ;;  %v1061_v60 = vor.u32 %v1060_v44, %v5321_v19  ;;  %v410_v38 = vshrl.u32 %v4314_v26, 16  ;;  %v931_v61 = vld [vmem:[#allocation2 + $0x20] sm:$0x1]  ;;  %v5352_v62 = vld [vmem:[#allocation2 + $0x1c] sm:$0xf]  ;;  %v413_v1 = vshll.u32 %v4314_v26, 16 }
  0x4d   : > { %v1027_v0 = vor.u32 %v1026_v48, %v1023_v46  ;;  %1229 = vst [vmem:[#allocation3 + $0x28] sm:$0xf] %v1043_v58  ;;  %v1066_v53 = vrot.slane %v1064_v52, 5  ;;  %v4107_v3 = vrot.slane %v866_v45, 11  ;;  %v966_v54 = vld [vmem:[#allocation2 + $0x1c] sm:$0xf]  ;;  %v5379_v2 = vadd.f32 %v5183_v35, %v5317_v6 }
  0x4e   : > { %v1052_v7 = vrot.slane %v1051_v59, 4  ;;  %v1062_v8 = vrot.slane %v1061_v60, 4  ;;  %v412_v55 = vrot.slane %v410_v38, 7  ;;  %v4119_v10 = vrot.slane %v1250_v57, 9  ;;  %982 = vst [vmem:[#allocation3 + $0xb4] sm:$0xf] %v966_v54 }
  0x4f   : > { %v551_v11 = vld [vmem:[#allocation2 + $0x2c] sm:$0x1]  ;;  %v1028_v12 = vrot.slane %v1027_v0, 4  ;;  %v771_v14 = vld [vmem:[#allocation2 + $0x24] sm:$0x2]  ;;  %v932_v15 = vsel %vm5259_vm10, %v4107_v3, %v931_v61  ;;  %v1311_v17 = vrot.slane %v5352_v62, 5  ;;  %v271_v46 = vmul.f32 %v4372_v5, %v5177_v33 }
  0x50   : > { %v1000_v22 = vld [vmem:[#allocation2 + $0x1c] sm:$0xf]  ;;  %v1057_v24 = vsel %vm5339_vm14, %v1052_v7, %v5321_v19  ;;  %v1067_v25 = vsel %vm5339_vm14, %v1062_v8, %v1066_v53  ;;  %v415_v26 = vor.u32 %v413_v1, %v412_v55  ;;  %v417_v27 = vrot.slane %v412_v55, 4  ;;  %v837_v28 = vld [vmem:[#allocation2 + $0x24] sm:$0x1]  ;;  %v4865_v32 = vld [vmem:[%s6213_s1 + $0x1f0] sm:$0xff]  }
  0x51   : > { %933 = vst [vmem:[#allocation2 + $0x20] sm:$0x1] %v932_v15  ;;  %v4858_v29 = vld [vmem:[%s6213_s1 + $0x1b8] sm:$0xff]   ;;  %v1033_v4 = vsel %vm5339_vm14, %v1028_v12, %v5299_v51  ;;  %1230 = vst [vmem:[#allocation3 + $0x4c] sm:$0xf] %v1057_v24  ;;  %v4096_v31 = vrot.slane %v771_v14, 9  ;;  %v1312_v19 = vsel %vm5272_vm11, %v4119_v10, %v1311_v17  ;;  %v5423_v8 = vadd.f32 %v5183_v35, %v271_v46 }
  0x52   : > { %v1385_v30 = vld [vmem:[#allocation2 + $0x18] sm:$0xf]  ;;  %1231 = vst [vmem:[#allocation3 + $0x70] sm:$0xf] %v1067_v25  ;;  %v4833_v37 = vld [vmem:[#allocation3 + $0xc] ss:$36 sps:$4 sm:$0xff]   ;;  %v416_v51 = vsel %vm5208_vm5, %v408_v56, %v415_v26  ;;  %v552_v40 = vsel %vm5223_vm7, %v417_v27, %v551_v11 }
  0x53   : > { %v4831_v36 = vld [vmem:[#allocation3 + $0x8] ss:$36 sps:$4 sm:$0xff]   ;;  %1228 = vst [vmem:[#allocation3 + $0x4] sm:$0xf] %v1033_v4  ;;  %1401 = vst [vmem:[#allocation3 + $0x54] sm:$0xf] %v1385_v30  ;;  %v838_v6 = vsel %vm5223_vm7, %v4096_v31, %v837_v28  ;;  %3369 = vmatprep.mubr.bf16.mxu1 %v4833_v37 }
  0x54   : > { %1371 = vst [vmem:[#allocation3 + $0x98] sm:$0xf] %v1312_v19  ;;  %v1078_v39 = vshll.u32 %v1000_v22, 16  ;;  %550 = vst [vmem:[#allocation2 + $0x28] sm:$0xf] %v416_v51  ;;  %v1082_v44 = vshrl.u32 %v1000_v22, 16  ;;  %3370 = vmatmul.mubr.bf16.vlgmr.msra.gmra.mxu1 %v4831_v36 }
  0x55   : > { %v965_v42 = vld [vmem:[#allocation2 + $0x18] sm:$0xf]  ;;  %v306_v45 = vmax.f32 %v5324_v20, 0.0  ;;  %553 = vst [vmem:[#allocation2 + $0x2c] sm:$0x1] %v552_v40  ;;  %v307_v56 = vmax.f32 %v5359_v23, 0.0  ;;  %4650 = vmatpush3.bf16.msra.mxu1 %v4858_v29  ;;  %v5436_v29 = vadd.f32 %v5183_v35, %v603_v49 }
  0x56   : > { %v999_v43 = vld [vmem:[#allocation2 + $0x18] sm:$0xf]  ;;  %839 = vst [vmem:[#allocation2 + $0x24] sm:$0x1] %v838_v6  ;;  %981 = vst [vmem:[#allocation3 + $0x90] sm:$0xf] %v965_v42  ;;  %4651 = vmatprep.subr.bf16.mxu1 %v4865_v32 }
  0x57   : > { %v1069_v48 = vshrl.u32 %v999_v43, 16  ;;  %v1072_v34 = vshll.u32 %v999_v43, 16  ;;  %v5395_v52 = vrot.slane %v1078_v39, 5  ;;  %v1084_v57 = vrot.slane %v1082_v44, 4  ;;  %v4868_v20 = vld [vmem:[%s6213_s1 + $0x1b0] sm:$0xff]   ;;  %v4875_v59 = vld [vmem:[%s6213_s1 + $0x1e8] sm:$0xff]  }
  0x58   : > { %v5398_v58 = vpack.c.bf16 %v306_v45, %v306_v45  ;;  %v610_v5 = vmax.f32 %v5379_v2, 0.0  ;;  %v1313_v60 = vrot.slane %v1311_v17, 4  ;;  %v5410_v62 = vld [vmem:[#allocation2 + $0x24] sm:$0xe]  ;;  %v308_v0 = vmax.f32 %v5387_v41, 0.0  ;;  %v5414_v53 = vld [vmem:[%s5160_s9 + $0x88] sm:$0xff]  }
  0x59   : > { %v1071_v38 = vrot.slane %v1069_v48, 4  ;;  %v1074_v61 = vrot.slane %v1072_v34, 5  ;;  %v1252_v13 = vld [vmem:[#allocation2 + $0x20] sm:$0x1]  ;;  %v1085_v3 = vor.u32 %v1084_v57, %v5395_v52  ;;  %v4846_v10 = vld [vmem:[%s6213_s1 + $0x170] sm:$0xff]   ;;  %v5428_v15 = vpack.c.bf16 %v307_v56, %v307_v56  ;;  %v4878_v24 = vld [vmem:[%s6213_s1 + $0x1a8] sm:$0xff]   ;;  %4652 = vmatpush3.bf16.msra.mxu1 %v4868_v20 }
  0x5a   : > { %v1001_v1 = vld [vmem:[#allocation2 + $0x20] sm:$0x1]  ;;  %v419_v54 = vshrl.u32 %v5398_v58, 16  ;;  %v422_v7 = vshll.u32 %v5398_v58, 16  ;;  %v1314_v11 = vrot.slane %v1252_v13, 5  ;;  %v4848_v4 = vld [vmem:[%s6213_s1 + $0x130] sm:$0xff]   ;;  %v5443_v36 = vpack.c.bf16 %v308_v0, %v308_v0  ;;  %4653 = vmatprep.subr.bf16.mxu1 %v4875_v59 }
  0x5b   : > { %v4844_v55 = vld [vmem:[#allocation3 + $0x4c] ss:$36 sps:$4 sm:$0xff]   ;;  %v1075_v12 = vor.u32 %v1074_v61, %v1071_v38  ;;  %v1088_v14 = vshll.u32 %v1001_v1, 16  ;;  %v4836_v17 = vld [vmem:[#allocation3] ss:$36 sps:$4 sm:$0xff]   ;;  %v1086_v23 = vrot.slane %v1085_v3, 4  ;;  %v4375_v37 = vunpack.c.l.bf16 %v5414_v53 }
  0x5c   : > { %v4838_v22 = vld [vmem:[#allocation3 + $0x4] ss:$36 sps:$4 sm:$0xff]   ;;  %v4841_v25 = vld [vmem:[#allocation3 + $0x54] ss:$36 sps:$4 sm:$0xff]   ;;  %v1315_v27 = vsel %vm5272_vm11, %v1313_v60, %v1314_v11  ;;  %v554_v19 = vld [vmem:[#allocation2 + $0x30] sm:$0xf]  ;;  %v5457_v34 = vpack.c.bf16 %v610_v5, %v610_v5 }
  0x5d   : > { %v4843_v26 = vld [vmem:[#allocation3 + $0x50] ss:$36 sps:$4 sm:$0xff]   ;;  %v1076_v28 = vrot.slane %v1075_v12, 4  ;;  %3272 = vmatprep.mubr.bf16.mxu0 %v4838_v22  ;;  %1372 = vst [vmem:[#allocation3 + $0xbc] sm:$0xf] %v1315_v27  ;;  %v4120_v32 = vrot.slane %v5410_v62, 9  ;;  %3377 = vmatprep.mubr.bf16.mxu1 %v4841_v25  ;;  %v272_v13 = vmul.f32 %v4375_v37, %v5177_v33 }
  0x5e   : > { %v1387_v30 = vld [vmem:[#allocation2 + $0x24] sm:$0xf]  ;;  %v1388_v31 = vld [vmem:[#allocation2 + $0x28] sm:$0xf]  ;;  %v309_v2 = vmax.f32 %v5423_v8, 0.0  ;;  %3273 = vmatmul.mubr.bf16.vlgmr.msra.gmra.mxu0 %v4836_v17  ;;  %v1090_v39 = vrot.slane %v1088_v14, 5  ;;  %3378 = vmatmul.mubr.bf16.gmra.mxu1 %v4843_v26 }
  0x5f   : > { %1403 = vst [vmem:[#allocation3 + $0x9c] sm:$0xf] %v1387_v30  ;;  %1404 = vst [vmem:[#allocation3 + $0xc0] sm:$0xf] %v1388_v31  ;;  %v1081_v51 = vsel %vm5339_vm14, %v1076_v28, %v5395_v52  ;;  %v4854_v40 = vld [vmem:[%s6213_s1 + $0x168] sm:$0xff]   ;;  %v421_v41 = vrot.slane %v419_v54, 7  ;;  %4586 = vmatpush3.bf16.msra.mxu0 %v4840_v47  ;;  %v4376_v52 = vunpack.c.h.bf16 %v5414_v53  ;;  %3280 = vmatprep.mubr.bf16.mxu0 %v4844_v55 }
  0x60   : > { %v427_v6 = vshrl.u32 %v5428_v15, 16  ;;  %v867_v42 = vld [vmem:[#allocation2 + $0x28] sm:$0x8]  ;;  %v4882_v43 = vld [vmem:[%s6213_s1 + $0x1e0] sm:$0xff]   ;;  %1232 = vst [vmem:[#allocation3 + $0x94] sm:$0xf] %v1081_v51  ;;  %4587 = vmatprep.subr.bf16.mxu0 %v4846_v10  ;;  %v1091_v58 = vsel %vm5339_vm14, %v1086_v23, %v1090_v39  ;;  %4654 = vmatpush3.bf16.msra.mxu1 %v4878_v24  ;;  %v5483_v55 = vpack.c.bf16 %v309_v2, %v309_v2 }
  0x61   : > { %v430_v44 = vshll.u32 %v5428_v15, 16  ;;  %v4108_v45 = vrot.slane %v867_v42, 11  ;;  %v934_v46 = vld [vmem:[#allocation2 + $0x2c] sm:$0x1]  ;;  %v1254_v48 = vld [vmem:[#allocation2 + $0x28] sm:$0xf]  ;;  %v424_v20 = vor.u32 %v422_v7, %v421_v41  ;;  %4655 = vmatprep.subr.bf16.mxu1 %v4882_v43 }
  0x62   : > { %v4886_v56 = vld [vmem:[%s6213_s1 + $0x1a0] sm:$0xff]   ;;  %v4847_v57 = vld [vmem:[#allocation3 + $0x48] ss:$36 sps:$4 sm:$0xff]   ;;  %v425_v49 = vrot.slane %v421_v41, 4  ;;  %v5465_v59 = vrot.slane %v427_v6, 7  ;;  %v4857_v38 = vld [vmem:[%s6213_s1 + $0x128] sm:$0xff]  }
  0x63   : > { %v967_v60 = vld [vmem:[#allocation2 + $0x24] sm:$0xf]  ;;  %v968_v5 = vld [vmem:[#allocation2 + $0x28] sm:$0xf]  ;;  %1233 = vst [vmem:[#allocation3 + $0xb8] sm:$0xf] %v1091_v58  ;;  %v935_v61 = vsel %vm5259_vm10, %v4108_v45, %v934_v46  ;;  %v555_v54 = vsel %vm5214_vm6, %v424_v20, %v554_v19  ;;  %4588 = vmatpush3.bf16.msra.mxu0 %v4848_v4  ;;  %v273_v19 = vmul.f32 %v4376_v52, %v5177_v33 }
  0x64   : > { %v1318_v62 = vrot.slane %v1254_v48, 5  ;;  %983 = vst [vmem:[#allocation3 + $0xd8] sm:$0xf] %v967_v60  ;;  %984 = vst [vmem:[#allocation3 + $0xfc] sm:$0xf] %v968_v5  ;;  %v436_v47 = vshrl.u32 %v5443_v36, 16  ;;  %v432_v3 = vor.u32 %v430_v44, %v5465_v59  ;;  %4589 = vmatprep.subr.bf16.mxu0 %v4854_v40  ;;  %4656 = vmatpush3.bf16.msra.mxu1 %v4886_v56 }
  0x65   : > { %v1002_v0 = vld [vmem:[#allocation2 + $0x24] sm:$0xf]  ;;  %v1003_v53 = vld [vmem:[#allocation2 + $0x28] sm:$0xf]  ;;  %v5475_v1 = vld [vmem:[%s5160_s9 + $0x90] sm:$0xff]   ;;  %v439_v51 = vshll.u32 %v5443_v36, 16  ;;  %v295_v5 = vadd.f32 %v5183_v35, %v273_v19 }
  0x66   : > { %936 = vst [vmem:[#allocation2 + $0x2c] sm:$0x1] %v935_v61  ;;  %v1093_v7 = vshrl.u32 %v1002_v0, 16  ;;  %v4864_v8 = vld [vmem:[%s6213_s1 + $0x160] sm:$0xff]   ;;  %v4892_v10 = vld [vmem:[%s6213_s1 + $0x1d8] sm:$0xff]   ;;  %v1319_v11 = vsel %vm5272_vm11, %v4120_v32, %v1318_v62  ;;  %v5490_v12 = vrot.slane %v1318_v62, 4  ;;  %v433_v22 = vsel %vm5208_vm5, %v425_v49, %v432_v3  ;;  %3281 = vmatmul.mubr.bf16.gmra.mxu0 %v4847_v57 }
  0x67   : > { %556 = vst [vmem:[#allocation2 + $0x30] sm:$0xf] %v555_v54  ;;  %v1096_v14 = vshll.u32 %v1002_v0, 16  ;;  %v1102_v15 = vshll.u32 %v1003_v53, 16  ;;  %v4893_v17 = vld [vmem:[%s6213_s1 + $0x198] sm:$0xff]   ;;  %v1106_v24 = vshrl.u32 %v1003_v53, 16  ;;  %v5507_v32 = vadd.f32 %v5183_v35, %v272_v13  ;;  %4657 = vmatprep.subr.bf16.mxu1 %v4892_v10  ;;  %4590 = vmatpush3.bf16.msra.mxu0 %v4857_v38 }
  0x68   : > { %1373 = vst [vmem:[#allocation3 + $0xe0] sm:$0xf] %v1319_v11  ;;  %v1095_v23 = vrot.slane %v1093_v7, 4  ;;  %v5497_v25 = vrot.slane %v436_v47, 7  ;;  %v4894_v26 = vld [vmem:[%s6213_s1 + $0x1d0] sm:$0xff]   ;;  %v4867_v30 = vld [vmem:[%s6213_s1 + $0x120] sm:$0xff]   ;;  %v4379_v41 = vunpack.c.l.bf16 %v5475_v1  ;;  %4591 = vmatprep.subr.bf16.mxu0 %v4864_v8  ;;  %v4380_v57 = vunpack.c.h.bf16 %v5475_v1  ;;  %4658 = vmatpush3.bf16.msra.mxu1 %v4893_v17 }
  0x69   : > { %v4849_v27 = vld [vmem:[#allocation3 + $0x9c] ss:$36 sps:$4 sm:$0xff]   ;;  %557 = vst [vmem:[#allocation2 + $0x34] sm:$0xf] %v433_v22  ;;  %v1098_v28 = vrot.slane %v1096_v14, 5  ;;  %v1104_v4 = vrot.slane %v1102_v15, 5  ;;  %4659 = vmatprep.subr.bf16.mxu1 %v4894_v26 }
  0x6a   : > { %v561_v31 = vld [vmem:[#allocation2 + $0x54] sm:$0xf]  ;;  %v4851_v2 = vld [vmem:[#allocation3 + $0x98] ss:$36 sps:$4 sm:$0xff]   ;;  %v1108_v37 = vrot.slane %v1106_v24, 4  ;;  %v442_v39 = vrot.slane %v5497_v25, 4  ;;  %3385 = vmatprep.mubr.bf16.mxu1 %v4849_v27  ;;  %v441_v52 = vor.u32 %v439_v51, %v5497_v25  ;;  %v274_v47 = vmul.f32 %v4379_v41, %v5177_v33 }
  0x6b   : > { %v4874_v40 = vld [vmem:[%s6213_s1 + $0x158] sm:$0xff]   ;;  %v1099_v6 = vor.u32 %v1098_v28, %v1095_v23  ;;  %v444_v42 = vshrl.u32 %v5483_v55, 16  ;;  %v447_v43 = vshll.u32 %v5483_v55, 16  ;;  %v611_v44 = vmax.f32 %v5436_v29, 0.0  ;;  %v4898_v36 = vld [vmem:[%s6213_s1 + $0x190] sm:$0xff]   ;;  %3386 = vmatmul.mubr.bf16.gmra.mxu1 %v4851_v2  ;;  %4592 = vmatpush3.bf16.msra.mxu0 %v4867_v30  ;;  %v4897_v30 = vld [vmem:[%s6213_s1 + $0x148] sm:$0xff]  }
  0x6c   : > { %v4852_v45 = vld [vmem:[#allocation3 + $0x94] ss:$36 sps:$4 sm:$0xff]   ;;  %v1109_v48 = vor.u32 %v1108_v37, %v1104_v4  ;;  %v642_v56 = vshrl.u32 %v5457_v34, 16  ;;  %v562_v53 = vsel %vm5214_vm6, %v441_v52, %v561_v31  ;;  %v4877_v8 = vld [vmem:[%s6213_s1 + $0x118] sm:$0xff]   ;;  %v645_v15 = vshll.u32 %v5457_v34, 16  ;;  %4593 = vmatprep.subr.bf16.mxu0 %v4874_v40  ;;  %v4885_v17 = vld [vmem:[%s6213_s1 + $0x150] sm:$0xff]   ;;  %4660 = vmatpush3.bf16.msra.mxu1 %v4898_v36 }
  0x6d   : > { %v4856_v46 = vld [vmem:[#allocation3 + $0x90] ss:$36 sps:$4 sm:$0xff]   ;;  %v1255_v58 = vld [vmem:[#allocation2 + $0x2c] sm:$0x1]  ;;  %v1100_v49 = vrot.slane %v1099_v6, 4  ;;  %v446_v60 = vrot.slane %v444_v42, 7  ;;  %v4329_v29 = vpack.c.bf16 %v611_v44, %v611_v44  ;;  %3288 = vmatprep.mubr.bf16.mxu0 %v4852_v45 }
  0x6e   : > { %v1004_v20 = vld [vmem:[#allocation2 + $0x2c] sm:$0x1]  ;;  %v772_v38 = vld [vmem:[#allocation2 + $0x30] sm:$0x2]  ;;  %v840_v61 = vld [vmem:[#allocation2 + $0x30] sm:$0x1]  ;;  %3289 = vmatmul.mubr.bf16.gmra.mxu0 %v4856_v46 }
  0x6f   : > { %v1321_v62 = vrot.slane %v1255_v58, 5  ;;  %v1110_v0 = vrot.slane %v1109_v48, 4  ;;  %v4097_v13 = vrot.slane %v772_v38, 9  ;;  %v1105_v3 = vsel %vm5339_vm14, %v1100_v49, %v1104_v4  ;;  %563 = vst [vmem:[#allocation2 + $0x54] sm:$0xf] %v562_v53  ;;  %v4888_v25 = vld [vmem:[%s6213_s1 + $0x110] sm:$0xff]   ;;  %4594 = vmatpush3.bf16.msra.mxu0 %v4877_v8 }
  0x70   : > { %v1112_v54 = vshll.u32 %v1004_v20, 16  ;;  %v449_v7 = vor.u32 %v447_v43, %v446_v60  ;;  %v671_v35 = vld [vmem:[#allocation2 + $0x48] sm:$0xf]  ;;  %v565_v55 = vld [vmem:[#allocation2 + $0x5c] sm:$0x1]  ;;  %v451_v11 = vrot.slane %v446_v60, 4  ;;  %4595 = vmatprep.subr.bf16.mxu0 %v4885_v17 }
  0x71   : > { %v1322_v10 = vsel %vm5272_vm11, %v5490_v12, %v1321_v62  ;;  %v1390_v33 = vld [vmem:[#allocation2 + $0x34] sm:$0xf]  ;;  %1234 = vst [vmem:[#allocation3 + $0xdc] sm:$0xf] %v1105_v3  ;;  %v644_v14 = vrot.slane %v642_v56, 7  ;;  %v841_v22 = vsel %vm5223_vm7, %v4097_v13, %v840_v61  ;;  %v650_v24 = vshrl.u32 %v4329_v29, 16 }
  0x72   : > { %1374 = vst [vmem:[#allocation3 + $0x104] sm:$0xf] %v1322_v10  ;;  %1406 = vst [vmem:[#allocation3 + $0x108] sm:$0xf] %v1390_v33  ;;  %v1114_v23 = vrot.slane %v1112_v54, 5  ;;  %v450_v12 = vsel %vm5208_vm5, %v442_v39, %v449_v7  ;;  %v653_v27 = vshll.u32 %v4329_v29, 16  ;;  %v566_v37 = vsel %vm5223_vm7, %v451_v11, %v565_v55 }
  0x73   : > { %842 = vst [vmem:[#allocation2 + $0x30] sm:$0x1] %v841_v22  ;;  %564 = vst [vmem:[#allocation2 + $0x58] sm:$0xf] %v450_v12  ;;  %v647_v34 = vor.u32 %v645_v15, %v644_v14  ;;  %v648_v26 = vrot.slane %v644_v14, 4  ;;  %v310_v4 = vmax.f32 %v5507_v32, 0.0  ;;  %4596 = vmatpush3.bf16.msra.mxu0 %v4888_v25 }
  0x74   : > { %v675_v28 = vld [vmem:[#allocation2 + $0x50] sm:$0x1]  ;;  %v1115_v31 = vsel %vm5339_vm14, %v1110_v0, %v1114_v23  ;;  %v652_v19 = vrot.slane %v650_v24, 7  ;;  %v311_v2 = vmax.f32 %v295_v5, 0.0  ;;  %567 = vst [vmem:[#allocation2 + $0x5c] sm:$0x1] %v566_v37  ;;  %4597 = vmatprep.subr.bf16.mxu0 %v4897_v30 }
  0x75   : > { %1235 = vst [vmem:[#allocation3 + $0x100] sm:$0xf] %v1115_v31  ;;  %v672_v51 = vsel %vm5214_vm6, %v647_v34, %v671_v35  ;;  %v4319_v39 = vpack.c.bf16 %v310_v4, %v310_v4  ;;  %v5560_v32 = vld [vmem:[%s6215_s3] ss:$0 sm:$0xff]  ;;  %v4900_v36 = vld [vmem:[%s6213_s1 + $0x108] sm:$0xff]   ;;  %v5604_v22 = vld [vmem:[%s5160_s9 + $0x98] sm:$0xff]  }
  0x76   : > { %v5563_v40 = vadd.f32 %v5560_v32, %v274_v47  ;;  %v655_v41 = vor.u32 %v653_v27, %v652_v19  ;;  %v657_v6 = vrot.slane %v652_v19, 4  ;;  %673 = vst [vmem:[#allocation2 + $0x48] sm:$0xf] %v672_v51  ;;  %v4320_v42 = vpack.c.bf16 %v311_v2, %v311_v2  ;;  %v5568_v43 = vld [vmem:[%s6214_s2] ss:$0 sm:$0xff]  ;;  %v4905_v62 = vld [vmem:[%s6213_s1 + $0x188] sm:$0xff]  }
  0x77   : > { %v275_v44 = vmul.f32 %v5568_v43, %v4380_v57  ;;  %v775_v45 = vld [vmem:[#allocation2 + $0x54] sm:$0x2]  ;;  %v849_v46 = vld [vmem:[#allocation2 + $0x54] sm:$0x1]  ;;  %v453_v48 = vshrl.u32 %v4319_v39, 16  ;;  %v456_v52 = vshll.u32 %v4319_v39, 16  ;;  %4598 = vmatpush3.bf16.msra.mxu0 %v4900_v36 }
  0x78   : > { %v656_v56 = vsel %vm5208_vm5, %v648_v26, %v655_v41  ;;  %v676_v58 = vsel %vm5223_vm7, %v657_v6, %v675_v28  ;;  %v4100_v20 = vrot.slane %v775_v45, 9  ;;  %v461_v49 = vshrl.u32 %v4320_v42, 16  ;;  %v568_v60 = vld [vmem:[#allocation2 + $0x60] sm:$0xf]  ;;  %v5580_v1 = vld [vmem:[#allocation2 + $0x54] sm:$0xe] }
  0x79   : > { %v4904_v57 = vld [vmem:[%s6213_s1 + $0x1c8] sm:$0xff]   ;;  %674 = vst [vmem:[#allocation2 + $0x4c] sm:$0xf] %v656_v56  ;;  %677 = vst [vmem:[#allocation2 + $0x50] sm:$0x1] %v676_v58  ;;  %v455_v29 = vrot.slane %v453_v48, 7  ;;  %v5593_v3 = vadd.f32 %v5560_v32, %v275_v44  ;;  %v4383_v56 = vunpack.c.l.bf16 %v5604_v22 }
  0x7a   : > { %v464_v5 = vshll.u32 %v4320_v42, 16  ;;  %v4122_v38 = vrot.slane %v5580_v1, 9  ;;  %v312_v61 = vmax.f32 %v5563_v40, 0.0  ;;  %v1389_v0 = vld [vmem:[#allocation2 + $0x30] sm:$0xf]  ;;  %v850_v53 = vsel %vm5223_vm7, %v4100_v20, %v849_v46  ;;  %4661 = vmatprep.subr.bf16.mxu1 %v4904_v57  ;;  %v4906_v7 = vld [vmem:[%s6213_s1 + $0x1c0] sm:$0xff]  }
  0x7b   : > { %v1392_v47 = vld [vmem:[#allocation2 + $0x58] sm:$0xf]  ;;  %v463_v13 = vrot.slane %v461_v49, 7  ;;  %v572_v54 = vld [vmem:[#allocation2 + $0x68] sm:$0x1]  ;;  %v458_v35 = vor.u32 %v456_v52, %v455_v29  ;;  %v459_v8 = vrot.slane %v455_v29, 4  ;;  %4662 = vmatpush3.bf16.msra.mxu1 %v4905_v62 }
  0x7c   : > { %1405 = vst [vmem:[#allocation3 + $0xe4] sm:$0xf] %v1389_v0  ;;  %851 = vst [vmem:[#allocation2 + $0x54] sm:$0x1] %v850_v53  ;;  %v871_v55 = vld [vmem:[#allocation2 + $0x58] sm:$0x8]  ;;  %4663 = vmatprep.subr.bf16.mxu1 %v4906_v7  ;;  %v5615_v51 = vpack.c.bf16 %v312_v61, %v312_v61 }
  0x7d   : > { %1408 = vst [vmem:[#allocation3 + $0x150] sm:$0xf] %v1392_v47  ;;  %v5598_v10 = vld [vmem:[#allocation2 + $0x58] sm:$0xf]  ;;  %v4909_v33 = vld [vmem:[%s6213_s1 + $0x140] sm:$0xff]   ;;  %v466_v15 = vor.u32 %v464_v5, %v463_v13  ;;  %v468_v17 = vrot.slane %v463_v13, 4  ;;  %v569_v25 = vsel %vm5214_vm6, %v458_v35, %v568_v60  ;;  %v4384_v60 = vunpack.c.h.bf16 %v5604_v22 }
  0x7e   : > { %v4862_v11 = vld [vmem:[#allocation3 + $0xdc] ss:$36 sps:$4 sm:$0xff]   ;;  %v1256_v23 = vld [vmem:[#allocation2 + $0x48] sm:$0xe]  ;;  %v846_v24 = vld [vmem:[#allocation2 + $0x48] sm:$0x1]  ;;  %4599 = vmatprep.subr.bf16.mxu0 %v4909_v33 }
  0x7f   : > { %v4866_v14 = vld [vmem:[#allocation3 + $0xd8] ss:$36 sps:$4 sm:$0xff]   ;;  %3296 = vmatprep.mubr.bf16.mxu0 %v4862_v11  ;;  %v467_v26 = vsel %vm5208_vm5, %v459_v8, %v466_v15  ;;  %570 = vst [vmem:[#allocation2 + $0x60] sm:$0xf] %v569_v25  ;;  %v4112_v27 = vrot.slane %v871_v55, 11  ;;  %v313_v4 = vmax.f32 %v5593_v3, 0.0  ;;  %v573_v39 = vsel %vm5223_vm7, %v468_v17, %v572_v54 }
  0x80   : > { %v774_v12 = vld [vmem:[#allocation2 + $0x48] sm:$0x2]  ;;  %v946_v28 = vld [vmem:[#allocation2 + $0x5c] sm:$0x1]  ;;  %v4910_v30 = vld [vmem:[%s6213_s1 + $0x180] sm:$0xff]   ;;  %3297 = vmatmul.mubr.bf16.gmra.mxu0 %v4866_v14  ;;  %v4121_v31 = vrot.slane %v1256_v23, 9  ;;  %v276_v55 = vmul.f32 %v5568_v43, %v4383_v56 }
  0x81   : > { %v4099_v34 = vrot.slane %v774_v12, 9  ;;  %571 = vst [vmem:[#allocation2 + $0x64] sm:$0xf] %v467_v26  ;;  %v1332_v19 = vrot.slane %v5598_v10, 5  ;;  %v972_v2 = vld [vmem:[#allocation2 + $0x58] sm:$0xf]  ;;  %v947_v44 = vsel %vm5259_vm10, %v4112_v27, %v946_v28  ;;  %4664 = vmatpush3.bf16.msra.mxu1 %v4910_v30  ;;  %v4322_v30 = vpack.c.bf16 %v313_v4, %v313_v4 }
  0x82   : > { %v1009_v37 = vld [vmem:[#allocation2 + $0x58] sm:$0xf]  ;;  %v870_v40 = vld [vmem:[#allocation2 + $0x4c] sm:$0x8]  ;;  %v943_v41 = vld [vmem:[#allocation2 + $0x50] sm:$0x1]  ;;  %v5662_v56 = vadd.f32 %v5560_v32, %v276_v55 }
  0x83   : > { %v1257_v6 = vld [vmem:[#allocation2 + $0x4c] sm:$0xf]  ;;  %v847_v42 = vsel %vm5223_vm7, %v4099_v34, %v846_v24  ;;  %988 = vst [vmem:[#allocation3 + $0x18c] sm:$0xf] %v972_v2  ;;  %574 = vst [vmem:[#allocation2 + $0x68] sm:$0x1] %v573_v39  ;;  %v1333_v52 = vsel %vm5272_vm11, %v4122_v38, %v1332_v19 }
  0x84   : > { %v4111_v36 = vrot.slane %v870_v40, 11  ;;  %v1325_v45 = vrot.slane %v1257_v6, 5  ;;  %848 = vst [vmem:[#allocation2 + $0x48] sm:$0x1] %v847_v42  ;;  %v970_v46 = vld [vmem:[#allocation2 + $0x4c] sm:$0xf] }
  0x85   : > { %v1006_v48 = vld [vmem:[#allocation2 + $0x4c] sm:$0xf]  ;;  %948 = vst [vmem:[#allocation2 + $0x5c] sm:$0x1] %v947_v44  ;;  %v4859_v58 = vld [vmem:[#allocation3 + $0xe4] ss:$36 sps:$4 sm:$0xff]  }
  0x86   : > { %v4861_v20 = vld [vmem:[#allocation3 + $0xe0] ss:$36 sps:$4 sm:$0xff]   ;;  %986 = vst [vmem:[#allocation3 + $0x144] sm:$0xf] %v970_v46  ;;  %v1126_v49 = vshll.u32 %v1006_v48, 16  ;;  %v944_v57 = vsel %vm5259_vm10, %v4111_v36, %v943_v41  ;;  %v1326_v29 = vsel %vm5272_vm11, %v4121_v31, %v1325_v45  ;;  %v1130_v1 = vshrl.u32 %v1006_v48, 16  ;;  %3393 = vmatprep.mubr.bf16.mxu1 %v4859_v58 }
  0x87   : > { %1377 = vst [vmem:[#allocation3 + $0x170] sm:$0xf] %v1333_v52  ;;  %v1391_v5 = vld [vmem:[#allocation2 + $0x54] sm:$0xf]  ;;  %v470_v38 = vshrl.u32 %v5615_v51, 16  ;;  %v1334_v0 = vrot.slane %v1332_v19, 4  ;;  %3394 = vmatmul.mubr.bf16.gmra.mxu1 %v4861_v20  ;;  %v277_v31 = vmul.f32 %v5568_v43, %v4384_v60 }
  0x88   : > { %v971_v61 = vld [vmem:[#allocation2 + $0x54] sm:$0xf]  ;;  %945 = vst [vmem:[#allocation2 + $0x50] sm:$0x1] %v944_v57  ;;  %1375 = vst [vmem:[#allocation3 + $0x128] sm:$0xf] %v1326_v29 }
  0x89   : > { %1407 = vst [vmem:[#allocation3 + $0x12c] sm:$0xf] %v1391_v5  ;;  %v5634_v62 = vrot.slane %v1126_v49, 5  ;;  %987 = vst [vmem:[#allocation3 + $0x168] sm:$0xf] %v971_v61  ;;  %v1150_v47 = vshll.u32 %v1009_v37, 16 }
  0x8a   : > { %v1008_v53 = vld [vmem:[#allocation2 + $0x54] sm:$0xf]  ;;  %v1154_v13 = vshrl.u32 %v1009_v37, 16  ;;  %v1132_v54 = vrot.slane %v1130_v1, 4  ;;  %v776_v7 = vld [vmem:[#allocation2 + $0x60] sm:$0x2] }
  0x8b   : > { %v852_v35 = vld [vmem:[#allocation2 + $0x60] sm:$0x1]  ;;  %v1141_v8 = vshrl.u32 %v1008_v53, 16  ;;  %v4101_v10 = vrot.slane %v776_v7, 9  ;;  %v1394_v33 = vld [vmem:[#allocation2 + $0x64] sm:$0xf] }
  0x8c   : > { %v1144_v11 = vshll.u32 %v1008_v53, 16  ;;  %v5637_v14 = vrot.slane %v1150_v47, 5  ;;  %v1156_v15 = vrot.slane %v1154_v13, 4  ;;  %v1133_v17 = vor.u32 %v1132_v54, %v5634_v62  ;;  %1410 = vst [vmem:[#allocation3 + $0x198] sm:$0xf] %v1394_v33  ;;  %v4912_v24 = vld [vmem:[%s6213_s1 + $0x100] sm:$0xff]  }
  0x8d   : > { %v1143_v22 = vrot.slane %v1141_v8, 4  ;;  %v5640_v23 = vrot.slane %v470_v38, 7  ;;  %v473_v12 = vshll.u32 %v5615_v51, 16  ;;  %v969_v25 = vld [vmem:[#allocation2 + $0x48] sm:$0xf]  ;;  %v853_v26 = vsel %vm5223_vm7, %v4101_v10, %v852_v35  ;;  %4600 = vmatpush3.bf16.msra.mxu0 %v4912_v24  ;;  %v5656_v3 = vld [vmem:[%s6213_s1 + $0x238] sm:$0xff]  }
  0x8e   : > { %v1005_v34 = vld [vmem:[#allocation2 + $0x48] sm:$0xf]  ;;  %v1261_v27 = vld [vmem:[#allocation2 + $0x5c] sm:$0x1]  ;;  %v1157_v28 = vor.u32 %v1156_v15, %v5637_v14  ;;  %v1327_v19 = vrot.slane %v1325_v45, 4  ;;  %v1134_v40 = vrot.slane %v1133_v17, 4  ;;  %4729 = vmatprep.subr.bf16.mxu0 %v5656_v3  ;;  %4761 = vmatprep.subr.bf16.mxu1 %v5656_v3 }
  0x8f   : > { %985 = vst [vmem:[#allocation3 + $0x120] sm:$0xf] %v969_v25  ;;  %v1117_v2 = vshrl.u32 %v1005_v34, 16  ;;  %v1120_v37 = vshll.u32 %v1005_v34, 16  ;;  %854 = vst [vmem:[#allocation2 + $0x60] sm:$0x1] %v853_v26  ;;  %v475_v52 = vor.u32 %v473_v12, %v5640_v23  ;;  %v299_v25 = vadd.f32 %v5560_v32, %v277_v31 }
  0x90   : > { %v1335_v51 = vrot.slane %v1261_v27, 5  ;;  %v1010_v39 = vld [vmem:[#allocation2 + $0x5c] sm:$0x1]  ;;  %v1146_v41 = vrot.slane %v1144_v11, 5  ;;  %v1158_v6 = vrot.slane %v1157_v28, 4  ;;  %v476_v1 = vrot.slane %v5640_v23, 4 }
  0x91   : > { %v1160_v42 = vshll.u32 %v1010_v39, 16  ;;  %v575_v44 = vld [vmem:[#allocation2 + $0x6c] sm:$0xf]  ;;  %v872_v36 = vld [vmem:[#allocation2 + $0x64] sm:$0x8]  ;;  %v1119_v46 = vrot.slane %v1117_v2, 4 }
  0x92   : > { %v1258_v4 = vld [vmem:[#allocation2 + $0x50] sm:$0x1]  ;;  %v1336_v48 = vsel %vm5272_vm11, %v1334_v0, %v1335_v51  ;;  %v1122_v20 = vrot.slane %v1120_v37, 5  ;;  %v1147_v60 = vor.u32 %v1146_v41, %v1143_v22  ;;  %v949_v57 = vld [vmem:[#allocation2 + $0x68] sm:$0x1]  ;;  %v478_v61 = vshrl.u32 %v4322_v30, 16 }
  0x93   : > { %v1007_v45 = vld [vmem:[#allocation2 + $0x50] sm:$0x1]  ;;  %v1328_v58 = vrot.slane %v1258_v4, 5  ;;  %1378 = vst [vmem:[#allocation3 + $0x194] sm:$0xf] %v1336_v48  ;;  %v1162_v5 = vrot.slane %v1160_v42, 5  ;;  %v576_v8 = vsel %vm5214_vm6, %v475_v52, %v575_v44 }
  0x94   : > { %v1136_v49 = vshll.u32 %v1007_v45, 16  ;;  %v1262_v29 = vld [vmem:[#allocation2 + $0x60] sm:$0xe]  ;;  %v481_v38 = vshll.u32 %v4322_v30, 16  ;;  %v1263_v0 = vld [vmem:[#allocation2 + $0x64] sm:$0xf]  ;;  %v1123_v47 = vor.u32 %v1122_v20, %v1119_v46 }
  0x95   : > { %v1329_v53 = vsel %vm5272_vm11, %v1327_v19, %v1328_v58  ;;  %v1148_v54 = vrot.slane %v1147_v60, 4  ;;  %v1163_v7 = vsel %vm5339_vm14, %v1158_v6, %v1162_v5  ;;  %v5675_v35 = vrot.slane %v478_v61, 7  ;;  %577 = vst [vmem:[#allocation2 + $0x6c] sm:$0xf] %v576_v8  ;;  %v974_v34 = vld [vmem:[#allocation2 + $0x64] sm:$0xf] }
  0x96   : > { %v1138_v13 = vrot.slane %v1136_v49, 5  ;;  %1376 = vst [vmem:[#allocation3 + $0x14c] sm:$0xf] %v1329_v53  ;;  %v4113_v55 = vrot.slane %v872_v36, 11  ;;  %v1124_v10 = vrot.slane %v1123_v47, 4  ;;  %v4123_v17 = vrot.slane %v1262_v29, 9 }
  0x97   : > { %v1393_v11 = vld [vmem:[#allocation2 + $0x60] sm:$0xf]  ;;  %v1153_v15 = vsel %vm5339_vm14, %v1148_v54, %v5637_v14  ;;  %1239 = vst [vmem:[#allocation3 + $0x190] sm:$0xf] %v1163_v7  ;;  %v483_v22 = vor.u32 %v481_v38, %v5675_v35  ;;  %v1339_v12 = vrot.slane %v1263_v0, 5  ;;  %v314_v37 = vmax.f32 %v5662_v56, 0.0 }
  0x98   : > { %v1139_v33 = vsel %vm5339_vm14, %v1134_v40, %v1138_v13  ;;  %1409 = vst [vmem:[#allocation3 + $0x174] sm:$0xf] %v1393_v11  ;;  %1238 = vst [vmem:[#allocation3 + $0x16c] sm:$0xf] %v1153_v15  ;;  %v950_v23 = vsel %vm5259_vm10, %v4113_v55, %v949_v57  ;;  %v973_v24 = vld [vmem:[#allocation2 + $0x60] sm:$0xf]  ;;  %v1129_v14 = vsel %vm5339_vm14, %v1124_v10, %v5634_v62 }
  0x99   : > { %1237 = vst [vmem:[#allocation3 + $0x148] sm:$0xf] %v1139_v33  ;;  %951 = vst [vmem:[#allocation2 + $0x68] sm:$0x1] %v950_v23  ;;  %v1011_v26 = vld [vmem:[#allocation2 + $0x60] sm:$0xf]  ;;  %v484_v28 = vsel %vm5208_vm5, %v476_v1, %v483_v22  ;;  %v1340_v30 = vsel %vm5272_vm11, %v4123_v17, %v1339_v12  ;;  %v4323_v42 = vpack.c.bf16 %v314_v37, %v314_v37 }
  0x9a   : > { %989 = vst [vmem:[#allocation3 + $0x1b0] sm:$0xf] %v973_v24  ;;  %v1012_v27 = vld [vmem:[#allocation2 + $0x64] sm:$0xf]  ;;  %1236 = vst [vmem:[#allocation3 + $0x124] sm:$0xf] %v1129_v14 }
  0x9b   : > { %990 = vst [vmem:[#allocation3 + $0x1d4] sm:$0xf] %v974_v34  ;;  %v1165_v19 = vshrl.u32 %v1011_v26, 16  ;;  %578 = vst [vmem:[#allocation2 + $0x70] sm:$0xf] %v484_v28  ;;  %v1168_v62 = vshll.u32 %v1011_v26, 16 }
  0x9c   : > { %1379 = vst [vmem:[#allocation3 + $0x1b8] sm:$0xf] %v1340_v30  ;;  %v1174_v31 = vshll.u32 %v1012_v27, 16  ;;  %v1178_v2 = vshrl.u32 %v1012_v27, 16  ;;  %v315_v39 = vmax.f32 %v299_v25, 0.0  ;;  %v485_v20 = vrot.slane %v5675_v35, 4 }
  0x9d   : > { %v1167_v51 = vrot.slane %v1165_v19, 4  ;;  %v4869_v40 = vld [vmem:[#allocation3 + $0x12c] ss:$36 sps:$4 sm:$0xff]   ;;  %v1170_v6 = vrot.slane %v1168_v62, 5  ;;  %v777_v44 = vld [vmem:[#allocation2 + $0x6c] sm:$0x2] }
  0x9e   : > { %v4871_v41 = vld [vmem:[#allocation3 + $0x128] ss:$36 sps:$4 sm:$0xff]   ;;  %v855_v36 = vld [vmem:[#allocation2 + $0x6c] sm:$0x1]  ;;  %v1176_v4 = vrot.slane %v1174_v31, 5  ;;  %3401 = vmatprep.mubr.bf16.mxu1 %v4869_v40  ;;  %v4102_v46 = vrot.slane %v777_v44, 9  ;;  %v4324_v56 = vpack.c.bf16 %v315_v39, %v315_v39 }
  0x9f   : > { %v4879_v45 = vld [vmem:[#allocation3 + $0x174] ss:$36 sps:$4 sm:$0xff]   ;;  %v1171_v48 = vor.u32 %v1170_v6, %v1167_v51  ;;  %v1180_v52 = vrot.slane %v1178_v2, 4  ;;  %3402 = vmatmul.mubr.bf16.gmra.mxu1 %v4871_v41  ;;  %v4883_v58 = vld [vmem:[#allocation3 + $0x16c] ss:$36 sps:$4 sm:$0xff]   ;;  %v1341_v49 = vrot.slane %v1339_v12, 4 }
  0xa0   : > { %v487_v60 = vshrl.u32 %v4323_v42, 16  ;;  %v4876_v29 = vld [vmem:[#allocation3 + $0x120] ss:$36 sps:$4 sm:$0xff]   ;;  %3409 = vmatprep.mubr.bf16.mxu1 %v4879_v45  ;;  %v856_v5 = vsel %vm5223_vm7, %v4102_v46, %v855_v36  ;;  %v4881_v38 = vld [vmem:[#allocation3 + $0x170] ss:$36 sps:$4 sm:$0xff]   ;;  %v490_v55 = vshll.u32 %v4323_v42, 16 }
  0xa1   : > { %v4872_v57 = vld [vmem:[#allocation3 + $0x124] ss:$36 sps:$4 sm:$0xff]   ;;  %v1172_v1 = vrot.slane %v1171_v48, 4  ;;  %v1181_v61 = vor.u32 %v1180_v52, %v1176_v4  ;;  %857 = vst [vmem:[#allocation2 + $0x6c] sm:$0x1] %v856_v5  ;;  %v495_v10 = vshrl.u32 %v4324_v56, 16 }
  0xa2   : > { %v1264_v0 = vld [vmem:[#allocation2 + $0x68] sm:$0x1]  ;;  %v1396_v53 = vld [vmem:[#allocation2 + $0x70] sm:$0xf]  ;;  %3304 = vmatprep.mubr.bf16.mxu0 %v4872_v57  ;;  %v489_v8 = vrot.slane %v487_v60, 7  ;;  %v498_v11 = vshll.u32 %v4324_v56, 16 }
  0xa3   : > { %v1342_v47 = vrot.slane %v1264_v0, 5  ;;  %1412 = vst [vmem:[#allocation3 + $0x1e0] sm:$0xf] %v1396_v53  ;;  %v1013_v13 = vld [vmem:[#allocation2 + $0x68] sm:$0x1]  ;;  %v1177_v54 = vsel %vm5339_vm14, %v1172_v1, %v1176_v4  ;;  %v1182_v7 = vrot.slane %v1181_v61, 4  ;;  %3305 = vmatmul.mubr.bf16.gmra.mxu0 %v4876_v29 }
  0xa4   : > { %v1184_v35 = vshll.u32 %v1013_v13, 16  ;;  %1240 = vst [vmem:[#allocation3 + $0x1b4] sm:$0xf] %v1177_v54  ;;  %3312 = vmatprep.mubr.bf16.mxu0 %v4883_v58  ;;  %v579_v15 = vld [vmem:[#allocation2 + $0x74] sm:$0x1]  ;;  %v492_v12 = vor.u32 %v490_v55, %v489_v8  ;;  %v493_v24 = vrot.slane %v489_v8, 4 }
  0xa5   : > { %v1343_v33 = vsel %vm5272_vm11, %v1341_v49, %v1342_v47  ;;  %v582_v17 = vld [vmem:[#allocation2 + $0x78] sm:$0xf]  ;;  %v5708_v25 = vrot.slane %v495_v10, 7  ;;  %v580_v14 = vsel %vm5223_vm7, %v485_v20, %v579_v15  ;;  %v1265_v34 = vld [vmem:[#allocation2 + $0x6c] sm:$0xe]  ;;  %v4394_v46 = vld [vmem:[%s5723_s20] sm:$0xff]  }
  0xa6   : > { %v4887_v22 = vld [vmem:[#allocation3 + $0x168] ss:$36 sps:$4 sm:$0xff]   ;;  %1380 = vst [vmem:[#allocation3 + $0x1dc] sm:$0xf] %v1343_v33  ;;  %v1186_v23 = vrot.slane %v1184_v35, 5  ;;  %v583_v30 = vsel %vm5214_vm6, %v492_v12, %v582_v17  ;;  %v4124_v31 = vrot.slane %v1265_v34, 9  ;;  %v4395_v29 = vunpack.c.l.bf16 %v4394_v46 }
  0xa7   : > { %v1266_v26 = vld [vmem:[#allocation2 + $0x70] sm:$0xf]  ;;  %3410 = vmatmul.mubr.bf16.gmra.mxu1 %v4881_v38  ;;  %v500_v28 = vor.u32 %v498_v11, %v5708_v25  ;;  %581 = vst [vmem:[#allocation2 + $0x74] sm:$0x1] %v580_v14  ;;  %584 = vst [vmem:[#allocation2 + $0x78] sm:$0xf] %v583_v30  ;;  %v4396_v33 = vunpack.c.h.bf16 %v4394_v46 }
  0xa8   : > { %v1187_v27 = vsel %vm5339_vm14, %v1182_v7, %v1186_v23  ;;  %v873_v19 = vld [vmem:[#allocation2 + $0x70] sm:$0x8]  ;;  %v1395_v62 = vld [vmem:[#allocation2 + $0x6c] sm:$0xf]  ;;  %v1346_v2 = vrot.slane %v1266_v26, 5  ;;  %v434_v5 = vrot.slane %v5465_v59, 4  ;;  %v689_v11 = vmul.f32 %v5568_v43, %v4395_v29 }
  0xa9   : > { %1241 = vst [vmem:[#allocation3 + $0x1d8] sm:$0xf] %v1187_v27  ;;  %1411 = vst [vmem:[#allocation3 + $0x1bc] sm:$0xf] %v1395_v62  ;;  %v501_v37 = vsel %vm5208_vm5, %v493_v24, %v500_v28  ;;  %v4114_v51 = vrot.slane %v873_v19, 11  ;;  %v4925_v59 = vld [vmem:[%s6213_s1 + $0x230] sm:$0xff]  }
  0xaa   : > { %585 = vst [vmem:[#allocation2 + $0x7c] sm:$0xf] %v501_v37  ;;  %v1347_v39 = vsel %vm5272_vm11, %v4124_v31, %v1346_v2  ;;  %v975_v40 = vld [vmem:[#allocation2 + $0x6c] sm:$0xf]  ;;  %v976_v41 = vld [vmem:[#allocation2 + $0x70] sm:$0xf] }
  0xab   : > { %3313 = vmatmul.mubr.bf16.gmra.mxu0 %v4887_v22  ;;  %1381 = vst [vmem:[#allocation3 + $0x200] sm:$0xf] %v1347_v39  ;;  %991 = vst [vmem:[#allocation3 + $0x1f8] sm:$0xf] %v975_v40  ;;  %v1014_v6 = vld [vmem:[#allocation2 + $0x6c] sm:$0xf]  ;;  %v690_v39 = vmul.f32 %v5568_v43, %v4396_v33  ;;  %v5738_v40 = vadd.f32 %v5560_v32, %v689_v11 }
  0xac   : > { %992 = vst [vmem:[#allocation3 + $0x21c] sm:$0xf] %v976_v41  ;;  %v1015_v42 = vld [vmem:[#allocation2 + $0x70] sm:$0xf]  ;;  %v1189_v44 = vshrl.u32 %v1014_v6, 16  ;;  %v1192_v36 = vshll.u32 %v1014_v6, 16 }
  0xad   : > { %v1198_v4 = vshll.u32 %v1015_v42, 16  ;;  %v1202_v45 = vshrl.u32 %v1015_v42, 16  ;;  %v4899_v60 = vld [vmem:[#allocation3 + $0x1b0] ss:$36 sps:$4 sm:$0xff]   ;;  %v4891_v61 = vld [vmem:[#allocation3 + $0x1b8] ss:$36 sps:$4 sm:$0xff]  }
  0xae   : > { %v952_v48 = vld [vmem:[#allocation2 + $0x74] sm:$0x1]  ;;  %v1191_v52 = vrot.slane %v1189_v44, 4  ;;  %v1194_v58 = vrot.slane %v1192_v36, 5  ;;  %v778_v53 = vld [vmem:[#allocation2 + $0x78] sm:$0x2] }
  0xaf   : > { %v1200_v20 = vrot.slane %v1198_v4, 5  ;;  %v1204_v49 = vrot.slane %v1202_v45, 4  ;;  %v953_v57 = vsel %vm5259_vm10, %v4114_v51, %v952_v48  ;;  %v858_v47 = vld [vmem:[#allocation2 + $0x78] sm:$0x1]  ;;  %v4103_v54 = vrot.slane %v778_v53, 9 }
  0xb0   : > { %v4895_v56 = vld [vmem:[#allocation3 + $0x1b4] ss:$36 sps:$4 sm:$0xff]   ;;  %v4889_v1 = vld [vmem:[#allocation3 + $0x1bc] ss:$36 sps:$4 sm:$0xff]   ;;  %954 = vst [vmem:[#allocation2 + $0x74] sm:$0x1] %v953_v57  ;;  %v1195_v38 = vor.u32 %v1194_v58, %v1191_v52 }
  0xb1   : > { %v1205_v0 = vor.u32 %v1204_v49, %v1200_v20  ;;  %3320 = vmatprep.mubr.bf16.mxu0 %v4895_v56  ;;  %v1398_v13 = vld [vmem:[#allocation2 + $0x7c] sm:$0xf]  ;;  %3417 = vmatprep.mubr.bf16.mxu1 %v4889_v1  ;;  %v1348_v7 = vrot.slane %v1346_v2, 4  ;;  %v1800_v55 = vld [vmem:[#allocation2 + $0x18] sm:$0xf]  ;;  %v859_v15 = vsel %vm5223_vm7, %v4103_v54, %v858_v47 }
  0xb2   : > { %1414 = vst [vmem:[#allocation3 + $0x228] sm:$0xf] %v1398_v13  ;;  %v1196_v35 = vrot.slane %v1195_v38, 4  ;;  %3418 = vmatmul.mubr.bf16.gmra.mxu1 %v4891_v61  ;;  %v1801_v10 = vld [vmem:[#allocation2 + $0x1c] sm:$0xf] }
  0xb3   : > { %v1206_v8 = vrot.slane %v1205_v0, 4  ;;  %3321 = vmatmul.mubr.bf16.gmra.mxu0 %v4899_v60  ;;  %1816 = vst [vmem:[#allocation3 + $0x18] sm:$0xf] %v1800_v55  ;;  %1817 = vst [vmem:[#allocation3 + $0x3c] sm:$0xf] %v1801_v10 }
  0xb4   : > { %v1201_v17 = vsel %vm5339_vm14, %v1196_v35, %v1200_v20  ;;  %v1832_v22 = vld [vmem:[#allocation2 + $0x18] sm:$0xf]  ;;  %v1833_v23 = vld [vmem:[#allocation2 + $0x1c] sm:$0xf]  ;;  %v1834_v12 = vld [vmem:[#allocation2 + $0x20] sm:$0x1] }
  0xb5   : > { %860 = vst [vmem:[#allocation2 + $0x78] sm:$0x1] %v859_v15  ;;  %1242 = vst [vmem:[#allocation3 + $0x1fc] sm:$0xf] %v1201_v17  ;;  %v1857_v24 = vshrl.u32 %v1832_v22, 16  ;;  %v1860_v14 = vshll.u32 %v1832_v22, 16  ;;  %v5749_v22 = vadd.f32 %v5560_v32, %v690_v39 }
  0xb6   : > { %v1866_v34 = vshll.u32 %v1833_v23, 16  ;;  %v1870_v26 = vshrl.u32 %v1833_v23, 16  ;;  %v1415_v27 = vld [vmem:[#allocation2 + $0xc] sm:$0xf]  ;;  %v1876_v28 = vshll.u32 %v1834_v12, 16 }
  0xb7   : > { %v1416_v30 = vld [vmem:[#allocation2 + $0x10] sm:$0xf]  ;;  %v1417_v19 = vld [vmem:[#allocation2 + $0x14] sm:$0x1]  ;;  %v1440_v62 = vshrl.u32 %v1415_v27, 16  ;;  %v1859_v37 = vrot.slane %v1857_v24, 4 }
  0xb8   : > { %v1267_v31 = vld [vmem:[#allocation2 + $0x74] sm:$0x1]  ;;  %v1862_v51 = vrot.slane %v1860_v14, 5  ;;  %v1868_v42 = vrot.slane %v1866_v34, 5  ;;  %v1872_v44 = vrot.slane %v1870_v26, 4  ;;  %v1878_v45 = vrot.slane %v1876_v28, 5 }
  0xb9   : > { %v1016_v2 = vld [vmem:[#allocation2 + $0x74] sm:$0x1]  ;;  %v1349_v41 = vrot.slane %v1267_v31, 5  ;;  %v1663_v36 = vld [vmem:[#allocation2 + $0xc] sm:$0xe]  ;;  %v1442_v46 = vrot.slane %v1440_v62, 4 }
  0xba   : > { %v1208_v6 = vshll.u32 %v1016_v2, 16  ;;  %v1863_v4 = vor.u32 %v1862_v51, %v1859_v37  ;;  %v1443_v48 = vshll.u32 %v1415_v27, 16  ;;  %v1664_v52 = vld [vmem:[#allocation2 + $0x10] sm:$0xf]  ;;  %v1873_v49 = vor.u32 %v1872_v44, %v1868_v42  ;;  %v1665_v43 = vld [vmem:[#allocation2 + $0x14] sm:$0x1] }
  0xbb   : > { %v1350_v58 = vsel %vm5272_vm11, %v1348_v7, %v1349_v41  ;;  %v1449_v56 = vshll.u32 %v1416_v30, 16  ;;  %v1453_v29 = vshrl.u32 %v1416_v30, 16  ;;  %v1459_v1 = vshll.u32 %v1417_v19, 16  ;;  %v1802_v55 = vld [vmem:[#allocation2 + $0x24] sm:$0xf] }
  0xbc   : > { %v1210_v20 = vrot.slane %v1208_v6, 5  ;;  %1382 = vst [vmem:[#allocation3 + $0x224] sm:$0xf] %v1350_v58  ;;  %v1864_v60 = vrot.slane %v1863_v4, 4  ;;  %v1445_v57 = vrot.slane %v1443_v48, 5  ;;  %v1874_v0 = vrot.slane %v1873_v49, 4 }
  0xbd   : > { %v1397_v61 = vld [vmem:[#allocation2 + $0x78] sm:$0xf]  ;;  %v1451_v53 = vrot.slane %v1449_v56, 5  ;;  %v4125_v47 = vrot.slane %v1663_v36, 9  ;;  %v1455_v7 = vrot.slane %v1453_v29, 4  ;;  %v1461_v35 = vrot.slane %v1459_v1, 5 }
  0xbe   : > { %v1211_v38 = vsel %vm5339_vm14, %v1206_v8, %v1210_v20  ;;  %1413 = vst [vmem:[#allocation3 + $0x204] sm:$0xf] %v1397_v61  ;;  %v1869_v13 = vsel %vm5339_vm14, %v1864_v60, %v1868_v42  ;;  %v1446_v54 = vor.u32 %v1445_v57, %v1442_v46  ;;  %v1803_v10 = vld [vmem:[#allocation2 + $0x28] sm:$0xf]  ;;  %v1879_v33 = vsel %vm5339_vm14, %v1874_v0, %v1878_v45  ;;  %v1835_v8 = vld [vmem:[#allocation2 + $0x24] sm:$0xf] }
  0xbf   : > { %1243 = vst [vmem:[#allocation3 + $0x220] sm:$0xf] %v1211_v38  ;;  %2064 = vst [vmem:[#allocation3 + $0x1c] sm:$0xf] %v1869_v13  ;;  %v1713_v11 = vrot.slane %v1664_v52, 5  ;;  %v1716_v15 = vrot.slane %v1665_v43, 5  ;;  %v1456_v12 = vor.u32 %v1455_v7, %v1451_v53 }
  0xc0   : > { %1818 = vst [vmem:[#allocation3 + $0x60] sm:$0xf] %v1802_v55  ;;  %1819 = vst [vmem:[#allocation3 + $0x84] sm:$0xf] %v1803_v10  ;;  %v1836_v17 = vld [vmem:[#allocation2 + $0x28] sm:$0xf] }
  0xc1   : > { %2065 = vst [vmem:[#allocation3 + $0x40] sm:$0xf] %v1879_v33  ;;  %v1447_v23 = vrot.slane %v1446_v54, 4  ;;  %v1837_v24 = vld [vmem:[#allocation2 + $0x2c] sm:$0x1]  ;;  %v1881_v14 = vshrl.u32 %v1835_v8, 16  ;;  %v1714_v26 = vsel %vm5272_vm11, %v4125_v47, %v1713_v11 }
  0xc2   : > { %v1884_v34 = vshll.u32 %v1835_v8, 16  ;;  %v1715_v27 = vrot.slane %v1713_v11, 4  ;;  %v1890_v28 = vshll.u32 %v1836_v17, 16  ;;  %v1894_v30 = vshrl.u32 %v1836_v17, 16  ;;  %v1418_v19 = vld [vmem:[#allocation2 + $0x18] sm:$0xf] }
  0xc3   : > { %v1452_v62 = vsel %vm5339_vm14, %v1447_v23, %v1451_v53  ;;  %v1457_v31 = vrot.slane %v1456_v12, 4  ;;  %1783 = vst [vmem:[#allocation3 + $0x14] sm:$0xf] %v1714_v26  ;;  %v1883_v32 = vrot.slane %v1881_v14, 4  ;;  %v1900_v41 = vshll.u32 %v1837_v24, 16 }
  0xc4   : > { %v1886_v2 = vrot.slane %v1884_v34, 5  ;;  %1647 = vst [vmem:[#allocation3 + $0x10] sm:$0xf] %v1452_v62  ;;  %v1717_v37 = vsel %vm5272_vm11, %v1715_v27, %v1716_v15  ;;  %v1892_v51 = vrot.slane %v1890_v28, 5  ;;  %v1896_v39 = vrot.slane %v1894_v30, 4 }
  0xc5   : > { %v1419_v6 = vld [vmem:[#allocation2 + $0x1c] sm:$0xf]  ;;  %v1462_v42 = vsel %vm5339_vm14, %v1457_v31, %v1461_v35  ;;  %1784 = vst [vmem:[#allocation3 + $0x38] sm:$0xf] %v1717_v37  ;;  %v1420_v36 = vld [vmem:[#allocation2 + $0x20] sm:$0x1] }
  0xc6   : > { %v1887_v44 = vor.u32 %v1886_v2, %v1883_v32  ;;  %v1464_v4 = vshrl.u32 %v1418_v19, 16  ;;  %v1467_v45 = vshll.u32 %v1418_v19, 16  ;;  %v1666_v46 = vld [vmem:[#allocation2 + $0x18] sm:$0xe]  ;;  %v1667_v48 = vld [vmem:[#allocation2 + $0x1c] sm:$0xf]  ;;  %v1897_v20 = vor.u32 %v1896_v39, %v1892_v51 }
  0xc7   : > { %v4901_v52 = vld [vmem:[#allocation3 + $0x204] ss:$36 sps:$4 sm:$0xff]   ;;  %1648 = vst [vmem:[#allocation3 + $0x34] sm:$0xf] %v1462_v42  ;;  %v1902_v49 = vrot.slane %v1900_v41, 5  ;;  %v697_v1 = vmax.f32 %v5738_v40, 0.0 }
  0xc8   : > { %v4903_v58 = vld [vmem:[#allocation3 + $0x200] ss:$36 sps:$4 sm:$0xff]   ;;  %v4911_v43 = vld [vmem:[#allocation3 + $0x1f8] ss:$36 sps:$4 sm:$0xff]   ;;  %v1888_v60 = vrot.slane %v1887_v44, 4  ;;  %3425 = vmatprep.mubr.bf16.mxu1 %v4901_v52  ;;  %v1898_v57 = vrot.slane %v1897_v20, 4 }
  0xc9   : > { %v4907_v56 = vld [vmem:[#allocation3 + $0x1fc] ss:$36 sps:$4 sm:$0xff]   ;;  %v1466_v29 = vrot.slane %v1464_v4, 4  ;;  %v698_v61 = vmax.f32 %v5749_v22, 0.0  ;;  %3426 = vmatmul.mubr.bf16.gmra.mxu1 %v4903_v58  ;;  %v1469_v53 = vrot.slane %v1467_v45, 5  ;;  %v1473_v47 = vshll.u32 %v1419_v6, 16 }
  0xca   : > { %3328 = vmatprep.mubr.bf16.mxu0 %v4907_v56  ;;  %v4915_v38 = vld [vmem:[#allocation3 + $0x1c] ss:$36 sps:$4 sm:$0xff]   ;;  %v1893_v0 = vsel %vm5339_vm14, %v1888_v60, %v1892_v51  ;;  %v1477_v13 = vshrl.u32 %v1419_v6, 16  ;;  %v1903_v54 = vsel %vm5339_vm14, %v1898_v57, %v1902_v49  ;;  %v1483_v7 = vshll.u32 %v1420_v36, 16  ;;  %v1668_v35 = vld [vmem:[#allocation2 + $0x20] sm:$0x1] }
  0xcb   : > { %3329 = vmatmul.mubr.bf16.gmra.mxu0 %v4911_v43  ;;  %2066 = vst [vmem:[#allocation3 + $0x64] sm:$0xf] %v1893_v0  ;;  %v4126_v55 = vrot.slane %v1666_v46, 9  ;;  %v1720_v10 = vrot.slane %v1667_v48, 5  ;;  %v4913_v33 = vld [vmem:[#allocation3 + $0x18] ss:$36 sps:$4 sm:$0xff]   ;;  %3563 = vmatprep.mubr.bf16.mxu1 %v4915_v38  ;;  %v1470_v11 = vor.u32 %v1469_v53, %v1466_v29  ;;  %v5787_v49 = vpack.c.bf16 %v697_v1, %v697_v1 }
  0xcc   : > { %2067 = vst [vmem:[#allocation3 + $0x88] sm:$0xf] %v1903_v54  ;;  %v1475_v15 = vrot.slane %v1473_v47, 5  ;;  %v1479_v8 = vrot.slane %v1477_v13, 4  ;;  %v1723_v17 = vrot.slane %v1668_v35, 5  ;;  %v1485_v23 = vrot.slane %v1483_v7, 5 }
  0xcd   : > { %v1721_v12 = vsel %vm5272_vm11, %v4126_v55, %v1720_v10  ;;  %v1722_v24 = vrot.slane %v1720_v10, 4  ;;  %v558_v14 = vld [vmem:[#allocation2 + $0x38] sm:$0x1]  ;;  %v4918_v26 = vld [vmem:[#allocation3 + $0x14] ss:$36 sps:$4 sm:$0xff]   ;;  %v1471_v27 = vrot.slane %v1470_v11, 4  ;;  %v5792_v56 = vpack.c.bf16 %v698_v61, %v698_v61 }
  0xce   : > { %v4916_v34 = vld [vmem:[#allocation3 + $0x10] ss:$36 sps:$4 sm:$0xff]   ;;  %v1480_v28 = vor.u32 %v1479_v8, %v1475_v15  ;;  %1785 = vst [vmem:[#allocation3 + $0x5c] sm:$0xf] %v1721_v12  ;;  %v559_v30 = vsel %vm5223_vm7, %v434_v5, %v558_v14  ;;  %v868_v62 = vld [vmem:[#allocation2 + $0x34] sm:$0x8]  ;;  %3466 = vmatprep.mubr.bf16.mxu0 %v4918_v26 }
  0xcf   : > { %v1724_v19 = vsel %vm5272_vm11, %v1722_v24, %v1723_v17  ;;  %560 = vst [vmem:[#allocation2 + $0x38] sm:$0x1] %v559_v30  ;;  %v1804_v31 = vld [vmem:[#allocation2 + $0x30] sm:$0xf]  ;;  %v1805_v32 = vld [vmem:[#allocation2 + $0x34] sm:$0xf]  ;;  %v1476_v2 = vsel %vm5339_vm14, %v1471_v27, %v1475_v15 }
  0xd0   : > { %v1481_v37 = vrot.slane %v1480_v28, 4  ;;  %1786 = vst [vmem:[#allocation3 + $0x80] sm:$0xf] %v1724_v19  ;;  %1820 = vst [vmem:[#allocation3 + $0xa8] sm:$0xf] %v1804_v31  ;;  %v4109_v52 = vrot.slane %v868_v62, 11 }
  0xd1   : > { %1821 = vst [vmem:[#allocation3 + $0xcc] sm:$0xf] %v1805_v32  ;;  %v1838_v5 = vld [vmem:[#allocation2 + $0x30] sm:$0xf]  ;;  %v1839_v51 = vld [vmem:[#allocation2 + $0x34] sm:$0xf]  ;;  %3564 = vmatmul.mubr.bf16.vlgmr.msra.gmra.mxu1 %v4913_v33 }
  0xd2   : > { %1649 = vst [vmem:[#allocation3 + $0x58] sm:$0xf] %v1476_v2  ;;  %v1905_v39 = vshrl.u32 %v1838_v5, 16  ;;  %v1908_v41 = vshll.u32 %v1838_v5, 16  ;;  %v1914_v6 = vshll.u32 %v1839_v51, 16  ;;  %v1918_v42 = vshrl.u32 %v1839_v51, 16  ;;  %4769 = vmatpush3.bf16.msra.mxu1 %v5656_v3 }
  0xd3   : > { %v1421_v44 = vld [vmem:[#allocation2 + $0x24] sm:$0xf]  ;;  %v1486_v36 = vsel %vm5339_vm14, %v1481_v37, %v1485_v23  ;;  %v1422_v4 = vld [vmem:[#allocation2 + $0x28] sm:$0xf]  ;;  %v1423_v45 = vld [vmem:[#allocation2 + $0x2c] sm:$0x1]  ;;  %3467 = vmatmul.mubr.bf16.vlgmr.msra.gmra.mxu0 %v4916_v34  ;;  %4762 = vmatprep.subr.bf16.mxu1 %v4925_v59 }
  0xd4   : > { %v1488_v46 = vshrl.u32 %v1421_v44, 16  ;;  %v4920_v48 = vld [vmem:[#allocation3 + $0x64] ss:$36 sps:$4 sm:$0xff]   ;;  %1650 = vst [vmem:[#allocation3 + $0x7c] sm:$0xf] %v1486_v36  ;;  %v1907_v58 = vrot.slane %v1905_v39, 4  ;;  %4730 = vmatpush3.bf16.msra.mxu0 %v5656_v3 }
  0xd5   : > { %v4932_v20 = vld [vmem:[%s6213_s1 + $0x228] sm:$0xff]   ;;  %v4922_v43 = vld [vmem:[#allocation3 + $0x60] ss:$36 sps:$4 sm:$0xff]   ;;  %v1910_v60 = vrot.slane %v1908_v41, 5  ;;  %v1916_v57 = vrot.slane %v1914_v6, 5  ;;  %v1920_v29 = vrot.slane %v1918_v42, 4  ;;  %3571 = vmatprep.mubr.bf16.mxu1 %v4920_v48  ;;  %4731 = vmatprep.subr.bf16.mxu0 %v4925_v59 }
  0xd6   : > { %v1490_v38 = vrot.slane %v1488_v46, 4  ;;  %v1669_v0 = vld [vmem:[#allocation2 + $0x24] sm:$0xe]  ;;  %v1491_v40 = vshll.u32 %v1421_v44, 16  ;;  %v1497_v53 = vshll.u32 %v1422_v4, 16  ;;  %v1501_v1 = vshrl.u32 %v1422_v4, 16  ;;  %4770 = vmatpush3.bf16.msra.mxu1 %v4925_v59 }
  0xd7   : > { %v1507_v47 = vshll.u32 %v1423_v45, 16  ;;  %v1670_v13 = vld [vmem:[#allocation2 + $0x28] sm:$0xf]  ;;  %v937_v22 = vld [vmem:[#allocation2 + $0x38] sm:$0x1]  ;;  %v1911_v54 = vor.u32 %v1910_v60, %v1907_v58  ;;  %v1921_v61 = vor.u32 %v1920_v29, %v1916_v57  ;;  %v4127_v35 = vrot.slane %v1669_v0, 9  ;;  %4763 = vmatprep.subr.bf16.mxu1 %v4932_v20 }
  0xd8   : > { %v1671_v7 = vld [vmem:[#allocation2 + $0x2c] sm:$0x1]  ;;  %v1727_v3 = vrot.slane %v1670_v13, 5  ;;  %v938_v55 = vsel %vm5259_vm10, %v4109_v52, %v937_v22  ;;  %v1493_v10 = vrot.slane %v1491_v40, 5  ;;  %v1499_v33 = vrot.slane %v1497_v53, 5  ;;  %4732 = vmatpush3.bf16.msra.mxu0 %v4925_v59  ;;  %v4939_v26 = vld [vmem:[%s6213_s1 + $0x220] sm:$0xff]  }
  0xd9   : > { %v1503_v11 = vrot.slane %v1501_v1, 4  ;;  %939 = vst [vmem:[#allocation2 + $0x38] sm:$0x1] %v938_v55  ;;  %v1912_v15 = vrot.slane %v1911_v54, 4  ;;  %v5797_v8 = vrot.slane %v1921_v61, 4  ;;  %v1509_v17 = vrot.slane %v1507_v47, 5  ;;  %4733 = vmatprep.subr.bf16.mxu0 %v4932_v20  ;;  %3572 = vmatmul.mubr.bf16.gmra.mxu1 %v4922_v43 }
  0xda   : > { %v1728_v23 = vsel %vm5272_vm11, %v4127_v35, %v1727_v3  ;;  %v1494_v12 = vor.u32 %v1493_v10, %v1490_v38  ;;  %v1729_v14 = vrot.slane %v1727_v3, 4  ;;  %v1730_v34 = vrot.slane %v1671_v7, 5  ;;  %v4923_v27 = vld [vmem:[#allocation3 + $0x5c] ss:$36 sps:$4 sm:$0xff]   ;;  %v5810_v62 = vld [vmem:[%s6213_s1 + $0x218] sm:$0xff]   ;;  %4771 = vmatpush3.bf16.msra.mxu1 %v4932_v20  ;;  %v5816_v51 = vld [vmem:[%s5723_s20 + $0x80] sm:$0xff]  }
  0xdb   : > { %v1504_v24 = vor.u32 %v1503_v11, %v1499_v33  ;;  %1787 = vst [vmem:[#allocation3 + $0xa4] sm:$0xf] %v1728_v23  ;;  %v4926_v28 = vld [vmem:[#allocation3 + $0x58] ss:$36 sps:$4 sm:$0xff]   ;;  %v1917_v30 = vsel %vm5339_vm14, %v1912_v15, %v1916_v57  ;;  %v714_v19 = vshrl.u32 %v5787_v49, 16  ;;  %v717_v37 = vshll.u32 %v5787_v49, 16  ;;  %3474 = vmatprep.mubr.bf16.mxu0 %v4923_v27  ;;  %4764 = vmatprep.subr.bf16.mxu1 %v4939_v26 }
  0xdc   : > { %2068 = vst [vmem:[#allocation3 + $0xac] sm:$0xf] %v1917_v30  ;;  %v1495_v31 = vrot.slane %v1494_v12, 4  ;;  %v1731_v2 = vsel %vm5272_vm11, %v1729_v14, %v1730_v34  ;;  %v754_v59 = vld [vmem:[#allocation2 + $0x3c] sm:$0xf]  ;;  %4734 = vmatpush3.bf16.msra.mxu0 %v4932_v20  ;;  %v722_v41 = vshrl.u32 %v5792_v56, 16  ;;  %v4399_v40 = vunpack.c.l.bf16 %v5816_v51 }
  0xdd   : > { %v1505_v32 = vrot.slane %v1504_v24, 4  ;;  %v1424_v5 = vld [vmem:[#allocation2 + $0x30] sm:$0xf]  ;;  %1788 = vst [vmem:[#allocation3 + $0xc8] sm:$0xf] %v1731_v2  ;;  %v716_v39 = vrot.slane %v714_v19, 7  ;;  %3475 = vmatmul.mubr.bf16.gmra.mxu0 %v4926_v28  ;;  %4735 = vmatprep.subr.bf16.mxu0 %v4939_v26 }
  0xde   : > { %v725_v6 = vshll.u32 %v5792_v56, 16  ;;  %v1425_v42 = vld [vmem:[#allocation2 + $0x34] sm:$0xf]  ;;  %v1512_v44 = vshrl.u32 %v1424_v5, 16  ;;  %v1500_v36 = vsel %vm5339_vm14, %v1495_v31, %v1499_v33  ;;  %v758_v45 = vld [vmem:[#allocation2 + $0x44] sm:$0x1]  ;;  %4772 = vmatpush3.bf16.msra.mxu1 %v4939_v26 }
  0xdf   : > { %v1510_v4 = vsel %vm5339_vm14, %v1505_v32, %v1509_v17  ;;  %v1515_v46 = vshll.u32 %v1424_v5, 16  ;;  %v1521_v48 = vshll.u32 %v1425_v42, 16  ;;  %v1672_v52 = vld [vmem:[#allocation2 + $0x30] sm:$0xe]  ;;  %v1673_v58 = vld [vmem:[#allocation2 + $0x34] sm:$0xf]  ;;  %v719_v20 = vor.u32 %v717_v37, %v716_v39  ;;  %4765 = vmatprep.subr.bf16.mxu1 %v5810_v62 }
  0xe0   : > { %1651 = vst [vmem:[#allocation3 + $0xa0] sm:$0xf] %v1500_v36  ;;  %1652 = vst [vmem:[#allocation3 + $0xc4] sm:$0xf] %v1510_v4  ;;  %v720_v49 = vrot.slane %v716_v39, 4  ;;  %v724_v56 = vrot.slane %v722_v41, 7  ;;  %4736 = vmatpush3.bf16.msra.mxu0 %v4939_v26 }
  0xe1   : > { %v1514_v43 = vrot.slane %v1512_v44, 4  ;;  %v5827_v60 = vld [vmem:[%s6213_s1 + $0x210] sm:$0xff]   ;;  %v1840_v57 = vld [vmem:[#allocation2 + $0x38] sm:$0x1]  ;;  %v1517_v38 = vrot.slane %v1515_v46, 5  ;;  %v1523_v0 = vrot.slane %v1521_v48, 5  ;;  %v755_v13 = vsel %vm5214_vm6, %v719_v20, %v754_v59  ;;  %4737 = vmatprep.subr.bf16.mxu0 %v5810_v62 }
  0xe2   : > { %v1426_v29 = vld [vmem:[#allocation2 + $0x38] sm:$0x1]  ;;  %v1924_v53 = vshll.u32 %v1840_v57, 16  ;;  %v727_v1 = vor.u32 %v725_v6, %v724_v56  ;;  %v729_v47 = vrot.slane %v724_v56, 4  ;;  %756 = vst [vmem:[#allocation2 + $0x3c] sm:$0xf] %v755_v13  ;;  %4773 = vmatpush3.bf16.msra.mxu1 %v5810_v62  ;;  %v4400_v20 = vunpack.c.h.bf16 %v5816_v51 }
  0xe3   : > { %v1674_v22 = vld [vmem:[#allocation2 + $0x38] sm:$0x1]  ;;  %v1518_v54 = vor.u32 %v1517_v38, %v1514_v43  ;;  %v1525_v61 = vshrl.u32 %v1425_v42, 16  ;;  %v1531_v7 = vshll.u32 %v1426_v29, 16  ;;  %v4128_v35 = vrot.slane %v1672_v52, 9  ;;  %v5841_v17 = vld [vmem:[%s6213_s1 + $0x208] sm:$0xff]   ;;  %4766 = vmatprep.subr.bf16.mxu1 %v5827_v60 }
  0xe4   : > { %v1808_v3 = vld [vmem:[#allocation2 + $0x60] sm:$0xf]  ;;  %v1926_v55 = vrot.slane %v1924_v53, 5  ;;  %v728_v10 = vsel %vm5208_vm5, %v720_v49, %v727_v1  ;;  %v759_v33 = vsel %vm5223_vm7, %v729_v47, %v758_v45  ;;  %v1734_v11 = vrot.slane %v1673_v58, 5  ;;  %v1809_v15 = vld [vmem:[#allocation2 + $0x64] sm:$0xf]  ;;  %4738 = vmatpush3.bf16.msra.mxu0 %v5810_v62 }
  0xe5   : > { %1824 = vst [vmem:[#allocation3 + $0x138] sm:$0xf] %v1808_v3  ;;  %757 = vst [vmem:[#allocation2 + $0x40] sm:$0xf] %v728_v10  ;;  %v1519_v23 = vrot.slane %v1518_v54, 4  ;;  %v1527_v12 = vrot.slane %v1525_v61, 4  ;;  %4739 = vmatprep.subr.bf16.mxu0 %v5827_v60 }
  0xe6   : > { %760 = vst [vmem:[#allocation2 + $0x44] sm:$0x1] %v759_v33  ;;  %v1533_v24 = vrot.slane %v1531_v7, 5  ;;  %v1737_v14 = vrot.slane %v1674_v22, 5  ;;  %1825 = vst [vmem:[#allocation3 + $0x15c] sm:$0xf] %v1809_v15  ;;  %v1927_v26 = vsel %vm5339_vm14, %v5797_v8, %v1926_v55  ;;  %v1735_v27 = vsel %vm5272_vm11, %v4128_v35, %v1734_v11  ;;  %4774 = vmatpush3.bf16.msra.mxu1 %v5827_v60 }
  0xe7   : > { %v1844_v34 = vld [vmem:[#allocation2 + $0x60] sm:$0xf]  ;;  %v1736_v28 = vrot.slane %v1734_v11, 4  ;;  %v1845_v30 = vld [vmem:[#allocation2 + $0x64] sm:$0xf]  ;;  %v1524_v2 = vsel %vm5339_vm14, %v1519_v23, %v1523_v0  ;;  %v1528_v37 = vor.u32 %v1527_v12, %v1523_v0  ;;  %4767 = vmatprep.subr.bf16.mxu1 %v5841_v17 }
  0xe8   : > { %v1846_v19 = vld [vmem:[#allocation2 + $0x68] sm:$0x1]  ;;  %v1953_v31 = vshrl.u32 %v1844_v34, 16  ;;  %2069 = vst [vmem:[#allocation3 + $0xd0] sm:$0xf] %v1927_v26  ;;  %v1956_v59 = vshll.u32 %v1844_v34, 16  ;;  %4740 = vmatpush3.bf16.msra.mxu0 %v5827_v60 }
  0xe9   : > { %v4930_v32 = vld [vmem:[#allocation3 + $0xa4] ss:$36 sps:$4 sm:$0xff]   ;;  %1789 = vst [vmem:[#allocation3 + $0xec] sm:$0xf] %v1735_v27  ;;  %v1962_v8 = vshll.u32 %v1845_v30, 16  ;;  %v1738_v39 = vsel %vm5272_vm11, %v1736_v28, %v1737_v14  ;;  %v1966_v62 = vshrl.u32 %v1845_v30, 16  ;;  %4741 = vmatprep.subr.bf16.mxu0 %v5841_v17 }
  0xea   : > { %v4933_v5 = vld [vmem:[#allocation3 + $0xa0] ss:$36 sps:$4 sm:$0xff]   ;;  %1653 = vst [vmem:[#allocation3 + $0xe8] sm:$0xf] %v1524_v2  ;;  %v1955_v41 = vrot.slane %v1953_v31, 4  ;;  %v1972_v6 = vshll.u32 %v1846_v19, 16  ;;  %3482 = vmatprep.mubr.bf16.mxu0 %v4930_v32  ;;  %4775 = vmatpush3.bf16.msra.mxu1 %v5841_v17 }
  0xeb   : > { %v1529_v42 = vrot.slane %v1528_v37, 4  ;;  %1790 = vst [vmem:[#allocation3 + $0x110] sm:$0xf] %v1738_v39  ;;  %v1958_v44 = vrot.slane %v1956_v59, 5  ;;  %v1964_v36 = vrot.slane %v1962_v8, 5  ;;  %v5860_v45 = vld [vmem:[%s6213_s1 + $0x200] sm:$0xff]   ;;  %3483 = vmatmul.mubr.bf16.gmra.mxu0 %v4933_v5 }
  0xec   : > { %v1427_v4 = vld [vmem:[#allocation2 + $0x54] sm:$0xf]  ;;  %v773_v46 = vld [vmem:[#allocation2 + $0x3c] sm:$0x2]  ;;  %v843_v48 = vld [vmem:[#allocation2 + $0x3c] sm:$0x1]  ;;  %4768 = vmatprep.subr.bf16.mxu1 %v5860_v45  ;;  %4742 = vmatpush3.bf16.msra.mxu0 %v5841_v17 }
  0xed   : > { %v1968_v52 = vrot.slane %v1966_v62, 4  ;;  %v1974_v58 = vrot.slane %v1972_v6, 5  ;;  %v4979_v49 = vld [vmem:[%s6214_s2] ss:$0 sm:$0xff]  ;;  %v4098_v43 = vrot.slane %v773_v46, 9  ;;  %v1534_v57 = vsel %vm5339_vm14, %v1529_v42, %v1533_v24  ;;  %4743 = vmatprep.subr.bf16.mxu0 %v5860_v45 }
  0xee   : > { %v691_v56 = vmul.f32 %v4979_v49, %v4399_v40  ;;  %v1959_v29 = vor.u32 %v1958_v44, %v1955_v41  ;;  %v1428_v38 = vld [vmem:[#allocation2 + $0x58] sm:$0xf]  ;;  %v1536_v0 = vshrl.u32 %v1427_v4, 16  ;;  %v869_v53 = vld [vmem:[#allocation2 + $0x40] sm:$0x8]  ;;  %v692_v55 = vmul.f32 %v4979_v49, %v4400_v20  ;;  %4776 = vmatpush3.bf16.msra.mxu1 %v5860_v45 }
  0xef   : > { %v940_v1 = vld [vmem:[#allocation2 + $0x44] sm:$0x1]  ;;  %v1807_v47 = vld [vmem:[#allocation2 + $0x40] sm:$0xf]  ;;  %1654 = vst [vmem:[#allocation3 + $0x10c] sm:$0xf] %v1534_v57  ;;  %v1969_v13 = vor.u32 %v1968_v52, %v1964_v36  ;;  %v844_v51 = vsel %vm5223_vm7, %v4098_v43, %v843_v48 }
  0xf0   : > { %v1429_v22 = vld [vmem:[#allocation2 + $0x5c] sm:$0x1]  ;;  %v4110_v40 = vrot.slane %v869_v53, 11  ;;  %1823 = vst [vmem:[#allocation3 + $0x114] sm:$0xf] %v1807_v47  ;;  %v1960_v61 = vrot.slane %v1959_v29, 4  ;;  %4744 = vmatpush3.bf16.msra.mxu0 %v5860_v45 }
  0xf1   : > { %v1842_v54 = vld [vmem:[#allocation2 + $0x40] sm:$0xf]  ;;  %v1538_v7 = vrot.slane %v1536_v0, 4  ;;  %v4929_v60 = vld [vmem:[#allocation3 + $0xa8] ss:$36 sps:$4 sm:$0xff]   ;;  %v1970_v12 = vrot.slane %v1969_v13, 4 }
  0xf2   : > { %v4927_v35 = vld [vmem:[#allocation3 + $0xac] ss:$36 sps:$4 sm:$0xff]   ;;  %845 = vst [vmem:[#allocation2 + $0x3c] sm:$0x1] %v844_v51  ;;  %v1938_v3 = vshll.u32 %v1842_v54, 16  ;;  %v941_v11 = vsel %vm5259_vm10, %v4110_v40, %v940_v1  ;;  %v1942_v15 = vshrl.u32 %v1842_v54, 16  ;;  %v1965_v23 = vsel %vm5339_vm14, %v1960_v61, %v1964_v36 }
  0xf3   : > { %v4980_v10 = vld [vmem:[%s6215_s3] ss:$0 sm:$0xff]  ;;  %v1675_v24 = vld [vmem:[#allocation2 + $0x54] sm:$0xe]  ;;  %3579 = vmatprep.mubr.bf16.mxu1 %v4927_v35  ;;  %942 = vst [vmem:[#allocation2 + $0x44] sm:$0x1] %v941_v11  ;;  %v1975_v19 = vsel %vm5339_vm14, %v1970_v12, %v1974_v58 }
  0xf4   : > { %v695_v33 = vadd.f32 %v4980_v10, %v691_v56  ;;  %v5885_v14 = vrot.slane %v1938_v3, 5  ;;  %2072 = vst [vmem:[#allocation3 + $0x13c] sm:$0xf] %v1965_v23  ;;  %v1539_v34 = vshll.u32 %v1427_v4, 16  ;;  %v1545_v26 = vshll.u32 %v1428_v38, 16  ;;  %3580 = vmatmul.mubr.bf16.gmra.mxu1 %v4929_v60 }
  0xf5   : > { %v1549_v27 = vshrl.u32 %v1428_v38, 16  ;;  %v1676_v28 = vld [vmem:[#allocation2 + $0x58] sm:$0xf]  ;;  %v1944_v30 = vrot.slane %v1942_v15, 4  ;;  %v1555_v31 = vshll.u32 %v1429_v22, 16  ;;  %v4129_v2 = vrot.slane %v1675_v24, 9 }
  0xf6   : > { %v1677_v32 = vld [vmem:[#allocation2 + $0x5c] sm:$0x1]  ;;  %2073 = vst [vmem:[#allocation3 + $0x160] sm:$0xf] %v1975_v19  ;;  %v1541_v17 = vrot.slane %v1539_v34, 5  ;;  %v1547_v37 = vrot.slane %v1545_v26, 5  ;;  %v5895_v20 = vadd.f32 %v4980_v10, %v692_v55 }
  0xf7   : > { %v1551_v59 = vrot.slane %v1549_v27, 4  ;;  %v1741_v8 = vrot.slane %v1676_v28, 5  ;;  %v1945_v5 = vor.u32 %v1944_v30, %v5885_v14  ;;  %v4937_v39 = vld [vmem:[#allocation3 + $0xec] ss:$36 sps:$4 sm:$0xff]   ;;  %v699_v62 = vmax.f32 %v695_v33, 0.0 }
  0xf8   : > { %v4940_v41 = vld [vmem:[#allocation3 + $0xe8] ss:$36 sps:$4 sm:$0xff]   ;;  %v1542_v6 = vor.u32 %v1541_v17, %v1538_v7  ;;  %v1810_v4 = vld [vmem:[#allocation2 + $0x6c] sm:$0xf]  ;;  %3490 = vmatprep.mubr.bf16.mxu0 %v4937_v39  ;;  %v1557_v52 = vrot.slane %v1555_v31, 5  ;;  %v1744_v58 = vrot.slane %v1677_v32, 5 }
  0xf9   : > { %v1552_v42 = vor.u32 %v1551_v59, %v1547_v37  ;;  %v1742_v44 = vsel %vm5272_vm11, %v4129_v2, %v1741_v8  ;;  %v1743_v36 = vrot.slane %v1741_v8, 4  ;;  %v1806_v46 = vld [vmem:[#allocation2 + $0x3c] sm:$0xf]  ;;  %1826 = vst [vmem:[#allocation3 + $0x180] sm:$0xf] %v1810_v4  ;;  %3491 = vmatmul.mubr.bf16.gmra.mxu0 %v4940_v41  ;;  %v1946_v38 = vrot.slane %v1945_v5, 4 }
  0xfa   : > { %v1841_v48 = vld [vmem:[#allocation2 + $0x3c] sm:$0xf]  ;;  %1791 = vst [vmem:[#allocation3 + $0x134] sm:$0xf] %v1742_v44  ;;  %1822 = vst [vmem:[#allocation3 + $0xf0] sm:$0xf] %v1806_v46  ;;  %v5899_v1 = vpack.c.bf16 %v699_v62, %v699_v62 }
  0xfb   : > { %v1929_v49 = vshrl.u32 %v1841_v48, 16  ;;  %v1932_v56 = vshll.u32 %v1841_v48, 16  ;;  %v1543_v45 = vrot.slane %v1542_v6, 4  ;;  %v1553_v43 = vrot.slane %v1552_v42, 4  ;;  %v1811_v57 = vld [vmem:[#allocation2 + $0x70] sm:$0xf] }
  0xfc   : > { %v1843_v29 = vld [vmem:[#allocation2 + $0x44] sm:$0x1]  ;;  %v1745_v0 = vsel %vm5272_vm11, %v1743_v36, %v1744_v58  ;;  %1827 = vst [vmem:[#allocation3 + $0x1a4] sm:$0xf] %v1811_v57  ;;  %v1847_v53 = vld [vmem:[#allocation2 + $0x6c] sm:$0xf] }
  0xfd   : > { %v1931_v47 = vrot.slane %v1929_v49, 4  ;;  %v1934_v13 = vrot.slane %v1932_v56, 5  ;;  %v1948_v22 = vshll.u32 %v1843_v29, 16  ;;  %v1548_v51 = vsel %vm5339_vm14, %v1543_v45, %v1547_v37  ;;  %1792 = vst [vmem:[#allocation3 + $0x158] sm:$0xf] %v1745_v0 }
  0xfe   : > { %v1848_v40 = vld [vmem:[#allocation2 + $0x70] sm:$0xf]  ;;  %v502_v54 = vrot.slane %v5708_v25, 4  ;;  %v1558_v61 = vsel %vm5339_vm14, %v1553_v43, %v1557_v52  ;;  %1655 = vst [vmem:[#allocation3 + $0x130] sm:$0xf] %v1548_v51  ;;  %v1977_v7 = vshrl.u32 %v1847_v53, 16 }
  0xff   : > { %v700_v35 = vmax.f32 %v5895_v20, 0.0  ;;  %v1935_v60 = vor.u32 %v1934_v13, %v1931_v47  ;;  %v1950_v3 = vrot.slane %v1948_v22, 5  ;;  %1656 = vst [vmem:[#allocation3 + $0x154] sm:$0xf] %v1558_v61  ;;  %v1849_v55 = vld [vmem:[#allocation2 + $0x74] sm:$0x1] }
 0x100   : > { %v1980_v10 = vshll.u32 %v1847_v53, 16  ;;  %v1986_v33 = vshll.u32 %v1848_v40, 16  ;;  %v1979_v11 = vrot.slane %v1977_v7, 4  ;;  %v1990_v15 = vshrl.u32 %v1848_v40, 16  ;;  %v1430_v12 = vld [vmem:[#allocation2 + $0x60] sm:$0xf] }
 0x101   : > { %v1996_v23 = vshll.u32 %v1849_v55, 16  ;;  %v731_v24 = vshrl.u32 %v5899_v1, 16  ;;  %v1936_v34 = vrot.slane %v1935_v60, 4  ;;  %v1951_v26 = vsel %vm5339_vm14, %v1946_v38, %v1950_v3  ;;  %v1431_v30 = vld [vmem:[#allocation2 + $0x64] sm:$0xf] }
 0x102   : > { %v1982_v27 = vrot.slane %v1980_v10, 5  ;;  %v1988_v28 = vrot.slane %v1986_v33, 5  ;;  %2071 = vst [vmem:[#allocation3 + $0x118] sm:$0xf] %v1951_v26  ;;  %v1992_v19 = vrot.slane %v1990_v15, 4  ;;  %v1560_v2 = vshrl.u32 %v1430_v12, 16 }
 0x103   : > { %v1998_v31 = vrot.slane %v1996_v23, 5  ;;  %v1432_v32 = vld [vmem:[#allocation2 + $0x68] sm:$0x1]  ;;  %v1563_v17 = vshll.u32 %v1430_v12, 16  ;;  %v1941_v37 = vsel %vm5339_vm14, %v1936_v34, %v5885_v14  ;;  %v1569_v8 = vshll.u32 %v1431_v30, 16 }
 0x104   : > { %v1983_v59 = vor.u32 %v1982_v27, %v1979_v11  ;;  %v1573_v5 = vshrl.u32 %v1431_v30, 16  ;;  %v1678_v39 = vld [vmem:[#allocation2 + $0x60] sm:$0xe]  ;;  %v1679_v41 = vld [vmem:[#allocation2 + $0x64] sm:$0xf]  ;;  %v1993_v62 = vor.u32 %v1992_v19, %v1988_v28  ;;  %v1562_v6 = vrot.slane %v1560_v2, 4 }
 0x105   : > { %2070 = vst [vmem:[#allocation3 + $0xf4] sm:$0xf] %v1941_v37  ;;  %v1565_v42 = vrot.slane %v1563_v17, 5  ;;  %v1579_v44 = vshll.u32 %v1432_v32, 16  ;;  %v1680_v36 = vld [vmem:[#allocation2 + $0x68] sm:$0x1] }
 0x106   : > { %v1984_v4 = vrot.slane %v1983_v59, 4  ;;  %v1571_v46 = vrot.slane %v1569_v8, 5  ;;  %v1575_v48 = vrot.slane %v1573_v5, 4  ;;  %v4130_v52 = vrot.slane %v1678_v39, 9  ;;  %v4944_v58 = vld [vmem:[#allocation3 + $0x134] ss:$36 sps:$4 sm:$0xff]  }
 0x107   : > { %v4947_v49 = vld [vmem:[#allocation3 + $0x130] ss:$36 sps:$4 sm:$0xff]   ;;  %v1994_v56 = vrot.slane %v1993_v62, 4  ;;  %v1566_v45 = vor.u32 %v1565_v42, %v1562_v6  ;;  %v1581_v57 = vrot.slane %v1579_v44, 5  ;;  %v1748_v29 = vrot.slane %v1679_v41, 5  ;;  %3498 = vmatprep.mubr.bf16.mxu0 %v4944_v58 }
 0x108   : > { %v1989_v14 = vsel %vm5339_vm14, %v1984_v4, %v1988_v28  ;;  %v1576_v43 = vor.u32 %v1575_v48, %v1571_v46  ;;  %v1751_v53 = vrot.slane %v1680_v36, 5  ;;  %v586_v47 = vld [vmem:[#allocation2 + $0x80] sm:$0x1]  ;;  %v874_v13 = vld [vmem:[#allocation2 + $0x7c] sm:$0x8]  ;;  %3499 = vmatmul.mubr.bf16.gmra.mxu0 %v4947_v49  ;;  %v5925_v11 = vrot.slane %v731_v24, 7 }
 0x109   : > { %v1999_v38 = vsel %vm5339_vm14, %v1994_v56, %v1998_v31  ;;  %2074 = vst [vmem:[#allocation3 + $0x184] sm:$0xf] %v1989_v14  ;;  %v1567_v0 = vrot.slane %v1566_v45, 4  ;;  %v4941_v22 = vld [vmem:[#allocation3 + $0x13c] ss:$36 sps:$4 sm:$0xff]   ;;  %v1749_v40 = vsel %vm5272_vm11, %v4130_v52, %v1748_v29  ;;  %v1750_v61 = vrot.slane %v1748_v29, 4 }
 0x10a   : > { %2075 = vst [vmem:[#allocation3 + $0x1a8] sm:$0xf] %v1999_v38  ;;  %v1577_v51 = vrot.slane %v1576_v43, 4  ;;  %v587_v7 = vsel %vm5223_vm7, %v502_v54, %v586_v47  ;;  %v1812_v60 = vld [vmem:[#allocation2 + $0x78] sm:$0xf]  ;;  %v4115_v55 = vrot.slane %v874_v13, 11 }
 0x10b   : > { %v1572_v3 = vsel %vm5339_vm14, %v1567_v0, %v1571_v46  ;;  %1793 = vst [vmem:[#allocation3 + $0x17c] sm:$0xf] %v1749_v40  ;;  %588 = vst [vmem:[#allocation2 + $0x80] sm:$0x1] %v587_v7  ;;  %v1813_v10 = vld [vmem:[#allocation2 + $0x7c] sm:$0xf]  ;;  %v1752_v54 = vsel %vm5272_vm11, %v1750_v61, %v1751_v53  ;;  %v4334_v0 = vpack.c.bf16 %v700_v35, %v700_v35 }
 0x10c   : > { %1828 = vst [vmem:[#allocation3 + $0x1c8] sm:$0xf] %v1812_v60  ;;  %v1850_v33 = vld [vmem:[#allocation2 + $0x78] sm:$0xf]  ;;  %v4934_v15 = vld [vmem:[#allocation3 + $0xf4] ss:$36 sps:$4 sm:$0xff]   ;;  %v1582_v25 = vsel %vm5339_vm14, %v1577_v51, %v1581_v57 }
 0x10d   : > { %v4936_v23 = vld [vmem:[#allocation3 + $0xf0] ss:$36 sps:$4 sm:$0xff]   ;;  %1657 = vst [vmem:[#allocation3 + $0x178] sm:$0xf] %v1572_v3  ;;  %1829 = vst [vmem:[#allocation3 + $0x1ec] sm:$0xf] %v1813_v10  ;;  %3587 = vmatprep.mubr.bf16.mxu1 %v4934_v15 }
 0x10e   : > { %v2001_v12 = vshrl.u32 %v1850_v33, 16  ;;  %1658 = vst [vmem:[#allocation3 + $0x19c] sm:$0xf] %v1582_v25  ;;  %1794 = vst [vmem:[#allocation3 + $0x1a0] sm:$0xf] %v1752_v54  ;;  %v2004_v26 = vshll.u32 %v1850_v33, 16  ;;  %3588 = vmatmul.mubr.bf16.gmra.mxu1 %v4936_v23 }
 0x10f   : > { %v1851_v34 = vld [vmem:[#allocation2 + $0x7c] sm:$0xf]  ;;  %v1433_v27 = vld [vmem:[#allocation2 + $0x6c] sm:$0xf]  ;;  %v734_v28 = vshll.u32 %v5899_v1, 16  ;;  %3595 = vmatprep.mubr.bf16.mxu1 %v4941_v22  ;;  %v737_v3 = vrot.slane %v5925_v11, 4 }
 0x110   : > { %v2003_v24 = vrot.slane %v2001_v12, 4  ;;  %v2010_v30 = vshll.u32 %v1851_v34, 16  ;;  %v2014_v19 = vshrl.u32 %v1851_v34, 16  ;;  %v1434_v31 = vld [vmem:[#allocation2 + $0x70] sm:$0xf]  ;;  %v1584_v32 = vshrl.u32 %v1433_v27, 16 }
 0x111   : > { %v2006_v2 = vrot.slane %v2004_v26, 5  ;;  %v1435_v17 = vld [vmem:[#allocation2 + $0x74] sm:$0x1]  ;;  %v1587_v37 = vshll.u32 %v1433_v27, 16  ;;  %v1593_v59 = vshll.u32 %v1434_v31, 16  ;;  %v1597_v8 = vshrl.u32 %v1434_v31, 16 }
 0x112   : > { %v2012_v5 = vrot.slane %v2010_v30, 5  ;;  %v2016_v39 = vrot.slane %v2014_v19, 4  ;;  %v1586_v41 = vrot.slane %v1584_v32, 4  ;;  %v1603_v62 = vshll.u32 %v1435_v17, 16  ;;  %v4943_v6 = vld [vmem:[#allocation3 + $0x138] ss:$36 sps:$4 sm:$0xff]  }
 0x113   : > { %v2007_v42 = vor.u32 %v2006_v2, %v2003_v24  ;;  %v1589_v1 = vrot.slane %v1587_v37, 5  ;;  %v4948_v44 = vld [vmem:[#allocation3 + $0x184] ss:$36 sps:$4 sm:$0xff]   ;;  %v955_v36 = vld [vmem:[#allocation2 + $0x80] sm:$0x1]  ;;  %v1595_v46 = vrot.slane %v1593_v59, 5  ;;  %v736_v53 = vor.u32 %v734_v28, %v5925_v11 }
 0x114   : > { %v2017_v4 = vor.u32 %v2016_v39, %v2012_v5  ;;  %v1599_v48 = vrot.slane %v1597_v8, 4  ;;  %v1605_v52 = vrot.slane %v1603_v62, 5  ;;  %v956_v58 = vsel %vm5259_vm10, %v4115_v55, %v955_v36  ;;  %v1681_v45 = vld [vmem:[#allocation2 + $0x6c] sm:$0xe]  ;;  %v1682_v14 = vld [vmem:[#allocation2 + $0x70] sm:$0xf] }
 0x115   : > { %v2008_v49 = vrot.slane %v2007_v42, 4  ;;  %v1590_v56 = vor.u32 %v1589_v1, %v1586_v41  ;;  %v4951_v43 = vld [vmem:[#allocation3 + $0x17c] ss:$36 sps:$4 sm:$0xff]   ;;  %957 = vst [vmem:[#allocation2 + $0x80] sm:$0x1] %v956_v58  ;;  %v4131_v51 = vrot.slane %v1681_v45, 9 }
 0x116   : > { %v4954_v57 = vld [vmem:[#allocation3 + $0x178] ss:$36 sps:$4 sm:$0xff]   ;;  %v5934_v29 = vrot.slane %v2017_v4, 4  ;;  %v1600_v38 = vor.u32 %v1599_v48, %v1595_v46  ;;  %v1683_v22 = vld [vmem:[#allocation2 + $0x74] sm:$0x1]  ;;  %v1755_v40 = vrot.slane %v1682_v14, 5  ;;  %3506 = vmatprep.mubr.bf16.mxu0 %v4951_v43  ;;  %3596 = vmatmul.mubr.bf16.gmra.mxu1 %v4943_v6 }
 0x117   : > { %v2013_v47 = vsel %vm5339_vm14, %v2008_v49, %v2012_v5  ;;  %v1591_v13 = vrot.slane %v1590_v56, 4  ;;  %v1758_v7 = vrot.slane %v1683_v22, 5  ;;  %3507 = vmatmul.mubr.bf16.gmra.mxu0 %v4954_v57  ;;  %v761_v55 = vld [vmem:[#allocation2 + $0x84] sm:$0xf]  ;;  %3603 = vmatprep.mubr.bf16.mxu1 %v4948_v44  ;;  %v739_v33 = vshrl.u32 %v4334_v0, 16 }
 0x118   : > { %2076 = vst [vmem:[#allocation3 + $0x1cc] sm:$0xf] %v2013_v47  ;;  %v1601_v61 = vrot.slane %v1600_v38, 4  ;;  %v1756_v35 = vsel %vm5272_vm11, %v4131_v51, %v1755_v40  ;;  %v1757_v60 = vrot.slane %v1755_v40, 4  ;;  %v742_v15 = vshll.u32 %v4334_v0, 16 }
 0x119   : > { %v1596_v20 = vsel %vm5339_vm14, %v1591_v13, %v1595_v46  ;;  %1795 = vst [vmem:[#allocation3 + $0x1c4] sm:$0xf] %v1756_v35  ;;  %v762_v23 = vsel %vm5214_vm6, %v736_v53, %v761_v55  ;;  %v4950_v25 = vld [vmem:[#allocation3 + $0x180] ss:$36 sps:$4 sm:$0xff]   ;;  %v765_v12 = vld [vmem:[#allocation2 + $0x8c] sm:$0x1] }
 0x11a   : > { %v1606_v10 = vsel %vm5339_vm14, %v1601_v61, %v1605_v52  ;;  %1659 = vst [vmem:[#allocation3 + $0x1c0] sm:$0xf] %v1596_v20  ;;  %v1759_v54 = vsel %vm5272_vm11, %v1757_v60, %v1758_v7  ;;  %763 = vst [vmem:[#allocation2 + $0x84] sm:$0xf] %v762_v23  ;;  %v1436_v11 = vld [vmem:[#allocation2 + $0x78] sm:$0xf] }
 0x11b   : > { %1660 = vst [vmem:[#allocation3 + $0x1e4] sm:$0xf] %v1606_v10  ;;  %v1437_v34 = vld [vmem:[#allocation2 + $0x7c] sm:$0xf]  ;;  %v1684_v26 = vld [vmem:[#allocation2 + $0x78] sm:$0xe] }
 0x11c   : > { %1796 = vst [vmem:[#allocation3 + $0x1e8] sm:$0xf] %v1759_v54  ;;  %v741_v27 = vrot.slane %v739_v33, 7  ;;  %v1608_v28 = vshrl.u32 %v1436_v11, 16  ;;  %v1611_v24 = vshll.u32 %v1436_v11, 16  ;;  %v1617_v30 = vshll.u32 %v1437_v34, 16 }
 0x11d   : > { %v1685_v19 = vld [vmem:[#allocation2 + $0x7c] sm:$0xf]  ;;  %v1852_v31 = vld [vmem:[#allocation2 + $0x80] sm:$0x1]  ;;  %v1621_v18 = vshrl.u32 %v1437_v34, 16  ;;  %v4132_v2 = vrot.slane %v1684_v26, 9 }
 0x11e   : > { %v1438_v32 = vld [vmem:[#allocation2 + $0x80] sm:$0x1]  ;;  %v2020_v17 = vshll.u32 %v1852_v31, 16  ;;  %v744_v37 = vor.u32 %v742_v15, %v741_v27  ;;  %v746_v59 = vrot.slane %v741_v27, 4  ;;  %v1610_v8 = vrot.slane %v1608_v28, 4  ;;  %3604 = vmatmul.mubr.bf16.gmra.mxu1 %v4950_v25 }
 0x11f   : > { %v1686_v5 = vld [vmem:[#allocation2 + $0x80] sm:$0x1]  ;;  %v1613_v39 = vrot.slane %v1611_v24, 5  ;;  %v1619_v41 = vrot.slane %v1617_v30, 5  ;;  %v1623_v62 = vrot.slane %v1621_v18, 4  ;;  %v1627_v6 = vshll.u32 %v1438_v32, 16 }
 0x120   : > { %v2022_v42 = vrot.slane %v2020_v17, 5  ;;  %v745_v1 = vsel %vm5208_vm5, %v737_v3, %v744_v37  ;;  %v766_v44 = vsel %vm5223_vm7, %v746_v59, %v765_v12  ;;  %v1762_v36 = vrot.slane %v1685_v19, 5  ;;  %v2092_v4 = vld [vmem:[#allocation2 + $0x60] sm:$0xe]  ;;  %v2093_v46 = vld [vmem:[#allocation2 + $0x64] sm:$0xf] }
 0x121   : > { %764 = vst [vmem:[#allocation2 + $0x88] sm:$0xf] %v745_v1  ;;  %767 = vst [vmem:[#allocation2 + $0x8c] sm:$0x1] %v766_v44  ;;  %v1614_v48 = vor.u32 %v1613_v39, %v1610_v8  ;;  %v1624_v52 = vor.u32 %v1623_v62, %v1619_v41  ;;  %v1629_v58 = vrot.slane %v1627_v6, 5  ;;  %v1765_v49 = vrot.slane %v1686_v5, 5 }
 0x122   : > { %v2094_v56 = vld [vmem:[#allocation2 + $0x68] sm:$0x1]  ;;  %v2023_v45 = vsel %vm5339_vm14, %v5934_v29, %v2022_v42  ;;  %v779_v9 = vld [vmem:[#allocation2 + $0x84] sm:$0x2]  ;;  %v861_v14 = vld [vmem:[#allocation2 + $0x84] sm:$0x1]  ;;  %v1763_v43 = vsel %vm5272_vm11, %v4132_v2, %v1762_v36 }
 0x123   : > { %v1764_v57 = vrot.slane %v1762_v36, 4  ;;  %v4137_v38 = vrot.slane %v2092_v4, 9  ;;  %2077 = vst [vmem:[#allocation3 + $0x1f0] sm:$0xf] %v2023_v45  ;;  %v4958_v0 = vld [vmem:[#allocation3 + $0x1c4] ss:$36 sps:$4 sm:$0xff]  }
 0x124   : > { %v4961_v53 = vld [vmem:[#allocation3 + $0x1c0] ss:$36 sps:$4 sm:$0xff]   ;;  %v4104_v47 = vrot.slane %v779_v9, 9  ;;  %1797 = vst [vmem:[#allocation3 + $0x20c] sm:$0xf] %v1763_v43  ;;  %v1615_v13 = vrot.slane %v1614_v48, 4  ;;  %3514 = vmatprep.mubr.bf16.mxu0 %v4958_v0 }
 0x125   : > { %v1625_v22 = vrot.slane %v1624_v52, 4  ;;  %v1766_v51 = vsel %vm5272_vm11, %v1764_v57, %v1765_v49  ;;  %v2158_v40 = vrot.slane %v2093_v46, 5  ;;  %v2095_v61 = vld [vmem:[#allocation2 + $0x6c] sm:$0xe]  ;;  %v2161_v7 = vrot.slane %v2094_v56, 5  ;;  %3515 = vmatmul.mubr.bf16.gmra.mxu0 %v4961_v53  ;;  %v4537_v57 = vpop.f32.mrf.mxu1 }
 0x126   : > { %v862_v29 = vsel %vm5223_vm7, %v4104_v47, %v861_v14  ;;  %1798 = vst [vmem:[#allocation3 + $0x230] sm:$0xf] %v1766_v51  ;;  %v2096_v20 = vld [vmem:[#allocation2 + $0x70] sm:$0xf]  ;;  %v2097_v35 = vld [vmem:[#allocation2 + $0x74] sm:$0x1]  ;;  %v1620_v3 = vsel %vm5339_vm14, %v1615_v13, %v1619_v41 }
 0x127   : > { %v4138_v60 = vrot.slane %v2095_v61, 9  ;;  %863 = vst [vmem:[#allocation2 + $0x84] sm:$0x1] %v862_v29  ;;  %v1630_v55 = vsel %vm5339_vm14, %v1625_v22, %v1629_v58  ;;  %v2159_v10 = vsel %vm5272_vm11, %v4137_v38, %v2158_v40  ;;  %v2160_v33 = vrot.slane %v2158_v40, 4  ;;  %v2080_v15 = vld [vmem:[#allocation2 + $0x18] sm:$0xe]  ;;  %v4538_v13 = vpop.f32.mrf.mxu1 }
 0x128   : > { %v2081_v21 = vld [vmem:[#allocation2 + $0x1c] sm:$0xf]  ;;  %1661 = vst [vmem:[#allocation3 + $0x208] sm:$0xf] %v1620_v3  ;;  %1662 = vst [vmem:[#allocation3 + $0x22c] sm:$0xf] %v1630_v55  ;;  %v4539_v29 = vadd.f32 %v4538_v13, %v4537_v57 }
 0x129   : > { %2208 = vst [vmem:[#allocation3 + $0x140] sm:$0xf] %v2159_v10  ;;  %v2165_v23 = vrot.slane %v2096_v20, 5  ;;  %v2168_v25 = vrot.slane %v2097_v35, 5  ;;  %v2082_v54 = vld [vmem:[#allocation2 + $0x20] sm:$0x1]  ;;  %v2162_v28 = vsel %vm5272_vm11, %v2160_v33, %v2161_v7  ;;  %v4540_v35 = vpop.f32.mrf.mxu1 }
 0x12a   : > { %v4133_v12 = vrot.slane %v2080_v15, 9  ;;  %v2130_v11 = vrot.slane %v2081_v21, 5  ;;  %v875_v34 = vld [vmem:[#allocation2 + $0x88] sm:$0x8]  ;;  %v958_v26 = vld [vmem:[#allocation2 + $0x8c] sm:$0x1] }
 0x12b   : > { %v1815_v27 = vld [vmem:[#allocation2 + $0x88] sm:$0xf]  ;;  %v4116_v24 = vrot.slane %v875_v34, 11  ;;  %2209 = vst [vmem:[#allocation3 + $0x164] sm:$0xf] %v2162_v28  ;;  %v2166_v19 = vsel %vm5272_vm11, %v4138_v60, %v2165_v23  ;;  %v2167_v31 = vrot.slane %v2165_v23, 4  ;;  %v4473_v28 = vpop.f32.mrf.mxu0 }
 0x12c   : > { %1831 = vst [vmem:[#allocation3 + $0x234] sm:$0xf] %v1815_v27  ;;  %v1854_v30 = vld [vmem:[#allocation2 + $0x88] sm:$0xf]  ;;  %v2131_v32 = vsel %vm5272_vm11, %v4133_v12, %v2130_v11  ;;  %v2083_v18 = vld [vmem:[#allocation2 + $0x24] sm:$0xe] }
 0x12d   : > { %v4955_v2 = vld [vmem:[#allocation3 + $0x1cc] ss:$36 sps:$4 sm:$0xff]   ;;  %v2034_v37 = vshll.u32 %v1854_v30, 16  ;;  %2210 = vst [vmem:[#allocation3 + $0x188] sm:$0xf] %v2166_v19  ;;  %v959_v59 = vsel %vm5259_vm10, %v4116_v24, %v958_v26  ;;  %v2038_v8 = vshrl.u32 %v1854_v30, 16  ;;  %v2169_v5 = vsel %vm5272_vm11, %v2167_v31, %v2168_v25 }
 0x12e   : > { %v4957_v17 = vld [vmem:[#allocation3 + $0x1c8] ss:$36 sps:$4 sm:$0xff]   ;;  %2200 = vst [vmem:[#allocation3 + $0x20] sm:$0xf] %v2131_v32  ;;  %v2132_v39 = vrot.slane %v2130_v11, 4  ;;  %3611 = vmatprep.mubr.bf16.mxu1 %v4955_v2  ;;  %v2133_v42 = vrot.slane %v2082_v54, 5  ;;  %v4541_v54 = vpop.f32.mrf.mxu1 }
 0x12f   : > { %v2084_v41 = vld [vmem:[#allocation2 + $0x28] sm:$0xf]  ;;  %v2085_v62 = vld [vmem:[#allocation2 + $0x2c] sm:$0x1]  ;;  %960 = vst [vmem:[#allocation2 + $0x8c] sm:$0x1] %v959_v59  ;;  %3612 = vmatmul.mubr.bf16.gmra.mxu1 %v4957_v17  ;;  %v4542_v32 = vadd.f32 %v4541_v54, %v4540_v35 }
 0x130   : > { %v2036_v6 = vrot.slane %v2034_v37, 5  ;;  %2211 = vst [vmem:[#allocation3 + $0x1ac] sm:$0xf] %v2169_v5  ;;  %v4134_v1 = vrot.slane %v2083_v18, 9  ;;  %v2137_v44 = vrot.slane %v2084_v41, 5  ;;  %v2040_v63 = vrot.slane %v2038_v8, 4  ;;  %v4543_v18 = vpop.f32.mrf.mxu1 }
 0x131   : > { %v2098_v36 = vld [vmem:[#allocation2 + $0x78] sm:$0xe]  ;;  %v1814_v4 = vld [vmem:[#allocation2 + $0x84] sm:$0xf]  ;;  %v2140_v48 = vrot.slane %v2085_v62, 5  ;;  %v2134_v56 = vsel %vm5272_vm11, %v2132_v39, %v2133_v42  ;;  %v4474_v39 = vpop.f32.mrf.mxu0 }
 0x132   : > { %v1853_v46 = vld [vmem:[#allocation2 + $0x84] sm:$0xf]  ;;  %1830 = vst [vmem:[#allocation3 + $0x210] sm:$0xf] %v1814_v4  ;;  %v4966_v49 = vld [vmem:[#allocation3 + $0x20c] ss:$36 sps:$4 sm:$0xff]   ;;  %v2138_v45 = vsel %vm5272_vm11, %v4134_v1, %v2137_v44  ;;  %v2041_v9 = vor.u32 %v2040_v63, %v2036_v6  ;;  %v4475_v50 = vadd.f32 %v4474_v39, %v4473_v28  ;;  %v4544_v1 = vpop.f32.mrf.mxu1 }
 0x133   : > { %v2025_v52 = vshrl.u32 %v1853_v46, 16  ;;  %v2028_v58 = vshll.u32 %v1853_v46, 16  ;;  %v4968_v14 = vld [vmem:[#allocation3 + $0x208] ss:$36 sps:$4 sm:$0xff]   ;;  %2201 = vst [vmem:[#allocation3 + $0x44] sm:$0xf] %v2134_v56  ;;  %3522 = vmatprep.mubr.bf16.mxu0 %v4966_v49  ;;  %v4476_v63 = vpop.f32.mrf.mxu0 }
 0x134   : > { %v2139_v43 = vrot.slane %v2137_v44, 4  ;;  %2202 = vst [vmem:[#allocation3 + $0x68] sm:$0xf] %v2138_v45  ;;  %3523 = vmatmul.mubr.bf16.gmra.mxu0 %v4968_v14  ;;  %v4139_v47 = vrot.slane %v2098_v36, 9  ;;  %v2099_v51 = vld [vmem:[#allocation2 + $0x7c] sm:$0xf]  ;;  %v6002_v49 = vadd.f32 %v4539_v29, %v4475_v50  ;;  %v4546_v56 = vpop.f32.mrf.mxu1 }
 0x135   : > { %v2027_v38 = vrot.slane %v2025_v52, 4  ;;  %v2030_v0 = vrot.slane %v2028_v58, 5  ;;  %v2100_v40 = vld [vmem:[#allocation2 + $0x80] sm:$0x1]  ;;  %v2101_v61 = vld [vmem:[#allocation2 + $0x84] sm:$0xe] }
 0x136   : > { %v2141_v53 = vsel %vm5272_vm11, %v2139_v43, %v2140_v48  ;;  %v1855_v7 = vld [vmem:[#allocation2 + $0x8c] sm:$0x1]  ;;  %v2042_v20 = vrot.slane %v2041_v9, 4  ;;  %v2172_v55 = vrot.slane %v2099_v51, 5  ;;  %v2175_v10 = vrot.slane %v2100_v40, 5  ;;  %v4477_v9 = vpop.f32.mrf.mxu0 }
 0x137   : > { %v2031_v22 = vor.u32 %v2030_v0, %v2027_v38  ;;  %2203 = vst [vmem:[#allocation3 + $0x8c] sm:$0xf] %v2141_v53  ;;  %v2044_v3 = vshll.u32 %v1855_v7, 16  ;;  %v2102_v33 = vld [vmem:[#allocation2 + $0x88] sm:$0xf]  ;;  %v4140_v21 = vrot.slane %v2101_v61, 9  ;;  %v4545_v48 = vadd.f32 %v4544_v1, %v4543_v18  ;;  %v4547_v38 = vpop.f32.mrf.mxu1 }
 0x138   : > { %v2103_v15 = vld [vmem:[#allocation2 + $0x8c] sm:$0x1]  ;;  %v2179_v23 = vrot.slane %v2102_v33, 5  ;;  %v2086_v25 = vld [vmem:[#allocation2 + $0x30] sm:$0xe]  ;;  %v2173_v26 = vsel %vm5272_vm11, %v4139_v47, %v2172_v55  ;;  %v2174_v27 = vrot.slane %v2172_v55, 4  ;;  %v4478_v57 = vadd.f32 %v4477_v9, %v4476_v63  ;;  %v4479_v0 = vpop.f32.mrf.mxu0 }
 0x139   : > { %v2032_v60 = vrot.slane %v2031_v22, 4  ;;  %v2046_v11 = vrot.slane %v2044_v3, 5  ;;  %2212 = vst [vmem:[#allocation3 + $0x1d0] sm:$0xf] %v2173_v26  ;;  %v2182_v19 = vrot.slane %v2103_v15, 5  ;;  %v4135_v59 = vrot.slane %v2086_v25, 9  ;;  %v4549_v29 = vpop.f32.mrf.mxu1 }
 0x13a   : > { %v4971_v34 = vld [vmem:[#allocation3 + $0x20] ss:$36 sps:$4 sm:$0xff]   ;;  %v2180_v24 = vsel %vm5272_vm11, %v4140_v21, %v2179_v23  ;;  %v2181_v30 = vrot.slane %v2179_v23, 4  ;;  %v2176_v17 = vsel %vm5272_vm11, %v2174_v27, %v2175_v10  ;;  %v2088_v37 = vld [vmem:[#allocation2 + $0x38] sm:$0x1]  ;;  %v4548_v53 = vadd.f32 %v4547_v38, %v4546_v56  ;;  %v4480_v61 = vpop.f32.mrf.mxu0 }
 0x13b   : > { %v2037_v12 = vsel %vm5339_vm14, %v2032_v60, %v2036_v6  ;;  %v2087_v31 = vld [vmem:[#allocation2 + $0x34] sm:$0xf]  ;;  %v2047_v2 = vsel %vm5339_vm14, %v2042_v20, %v2046_v11  ;;  %4745 = vmatprep.mubr.bf16.mxu0 %v4971_v34  ;;  %2214 = vst [vmem:[#allocation3 + $0x218] sm:$0xf] %v2180_v24  ;;  %v2089_v5 = vld [vmem:[#allocation2 + $0x3c] sm:$0xe]  ;;  %v6010_v22 = vadd.f32 %v4542_v32, %v4478_v57  ;;  %v4550_v35 = vpop.f32.mrf.mxu1 }
 0x13c   : > { %2078 = vst [vmem:[#allocation3 + $0x214] sm:$0xf] %v2037_v12  ;;  %v2144_v8 = vrot.slane %v2087_v31, 5  ;;  %2079 = vst [vmem:[#allocation3 + $0x238] sm:$0xf] %v2047_v2  ;;  %v2183_v62 = vsel %vm5272_vm11, %v2181_v30, %v2182_v19  ;;  %v2147_v6 = vrot.slane %v2088_v37, 5  ;;  %v4481_v7 = vadd.f32 %v4480_v61, %v4479_v0  ;;  %v4482_v20 = vpop.f32.mrf.mxu0 }
 0x13d   : > { %2213 = vst [vmem:[#allocation3 + $0x1f4] sm:$0xf] %v2176_v17  ;;  %v4136_v42 = vrot.slane %v2089_v5, 9  ;;  %2215 = vst [vmem:[#allocation3 + $0x23c] sm:$0xf] %v2183_v62  ;;  %v4551_v3 = vadd.f32 %v4550_v35, %v4549_v29  ;;  %v4552_v16 = vpop.f32.mrf.mxu1 }
 0x13e   : > { %v4972_v41 = vld [vmem:[#allocation3 + $0x68] ss:$36 sps:$4 sm:$0xff]   ;;  %v2145_v44 = vsel %vm5272_vm11, %v4135_v59, %v2144_v8  ;;  %v2146_v36 = vrot.slane %v2144_v8, 4  ;;  %v2090_v4 = vld [vmem:[#allocation2 + $0x40] sm:$0xf]  ;;  %v6012_v60 = vadd.f32 %v4545_v48, %v4481_v7  ;;  %v4483_v10 = vpop.f32.mrf.mxu0 }
 0x13f   : > { %v2091_v46 = vld [vmem:[#allocation2 + $0x44] sm:$0x1]  ;;  %4746 = vmatmul.mubr.bf16.vlgmr.msra.gmra.mxu0 %v4972_v41  ;;  %2204 = vst [vmem:[#allocation3 + $0xb0] sm:$0xf] %v2145_v44  ;;  %v2151_v52 = vrot.slane %v2090_v4, 5  ;;  %v4484_v33 = vadd.f32 %v4483_v10, %v4482_v20  ;;  %v4553_v21 = vpop.f32.mrf.mxu1 }
 0x140   : > { %v2154_v58 = vrot.slane %v2091_v46, 5  ;;  %v2148_v45 = vsel %vm5272_vm11, %v2146_v36, %v2147_v6  ;;  %v4969_v47 = vld [vmem:[#allocation3 + $0x140] ss:$36 sps:$4 sm:$0xff]   ;;  %v4964_v40 = vld [vmem:[#allocation3 + $0x210] ss:$36 sps:$4 sm:$0xff]   ;;  %v4485_v15 = vpop.f32.mrf.mxu0  ;;  %v4554_v12 = vadd.f32 %v4553_v21, %v4552_v16 }
 0x141   : > { %2205 = vst [vmem:[#allocation3 + $0xd4] sm:$0xf] %v2148_v45  ;;  %v2152_v14 = vsel %vm5272_vm11, %v4136_v42, %v2151_v52  ;;  %v2153_v43 = vrot.slane %v2151_v52, 4  ;;  %v4970_v23 = vld [vmem:[#allocation3 + $0x188] ss:$36 sps:$4 sm:$0xff]   ;;  %v6014_v54 = vadd.f32 %v4548_v53, %v4484_v33 }
 0x142   : > { %2206 = vst [vmem:[#allocation3 + $0xf8] sm:$0xf] %v2152_v14  ;;  %v4486_v34 = vpop.f32.mrf.mxu0 }
 0x143   : > { %v2155_v13 = vsel %vm5272_vm11, %v2153_v43, %v2154_v58  ;;  %v4962_v51 = vld [vmem:[#allocation3 + $0x214] ss:$36 sps:$4 sm:$0xff]   ;;  %v4487_v26 = vadd.f32 %v4486_v34, %v4485_v15 }
 0x144   : > { %2207 = vst [vmem:[#allocation3 + $0x11c] sm:$0xf] %v2155_v13  ;;  %3619 = vmatprep.mubr.bf16.mxu1 %v4962_v51  ;;  %v4973_v11 = vld [vmem:[#allocation3 + $0x1d0] ss:$36 sps:$4 sm:$0xff]   ;;  %v4488_v27 = vpop.f32.mrf.mxu0  ;;  %v4974_v19 = vld [vmem:[#allocation3 + $0x218] ss:$36 sps:$4 sm:$0xff]  }
 0x145   : > { %3620 = vmatmul.mubr.bf16.gmra.mxu1 %v4964_v40  ;;  %v6016_v28 = vadd.f32 %v4551_v3, %v4487_v26 }
 0x146   : > { %4753 = vmatprep.mubr.bf16.mxu1 %v4969_v47  ;;  %v4489_v24 = vpop.f32.mrf.mxu0 }
 0x147   : > { %v4490_v30 = vadd.f32 %v4489_v24, %v4488_v27  ;;  %v4555_v37 = vpop.f32.mrf.mxu1 }
 0x148   : > { %v4975_v55 = vld [vmem:[#allocation3 + $0xb0] ss:$36 sps:$4 sm:$0xff]   ;;  %v4491_v32 = vpop.f32.mrf.mxu0 }
 0x149   : > { %4749 = vmatprep.mubr.bf16.mxu0 %v4975_v55  ;;  %v6018_v31 = vadd.f32 %v4554_v12, %v4490_v30  ;;  %v4556_v5 = vpop.f32.mrf.mxu1 }
 0x14a   : > { %v4492_v18 = vpop.f32.mrf.mxu0  ;;  %v4557_v39 = vadd.f32 %v4556_v5, %v4555_v37 }
 0x14b   : > { %v4976_v25 = vld [vmem:[#allocation3 + $0xf8] ss:$36 sps:$4 sm:$0xff]   ;;  %v4493_v2 = vadd.f32 %v4492_v18, %v4491_v32  ;;  %v4558_v41 = vpop.f32.mrf.mxu1 }
 0x14c   : > { %4750 = vmatmul.mubr.bf16.gmra.mxu0 %v4976_v25  ;;  %v4494_v17 = vpop.f32.mrf.mxu0 }
 0x14d   : > { %4754 = vmatmul.mubr.bf16.vlgmr.msra.gmra.mxu1 %v4970_v23  ;;  %v6020_v62 = vadd.f32 %v4557_v39, %v4493_v2  ;;  %v4559_v6 = vpop.f32.mrf.mxu1 }
 0x14e   : > { %4757 = vmatprep.mubr.bf16.mxu1 %v4973_v11  ;;  %v4495_v59 = vpop.f32.mrf.mxu0  ;;  %v4560_v42 = vadd.f32 %v4559_v6, %v4558_v41 }
 0x14f   : > { %v4496_v8 = vadd.f32 %v4495_v59, %v4494_v17 }
 0x151   : > { %v6022_v50 = vadd.f32 %v4560_v42, %v4496_v8 }
 0x155   : > { %4758 = vmatmul.mubr.bf16.gmra.mxu1 %v4974_v19 }
 0x15f   : > { %v4561_v1 = vpop.f32.mrf.mxu1 }
 0x161   : > { %v4562_v44 = vpop.f32.mrf.mxu1 }
 0x162   : > { %v4563_v36 = vadd.f32 %v4562_v44, %v4561_v1 }
 0x163   : > { %v4564_v4 = vpop.f32.mrf.mxu1  ;;  %v4497_v46 = vpop.f32.mrf.mxu0 }
 0x165   : > { %v4565_v63 = vpop.f32.mrf.mxu1  ;;  %v4498_v48 = vpop.f32.mrf.mxu0 }
 0x166   : > { %v4566_v52 = vadd.f32 %v4565_v63, %v4564_v4  ;;  %v4499_v58 = vadd.f32 %v4498_v48, %v4497_v46 }
 0x167   : > { %v4567_v56 = vpop.f32.mrf.mxu1  ;;  %v4500_v45 = vpop.f32.mrf.mxu0 }
 0x168   : > { %v6024_v9 = vadd.f32 %v4563_v36, %v4499_v58 }
 0x169   : > { %v4568_v14 = vpop.f32.mrf.mxu1  ;;  %v4501_v43 = vpop.f32.mrf.mxu0 }
 0x16a   : > { %v4569_v57 = vadd.f32 %v4568_v14, %v4567_v56  ;;  %v4502_v38 = vadd.f32 %v4501_v43, %v4500_v45 }
 0x16b   : > { %v4570_v0 = vpop.f32.mrf.mxu1  ;;  %v4503_v53 = vpop.f32.mrf.mxu0 }
 0x16c   : > { %v6026_v47 = vadd.f32 %v4566_v52, %v4502_v38 }
 0x16d   : > { %v4571_v13 = vpop.f32.mrf.mxu1  ;;  %v4504_v51 = vpop.f32.mrf.mxu0 }
 0x16e   : > { %v4572_v40 = vadd.f32 %v4571_v13, %v4570_v0  ;;  %v4505_v61 = vadd.f32 %v4504_v51, %v4503_v53 }
 0x16f   : > { %v4506_v29 = vpop.f32.mrf.mxu0 }
 0x170   : > { %v6028_v7 = vadd.f32 %v4569_v57, %v4505_v61 }
 0x171   : > { %v4507_v20 = vpop.f32.mrf.mxu0 }
 0x172   : > { %6231 = vst [vmem:[#allocation5_spill] sm:$0xff] %v6028_v7  ;;  %v4508_v35 = vadd.f32 %v4507_v20, %v4506_v29  ;;  %v4573_v3 = vpop.f32.mrf.mxu1 }
 0x173   : > { %v4509_v55 = vpop.f32.mrf.mxu0 }
 0x174   : > { %v6030_v10 = vadd.f32 %v4572_v40, %v4508_v35  ;;  %v4574_v16 = vpop.f32.mrf.mxu1 }
 0x175   : > { %v4510_v33 = vpop.f32.mrf.mxu0  ;;  %v4575_v15 = vadd.f32 %v4574_v16, %v4573_v3 }
 0x176   : > { %6232 = vst [vmem:[#allocation6_spill] sm:$0xff] %v6030_v10  ;;  %v4511_v21 = vadd.f32 %v4510_v33, %v4509_v55  ;;  %v4576_v23 = vpop.f32.mrf.mxu1 }
 0x177   : > { %v4512_v25 = vpop.f32.mrf.mxu0 }
 0x178   : > { %v6032_v12 = vadd.f32 %v4575_v15, %v4511_v21  ;;  %v4577_v11 = vpop.f32.mrf.mxu1 }
 0x179   : > { %v4513_v34 = vpop.f32.mrf.mxu0  ;;  %v4578_v26 = vadd.f32 %v4577_v11, %v4576_v23 }
 0x17a   : > { %6233 = vst [vmem:[#allocation7_spill] sm:$0xff] %v6032_v12  ;;  %v4514_v27 = vadd.f32 %v4513_v34, %v4512_v25 }
 0x17c   : > { %v6034_v24 = vadd.f32 %v4578_v26, %v4514_v27 }
 0x17e   : > { %6234 = vst [vmem:[#allocation8_spill] sm:$0xff] %v6034_v24 }
 0x189   : > { %v4579_v30 = vpop.f32.mrf.mxu1 }
 0x18b   : > { %v4515_v19 = vpop.f32.mrf.mxu0  ;;  %v4580_v32 = vpop.f32.mrf.mxu1 }
 0x18c   : > { %v4581_v18 = vadd.f32 %v4580_v32, %v4579_v30 }
 0x18d   : > { %v4516_v2 = vpop.f32.mrf.mxu0  ;;  %v4582_v17 = vpop.f32.mrf.mxu1 }
 0x18e   : > { %v4517_v37 = vadd.f32 %v4516_v2, %v4515_v19 }
 0x18f   : > { %v4518_v59 = vpop.f32.mrf.mxu0  ;;  %v4583_v8 = vpop.f32.mrf.mxu1 }
 0x190   : > { %v6036_v5 = vadd.f32 %v4581_v18, %v4517_v37  ;;  %v4584_v39 = vadd.f32 %v4583_v8, %v4582_v17 }
 0x191   : > { %v4519_v41 = vpop.f32.mrf.mxu0  ;;  %v4665_v4 = vpop.f32.mrf.mxu1 }
 0x192   : > { %6235 = vst [vmem:[#allocation9_spill] sm:$0xff] %v6036_v5  ;;  %v4520_v6 = vadd.f32 %v4519_v41, %v4518_v59 }
 0x193   : > { %v4601_v42 = vpop.f32.mrf.mxu0  ;;  %v4666_v52 = vpop.f32.mrf.mxu1 }
 0x194   : > { %v6038_v1 = vadd.f32 %v4584_v39, %v4520_v6 }
 0x195   : > { %v4602_v44 = vpop.f32.mrf.mxu0  ;;  %v4668_v56 = vpop.f32.mrf.mxu1 }
 0x196   : > { %6236 = vst [vmem:[#allocation10_spill] sm:$0xff] %v6038_v1  ;;  %v4603_v36 = vadd.f32 %v4602_v44, %v4601_v42 }
 0x197   : > { %v4604_v46 = vpop.f32.mrf.mxu0  ;;  %v4669_v43 = vpop.f32.mrf.mxu1 }
 0x198   : > { %v6041_v63 = vadd.f32 %v4603_v36, %v6002_v49 }
 0x199   : > { %v4605_v48 = vpop.f32.mrf.mxu0  ;;  %v4671_v38 = vpop.f32.mrf.mxu1 }
 0x19b   : > { %v4672_v13 = vpop.f32.mrf.mxu1 }
 0x19d   : > { %v4607_v58 = vpop.f32.mrf.mxu0  ;;  %v4674_v40 = vpop.f32.mrf.mxu1 }
 0x19f   : > { %v4608_v45 = vpop.f32.mrf.mxu0  ;;  %v4675_v29 = vpop.f32.mrf.mxu1 }
 0x1a0   : > { %v4609_v7 = vadd.f32 %v4608_v45, %v4607_v58 }
 0x1a1   : > { %v4610_v14 = vpop.f32.mrf.mxu0 }
 0x1a3   : > { %v4611_v57 = vpop.f32.mrf.mxu0 }
 0x1ab   : > { %v4613_v0 = vpop.f32.mrf.mxu0 }
 0x1ad   : > { %v4614_v53 = vpop.f32.mrf.mxu0 }
 0x1ae   : > { %v4615_v45 = vadd.f32 %v4614_v53, %v4613_v0 }
 0x1af   : > { %v4616_v51 = vpop.f32.mrf.mxu0 }
 0x1b1   : > { %v4617_v61 = vpop.f32.mrf.mxu0 }
 0x1b4   : > { %v6047_v35 = vpop.f32.mrf.mxu1 }
 0x1b6   : > { %v6051_v55 = vpop.f32.mrf.mxu1 }
 0x1b8   : > { %v6055_v33 = vpop.f32.mrf.mxu1 }
 0x1b9   : > { %v6043_v20 = vpop.f32.mrf.mxu0 }
 0x1ba   : > { %v6059_v21 = vpop.f32.mrf.mxu1 }
 0x1bb   : > { %v6045_v49 = vpop.f32.mrf.mxu0 }
 0x1bd   : > { %v6049_v3 = vpop.f32.mrf.mxu0 }
 0x1bf   : > { %v6053_v16 = vpop.f32.mrf.mxu0 }
 0x1c8   : > { %v6057_v15 = vpop.f32.mrf.mxu0 }
 0x1ca   : > { %v4626_v23 = vpop.f32.mrf.mxu0 }
 0x1cc   : > { %v4628_v11 = vpop.f32.mrf.mxu0 }
 0x1ce   : > { %v6061_v25 = vpop.f32.mrf.mxu1  ;;  %v4629_v27 = vpop.f32.mrf.mxu0 }
 0x1cf   : > { %v4630_v53 = vadd.f32 %v4629_v27, %v4628_v11 }
 0x1d0   : > { %v6063_v34 = vpop.f32.mrf.mxu1 }
 0x1d1   : > { %v4685_v11 = vadd.f32 %v6063_v34, %v6061_v25 }
 0x1d2   : > { %v6065_v26 = vpop.f32.mrf.mxu1 }
 0x1d4   : > { %v6067_v30 = vpop.f32.mrf.mxu1 }
 0x1d6   : > { %v6069_v19 = vpop.f32.mrf.mxu1 }
 0x1d7   : > { %v6071_v32 = vpop.f32.mrf.mxu0 }
 0x1d8   : > { %v6073_v18 = vpop.f32.mrf.mxu1 }
 0x1d9   : > { %v6075_v2 = vpop.f32.mrf.mxu0 }
 0x1da   : > { %v6077_v17 = vpop.f32.mrf.mxu1 }
 0x1db   : > { %6237 = vst [vmem:[#allocation11_spill] sm:$0xff] %v6077_v17  ;;  %v6079_v37 = vpop.f32.mrf.mxu0  ;;  %v4670_v17 = vadd.f32 %v4669_v43, %v4668_v56  ;;  %v4621_v56 = vadd.f32 %v6045_v49, %v6043_v20  ;;  %v3485_v43 = vadd.f32 %v4615_v45, %v6016_v28  ;;  %v4633_v20 = vadd.f32 %v6075_v2, %v6071_v32 }
 0x1dc   : > { %v6081_v59 = vpop.f32.mrf.mxu1 }
 0x1dd   : > { %6238 = vst [vmem:[#allocation12_spill] sm:$0xff] %v6081_v59  ;;  %v4635_v8 = vpop.f32.mrf.mxu0  ;;  %v4676_v59 = vadd.f32 %v4675_v29, %v4674_v40  ;;  %v3493_v29 = vadd.f32 %v4621_v56, %v6020_v62 }
 0x1de   : > { %v6083_v39 = vpop.f32.mrf.mxu1 }
 0x1df   : > { %6239 = vst [vmem:[#allocation13_spill] sm:$0xff] %v6083_v39  ;;  %v4667_v39 = vadd.f32 %v4666_v52, %v4665_v4  ;;  %v4618_v4 = vadd.f32 %v4617_v61, %v4616_v51  ;;  %v4682_v61 = vadd.f32 %v6059_v21, %v6055_v33  ;;  %v3504_v33 = vadd.f32 %v4630_v53, %v6026_v47 }
 0x1e0   : > { %v6087_v6 = vpop.f32.mrf.mxu1  ;;  %v4688_v21 = vadd.f32 %v6067_v30, %v6065_v26  ;;  %v6258_v26 = vld [vmem:[#allocation6_spill] sm:$0xff] }
 0x1e1   : > { %6241 = vst [vmem:[#allocation15_spill] sm:$0xff] %v6087_v6  ;;  %v4612_v6 = vadd.f32 %v4611_v57, %v4610_v14  ;;  %v3566_v57 = vadd.f32 %v4667_v39, %v6041_v63  ;;  %v4627_v63 = vadd.f32 %v4626_v23, %v6057_v15  ;;  %v6255_v39 = vld [vmem:[#allocation5_spill] sm:$0xff] }
 0x1e2   : > { %v6093_v36 = vpop.f32.mrf.mxu1 }
 0x1e3   : > { %6244 = vst [vmem:[#allocation18_spill] sm:$0xff] %v6093_v36  ;;  %v4606_v36 = vadd.f32 %v4605_v48, %v4604_v46 }
 0x1e4   : > { %v6097_v12 = vpop.f32.mrf.mxu1 }
 0x1e5   : > { %v6085_v41 = vpop.f32.mrf.mxu0  ;;  %6246 = vst [vmem:[#allocation20_spill] sm:$0xff] %v6097_v12  ;;  %v3477_v12 = vadd.f32 %v4609_v7, %v6012_v60 }
 0x1e6   : > { %6240 = vst [vmem:[#allocation14_spill] sm:$0xff] %v6085_v41  ;;  %v6253_v25 = vld [vmem:[#allocation13_spill] sm:$0xff] }
 0x1e7   : > { %v6089_v42 = vpop.f32.mrf.mxu0 }
 0x1e8   : > { %6242 = vst [vmem:[#allocation16_spill] sm:$0xff] %v6089_v42  ;;  %v6254_v34 = vld [vmem:[#allocation15_spill] sm:$0xff] }
 0x1e9   : > { %v6091_v44 = vpop.f32.mrf.mxu0 }
 0x1ea   : > { %6243 = vst [vmem:[#allocation17_spill] sm:$0xff] %v6091_v44 }
 0x1eb   : > { %v6095_v24 = vpop.f32.mrf.mxu0 }
 0x1ec   : > { %6245 = vst [vmem:[#allocation19_spill] sm:$0xff] %v6095_v24  ;;  %v4673_v24 = vadd.f32 %v4672_v13, %v4671_v38 }
 0x1ed   : > { %v6262_v53 = vld [vmem:[#allocation14_spill] sm:$0xff] }
 0x1ee   : > { %v3574_v14 = vadd.f32 %v4673_v24, %v3477_v12  ;;  %v3488_v24 = vadd.f32 %v4618_v4, %v6018_v31  ;;  %v4679_v31 = vadd.f32 %v6051_v55, %v6047_v35  ;;  %v3501_v55 = vadd.f32 %v4627_v63, %v6024_v9 }
 0x1ef   : > { %v6101_v5 = vpop.f32.mrf.mxu1  ;;  %v3509_v9 = vadd.f32 %v4633_v20, %v6255_v39 }
 0x1f0   : > { %6248 = vst [vmem:[#allocation22_spill] sm:$0xff] %v6101_v5  ;;  %v3582_v45 = vadd.f32 %v4679_v31, %v3485_v43  ;;  %v6263_v43 = vld [vmem:[#allocation16_spill] sm:$0xff] }
 0x1f1   : > { %v6107_v42 = vpop.f32.mrf.mxu1  ;;  %v6264_v31 = vld [vmem:[#allocation17_spill] sm:$0xff] }
 0x1f3   : > { %v6113_v5 = vpop.f32.mrf.mxu1  ;;  %v6265_v20 = vld [vmem:[#allocation19_spill] sm:$0xff] }
 0x1f4   : > { %v6099_v1 = vpop.f32.mrf.mxu0 }
 0x1f5   : > { %6247 = vst [vmem:[#allocation21_spill] sm:$0xff] %v6099_v1  ;;  %v3480_v1 = vadd.f32 %v4612_v6, %v6014_v54  ;;  %v6118_v48 = vpop.f32.mrf.mxu1  ;;  %v6256_v6 = vld [vmem:[#allocation18_spill] sm:$0xff] }
 0x1f6   : > { %v6103_v10 = vpop.f32.mrf.mxu0 }
 0x1f7   : > { %6249 = vst [vmem:[#allocation23_spill] sm:$0xff] %v6103_v10  ;;  %v3577_v46 = vadd.f32 %v4676_v59, %v3480_v1  ;;  %v4624_v1 = vadd.f32 %v6053_v16, %v6049_v3  ;;  %v4636_v3 = vadd.f32 %v4635_v8, %v6079_v37  ;;  %v6251_v37 = vld [vmem:[#allocation11_spill] sm:$0xff]  ;;  %v6252_v59 = vld [vmem:[#allocation12_spill] sm:$0xff] }
 0x1f8   : > { %v6105_v41 = vpop.f32.mrf.mxu0  ;;  %v4694_v8 = vadd.f32 %v6252_v59, %v6251_v37 }
 0x1f9   : > { %6250 = vst [vmem:[#allocation24_spill] sm:$0xff] %v6105_v41  ;;  %v3472_v41 = vadd.f32 %v4606_v36, %v6010_v22  ;;  %v3496_v35 = vadd.f32 %v4624_v1, %v6022_v50  ;;  %v4697_v50 = vadd.f32 %v6254_v34, %v6253_v25  ;;  %v6257_v36 = vld [vmem:[#allocation20_spill] sm:$0xff]  ;;  %v3512_v30 = vadd.f32 %v4636_v3, %v6258_v26  ;;  %v6266_v3 = vld [vmem:[#allocation9_spill] sm:$0xff]  ;;  %v6268_v34 = vld [vmem:[#allocation7_spill] sm:$0xff] }
 0x1fa   : > { %v6109_v44 = vpop.f32.mrf.mxu0  ;;  %v3601_v1 = vadd.f32 %v4694_v8, %v3504_v33 }
 0x1fb   : > { %v3569_v38 = vadd.f32 %v4670_v17, %v3472_v41  ;;  %v4691_v17 = vadd.f32 %v6073_v18, %v6069_v19 }
 0x1fd   : > { %v3598_v56 = vadd.f32 %v4691_v17, %v3501_v55 }
 0x1ff   : > { %v4747_v10 = vpop.f32.mrf.mxu0 }
 0x200   : > { %v3671_v60 = vadd.f32 %v4747_v10, %v3574_v14 }
 0x201   : > { %v3662_v58 = vpop.f32.mrf.mxu0 }
 0x202   : > { %v3663_v54 = vadd.f32 %v3662_v58, %v3566_v57  ;;  %v3828_v16 = vmul.f32 %v3671_v60, %v3671_v60  ;;  %v4700_v58 = vadd.f32 %v6257_v36, %v6256_v6  ;;  %v6259_v57 = vld [vmem:[#allocation21_spill] sm:$0xff]  ;;  %v6269_v6 = vld [vmem:[#allocation22_spill] sm:$0xff] }
 0x203   : > { %v4748_v52 = vpop.f32.mrf.mxu0 }
 0x204   : > { %v3674_v7 = vadd.f32 %v4748_v52, %v3577_v46  ;;  %v3826_v13 = vmul.f32 %v3663_v54, %v3663_v54  ;;  %v6260_v46 = vld [vmem:[#allocation23_spill] sm:$0xff]  ;;  %v3590_v52 = vadd.f32 %v4685_v11, %v3493_v29  ;;  %v4642_v29 = vadd.f32 %v6265_v20, %v6264_v31 }
 0x205   : > { %v3665_v22 = vpop.f32.mrf.mxu0  ;;  %v6127_v10 = vpop.f32.mrf.mxu1  ;;  %v4645_v19 = vadd.f32 %v6260_v46, %v6259_v57 }
 0x206   : > { %v4409_v0 = vpack.c.bf16 %v3674_v7, %v3671_v60  ;;  %v3666_v12 = vadd.f32 %v3665_v22, %v3569_v38  ;;  %v3829_v27 = vmul.f32 %v3674_v7, %v3674_v7  ;;  %v3606_v38 = vadd.f32 %v4697_v50, %v3509_v9 }
 0x207   : > { %v4708_v49 = vpop.f32.mrf.mxu1 }
 0x208   : > { %4450 = vst [vmem:[%s6129_s18 + $0x8] sm:$0xff] %v4409_v0   ;;  %v4404_v51 = vpack.c.bf16 %v3666_v12, %v3663_v54  ;;  %v3805_v28 = vadd.f32 %v3666_v12, %v3663_v54  ;;  %v3827_v40 = vmul.f32 %v3666_v12, %v3666_v12  ;;  %v3593_v54 = vadd.f32 %v4688_v21, %v3496_v35  ;;  %v6261_v0 = vld [vmem:[#allocation24_spill] sm:$0xff] }
 0x209   : > { %v4710_v62 = vpop.f32.mrf.mxu1  ;;  %v4648_v12 = vadd.f32 %v6109_v44, %v6261_v0  ;;  %v4709_v33 = vadd.f32 %v4708_v49, %v6127_v10  ;;  %v4703_v10 = vadd.f32 %v6107_v42, %v6269_v6  ;;  %v4706_v49 = vadd.f32 %v6118_v48, %v6113_v5 }
 0x20a   : > { %4405 = vst [vmem:[%s6129_s18] sm:$0xff] %v4404_v51   ;;  %v3806_v15 = vadd.f32 %v3805_v28, %v3671_v60  ;;  %v3842_v23 = vadd.f32 %v3827_v40, %v3826_v13  ;;  %v4639_v13 = vadd.f32 %v6263_v43, %v6262_v53  ;;  %v3609_v51 = vadd.f32 %v4700_v58, %v3512_v30 }
 0x20b   : > { %v4711_v41 = vpop.f32.mrf.mxu1 }
 0x20c   : > { %v3843_v32 = vadd.f32 %v3842_v23, %v3828_v16  ;;  %v3807_v2 = vadd.f32 %v3806_v15, %v3674_v7  ;;  %v4751_v47 = vpop.f32.mrf.mxu0  ;;  %v3585_v7 = vadd.f32 %v4682_v61, %v3488_v24  ;;  %v3525_v16 = vadd.f32 %v4645_v19, %v6266_v3 }
 0x20d   : > { %v4755_v18 = vpop.f32.mrf.mxu1  ;;  %v3687_v61 = vadd.f32 %v4751_v47, %v3590_v52  ;;  %v4712_v21 = vadd.f32 %v4711_v41, %v4710_v62  ;;  %v3517_v50 = vadd.f32 %v4639_v13, %v6268_v34  ;;  %v6270_v62 = vld [vmem:[#allocation8_spill] sm:$0xff] }
 0x20e   : > { %v3844_v14 = vadd.f32 %v3843_v32, %v3829_v27  ;;  %v3678_v4 = vpop.f32.mrf.mxu0  ;;  %v3703_v11 = vadd.f32 %v4755_v18, %v3606_v38  ;;  %v6267_v27 = vld [vmem:[#allocation10_spill] sm:$0xff]  ;;  %v3520_v41 = vadd.f32 %v4642_v29, %v6270_v62 }
 0x20f   : > { %v3679_v60 = vadd.f32 %v3678_v4, %v3582_v45  ;;  %v3694_v22 = vpop.f32.mrf.mxu1  ;;  %v3528_v32 = vadd.f32 %v4648_v12, %v6267_v27  ;;  %v3832_v26 = vmul.f32 %v3687_v61, %v3687_v61  ;;  %v3614_v52 = vadd.f32 %v4703_v10, %v3517_v50  ;;  %v3901_v6 = vld [vmem:[%s6129_s18 + $0x8] sm:$0xff] (%p5062_p4)  }
 0x210   : > { %v4752_v63 = vpop.f32.mrf.mxu0  ;;  %v3695_v37 = vadd.f32 %v3694_v22, %v3598_v56  ;;  %v3617_v48 = vadd.f32 %v4706_v49, %v3520_v41  ;;  %v3836_v43 = vmul.f32 %v3703_v11, %v3703_v11  ;;  %3902 = vst [vmem:[%s3880_s10 + $0x8] sm:$0xff] (%p5062_p4), %v3901_v6  }
 0x211   : > { %v3808_v28 = vadd.f32 %v3807_v2, %v3679_v60  ;;  %v3830_v40 = vmul.f32 %v3679_v60, %v3679_v60  ;;  %v4756_v24 = vpop.f32.mrf.mxu1  ;;  %v3690_v15 = vadd.f32 %v4752_v63, %v3593_v54  ;;  %v3625_v57 = vadd.f32 %v4712_v21, %v3528_v32 }
 0x212   : > { %v3681_v23 = vpop.f32.mrf.mxu0  ;;  %v3706_v44 = vadd.f32 %v4756_v24, %v3609_v51 }
 0x213   : > { %v3845_v35 = vadd.f32 %v3844_v14, %v3830_v40  ;;  %v3682_v55 = vadd.f32 %v3681_v23, %v3585_v7  ;;  %v3697_v2 = vpop.f32.mrf.mxu1  ;;  %v4419_v17 = vpack.c.bf16 %v3690_v15, %v3687_v61  ;;  %v3622_v14 = vadd.f32 %v4709_v33, %v3525_v16 }
 0x214   : > { %v4429_v59 = vpack.c.bf16 %v3706_v44, %v3703_v11  ;;  %v3698_v8 = vadd.f32 %v3697_v2, %v3601_v1  ;;  %v3833_v19 = vmul.f32 %v3690_v15, %v3690_v15 }
 0x215   : > { %v4414_v25 = vpack.c.bf16 %v3682_v55, %v3679_v60  ;;  %v4759_v39 = vpop.f32.mrf.mxu1  ;;  %4452 = vst [vmem:[%s6129_s18 + $0x18] sm:$0xff] %v4419_v17   ;;  %v3809_v9 = vadd.f32 %v3808_v28, %v3682_v55  ;;  %v3831_v47 = vmul.f32 %v3682_v55, %v3682_v55  ;;  %v3834_v60 = vmul.f32 %v3695_v37, %v3695_v37 }
 0x216   : > { %4454 = vst [vmem:[%s6129_s18 + $0x28] sm:$0xff] %v4429_v59   ;;  %v4424_v36 = vpack.c.bf16 %v3698_v8, %v3695_v37  ;;  %v3719_v4 = vadd.f32 %v4759_v39, %v3622_v14  ;;  %v3835_v12 = vmul.f32 %v3698_v8, %v3698_v8  ;;  %v3837_v28 = vmul.f32 %v3706_v44, %v3706_v44 }
 0x217   : > { %4451 = vst [vmem:[%s6129_s18 + $0x10] sm:$0xff] %v4414_v25   ;;  %v3710_v58 = vpop.f32.mrf.mxu1  ;;  %v3810_v30 = vadd.f32 %v3809_v9, %v3687_v61  ;;  %v3846_v45 = vadd.f32 %v3845_v35, %v3831_v47  ;;  %v3897_v47 = vld [vmem:[%s6129_s18] sm:$0xff] (%p5062_p4)  }
 0x218   : > { %4453 = vst [vmem:[%s6129_s18 + $0x20] sm:$0xff] %v4424_v36   ;;  %v3711_v56 = vadd.f32 %v3710_v58, %v3614_v52  ;;  %3898 = vst [vmem:[%s3880_s10] sm:$0xff] (%p5062_p4), %v3897_v47  }
 0x219   : > { %v4760_v46 = vpop.f32.mrf.mxu1  ;;  %v3811_v18 = vadd.f32 %v3810_v30, %v3690_v15  ;;  %v3847_v42 = vadd.f32 %v3846_v45, %v3832_v26  ;;  %v3840_v15 = vmul.f32 %v3719_v4, %v3719_v4 }
 0x21a   : > { %v3722_v5 = vadd.f32 %v4760_v46, %v3625_v57  ;;  %v3838_v20 = vmul.f32 %v3711_v56, %v3711_v56 }
 0x21b   : > { %v3713_v54 = vpop.f32.mrf.mxu1  ;;  %v3812_v7 = vadd.f32 %v3811_v18, %v3695_v37  ;;  %v3848_v38 = vadd.f32 %v3847_v42, %v3833_v19 }
 0x21c   : > { %v4439_v22 = vpack.c.bf16 %v3722_v5, %v3719_v4  ;;  %v3714_v0 = vadd.f32 %v3713_v54, %v3617_v48  ;;  %v3841_v55 = vmul.f32 %v3722_v5, %v3722_v5  ;;  %v3909_v49 = vld [vmem:[%s6129_s18 + $0x18] sm:$0xff] (%p5062_p4)  }
 0x21d   : > { %v3813_v1 = vadd.f32 %v3812_v7, %v3698_v8  ;;  %v3849_v63 = vadd.f32 %v3848_v38, %v3834_v60  ;;  %v3917_v41 = vld [vmem:[%s6129_s18 + $0x28] sm:$0xff] (%p5062_p4)   ;;  %3910 = vst [vmem:[%s3880_s10 + $0x18] sm:$0xff] (%p5062_p4), %v3909_v49  }
 0x21e   : > { %4456 = vst [vmem:[%s6129_s18 + $0x38] sm:$0xff] %v4439_v22   ;;  %v4434_v53 = vpack.c.bf16 %v3714_v0, %v3711_v56  ;;  %v3839_v16 = vmul.f32 %v3714_v0, %v3714_v0  ;;  %v3905_v10 = vld [vmem:[%s6129_s18 + $0x10] sm:$0xff] (%p5062_p4)   ;;  %3918 = vst [vmem:[%s3880_s10 + $0x88] sm:$0xff] (%p5062_p4), %v3917_v41  }
 0x21f   : > { %v3814_v13 = vadd.f32 %v3813_v1, %v3703_v11  ;;  %v3850_v51 = vadd.f32 %v3849_v63, %v3835_v12  ;;  %3906 = vst [vmem:[%s3880_s10 + $0x10] sm:$0xff] (%p5062_p4), %v3905_v10   ;;  %v3913_v62 = vld [vmem:[%s6129_s18 + $0x20] sm:$0xff] (%p5062_p4)  }
 0x220   : > { %4455 = vst [vmem:[%s6129_s18 + $0x30] sm:$0xff] %v4434_v53   ;;  %3914 = vst [vmem:[%s3880_s10 + $0x80] sm:$0xff] (%p5062_p4), %v3913_v62  }
 0x221   : > { %v3815_v40 = vadd.f32 %v3814_v13, %v3706_v44  ;;  %v3851_v31 = vadd.f32 %v3850_v51, %v3836_v43 }
 0x223   : > { %v3816_v29 = vadd.f32 %v3815_v40, %v3711_v56  ;;  %v3852_v3 = vadd.f32 %v3851_v31, %v3837_v28 }
 0x225   : > { %v3817_v24 = vadd.f32 %v3816_v29, %v3714_v0  ;;  %v3853_v61 = vadd.f32 %v3852_v3, %v3838_v20  ;;  %v3925_v58 = vld [vmem:[%s6129_s18 + $0x38] sm:$0xff] (%p5062_p4)  }
 0x226   : > { %3926 = vst [vmem:[%s3880_s10 + $0x98] sm:$0xff] (%p5062_p4), %v3925_v58  }
 0x227   : > { %v3818_v23 = vadd.f32 %v3817_v24, %v3719_v4  ;;  %v3854_v35 = vadd.f32 %v3853_v61, %v3839_v16  ;;  %v3921_v36 = vld [vmem:[%s6129_s18 + $0x30] sm:$0xff] (%p5062_p4)  }
 0x228   : > { %3922 = vst [vmem:[%s3880_s10 + $0x90] sm:$0xff] (%p5062_p4), %v3921_v36  }
 0x229   : > { %v3819_v33 = vadd.f32 %v3818_v23, %v3722_v5  ;;  %v3855_v21 = vadd.f32 %v3854_v35, %v3840_v15 }
 0x22b   : > { %v3820_v11 = vrot.slane %v3819_v33, 4  ;;  %v3856_v27 = vadd.f32 %v3855_v21, %v3841_v55 }
 0x22d   : > { %v3821_v32 = vadd.f32 %v3820_v11, %v3819_v33  ;;  %v3857_v44 = vrot.slane %v3856_v27, 4 }
 0x22f   : > { %v3822_v2 = vrot.slane %v3821_v32, 2  ;;  %v3858_v17 = vadd.f32 %v3857_v44, %v3856_v27 }
 0x231   : > { %v3823_v37 = vadd.f32 %v3822_v2, %v3821_v32  ;;  %v3859_v59 = vrot.slane %v3858_v17, 2 }
 0x233   : > { %v3824_v8 = vrot.slane %v3823_v37, 1  ;;  %v3860_v25 = vadd.f32 %v3859_v59, %v3858_v17 }
 0x235   : > { %v3861_v34 = vrot.slane %v3860_v25, 1  ;;  %v3825_v50 = vadd.f32 %v3824_v8, %v3823_v37 }
 0x236   : > { %3876 = sbr.rel (!%p5062_p4) target bundleno = 571 (0x23b), region = 40 }
 0x237   : > { %v3862_v39 = vadd.f32 %v3861_v34, %v3860_v25 }
 0x239   : > { %v3864_v9 = vsel %vm535_vm3, %v3825_v50, %v3862_v39 }
 0x23a   : > { %3865 = vst [vmem:[%s210_s7] sm:$0x3] %v3864_v9 }
 0x23b PF: > { %p13_p9 = scmp.ge.s32.totalorder %s5050_s22, 6   ;;  %s6271_s18 = smov %s4999_s19 }
 0x23c   : > { %s6272_s19 = smov %s5058_s25  ;;  %s6273_s20 = smov %s5050_s22 }
 0x23d   :  { %15 = sbr.rel (!%p13_p9) target bundleno = 2 (0x2), region = 122 }

</bundles_post_ra>
